<compile_context>
chip_gen: v7x
topology: tpu7x:2x2x1
jax: 0.10.0
libtpu: 0.0.40
codegen_flags: <defaults>
</compile_context>

<pallas_src>
import jax
import jax.numpy as jnp
from jax.experimental import pallas as pl
from jax.experimental.pallas import tpu as pltpu


TK = 512  # K-slab rows for the streamed layers (1 MiB / 0.5 MiB bf16 slabs)

# Padded (K, N) per layer: fc6 out 64->128, fc7 in 64->128 and out 6->128.
DIMS = [(2048, 1024), (1024, 1024), (1024, 512),
        (512, 256), (256, 128), (128, 128), (128, 128)]
N_STREAMED = 3            # fc1..fc3 streamed from HBM
WS_COLS = 256             # packed small-weight slab column width (fc4..fc7)
WS_ROW_OFFS = [0, 512, 768, 896]   # K offsets of fc4..fc7 inside the packed slab

BIAS_OFFS = []
_off = 0
for (_, _n) in DIMS:
    BIAS_OFFS.append(_off)
    _off += _n
BIAS_TOT = _off           # 3200


# ----------------------------------------------------------------------------
# Fused kernel
# ----------------------------------------------------------------------------
def _mlp_fused_kernel(x_ref, w1_hbm, w2_hbm, w3_hbm, ws_ref, b_ref, o_ref,
                      buf1, buf2, buf3, sem1, sem2, sem3):

    def slab_copies(w_hbm, buf, sem):
        k_total = w_hbm.shape[0]
        return [
            pltpu.make_async_copy(w_hbm.at[pl.ds(s * TK, TK)],
                                  buf.at[s % 2], sem.at[s % 2])
            for s in range(k_total // TK)
        ]

    def stream_matmul(h, copies, buf, next_prime):
        """x @ W with W streamed from HBM in K-slabs, double-buffered.

        copies[0] must already have been started by the caller."""
        ns = len(copies)
        acc = None
        for s in range(ns):            # tiny static trip count -> unrolled
            if s + 1 < ns:
                copies[s + 1].start()                      # prefetch next slab
            elif next_prime is not None:
                next_prime.start()                         # prime next layer
            copies[s].wait()
            part = jnp.dot(h[:, s * TK:(s + 1) * TK], buf[s % 2],
                           preferred_element_type=jnp.float32)
            acc = part if acc is None else acc + part
        return acc

    def bias(i):
        return b_ref[:, pl.ds(BIAS_OFFS[i], DIMS[i][1])]   # (1, N_i) f32

    c1 = slab_copies(w1_hbm, buf1, sem1)
    c2 = slab_copies(w2_hbm, buf2, sem2)
    c3 = slab_copies(w3_hbm, buf3, sem3)
    c1[0].start()

    h = x_ref[...]                                          # (Bp, 2048) bf16

    # fc1 .. fc3 : HBM-streamed weights (BN folded), ReLU epilogue
    a = stream_matmul(h, c1, buf1, next_prime=c2[0])
    h = jnp.maximum(a + bias(0), 0.0).astype(jnp.bfloat16)
    a = stream_matmul(h, c2, buf2, next_prime=c3[0])
    h = jnp.maximum(a + bias(1), 0.0).astype(jnp.bfloat16)
    a = stream_matmul(h, c3, buf3, next_prime=None)
    h = jnp.maximum(a + bias(2), 0.0).astype(jnp.bfloat16)

    # fc4 .. fc7 : small resident weights, one packed VMEM slab
    a = None
    for i in range(3, 7):
        k_i, n_i = DIMS[i]
        w = ws_ref[pl.ds(WS_ROW_OFFS[i - 3], k_i), pl.ds(0, n_i)]
        a = jnp.dot(h, w, preferred_element_type=jnp.float32) + bias(i)
        if i < 6:                                           # fc7 has no ReLU
            h = jnp.maximum(a, 0.0).astype(jnp.bfloat16)

    o_ref[...] = a                                          # (Bp, 128) f32


# ----------------------------------------------------------------------------
# Wrapper
# ----------------------------------------------------------------------------
def mlp_forward(x, params, *, out_channel=6):
    """x: (B, C, L) with C*L == 2048  ->  (B, out_channel) f32."""
    w_big, w_small, b_all = params
    B = x.shape[0]
    x2 = x.reshape(B, -1).astype(jnp.bfloat16)              # x.view(B, -1)
    assert x2.shape[1] == DIMS[0][0]

    Bp = ((B + 15) // 16) * 16                  # full bf16 sublane tiles
    if Bp != B:
        x2 = jnp.pad(x2, ((0, Bp - B), (0, 0)))

    vmem = pl.BlockSpec(memory_space=pltpu.MemorySpace.VMEM)
    hbm = pl.BlockSpec(memory_space=pl.ANY)

    flops = 2 * Bp * sum(k * n for (k, n) in DIMS)
    bytes_accessed = (
        int(x2.size) * 2
        + sum(int(w.size) * 2 for w in w_big)
        + int(w_small.size) * 2
        + int(b_all.size) * 4
        + Bp * 128 * 4
    )

    out_padded = pl.pallas_call(
        _mlp_fused_kernel,
        out_shape=jax.ShapeDtypeStruct((Bp, 128), jnp.float32),
        in_specs=[vmem, hbm, hbm, hbm, vmem, vmem],
        out_specs=vmem,
        scratch_shapes=[
            pltpu.VMEM((2, TK, 1024), jnp.bfloat16),   # fc1 slab double buffer
            pltpu.VMEM((2, TK, 1024), jnp.bfloat16),   # fc2 slab double buffer
            pltpu.VMEM((2, TK, 512), jnp.bfloat16),    # fc3 slab double buffer
            pltpu.SemaphoreType.DMA((2,)),
            pltpu.SemaphoreType.DMA((2,)),
            pltpu.SemaphoreType.DMA((2,)),
        ],
        compiler_params=pltpu.CompilerParams(
            vmem_limit_bytes=32 * 1024 * 1024,
        ),
        cost_estimate=pl.CostEstimate(
            flops=flops, transcendentals=0, bytes_accessed=bytes_accessed
        ),
    )(x2, w_big[0], w_big[1], w_big[2], w_small, b_all)

    return out_padded[:B, :out_channel]


# ----------------------------------------------------------------------------
# Deterministic parameter construction (PyTorch default inits, BN folded)
# ----------------------------------------------------------------------------
def _init_linear(key, fan_in, fan_out):
    # nn.Linear default: U(-1/sqrt(fan_in), 1/sqrt(fan_in)); stored (K_in, N_out).
    kw, kb = jax.random.split(key)
    bound = 1.0 / (fan_in ** 0.5)
    w = jax.random.uniform(kw, (fan_in, fan_out), jnp.float32, -bound, bound)
    b = jax.random.uniform(kb, (fan_out,), jnp.float32, -bound, bound)
    return w, b


def _bn_fold(w, b, n):
    # Eval-mode BN: gamma=1, beta=0, running_mean=0, running_var=1, eps=1e-5.
    eps = 1e-5
    scale = 1.0 / jnp.sqrt(jnp.ones((n,), jnp.float32) + eps)
    shift = jnp.zeros((n,), jnp.float32)
    return w * scale[None, :], b * scale + shift


def build_mlp_params(key, out_channel=6):
    logical = [(2048, 1024), (1024, 1024), (1024, 512),
               (512, 256), (256, 128), (128, 64), (64, out_channel)]
    keys = jax.random.split(key, len(logical))
    ws, bs = [], []
    for i, (k, (fi, fo)) in enumerate(zip(keys, logical)):
        w, b = _init_linear(k, fi, fo)
        if i < len(logical) - 1:                     # fc1..fc6 carry BN
            w, b = _bn_fold(w, b, fo)
        kp, np_ = DIMS[i]                            # padded dims (zeros)
        w = jnp.pad(w, ((0, kp - fi), (0, np_ - fo)))
        b = jnp.pad(b, ((0, np_ - fo),))
        ws.append(w.astype(jnp.bfloat16))
        bs.append(b.astype(jnp.float32))

    w_big = tuple(ws[:N_STREAMED])                   # fc1..fc3, streamed

    slabs = []                                       # fc4..fc7 packed slab
    for i in range(N_STREAMED, 7):
        w = ws[i]
        slabs.append(jnp.pad(w, ((0, 0), (0, WS_COLS - w.shape[1]))))
    w_small = jnp.concatenate(slabs, axis=0)         # (1024, 256) bf16

    b_all = jnp.concatenate(bs, axis=0).reshape(1, -1)   # (1, 3200) f32
    assert b_all.shape[1] == BIAS_TOT
    return w_big, w_small, b_all


if __name__ == "__main__":
    key = jax.random.PRNGKey(0)
    kparams, kx = jax.random.split(key)

    out_channel = 6
    params = build_mlp_params(kparams, out_channel=out_channel)

    # Input: (batch=2, in_channel=4, length=512) -> flattened 2048 features
    x = jax.random.normal(kx, (2, 4, 512), dtype=jnp.float32)

    out = mlp_forward(x, params, out_channel=out_channel)
    jax.block_until_ready(out)

    assert out.shape == (2, out_channel), out.shape
    assert jnp.isfinite(out).all()
    print("KERNEL_OK")
</pallas_src>

<mosaic_0001>
module attributes {stable_mosaic.version = 11 : i64} {
  func.func @_mlp_fused_kernel(%arg0: memref<16x2048xbf16, #tpu.memory_space<vmem>>, %arg1: memref<2048x1024xbf16, #tpu.memory_space<any>>, %arg2: memref<1024x1024xbf16, #tpu.memory_space<any>>, %arg3: memref<1024x512xbf16, #tpu.memory_space<any>>, %arg4: memref<1024x256xbf16, #tpu.memory_space<vmem>>, %arg5: memref<1x3200xf32, #tpu.memory_space<vmem>>, %arg6: memref<16x128xf32, #tpu.memory_space<vmem>>, %arg7: memref<2x512x1024xbf16, #tpu.memory_space<vmem>>, %arg8: memref<2x512x1024xbf16, #tpu.memory_space<vmem>>, %arg9: memref<2x512x512xbf16, #tpu.memory_space<vmem>>, %arg10: memref<2x!tpu.dma_semaphore, #tpu.memory_space<semaphore_mem>>, %arg11: memref<2x!tpu.dma_semaphore, #tpu.memory_space<semaphore_mem>>, %arg12: memref<2x!tpu.dma_semaphore, #tpu.memory_space<semaphore_mem>>) attributes {dimension_semantics = [], scalar_prefetch = 0 : i64, scratch_operands = 6 : i64, tpu.core_type = #tpu.core_type<tc>} {
    %c0_i32 = arith.constant 0 : i32
    %c0_i32_0 = arith.constant 0 : i32
    %c0_i32_1 = arith.constant 0 : i32
    %c0_i32_2 = arith.constant 0 : i32
    %0 = tpu.memref_slice %arg1[%c0_i32_1, %c0_i32_2] : memref<2048x1024xbf16, #tpu.memory_space<any>> -> memref<512x1024xbf16, #tpu.memory_space<any>>
    %c0_i32_3 = arith.constant 0 : i32
    %c0_i32_4 = arith.constant 0 : i32
    %1 = tpu.memref_slice %arg7[%c0_i32, %c0_i32_3, %c0_i32_4] : memref<2x512x1024xbf16, #tpu.memory_space<vmem>> -> memref<1x512x1024xbf16, #tpu.memory_space<vmem>>
    %2 = tpu.memref_squeeze %1 : memref<1x512x1024xbf16, #tpu.memory_space<vmem>> -> memref<512x1024xbf16, #tpu.memory_space<vmem>>
    %3 = tpu.memref_slice %arg10[%c0_i32_0] : memref<2x!tpu.dma_semaphore, #tpu.memory_space<semaphore_mem>> -> memref<1x!tpu.dma_semaphore, #tpu.memory_space<semaphore_mem>>
    %4 = tpu.memref_squeeze %3 : memref<1x!tpu.dma_semaphore, #tpu.memory_space<semaphore_mem>> -> memref<!tpu.dma_semaphore, #tpu.memory_space<semaphore_mem>>
    tpu.enqueue_dma source(%0 : memref<512x1024xbf16, #tpu.memory_space<any>>) target(%2 : memref<512x1024xbf16, #tpu.memory_space<vmem>>) target_semaphore(%4 : memref<!tpu.dma_semaphore, #tpu.memory_space<semaphore_mem>>)
    %c0 = arith.constant 0 : index
    %c0_5 = arith.constant 0 : index
    %5 = vector.load %arg0[%c0, %c0_5] : memref<16x2048xbf16, #tpu.memory_space<vmem>>, vector<16x2048xbf16>
    %c1_i32 = arith.constant 1 : i32
    %c1_i32_6 = arith.constant 1 : i32
    %c512_i32 = arith.constant 512 : i32
    %c0_i32_7 = arith.constant 0 : i32
    %6 = tpu.memref_slice %arg1[%c512_i32, %c0_i32_7] : memref<2048x1024xbf16, #tpu.memory_space<any>> -> memref<512x1024xbf16, #tpu.memory_space<any>>
    %c0_i32_8 = arith.constant 0 : i32
    %c0_i32_9 = arith.constant 0 : i32
    %7 = tpu.memref_slice %arg7[%c1_i32, %c0_i32_8, %c0_i32_9] : memref<2x512x1024xbf16, #tpu.memory_space<vmem>> -> memref<1x512x1024xbf16, #tpu.memory_space<vmem>>
    %8 = tpu.memref_squeeze %7 : memref<1x512x1024xbf16, #tpu.memory_space<vmem>> -> memref<512x1024xbf16, #tpu.memory_space<vmem>>
    %9 = tpu.memref_slice %arg10[%c1_i32_6] : memref<2x!tpu.dma_semaphore, #tpu.memory_space<semaphore_mem>> -> memref<1x!tpu.dma_semaphore, #tpu.memory_space<semaphore_mem>>
    %10 = tpu.memref_squeeze %9 : memref<1x!tpu.dma_semaphore, #tpu.memory_space<semaphore_mem>> -> memref<!tpu.dma_semaphore, #tpu.memory_space<semaphore_mem>>
    tpu.enqueue_dma source(%6 : memref<512x1024xbf16, #tpu.memory_space<any>>) target(%8 : memref<512x1024xbf16, #tpu.memory_space<vmem>>) target_semaphore(%10 : memref<!tpu.dma_semaphore, #tpu.memory_space<semaphore_mem>>)
    %c0_i32_10 = arith.constant 0 : i32
    %c0_i32_11 = arith.constant 0 : i32
    %c0_i32_12 = arith.constant 0 : i32
    %c0_i32_13 = arith.constant 0 : i32
    %11 = tpu.memref_slice %arg1[%c0_i32_12, %c0_i32_13] : memref<2048x1024xbf16, #tpu.memory_space<any>> -> memref<512x1024xbf16, #tpu.memory_space<any>>
    %c0_i32_14 = arith.constant 0 : i32
    %c0_i32_15 = arith.constant 0 : i32
    %12 = tpu.memref_slice %arg7[%c0_i32_10, %c0_i32_14, %c0_i32_15] : memref<2x512x1024xbf16, #tpu.memory_space<vmem>> -> memref<1x512x1024xbf16, #tpu.memory_space<vmem>>
    %13 = tpu.memref_squeeze %12 : memref<1x512x1024xbf16, #tpu.memory_space<vmem>> -> memref<512x1024xbf16, #tpu.memory_space<vmem>>
    %14 = tpu.memref_slice %arg10[%c0_i32_11] : memref<2x!tpu.dma_semaphore, #tpu.memory_space<semaphore_mem>> -> memref<1x!tpu.dma_semaphore, #tpu.memory_space<semaphore_mem>>
    %15 = tpu.memref_squeeze %14 : memref<1x!tpu.dma_semaphore, #tpu.memory_space<semaphore_mem>> -> memref<!tpu.dma_semaphore, #tpu.memory_space<semaphore_mem>>
    tpu.wait_dma2 semaphore(%15 : memref<!tpu.dma_semaphore, #tpu.memory_space<semaphore_mem>>) src(%11 : memref<512x1024xbf16, #tpu.memory_space<any>>) dst(%13 : memref<512x1024xbf16, #tpu.memory_space<vmem>>)
    %16 = vector.extract_strided_slice %5 {offsets = [0, 0], sizes = [16, 512], strides = [1, 1]} : vector<16x2048xbf16> to vector<16x512xbf16>
    %c0_16 = arith.constant 0 : index
    %c0_17 = arith.constant 0 : index
    %c0_18 = arith.constant 0 : index
    %17 = vector.load %arg7[%c0_16, %c0_17, %c0_18] : memref<2x512x1024xbf16, #tpu.memory_space<vmem>>, vector<1x512x1024xbf16>
    %18 = vector.shape_cast %17 : vector<1x512x1024xbf16> to vector<512x1024xbf16>
    %cst = arith.constant dense<0.000000e+00> : vector<16x1024xf32>
    %19 = tpu.matmul %16, %18, %cst {dimension_numbers = #tpu.dot_dimension_numbers<[1], [0], [0], [1], [0, 0, 1, 1], [], []>} : vector<16x512xbf16>, vector<512x1024xbf16>, vector<16x1024xf32> -> vector<16x1024xf32>
    %c0_i32_19 = arith.constant 0 : i32
    %c0_i32_20 = arith.constant 0 : i32
    %c1024_i32 = arith.constant 1024 : i32
    %c0_i32_21 = arith.constant 0 : i32
    %20 = tpu.memref_slice %arg1[%c1024_i32, %c0_i32_21] : memref<2048x1024xbf16, #tpu.memory_space<any>> -> memref<512x1024xbf16, #tpu.memory_space<any>>
    %c0_i32_22 = arith.constant 0 : i32
    %c0_i32_23 = arith.constant 0 : i32
    %21 = tpu.memref_slice %arg7[%c0_i32_19, %c0_i32_22, %c0_i32_23] : memref<2x512x1024xbf16, #tpu.memory_space<vmem>> -> memref<1x512x1024xbf16, #tpu.memory_space<vmem>>
    %22 = tpu.memref_squeeze %21 : memref<1x512x1024xbf16, #tpu.memory_space<vmem>> -> memref<512x1024xbf16, #tpu.memory_space<vmem>>
    %23 = tpu.memref_slice %arg10[%c0_i32_20] : memref<2x!tpu.dma_semaphore, #tpu.memory_space<semaphore_mem>> -> memref<1x!tpu.dma_semaphore, #tpu.memory_space<semaphore_mem>>
    %24 = tpu.memref_squeeze %23 : memref<1x!tpu.dma_semaphore, #tpu.memory_space<semaphore_mem>> -> memref<!tpu.dma_semaphore, #tpu.memory_space<semaphore_mem>>
    tpu.enqueue_dma source(%20 : memref<512x1024xbf16, #tpu.memory_space<any>>) target(%22 : memref<512x1024xbf16, #tpu.memory_space<vmem>>) target_semaphore(%24 : memref<!tpu.dma_semaphore, #tpu.memory_space<semaphore_mem>>)
    %c1_i32_24 = arith.constant 1 : i32
    %c1_i32_25 = arith.constant 1 : i32
    %c512_i32_26 = arith.constant 512 : i32
    %c0_i32_27 = arith.constant 0 : i32
    %25 = tpu.memref_slice %arg1[%c512_i32_26, %c0_i32_27] : memref<2048x1024xbf16, #tpu.memory_space<any>> -> memref<512x1024xbf16, #tpu.memory_space<any>>
    %c0_i32_28 = arith.constant 0 : i32
    %c0_i32_29 = arith.constant 0 : i32
    %26 = tpu.memref_slice %arg7[%c1_i32_24, %c0_i32_28, %c0_i32_29] : memref<2x512x1024xbf16, #tpu.memory_space<vmem>> -> memref<1x512x1024xbf16, #tpu.memory_space<vmem>>
    %27 = tpu.memref_squeeze %26 : memref<1x512x1024xbf16, #tpu.memory_space<vmem>> -> memref<512x1024xbf16, #tpu.memory_space<vmem>>
    %28 = tpu.memref_slice %arg10[%c1_i32_25] : memref<2x!tpu.dma_semaphore, #tpu.memory_space<semaphore_mem>> -> memref<1x!tpu.dma_semaphore, #tpu.memory_space<semaphore_mem>>
    %29 = tpu.memref_squeeze %28 : memref<1x!tpu.dma_semaphore, #tpu.memory_space<semaphore_mem>> -> memref<!tpu.dma_semaphore, #tpu.memory_space<semaphore_mem>>
    tpu.wait_dma2 semaphore(%29 : memref<!tpu.dma_semaphore, #tpu.memory_space<semaphore_mem>>) src(%25 : memref<512x1024xbf16, #tpu.memory_space<any>>) dst(%27 : memref<512x1024xbf16, #tpu.memory_space<vmem>>)
    %30 = vector.extract_strided_slice %5 {offsets = [0, 512], sizes = [16, 512], strides = [1, 1]} : vector<16x2048xbf16> to vector<16x512xbf16>
    %c1 = arith.constant 1 : index
    %c0_30 = arith.constant 0 : index
    %c0_31 = arith.constant 0 : index
    %31 = vector.load %arg7[%c1, %c0_30, %c0_31] : memref<2x512x1024xbf16, #tpu.memory_space<vmem>>, vector<1x512x1024xbf16>
    %32 = vector.shape_cast %31 : vector<1x512x1024xbf16> to vector<512x1024xbf16>
    %cst_32 = arith.constant dense<0.000000e+00> : vector<16x1024xf32>
    %33 = tpu.matmul %30, %32, %cst_32 {dimension_numbers = #tpu.dot_dimension_numbers<[1], [0], [0], [1], [0, 0, 1, 1], [], []>} : vector<16x512xbf16>, vector<512x1024xbf16>, vector<16x1024xf32> -> vector<16x1024xf32>
    %34 = arith.addf %19, %33 : vector<16x1024xf32>
    %c1_i32_33 = arith.constant 1 : i32
    %c1_i32_34 = arith.constant 1 : i32
    %c1536_i32 = arith.constant 1536 : i32
    %c0_i32_35 = arith.constant 0 : i32
    %35 = tpu.memref_slice %arg1[%c1536_i32, %c0_i32_35] : memref<2048x1024xbf16, #tpu.memory_space<any>> -> memref<512x1024xbf16, #tpu.memory_space<any>>
    %c0_i32_36 = arith.constant 0 : i32
    %c0_i32_37 = arith.constant 0 : i32
    %36 = tpu.memref_slice %arg7[%c1_i32_33, %c0_i32_36, %c0_i32_37] : memref<2x512x1024xbf16, #tpu.memory_space<vmem>> -> memref<1x512x1024xbf16, #tpu.memory_space<vmem>>
    %37 = tpu.memref_squeeze %36 : memref<1x512x1024xbf16, #tpu.memory_space<vmem>> -> memref<512x1024xbf16, #tpu.memory_space<vmem>>
    %38 = tpu.memref_slice %arg10[%c1_i32_34] : memref<2x!tpu.dma_semaphore, #tpu.memory_space<semaphore_mem>> -> memref<1x!tpu.dma_semaphore, #tpu.memory_space<semaphore_mem>>
    %39 = tpu.memref_squeeze %38 : memref<1x!tpu.dma_semaphore, #tpu.memory_space<semaphore_mem>> -> memref<!tpu.dma_semaphore, #tpu.memory_space<semaphore_mem>>
    tpu.enqueue_dma source(%35 : memref<512x1024xbf16, #tpu.memory_space<any>>) target(%37 : memref<512x1024xbf16, #tpu.memory_space<vmem>>) target_semaphore(%39 : memref<!tpu.dma_semaphore, #tpu.memory_space<semaphore_mem>>)
    %c0_i32_38 = arith.constant 0 : i32
    %c0_i32_39 = arith.constant 0 : i32
    %c1024_i32_40 = arith.constant 1024 : i32
    %c0_i32_41 = arith.constant 0 : i32
    %40 = tpu.memref_slice %arg1[%c1024_i32_40, %c0_i32_41] : memref<2048x1024xbf16, #tpu.memory_space<any>> -> memref<512x1024xbf16, #tpu.memory_space<any>>
    %c0_i32_42 = arith.constant 0 : i32
    %c0_i32_43 = arith.constant 0 : i32
    %41 = tpu.memref_slice %arg7[%c0_i32_38, %c0_i32_42, %c0_i32_43] : memref<2x512x1024xbf16, #tpu.memory_space<vmem>> -> memref<1x512x1024xbf16, #tpu.memory_space<vmem>>
    %42 = tpu.memref_squeeze %41 : memref<1x512x1024xbf16, #tpu.memory_space<vmem>> -> memref<512x1024xbf16, #tpu.memory_space<vmem>>
    %43 = tpu.memref_slice %arg10[%c0_i32_39] : memref<2x!tpu.dma_semaphore, #tpu.memory_space<semaphore_mem>> -> memref<1x!tpu.dma_semaphore, #tpu.memory_space<semaphore_mem>>
    %44 = tpu.memref_squeeze %43 : memref<1x!tpu.dma_semaphore, #tpu.memory_space<semaphore_mem>> -> memref<!tpu.dma_semaphore, #tpu.memory_space<semaphore_mem>>
    tpu.wait_dma2 semaphore(%44 : memref<!tpu.dma_semaphore, #tpu.memory_space<semaphore_mem>>) src(%40 : memref<512x1024xbf16, #tpu.memory_space<any>>) dst(%42 : memref<512x1024xbf16, #tpu.memory_space<vmem>>)
    %45 = vector.extract_strided_slice %5 {offsets = [0, 1024], sizes = [16, 512], strides = [1, 1]} : vector<16x2048xbf16> to vector<16x512xbf16>
    %c0_44 = arith.constant 0 : index
    %c0_45 = arith.constant 0 : index
    %c0_46 = arith.constant 0 : index
    %46 = vector.load %arg7[%c0_44, %c0_45, %c0_46] : memref<2x512x1024xbf16, #tpu.memory_space<vmem>>, vector<1x512x1024xbf16>
    %47 = vector.shape_cast %46 : vector<1x512x1024xbf16> to vector<512x1024xbf16>
    %cst_47 = arith.constant dense<0.000000e+00> : vector<16x1024xf32>
    %48 = tpu.matmul %45, %47, %cst_47 {dimension_numbers = #tpu.dot_dimension_numbers<[1], [0], [0], [1], [0, 0, 1, 1], [], []>} : vector<16x512xbf16>, vector<512x1024xbf16>, vector<16x1024xf32> -> vector<16x1024xf32>
    %49 = arith.addf %34, %48 : vector<16x1024xf32>
    %c0_i32_48 = arith.constant 0 : i32
    %c0_i32_49 = arith.constant 0 : i32
    %c0_i32_50 = arith.constant 0 : i32
    %c0_i32_51 = arith.constant 0 : i32
    %50 = tpu.memref_slice %arg2[%c0_i32_50, %c0_i32_51] : memref<1024x1024xbf16, #tpu.memory_space<any>> -> memref<512x1024xbf16, #tpu.memory_space<any>>
    %c0_i32_52 = arith.constant 0 : i32
    %c0_i32_53 = arith.constant 0 : i32
    %51 = tpu.memref_slice %arg8[%c0_i32_48, %c0_i32_52, %c0_i32_53] : memref<2x512x1024xbf16, #tpu.memory_space<vmem>> -> memref<1x512x1024xbf16, #tpu.memory_space<vmem>>
    %52 = tpu.memref_squeeze %51 : memref<1x512x1024xbf16, #tpu.memory_space<vmem>> -> memref<512x1024xbf16, #tpu.memory_space<vmem>>
    %53 = tpu.memref_slice %arg11[%c0_i32_49] : memref<2x!tpu.dma_semaphore, #tpu.memory_space<semaphore_mem>> -> memref<1x!tpu.dma_semaphore, #tpu.memory_space<semaphore_mem>>
    %54 = tpu.memref_squeeze %53 : memref<1x!tpu.dma_semaphore, #tpu.memory_space<semaphore_mem>> -> memref<!tpu.dma_semaphore, #tpu.memory_space<semaphore_mem>>
    tpu.enqueue_dma source(%50 : memref<512x1024xbf16, #tpu.memory_space<any>>) target(%52 : memref<512x1024xbf16, #tpu.memory_space<vmem>>) target_semaphore(%54 : memref<!tpu.dma_semaphore, #tpu.memory_space<semaphore_mem>>)
    %c1_i32_54 = arith.constant 1 : i32
    %c1_i32_55 = arith.constant 1 : i32
    %c1536_i32_56 = arith.constant 1536 : i32
    %c0_i32_57 = arith.constant 0 : i32
    %55 = tpu.memref_slice %arg1[%c1536_i32_56, %c0_i32_57] : memref<2048x1024xbf16, #tpu.memory_space<any>> -> memref<512x1024xbf16, #tpu.memory_space<any>>
    %c0_i32_58 = arith.constant 0 : i32
    %c0_i32_59 = arith.constant 0 : i32
    %56 = tpu.memref_slice %arg7[%c1_i32_54, %c0_i32_58, %c0_i32_59] : memref<2x512x1024xbf16, #tpu.memory_space<vmem>> -> memref<1x512x1024xbf16, #tpu.memory_space<vmem>>
    %57 = tpu.memref_squeeze %56 : memref<1x512x1024xbf16, #tpu.memory_space<vmem>> -> memref<512x1024xbf16, #tpu.memory_space<vmem>>
    %58 = tpu.memref_slice %arg10[%c1_i32_55] : memref<2x!tpu.dma_semaphore, #tpu.memory_space<semaphore_mem>> -> memref<1x!tpu.dma_semaphore, #tpu.memory_space<semaphore_mem>>
    %59 = tpu.memref_squeeze %58 : memref<1x!tpu.dma_semaphore, #tpu.memory_space<semaphore_mem>> -> memref<!tpu.dma_semaphore, #tpu.memory_space<semaphore_mem>>
    tpu.wait_dma2 semaphore(%59 : memref<!tpu.dma_semaphore, #tpu.memory_space<semaphore_mem>>) src(%55 : memref<512x1024xbf16, #tpu.memory_space<any>>) dst(%57 : memref<512x1024xbf16, #tpu.memory_space<vmem>>)
    %60 = vector.extract_strided_slice %5 {offsets = [0, 1536], sizes = [16, 512], strides = [1, 1]} : vector<16x2048xbf16> to vector<16x512xbf16>
    %c1_60 = arith.constant 1 : index
    %c0_61 = arith.constant 0 : index
    %c0_62 = arith.constant 0 : index
    %61 = vector.load %arg7[%c1_60, %c0_61, %c0_62] : memref<2x512x1024xbf16, #tpu.memory_space<vmem>>, vector<1x512x1024xbf16>
    %62 = vector.shape_cast %61 : vector<1x512x1024xbf16> to vector<512x1024xbf16>
    %cst_63 = arith.constant dense<0.000000e+00> : vector<16x1024xf32>
    %63 = tpu.matmul %60, %62, %cst_63 {dimension_numbers = #tpu.dot_dimension_numbers<[1], [0], [0], [1], [0, 0, 1, 1], [], []>} : vector<16x512xbf16>, vector<512x1024xbf16>, vector<16x1024xf32> -> vector<16x1024xf32>
    %64 = arith.addf %49, %63 : vector<16x1024xf32>
    %c0_64 = arith.constant 0 : index
    %c0_65 = arith.constant 0 : index
    %65 = vector.load %arg5[%c0_64, %c0_65] : memref<1x3200xf32, #tpu.memory_space<vmem>>, vector<1x1024xf32>
    %66 = vector.broadcast %65 : vector<1x1024xf32> to vector<16x1024xf32>
    %67 = arith.addf %64, %66 : vector<16x1024xf32>
    %cst_66 = arith.constant 0.000000e+00 : f32
    %68 = vector.broadcast %cst_66 : f32 to vector<16x1024xf32>
    %69 = arith.maximumf %67, %68 : vector<16x1024xf32>
    %70 = arith.truncf %69 : vector<16x1024xf32> to vector<16x1024xbf16>
    %c1_i32_67 = arith.constant 1 : i32
    %c1_i32_68 = arith.constant 1 : i32
    %c512_i32_69 = arith.constant 512 : i32
    %c0_i32_70 = arith.constant 0 : i32
    %71 = tpu.memref_slice %arg2[%c512_i32_69, %c0_i32_70] : memref<1024x1024xbf16, #tpu.memory_space<any>> -> memref<512x1024xbf16, #tpu.memory_space<any>>
    %c0_i32_71 = arith.constant 0 : i32
    %c0_i32_72 = arith.constant 0 : i32
    %72 = tpu.memref_slice %arg8[%c1_i32_67, %c0_i32_71, %c0_i32_72] : memref<2x512x1024xbf16, #tpu.memory_space<vmem>> -> memref<1x512x1024xbf16, #tpu.memory_space<vmem>>
    %73 = tpu.memref_squeeze %72 : memref<1x512x1024xbf16, #tpu.memory_space<vmem>> -> memref<512x1024xbf16, #tpu.memory_space<vmem>>
    %74 = tpu.memref_slice %arg11[%c1_i32_68] : memref<2x!tpu.dma_semaphore, #tpu.memory_space<semaphore_mem>> -> memref<1x!tpu.dma_semaphore, #tpu.memory_space<semaphore_mem>>
    %75 = tpu.memref_squeeze %74 : memref<1x!tpu.dma_semaphore, #tpu.memory_space<semaphore_mem>> -> memref<!tpu.dma_semaphore, #tpu.memory_space<semaphore_mem>>
    tpu.enqueue_dma source(%71 : memref<512x1024xbf16, #tpu.memory_space<any>>) target(%73 : memref<512x1024xbf16, #tpu.memory_space<vmem>>) target_semaphore(%75 : memref<!tpu.dma_semaphore, #tpu.memory_space<semaphore_mem>>)
    %c0_i32_73 = arith.constant 0 : i32
    %c0_i32_74 = arith.constant 0 : i32
    %c0_i32_75 = arith.constant 0 : i32
    %c0_i32_76 = arith.constant 0 : i32
    %76 = tpu.memref_slice %arg2[%c0_i32_75, %c0_i32_76] : memref<1024x1024xbf16, #tpu.memory_space<any>> -> memref<512x1024xbf16, #tpu.memory_space<any>>
    %c0_i32_77 = arith.constant 0 : i32
    %c0_i32_78 = arith.constant 0 : i32
    %77 = tpu.memref_slice %arg8[%c0_i32_73, %c0_i32_77, %c0_i32_78] : memref<2x512x1024xbf16, #tpu.memory_space<vmem>> -> memref<1x512x1024xbf16, #tpu.memory_space<vmem>>
    %78 = tpu.memref_squeeze %77 : memref<1x512x1024xbf16, #tpu.memory_space<vmem>> -> memref<512x1024xbf16, #tpu.memory_space<vmem>>
    %79 = tpu.memref_slice %arg11[%c0_i32_74] : memref<2x!tpu.dma_semaphore, #tpu.memory_space<semaphore_mem>> -> memref<1x!tpu.dma_semaphore, #tpu.memory_space<semaphore_mem>>
    %80 = tpu.memref_squeeze %79 : memref<1x!tpu.dma_semaphore, #tpu.memory_space<semaphore_mem>> -> memref<!tpu.dma_semaphore, #tpu.memory_space<semaphore_mem>>
    tpu.wait_dma2 semaphore(%80 : memref<!tpu.dma_semaphore, #tpu.memory_space<semaphore_mem>>) src(%76 : memref<512x1024xbf16, #tpu.memory_space<any>>) dst(%78 : memref<512x1024xbf16, #tpu.memory_space<vmem>>)
    %81 = vector.extract_strided_slice %70 {offsets = [0, 0], sizes = [16, 512], strides = [1, 1]} : vector<16x1024xbf16> to vector<16x512xbf16>
    %c0_79 = arith.constant 0 : index
    %c0_80 = arith.constant 0 : index
    %c0_81 = arith.constant 0 : index
    %82 = vector.load %arg8[%c0_79, %c0_80, %c0_81] : memref<2x512x1024xbf16, #tpu.memory_space<vmem>>, vector<1x512x1024xbf16>
    %83 = vector.shape_cast %82 : vector<1x512x1024xbf16> to vector<512x1024xbf16>
    %cst_82 = arith.constant dense<0.000000e+00> : vector<16x1024xf32>
    %84 = tpu.matmul %81, %83, %cst_82 {dimension_numbers = #tpu.dot_dimension_numbers<[1], [0], [0], [1], [0, 0, 1, 1], [], []>} : vector<16x512xbf16>, vector<512x1024xbf16>, vector<16x1024xf32> -> vector<16x1024xf32>
    %c0_i32_83 = arith.constant 0 : i32
    %c0_i32_84 = arith.constant 0 : i32
    %c0_i32_85 = arith.constant 0 : i32
    %c0_i32_86 = arith.constant 0 : i32
    %85 = tpu.memref_slice %arg3[%c0_i32_85, %c0_i32_86] : memref<1024x512xbf16, #tpu.memory_space<any>> -> memref<512x512xbf16, #tpu.memory_space<any>>
    %c0_i32_87 = arith.constant 0 : i32
    %c0_i32_88 = arith.constant 0 : i32
    %86 = tpu.memref_slice %arg9[%c0_i32_83, %c0_i32_87, %c0_i32_88] : memref<2x512x512xbf16, #tpu.memory_space<vmem>> -> memref<1x512x512xbf16, #tpu.memory_space<vmem>>
    %87 = tpu.memref_squeeze %86 : memref<1x512x512xbf16, #tpu.memory_space<vmem>> -> memref<512x512xbf16, #tpu.memory_space<vmem>>
    %88 = tpu.memref_slice %arg12[%c0_i32_84] : memref<2x!tpu.dma_semaphore, #tpu.memory_space<semaphore_mem>> -> memref<1x!tpu.dma_semaphore, #tpu.memory_space<semaphore_mem>>
    %89 = tpu.memref_squeeze %88 : memref<1x!tpu.dma_semaphore, #tpu.memory_space<semaphore_mem>> -> memref<!tpu.dma_semaphore, #tpu.memory_space<semaphore_mem>>
    tpu.enqueue_dma source(%85 : memref<512x512xbf16, #tpu.memory_space<any>>) target(%87 : memref<512x512xbf16, #tpu.memory_space<vmem>>) target_semaphore(%89 : memref<!tpu.dma_semaphore, #tpu.memory_space<semaphore_mem>>)
    %c1_i32_89 = arith.constant 1 : i32
    %c1_i32_90 = arith.constant 1 : i32
    %c512_i32_91 = arith.constant 512 : i32
    %c0_i32_92 = arith.constant 0 : i32
    %90 = tpu.memref_slice %arg2[%c512_i32_91, %c0_i32_92] : memref<1024x1024xbf16, #tpu.memory_space<any>> -> memref<512x1024xbf16, #tpu.memory_space<any>>
    %c0_i32_93 = arith.constant 0 : i32
    %c0_i32_94 = arith.constant 0 : i32
    %91 = tpu.memref_slice %arg8[%c1_i32_89, %c0_i32_93, %c0_i32_94] : memref<2x512x1024xbf16, #tpu.memory_space<vmem>> -> memref<1x512x1024xbf16, #tpu.memory_space<vmem>>
    %92 = tpu.memref_squeeze %91 : memref<1x512x1024xbf16, #tpu.memory_space<vmem>> -> memref<512x1024xbf16, #tpu.memory_space<vmem>>
    %93 = tpu.memref_slice %arg11[%c1_i32_90] : memref<2x!tpu.dma_semaphore, #tpu.memory_space<semaphore_mem>> -> memref<1x!tpu.dma_semaphore, #tpu.memory_space<semaphore_mem>>
    %94 = tpu.memref_squeeze %93 : memref<1x!tpu.dma_semaphore, #tpu.memory_space<semaphore_mem>> -> memref<!tpu.dma_semaphore, #tpu.memory_space<semaphore_mem>>
    tpu.wait_dma2 semaphore(%94 : memref<!tpu.dma_semaphore, #tpu.memory_space<semaphore_mem>>) src(%90 : memref<512x1024xbf16, #tpu.memory_space<any>>) dst(%92 : memref<512x1024xbf16, #tpu.memory_space<vmem>>)
    %95 = vector.extract_strided_slice %70 {offsets = [0, 512], sizes = [16, 512], strides = [1, 1]} : vector<16x1024xbf16> to vector<16x512xbf16>
    %c1_95 = arith.constant 1 : index
    %c0_96 = arith.constant 0 : index
    %c0_97 = arith.constant 0 : index
    %96 = vector.load %arg8[%c1_95, %c0_96, %c0_97] : memref<2x512x1024xbf16, #tpu.memory_space<vmem>>, vector<1x512x1024xbf16>
    %97 = vector.shape_cast %96 : vector<1x512x1024xbf16> to vector<512x1024xbf16>
    %cst_98 = arith.constant dense<0.000000e+00> : vector<16x1024xf32>
    %98 = tpu.matmul %95, %97, %cst_98 {dimension_numbers = #tpu.dot_dimension_numbers<[1], [0], [0], [1], [0, 0, 1, 1], [], []>} : vector<16x512xbf16>, vector<512x1024xbf16>, vector<16x1024xf32> -> vector<16x1024xf32>
    %99 = arith.addf %84, %98 : vector<16x1024xf32>
    %c0_99 = arith.constant 0 : index
    %c1024 = arith.constant 1024 : index
    %100 = vector.load %arg5[%c0_99, %c1024] : memref<1x3200xf32, #tpu.memory_space<vmem>>, vector<1x1024xf32>
    %101 = vector.broadcast %100 : vector<1x1024xf32> to vector<16x1024xf32>
    %102 = arith.addf %99, %101 : vector<16x1024xf32>
    %cst_100 = arith.constant 0.000000e+00 : f32
    %103 = vector.broadcast %cst_100 : f32 to vector<16x1024xf32>
    %104 = arith.maximumf %102, %103 : vector<16x1024xf32>
    %105 = arith.truncf %104 : vector<16x1024xf32> to vector<16x1024xbf16>
    %c1_i32_101 = arith.constant 1 : i32
    %c1_i32_102 = arith.constant 1 : i32
    %c512_i32_103 = arith.constant 512 : i32
    %c0_i32_104 = arith.constant 0 : i32
    %106 = tpu.memref_slice %arg3[%c512_i32_103, %c0_i32_104] : memref<1024x512xbf16, #tpu.memory_space<any>> -> memref<512x512xbf16, #tpu.memory_space<any>>
    %c0_i32_105 = arith.constant 0 : i32
    %c0_i32_106 = arith.constant 0 : i32
    %107 = tpu.memref_slice %arg9[%c1_i32_101, %c0_i32_105, %c0_i32_106] : memref<2x512x512xbf16, #tpu.memory_space<vmem>> -> memref<1x512x512xbf16, #tpu.memory_space<vmem>>
    %108 = tpu.memref_squeeze %107 : memref<1x512x512xbf16, #tpu.memory_space<vmem>> -> memref<512x512xbf16, #tpu.memory_space<vmem>>
    %109 = tpu.memref_slice %arg12[%c1_i32_102] : memref<2x!tpu.dma_semaphore, #tpu.memory_space<semaphore_mem>> -> memref<1x!tpu.dma_semaphore, #tpu.memory_space<semaphore_mem>>
    %110 = tpu.memref_squeeze %109 : memref<1x!tpu.dma_semaphore, #tpu.memory_space<semaphore_mem>> -> memref<!tpu.dma_semaphore, #tpu.memory_space<semaphore_mem>>
    tpu.enqueue_dma source(%106 : memref<512x512xbf16, #tpu.memory_space<any>>) target(%108 : memref<512x512xbf16, #tpu.memory_space<vmem>>) target_semaphore(%110 : memref<!tpu.dma_semaphore, #tpu.memory_space<semaphore_mem>>)
    %c0_i32_107 = arith.constant 0 : i32
    %c0_i32_108 = arith.constant 0 : i32
    %c0_i32_109 = arith.constant 0 : i32
    %c0_i32_110 = arith.constant 0 : i32
    %111 = tpu.memref_slice %arg3[%c0_i32_109, %c0_i32_110] : memref<1024x512xbf16, #tpu.memory_space<any>> -> memref<512x512xbf16, #tpu.memory_space<any>>
    %c0_i32_111 = arith.constant 0 : i32
    %c0_i32_112 = arith.constant 0 : i32
    %112 = tpu.memref_slice %arg9[%c0_i32_107, %c0_i32_111, %c0_i32_112] : memref<2x512x512xbf16, #tpu.memory_space<vmem>> -> memref<1x512x512xbf16, #tpu.memory_space<vmem>>
    %113 = tpu.memref_squeeze %112 : memref<1x512x512xbf16, #tpu.memory_space<vmem>> -> memref<512x512xbf16, #tpu.memory_space<vmem>>
    %114 = tpu.memref_slice %arg12[%c0_i32_108] : memref<2x!tpu.dma_semaphore, #tpu.memory_space<semaphore_mem>> -> memref<1x!tpu.dma_semaphore, #tpu.memory_space<semaphore_mem>>
    %115 = tpu.memref_squeeze %114 : memref<1x!tpu.dma_semaphore, #tpu.memory_space<semaphore_mem>> -> memref<!tpu.dma_semaphore, #tpu.memory_space<semaphore_mem>>
    tpu.wait_dma2 semaphore(%115 : memref<!tpu.dma_semaphore, #tpu.memory_space<semaphore_mem>>) src(%111 : memref<512x512xbf16, #tpu.memory_space<any>>) dst(%113 : memref<512x512xbf16, #tpu.memory_space<vmem>>)
    %116 = vector.extract_strided_slice %105 {offsets = [0, 0], sizes = [16, 512], strides = [1, 1]} : vector<16x1024xbf16> to vector<16x512xbf16>
    %c0_113 = arith.constant 0 : index
    %c0_114 = arith.constant 0 : index
    %c0_115 = arith.constant 0 : index
    %117 = vector.load %arg9[%c0_113, %c0_114, %c0_115] : memref<2x512x512xbf16, #tpu.memory_space<vmem>>, vector<1x512x512xbf16>
    %118 = vector.shape_cast %117 : vector<1x512x512xbf16> to vector<512x512xbf16>
    %cst_116 = arith.constant dense<0.000000e+00> : vector<16x512xf32>
    %119 = tpu.matmul %116, %118, %cst_116 {dimension_numbers = #tpu.dot_dimension_numbers<[1], [0], [0], [1], [0, 0, 1, 1], [], []>} : vector<16x512xbf16>, vector<512x512xbf16>, vector<16x512xf32> -> vector<16x512xf32>
    %c1_i32_117 = arith.constant 1 : i32
    %c1_i32_118 = arith.constant 1 : i32
    %c512_i32_119 = arith.constant 512 : i32
    %c0_i32_120 = arith.constant 0 : i32
    %120 = tpu.memref_slice %arg3[%c512_i32_119, %c0_i32_120] : memref<1024x512xbf16, #tpu.memory_space<any>> -> memref<512x512xbf16, #tpu.memory_space<any>>
    %c0_i32_121 = arith.constant 0 : i32
    %c0_i32_122 = arith.constant 0 : i32
    %121 = tpu.memref_slice %arg9[%c1_i32_117, %c0_i32_121, %c0_i32_122] : memref<2x512x512xbf16, #tpu.memory_space<vmem>> -> memref<1x512x512xbf16, #tpu.memory_space<vmem>>
    %122 = tpu.memref_squeeze %121 : memref<1x512x512xbf16, #tpu.memory_space<vmem>> -> memref<512x512xbf16, #tpu.memory_space<vmem>>
    %123 = tpu.memref_slice %arg12[%c1_i32_118] : memref<2x!tpu.dma_semaphore, #tpu.memory_space<semaphore_mem>> -> memref<1x!tpu.dma_semaphore, #tpu.memory_space<semaphore_mem>>
    %124 = tpu.memref_squeeze %123 : memref<1x!tpu.dma_semaphore, #tpu.memory_space<semaphore_mem>> -> memref<!tpu.dma_semaphore, #tpu.memory_space<semaphore_mem>>
    tpu.wait_dma2 semaphore(%124 : memref<!tpu.dma_semaphore, #tpu.memory_space<semaphore_mem>>) src(%120 : memref<512x512xbf16, #tpu.memory_space<any>>) dst(%122 : memref<512x512xbf16, #tpu.memory_space<vmem>>)
    %125 = vector.extract_strided_slice %105 {offsets = [0, 512], sizes = [16, 512], strides = [1, 1]} : vector<16x1024xbf16> to vector<16x512xbf16>
    %c1_123 = arith.constant 1 : index
    %c0_124 = arith.constant 0 : index
    %c0_125 = arith.constant 0 : index
    %126 = vector.load %arg9[%c1_123, %c0_124, %c0_125] : memref<2x512x512xbf16, #tpu.memory_space<vmem>>, vector<1x512x512xbf16>
    %127 = vector.shape_cast %126 : vector<1x512x512xbf16> to vector<512x512xbf16>
    %cst_126 = arith.constant dense<0.000000e+00> : vector<16x512xf32>
    %128 = tpu.matmul %125, %127, %cst_126 {dimension_numbers = #tpu.dot_dimension_numbers<[1], [0], [0], [1], [0, 0, 1, 1], [], []>} : vector<16x512xbf16>, vector<512x512xbf16>, vector<16x512xf32> -> vector<16x512xf32>
    %129 = arith.addf %119, %128 : vector<16x512xf32>
    %c0_127 = arith.constant 0 : index
    %c2048 = arith.constant 2048 : index
    %130 = vector.load %arg5[%c0_127, %c2048] : memref<1x3200xf32, #tpu.memory_space<vmem>>, vector<1x512xf32>
    %131 = vector.broadcast %130 : vector<1x512xf32> to vector<16x512xf32>
    %132 = arith.addf %129, %131 : vector<16x512xf32>
    %cst_128 = arith.constant 0.000000e+00 : f32
    %133 = vector.broadcast %cst_128 : f32 to vector<16x512xf32>
    %134 = arith.maximumf %132, %133 : vector<16x512xf32>
    %135 = arith.truncf %134 : vector<16x512xf32> to vector<16x512xbf16>
    %c0_129 = arith.constant 0 : index
    %c0_130 = arith.constant 0 : index
    %136 = vector.load %arg4[%c0_129, %c0_130] : memref<1024x256xbf16, #tpu.memory_space<vmem>>, vector<512x256xbf16>
    %cst_131 = arith.constant dense<0.000000e+00> : vector<16x256xf32>
    %137 = tpu.matmul %135, %136, %cst_131 {dimension_numbers = #tpu.dot_dimension_numbers<[1], [0], [0], [1], [0, 0, 1, 1], [], []>} : vector<16x512xbf16>, vector<512x256xbf16>, vector<16x256xf32> -> vector<16x256xf32>
    %c0_132 = arith.constant 0 : index
    %c2560 = arith.constant 2560 : index
    %138 = vector.load %arg5[%c0_132, %c2560] : memref<1x3200xf32, #tpu.memory_space<vmem>>, vector<1x256xf32>
    %139 = vector.broadcast %138 : vector<1x256xf32> to vector<16x256xf32>
    %140 = arith.addf %137, %139 : vector<16x256xf32>
    %cst_133 = arith.constant 0.000000e+00 : f32
    %141 = vector.broadcast %cst_133 : f32 to vector<16x256xf32>
    %142 = arith.maximumf %140, %141 : vector<16x256xf32>
    %143 = arith.truncf %142 : vector<16x256xf32> to vector<16x256xbf16>
    %c512 = arith.constant 512 : index
    %c0_134 = arith.constant 0 : index
    %144 = vector.load %arg4[%c512, %c0_134] : memref<1024x256xbf16, #tpu.memory_space<vmem>>, vector<256x128xbf16>
    %cst_135 = arith.constant dense<0.000000e+00> : vector<16x128xf32>
    %145 = tpu.matmul %143, %144, %cst_135 {dimension_numbers = #tpu.dot_dimension_numbers<[1], [0], [0], [1], [0, 0, 1, 1], [], []>} : vector<16x256xbf16>, vector<256x128xbf16>, vector<16x128xf32> -> vector<16x128xf32>
    %c0_136 = arith.constant 0 : index
    %c2816 = arith.constant 2816 : index
    %146 = vector.load %arg5[%c0_136, %c2816] : memref<1x3200xf32, #tpu.memory_space<vmem>>, vector<1x128xf32>
    %147 = vector.broadcast %146 : vector<1x128xf32> to vector<16x128xf32>
    %148 = arith.addf %145, %147 : vector<16x128xf32>
    %cst_137 = arith.constant 0.000000e+00 : f32
    %149 = vector.broadcast %cst_137 : f32 to vector<16x128xf32>
    %150 = arith.maximumf %148, %149 : vector<16x128xf32>
    %151 = arith.truncf %150 : vector<16x128xf32> to vector<16x128xbf16>
    %c768 = arith.constant 768 : index
    %c0_138 = arith.constant 0 : index
    %152 = vector.load %arg4[%c768, %c0_138] : memref<1024x256xbf16, #tpu.memory_space<vmem>>, vector<128x128xbf16>
    %cst_139 = arith.constant dense<0.000000e+00> : vector<16x128xf32>
    %153 = tpu.matmul %151, %152, %cst_139 {dimension_numbers = #tpu.dot_dimension_numbers<[1], [0], [0], [1], [0, 0, 1, 1], [], []>} : vector<16x128xbf16>, vector<128x128xbf16>, vector<16x128xf32> -> vector<16x128xf32>
    %c0_140 = arith.constant 0 : index
    %c2944 = arith.constant 2944 : index
    %154 = vector.load %arg5[%c0_140, %c2944] : memref<1x3200xf32, #tpu.memory_space<vmem>>, vector<1x128xf32>
    %155 = vector.broadcast %154 : vector<1x128xf32> to vector<16x128xf32>
    %156 = arith.addf %153, %155 : vector<16x128xf32>
    %cst_141 = arith.constant 0.000000e+00 : f32
    %157 = vector.broadcast %cst_141 : f32 to vector<16x128xf32>
    %158 = arith.maximumf %156, %157 : vector<16x128xf32>
    %159 = arith.truncf %158 : vector<16x128xf32> to vector<16x128xbf16>
    %c896 = arith.constant 896 : index
    %c0_142 = arith.constant 0 : index
    %160 = vector.load %arg4[%c896, %c0_142] : memref<1024x256xbf16, #tpu.memory_space<vmem>>, vector<128x128xbf16>
    %cst_143 = arith.constant dense<0.000000e+00> : vector<16x128xf32>
    %161 = tpu.matmul %159, %160, %cst_143 {dimension_numbers = #tpu.dot_dimension_numbers<[1], [0], [0], [1], [0, 0, 1, 1], [], []>} : vector<16x128xbf16>, vector<128x128xbf16>, vector<16x128xf32> -> vector<16x128xf32>
    %c0_144 = arith.constant 0 : index
    %c3072 = arith.constant 3072 : index
    %162 = vector.load %arg5[%c0_144, %c3072] : memref<1x3200xf32, #tpu.memory_space<vmem>>, vector<1x128xf32>
    %163 = vector.broadcast %162 : vector<1x128xf32> to vector<16x128xf32>
    %164 = arith.addf %161, %163 : vector<16x128xf32>
    %c0_145 = arith.constant 0 : index
    %c0_146 = arith.constant 0 : index
    %165 = vector.load %arg6[%c0_145, %c0_146] : memref<16x128xf32, #tpu.memory_space<vmem>>, vector<16x128xf32>
    tpu.vector_store %arg6[%c0_145, %c0_146], %164 {strides = array<i32>} : memref<16x128xf32, #tpu.memory_space<vmem>>, vector<16x128xf32>,
    return
  }
}

</mosaic_0001>

<bundles_post_ra>
// kernel: tpu_custom_call.1
= control target key start
LH: loop header
LB: loop body
LE: loop exit
PB: predicated region body
PF: predicated region fallthrough
CT: control target
= control target key end

     0   :  { %11 = vsyncpa [#allocation9], 0  ;;  %s9388_s0 = inlined_call_operand.hbm [shape: bf16[16,2048], index: 0, kind: input, shape index: {}]   ;;  %s9389_s1 = inlined_call_operand.hbm [shape: bf16[2048,1024], index: 1, kind: input, shape index: {}]   ;;  %s9390_s2 = inlined_call_operand.hbm [shape: bf16[1024,1024], index: 2, kind: input, shape index: {}]   ;;  %s9391_s3 = inlined_call_operand.hbm [shape: bf16[1024,512], index: 3, kind: input, shape index: {}]   ;;  %s9392_s4 = inlined_call_operand.hbm [shape: bf16[1024,256], index: 4, kind: input, shape index: {}]   ;;  %s9393_s5 = inlined_call_operand.hbm [shape: f32[1,3200], index: 5, kind: input, shape index: {}]   ;;  %s9394_s6 = inlined_call_operand.hbm [shape: f32[16,128], index: 6, kind: output, shape index: {}]  }
   0x1   :  { %12 = vsyncpa [#allocation12], 0 }
   0x2   :  { %13 = vsyncpa [#allocation10], 0  ;;  %s6529_s21 = smov [#allocation11]   ;;  %s6419_s25 = scalar_lea.hbm %s9392_s4, 16384 }
   0x3   :  { %s31_s22 = sshll.u32 %s6529_s21, 4  ;;  %p6420_p0 = scmp.ne.s32.totalorder %s9392_s4, %s6419_s25  ;;  %s32_s22 = int_to_ptr.vmem [resolvable:$true] %s31_s22 }
   0x4   :  { %p6423_p1 = scmp.lt.u32.totalorder %s6419_s25, %s9392_s4 }
   0x6   :  { %p6425_p2 = pnand %p6423_p1, %p6420_p0 }
   0x8   :  { %6428 = shalt.err (!%p6425_p2)
}
   0x9   :  { %s6429_s30 = scalar_lea.vmem %s32_s22, 16384  ;;  %p6434_p4 = scmp.lt.s32.totalorder %s32_s22, %s32_s22 }
   0xa   :  { %p6430_p3 = scmp.ne.s32.totalorder %s32_s22, %s6429_s30  ;;  %p6435_p5 = scmp.lt.s32.totalorder %s6429_s30, %s6429_s30 }
   0xc   :  { %p6436_p6 = por %p6435_p5, %p6434_p4 }
   0xe   :  { %p6437_p7 = pnand %p6436_p6, %p6430_p3 }
  0x10   :  { %6440 = shalt.err (!%p6437_p7)
}
  0x11   :  { %s6530_s7 = smov 128   ;;  %s6531_s8 = smov 8  }
  0x12   :  { %37 = dma.hbm_to_vmem [thread:$0]  %s9392_s4, 16384, %s32_s22, [#allocation12], %s6530_s7, %s6530_s7, %s6531_s8  }
  0x13   :  { %s6532_s11 = smov [#allocation8]   ;;  %s6441_s15 = scalar_lea.hbm %s9388_s0, 2048 }
  0x14   :  { %s19_s12 = sshll.u32 %s6532_s11, 4  ;;  %p6442_p8 = scmp.ne.s32.totalorder %s9388_s0, %s6441_s15  ;;  %s20_s12 = int_to_ptr.vmem [resolvable:$true] %s19_s12 }
  0x15   :  { %p6445_p9 = scmp.lt.u32.totalorder %s6441_s15, %s9388_s0 }
  0x17   :  { %p6447_p10 = pnand %p6445_p9, %p6442_p8 }
  0x19   :  { %6450 = shalt.err (!%p6447_p10)
}
  0x1a   :  { %s6451_s20 = scalar_lea.vmem %s20_s12, 2048  ;;  %p6456_p12 = scmp.lt.s32.totalorder %s20_s12, %s20_s12 }
  0x1b   :  { %p6452_p11 = scmp.ne.s32.totalorder %s20_s12, %s6451_s20  ;;  %p6457_p13 = scmp.lt.s32.totalorder %s6451_s20, %s6451_s20 }
  0x1d   :  { %p6458_p0 = por %p6457_p13, %p6456_p12 }
  0x1f   :  { %p6459_p1 = pnand %p6458_p0, %p6452_p11 }
  0x21   :  { %6462 = shalt.err (!%p6459_p1)
}
  0x22   :  { %s6533_s4 = smov 1024   ;;  %s6534_s21 = smov 64  }
  0x23   :  { %25 = dma.hbm_to_vmem [thread:$0]  %s9388_s0, 2048, %s20_s12, [#allocation9], %s6533_s4, %s6533_s4, %s6534_s21  }
  0x24   :  { %s6535_s24 = smov [#allocation13]   ;;  %s6463_s28 = scalar_lea.hbm %s9393_s5, 400 }
  0x25   :  { %s44_s25 = sshll.u32 %s6535_s24, 4  ;;  %p6464_p2 = scmp.ne.s32.totalorder %s9393_s5, %s6463_s28  ;;  %s45_s25 = int_to_ptr.vmem [resolvable:$true] %s44_s25 }
  0x26   :  { %p6467_p3 = scmp.lt.u32.totalorder %s6463_s28, %s9393_s5 }
  0x28   :  { %p6469_p4 = pnand %p6467_p3, %p6464_p2 }
  0x2a   :  { %6472 = shalt.err (!%p6469_p4)
}
  0x2b   :  { %s6473_s11 = scalar_lea.vmem %s45_s25, 400  ;;  %s6477_s0 = scalar_lea.vmem %s45_s25, 416 }
  0x2c   :  { %p6474_p5 = scmp.ne.s32.totalorder %s45_s25, %s6473_s11  ;;  %p6478_p6 = scmp.lt.s32.totalorder %s45_s25, %s45_s25 }
  0x2d   :  { %p6479_p7 = scmp.lt.s32.totalorder %s6477_s0, %s6473_s11 }
  0x2f   :  { %p6480_p8 = por %p6479_p7, %p6478_p6 }
  0x31   :  { %p6481_p9 = pnand %p6480_p8, %p6474_p5 }
  0x33   :  { %6484 = shalt.err (!%p6481_p9)
}
  0x34   :  { %47 = dma.hbm_to_vmem [thread:$0]  %s9393_s5, 400, %s45_s25, [#allocation12]  }
  0x35   :  { %6507 = dma.done.wait [#allocation9], 2048  }
  0x36   :  { %6508 = vsyncadd [#allocation9], 4294965248 }
  0x37   :  { %6509 = dma.done.wait [#allocation12], 16784  }
  0x38   :  { %6510 = vsyncadd [#allocation12], 4294950512  ;;  %s62_s14 = sld [smem:[#allocation0]]   ;;  %74 = sst [smem:[#allocation16]] %s6533_s4 }
  0x39   :  { %76 = sst [smem:[#allocation16 + $0x1]] %s6533_s4  ;;  %s6536_s15 = smov [#allocation2]  }
  0x3a   :  { %78 = sst [smem:[#allocation16 + $0x2]] %s6531_s8  ;;  %s6644_s16 = sshll.u32 %s6536_s15, 4  ;;  %s71_s16 = int_to_ptr.vmem [resolvable:$true] %s6644_s16 }
  0x3b   :  { %80 = sst [smem:[#allocation16 + $0x3]] %s6534_s21  ;;  %s6537_s5 = smov 2  }
  0x3c   :  { %82 = sst [smem:[#allocation16 + $0x4]] %s6530_s7  ;;  %s6538_s18 = smov 512  }
  0x3d   :  { %84 = sst [smem:[#allocation16 + $0x5]] %s6537_s5  ;;  %s6539_s20 = smov 4  }
  0x3e   :  { %s5848_s17 = sshll.u32 %s62_s14, 26  ;;  %86 = sst [smem:[#allocation16 + $0x6]] %s6538_s18 }
  0x3f   :  { %s6650_s19 = sadd.s32 134217728, %s5848_s17  ;;  %88 = sst [smem:[#allocation16 + $0x7]] %s6534_s21 }
  0x40   :  { %90 = sst [smem:[#allocation16 + $0x8]] %s6539_s20  ;;  %s6540_s22 = smov [#allocation5]  }
  0x41   :  { %s6541_s23 = smov [#allocation15]   ;;  %s6542_s26 = smov [#allocation2 + $0x800]  }
  0x42   :  { %92 = dma.general %s9389_s1, 32768, %s71_s16, %s6540_s22, %s6541_s23, [#allocation16], %s6650_s19, 0  }
  0x43   :  { %127 = sst [smem:[#allocation18]] %s6533_s4  ;;  %s6667_s27 = sshll.u32 %s6542_s26, 4  ;;  %v6670_v0 = vld [vmem:[#allocation8] sm:$0xff]  ;;  %v6672_v1 = vld [vmem:[#allocation8 + $0x8] sm:$0xff]  ;;  %v6674_v2 = vld [vmem:[#allocation8 + $0x10] sm:$0xff]  ;;  %s124_s27 = int_to_ptr.vmem [resolvable:$true] %s6667_s27 }
  0x44   :  { %129 = sst [smem:[#allocation18 + $0x1]] %s6533_s4  ;;  %9429 = vst [vmem:[#allocation42_spill] sm:$0xff] %v6672_v1  ;;  %v6677_v3 = vld [vmem:[#allocation8 + $0x18] sm:$0xff]  ;;  %v6679_v4 = vld [vmem:[#allocation8 + $0x20] sm:$0xff]  ;;  %v6681_v5 = vld [vmem:[#allocation8 + $0x28] sm:$0xff]  ;;  %s109_s30 = scalar_lea.hbm %s9389_s1, 32768 }
  0x45   :  { %131 = sst [smem:[#allocation18 + $0x2]] %s6531_s8  ;;  %9430 = vst [vmem:[#allocation43_spill] sm:$0xff] %v6679_v4  ;;  %9431 = vst [vmem:[#allocation44_spill] sm:$0xff] %v6681_v5  ;;  %v6687_v6 = vld [vmem:[#allocation8 + $0x30] sm:$0xff]  ;;  %v6689_v7 = vld [vmem:[#allocation8 + $0x38] sm:$0xff]  ;;  %s6543_s9 = smov [#allocation5 + $0x1]  }
  0x46   :  { %133 = sst [smem:[#allocation18 + $0x3]] %s6534_s21  ;;  %9432 = vst [vmem:[#allocation45_spill] sm:$0xff] %v6687_v6  ;;  %9433 = vst [vmem:[#allocation46_spill] sm:$0xff] %v6689_v7  ;;  %v6691_v8 = vld [vmem:[#allocation8 + $0x40] sm:$0xff]  ;;  %v6694_v9 = vld [vmem:[#allocation8 + $0x48] sm:$0xff]  ;;  %s6544_s10 = smov [#allocation17]  }
  0x47   :  { %135 = sst [smem:[#allocation18 + $0x4]] %s6530_s7  ;;  %9434 = vst [vmem:[#allocation47_spill] sm:$0xff] %v6694_v9  ;;  %v6696_v10 = vld [vmem:[#allocation8 + $0x50] sm:$0xff]  ;;  %v6698_v11 = vld [vmem:[#allocation8 + $0x58] sm:$0xff]  ;;  %v6700_v12 = vld [vmem:[#allocation8 + $0x60] sm:$0xff] }
  0x48   :  { %137 = sst [smem:[#allocation18 + $0x5]] %s6537_s5  ;;  %9435 = vst [vmem:[#allocation48_spill] sm:$0xff] %v6700_v12  ;;  %v6702_v13 = vld [vmem:[#allocation8 + $0x68] sm:$0xff]  ;;  %v6704_v14 = vld [vmem:[#allocation8 + $0x70] sm:$0xff]  ;;  %v6706_v15 = vld [vmem:[#allocation8 + $0x78] sm:$0xff] }
  0x49   :  { %139 = sst [smem:[#allocation18 + $0x6]] %s6538_s18  ;;  %9436 = vst [vmem:[#allocation49_spill] sm:$0xff] %v6702_v13  ;;  %9437 = vst [vmem:[#allocation50_spill] sm:$0xff] %v6704_v14 }
  0x4a   :  { %141 = sst [smem:[#allocation18 + $0x7]] %s6534_s21  ;;  %9438 = vst [vmem:[#allocation51_spill] sm:$0xff] %v6706_v15 }
  0x4b   :  { %143 = sst [smem:[#allocation18 + $0x8]] %s6539_s20 }
  0x4c   :  { %145 = dma.general %s109_s30, 32768, %s124_s27, %s6543_s9, %s6544_s10, [#allocation18], %s6650_s19, 0  }
  0x4d   :  { %6511 = dma.done.wait [#allocation5], 32768 }
  0x4e   :  { %6512 = vsyncadd [#allocation5], 4294934528  ;;  %422 = sst [smem:[#allocation20]] %s6533_s4  ;;  %v6718_v16 = vld [vmem:[#allocation2] sm:$0xff]  ;;  %v6720_v17 = vld [vmem:[#allocation2 + $0x8] sm:$0xff]  ;;  %s406_s12 = scalar_lea.hbm %s9389_s1, 65536 }
  0x4f   :  { %424 = sst [smem:[#allocation20 + $0x1]] %s6533_s4  ;;  %v6722_v18 = vld [vmem:[#allocation2 + $0x10] sm:$0xff]  ;;  %v6725_v19 = vld [vmem:[#allocation2 + $0x18] sm:$0xff]  ;;  %v6727_v20 = vld [vmem:[#allocation2 + $0x20] sm:$0xff]  ;;  %s6545_s13 = smov [#allocation19]  }
  0x50   :  { %426 = sst [smem:[#allocation20 + $0x2]] %s6531_s8  ;;  %9439 = vst [vmem:[#allocation52_spill] sm:$0xff] %v6727_v20  ;;  %v6729_v21 = vld [vmem:[#allocation2 + $0x28] sm:$0xff]  ;;  %v6732_v22 = vld [vmem:[#allocation2 + $0x30] sm:$0xff]  ;;  %v6734_v23 = vld [vmem:[#allocation2 + $0x38] sm:$0xff] }
  0x51   :  { %428 = sst [smem:[#allocation20 + $0x3]] %s6534_s21  ;;  %9440 = vst [vmem:[#allocation53_spill] sm:$0xff] %v6729_v21  ;;  %9441 = vst [vmem:[#allocation54_spill] sm:$0xff] %v6732_v22  ;;  %v6736_v24 = vld [vmem:[#allocation2 + $0x40] sm:$0xff]  ;;  %v6739_v25 = vld [vmem:[#allocation2 + $0x48] sm:$0xff] }
  0x52   :  { %430 = sst [smem:[#allocation20 + $0x4]] %s6530_s7  ;;  %9442 = vst [vmem:[#allocation55_spill] sm:$0xff] %v6734_v23  ;;  %v6741_v26 = vld [vmem:[#allocation2 + $0x50] sm:$0xff]  ;;  %v6743_v27 = vld [vmem:[#allocation2 + $0x58] sm:$0xff]  ;;  %v6745_v28 = vld [vmem:[#allocation2 + $0x60] sm:$0xff] }
  0x53   :  { %432 = sst [smem:[#allocation20 + $0x5]] %s6537_s5  ;;  %9443 = vst [vmem:[#allocation56_spill] sm:$0xff] %v6745_v28  ;;  %v6747_v29 = vld [vmem:[#allocation2 + $0x68] sm:$0xff]  ;;  %v6749_v30 = vld [vmem:[#allocation2 + $0x70] sm:$0xff]  ;;  %v6751_v31 = vld [vmem:[#allocation2 + $0x78] sm:$0xff] }
  0x54   :  { %434 = sst [smem:[#allocation20 + $0x6]] %s6538_s18  ;;  %9444 = vst [vmem:[#allocation57_spill] sm:$0xff] %v6747_v29  ;;  %9445 = vst [vmem:[#allocation58_spill] sm:$0xff] %v6749_v30  ;;  %v6753_v32 = vld [vmem:[#allocation2 + $0x80] sm:$0xff]  ;;  %v6755_v33 = vld [vmem:[#allocation2 + $0x88] sm:$0xff] }
  0x55   :  { %436 = sst [smem:[#allocation20 + $0x7]] %s6534_s21  ;;  %9446 = vst [vmem:[#allocation59_spill] sm:$0xff] %v6751_v31  ;;  %v6757_v34 = vld [vmem:[#allocation2 + $0x90] sm:$0xff]  ;;  %v6759_v35 = vld [vmem:[#allocation2 + $0x98] sm:$0xff]  ;;  %v6761_v36 = vld [vmem:[#allocation2 + $0xa0] sm:$0xff] }
  0x56   :  { %438 = sst [smem:[#allocation20 + $0x8]] %s6539_s20  ;;  %9447 = vst [vmem:[#allocation60_spill] sm:$0xff] %v6761_v36  ;;  %v6763_v37 = vld [vmem:[#allocation2 + $0xa8] sm:$0xff]  ;;  %v6765_v38 = vld [vmem:[#allocation2 + $0xb0] sm:$0xff]  ;;  %v6767_v39 = vld [vmem:[#allocation2 + $0xb8] sm:$0xff] }
  0x57   :  { %9448 = vst [vmem:[#allocation61_spill] sm:$0xff] %v6763_v37  ;;  %9449 = vst [vmem:[#allocation62_spill] sm:$0xff] %v6765_v38  ;;  %v6769_v40 = vld [vmem:[#allocation2 + $0xc0] sm:$0xff]  ;;  %v6771_v41 = vld [vmem:[#allocation2 + $0xc8] sm:$0xff] }
  0x58   :  { %9450 = vst [vmem:[#allocation63_spill] sm:$0xff] %v6767_v39  ;;  %v6773_v42 = vld [vmem:[#allocation2 + $0xd0] sm:$0xff]  ;;  %v6775_v43 = vld [vmem:[#allocation2 + $0xd8] sm:$0xff]  ;;  %v6777_v44 = vld [vmem:[#allocation2 + $0xe0] sm:$0xff] }
  0x59   :  { %9451 = vst [vmem:[#allocation64_spill] sm:$0xff] %v6777_v44  ;;  %v6779_v45 = vld [vmem:[#allocation2 + $0xe8] sm:$0xff]  ;;  %v6781_v46 = vld [vmem:[#allocation2 + $0xf0] sm:$0xff]  ;;  %v6783_v47 = vld [vmem:[#allocation2 + $0xf8] sm:$0xff] }
  0x5a   :  { %9452 = vst [vmem:[#allocation65_spill] sm:$0xff] %v6779_v45  ;;  %9453 = vst [vmem:[#allocation66_spill] sm:$0xff] %v6781_v46  ;;  %v6785_v48 = vld [vmem:[#allocation2 + $0x100] sm:$0xff]  ;;  %v6787_v49 = vld [vmem:[#allocation2 + $0x108] sm:$0xff] }
  0x5b   :  { %9454 = vst [vmem:[#allocation67_spill] sm:$0xff] %v6783_v47  ;;  %v6789_v50 = vld [vmem:[#allocation2 + $0x110] sm:$0xff]  ;;  %v6791_v51 = vld [vmem:[#allocation2 + $0x118] sm:$0xff]  ;;  %v6793_v52 = vld [vmem:[#allocation2 + $0x120] sm:$0xff] }
  0x5c   :  { %9455 = vst [vmem:[#allocation68_spill] sm:$0xff] %v6793_v52  ;;  %v6795_v53 = vld [vmem:[#allocation2 + $0x128] sm:$0xff]  ;;  %v6797_v54 = vld [vmem:[#allocation2 + $0x130] sm:$0xff]  ;;  %v6799_v55 = vld [vmem:[#allocation2 + $0x138] sm:$0xff] }
  0x5d   :  { %9456 = vst [vmem:[#allocation69_spill] sm:$0xff] %v6795_v53  ;;  %9457 = vst [vmem:[#allocation70_spill] sm:$0xff] %v6797_v54  ;;  %v6801_v56 = vld [vmem:[#allocation2 + $0x140] sm:$0xff]  ;;  %v6803_v57 = vld [vmem:[#allocation2 + $0x148] sm:$0xff] }
  0x5e   :  { %9458 = vst [vmem:[#allocation71_spill] sm:$0xff] %v6799_v55  ;;  %v6805_v58 = vld [vmem:[#allocation2 + $0x150] sm:$0xff]  ;;  %v6807_v59 = vld [vmem:[#allocation2 + $0x158] sm:$0xff]  ;;  %v6809_v60 = vld [vmem:[#allocation2 + $0x160] sm:$0xff] }
  0x5f   :  { %9459 = vst [vmem:[#allocation72_spill] sm:$0xff] %v6809_v60  ;;  %v6811_v61 = vld [vmem:[#allocation2 + $0x168] sm:$0xff]  ;;  %v6813_v62 = vld [vmem:[#allocation2 + $0x170] sm:$0xff]  ;;  %v6815_v63 = vld [vmem:[#allocation2 + $0x178] sm:$0xff] }
  0x60   :  { %9460 = vst [vmem:[#allocation73_spill] sm:$0xff] %v6811_v61  ;;  %9461 = vst [vmem:[#allocation74_spill] sm:$0xff] %v6813_v62  ;;  %v6817_v7 = vld [vmem:[#allocation2 + $0x180] sm:$0xff]  ;;  %v6819_v15 = vld [vmem:[#allocation2 + $0x188] sm:$0xff] }
  0x61   :  { %9462 = vst [vmem:[#allocation75_spill] sm:$0xff] %v6815_v63  ;;  %v6821_v6 = vld [vmem:[#allocation2 + $0x190] sm:$0xff]  ;;  %v6823_v14 = vld [vmem:[#allocation2 + $0x198] sm:$0xff]  ;;  %v6825_v5 = vld [vmem:[#allocation2 + $0x1a0] sm:$0xff] }
  0x62   :  { %9463 = vst [vmem:[#allocation76_spill] sm:$0xff] %v6825_v5  ;;  %v6827_v13 = vld [vmem:[#allocation2 + $0x1a8] sm:$0xff]  ;;  %v6829_v4 = vld [vmem:[#allocation2 + $0x1b0] sm:$0xff]  ;;  %v6831_v12 = vld [vmem:[#allocation2 + $0x1b8] sm:$0xff] }
  0x63   :  { %9464 = vst [vmem:[#allocation77_spill] sm:$0xff] %v6827_v13  ;;  %9465 = vst [vmem:[#allocation78_spill] sm:$0xff] %v6829_v4  ;;  %v6833_v60 = vld [vmem:[#allocation2 + $0x1c0] sm:$0xff]  ;;  %v6835_v62 = vld [vmem:[#allocation2 + $0x1c8] sm:$0xff] }
  0x64   :  { %9466 = vst [vmem:[#allocation79_spill] sm:$0xff] %v6831_v12  ;;  %v6837_v63 = vld [vmem:[#allocation2 + $0x1d0] sm:$0xff]  ;;  %v6839_v61 = vld [vmem:[#allocation2 + $0x1d8] sm:$0xff]  ;;  %v6841_v54 = vld [vmem:[#allocation2 + $0x1e0] sm:$0xff] }
  0x65   :  { %9467 = vst [vmem:[#allocation80_spill] sm:$0xff] %v6841_v54  ;;  %v6843_v52 = vld [vmem:[#allocation2 + $0x1e8] sm:$0xff]  ;;  %v6845_v55 = vld [vmem:[#allocation2 + $0x1f0] sm:$0xff]  ;;  %v6847_v5 = vld [vmem:[#allocation2 + $0x1f8] sm:$0xff] }
  0x66   :  { %9468 = vst [vmem:[#allocation81_spill] sm:$0xff] %v6843_v52  ;;  %9469 = vst [vmem:[#allocation82_spill] sm:$0xff] %v6845_v55  ;;  %v6849_v13 = vld [vmem:[#allocation2 + $0x200] sm:$0xff]  ;;  %v6851_v4 = vld [vmem:[#allocation2 + $0x208] sm:$0xff] }
  0x67   :  { %9470 = vst [vmem:[#allocation83_spill] sm:$0xff] %v6847_v5  ;;  %v6853_v12 = vld [vmem:[#allocation2 + $0x210] sm:$0xff]  ;;  %v6855_v53 = vld [vmem:[#allocation2 + $0x218] sm:$0xff]  ;;  %v6857_v46 = vld [vmem:[#allocation2 + $0x220] sm:$0xff] }
  0x68   :  { %9471 = vst [vmem:[#allocation84_spill] sm:$0xff] %v6857_v46  ;;  %v6859_v44 = vld [vmem:[#allocation2 + $0x228] sm:$0xff]  ;;  %v6861_v47 = vld [vmem:[#allocation2 + $0x230] sm:$0xff]  ;;  %v6863_v54 = vld [vmem:[#allocation2 + $0x238] sm:$0xff] }
  0x69   :  { %9472 = vst [vmem:[#allocation85_spill] sm:$0xff] %v6859_v44  ;;  %9473 = vst [vmem:[#allocation86_spill] sm:$0xff] %v6861_v47  ;;  %v6865_v52 = vld [vmem:[#allocation2 + $0x240] sm:$0xff]  ;;  %v6867_v55 = vld [vmem:[#allocation2 + $0x248] sm:$0xff] }
  0x6a   :  { %9474 = vst [vmem:[#allocation87_spill] sm:$0xff] %v6863_v54  ;;  %v6869_v5 = vld [vmem:[#allocation2 + $0x250] sm:$0xff]  ;;  %v6871_v45 = vld [vmem:[#allocation2 + $0x258] sm:$0xff]  ;;  %v6873_v38 = vld [vmem:[#allocation2 + $0x260] sm:$0xff] }
  0x6b   :  { %9475 = vst [vmem:[#allocation88_spill] sm:$0xff] %v6873_v38  ;;  %v6875_v36 = vld [vmem:[#allocation2 + $0x268] sm:$0xff]  ;;  %v6877_v39 = vld [vmem:[#allocation2 + $0x270] sm:$0xff]  ;;  %v6879_v46 = vld [vmem:[#allocation2 + $0x278] sm:$0xff] }
  0x6c   :  { %9476 = vst [vmem:[#allocation89_spill] sm:$0xff] %v6875_v36  ;;  %9477 = vst [vmem:[#allocation90_spill] sm:$0xff] %v6877_v39  ;;  %v6881_v44 = vld [vmem:[#allocation2 + $0x280] sm:$0xff]  ;;  %v6883_v47 = vld [vmem:[#allocation2 + $0x288] sm:$0xff] }
  0x6d   :  { %9478 = vst [vmem:[#allocation91_spill] sm:$0xff] %v6879_v46  ;;  %v6885_v54 = vld [vmem:[#allocation2 + $0x290] sm:$0xff]  ;;  %v6887_v37 = vld [vmem:[#allocation2 + $0x298] sm:$0xff]  ;;  %v6889_v30 = vld [vmem:[#allocation2 + $0x2a0] sm:$0xff] }
  0x6e   :  { %9479 = vst [vmem:[#allocation92_spill] sm:$0xff] %v6889_v30  ;;  %v6891_v28 = vld [vmem:[#allocation2 + $0x2a8] sm:$0xff]  ;;  %v6893_v31 = vld [vmem:[#allocation2 + $0x2b0] sm:$0xff]  ;;  %v6895_v38 = vld [vmem:[#allocation2 + $0x2b8] sm:$0xff] }
  0x6f   :  { %9480 = vst [vmem:[#allocation93_spill] sm:$0xff] %v6891_v28  ;;  %9481 = vst [vmem:[#allocation94_spill] sm:$0xff] %v6893_v31  ;;  %v6897_v36 = vld [vmem:[#allocation2 + $0x2c0] sm:$0xff]  ;;  %v6899_v39 = vld [vmem:[#allocation2 + $0x2c8] sm:$0xff] }
  0x70   :  { %9482 = vst [vmem:[#allocation95_spill] sm:$0xff] %v6895_v38  ;;  %9483 = vst [vmem:[#allocation96_spill] sm:$0xff] %v6897_v36  ;;  %v6901_v46 = vld [vmem:[#allocation2 + $0x2d0] sm:$0xff]  ;;  %v6903_v29 = vld [vmem:[#allocation2 + $0x2d8] sm:$0xff] }
  0x71   :  { %9484 = vst [vmem:[#allocation97_spill] sm:$0xff] %v6899_v39  ;;  %9485 = vst [vmem:[#allocation98_spill] sm:$0xff] %v6901_v46  ;;  %v6905_v22 = vld [vmem:[#allocation2 + $0x2e0] sm:$0xff]  ;;  %v6907_v20 = vld [vmem:[#allocation2 + $0x2e8] sm:$0xff] }
  0x72   :  { %9486 = vst [vmem:[#allocation99_spill] sm:$0xff] %v6903_v29  ;;  %9487 = vst [vmem:[#allocation100_spill] sm:$0xff] %v6905_v22  ;;  %v6909_v23 = vld [vmem:[#allocation2 + $0x2f0] sm:$0xff]  ;;  %v6911_v30 = vld [vmem:[#allocation2 + $0x2f8] sm:$0xff] }
  0x73   :  { %9488 = vst [vmem:[#allocation101_spill] sm:$0xff] %v6907_v20  ;;  %9489 = vst [vmem:[#allocation102_spill] sm:$0xff] %v6909_v23  ;;  %v6913_v28 = vld [vmem:[#allocation2 + $0x300] sm:$0xff]  ;;  %v6915_v31 = vld [vmem:[#allocation2 + $0x308] sm:$0xff] }
  0x74   :  { %9490 = vst [vmem:[#allocation103_spill] sm:$0xff] %v6911_v30  ;;  %9491 = vst [vmem:[#allocation104_spill] sm:$0xff] %v6913_v28  ;;  %v6917_v38 = vld [vmem:[#allocation2 + $0x310] sm:$0xff]  ;;  %v6919_v21 = vld [vmem:[#allocation2 + $0x318] sm:$0xff] }
  0x75   :  { %9492 = vst [vmem:[#allocation105_spill] sm:$0xff] %v6915_v31  ;;  %9493 = vst [vmem:[#allocation106_spill] sm:$0xff] %v6917_v38  ;;  %v6921_v1 = vld [vmem:[#allocation2 + $0x320] sm:$0xff]  ;;  %v6923_v9 = vld [vmem:[#allocation2 + $0x328] sm:$0xff] }
  0x76   :  { %9494 = vst [vmem:[#allocation107_spill] sm:$0xff] %v6919_v21  ;;  %9495 = vst [vmem:[#allocation108_spill] sm:$0xff] %v6921_v1  ;;  %v6925_v46 = vld [vmem:[#allocation2 + $0x330] sm:$0xff]  ;;  %v6927_v22 = vld [vmem:[#allocation2 + $0x338] sm:$0xff] }
  0x77   :  { %9496 = vst [vmem:[#allocation109_spill] sm:$0xff] %v6923_v9  ;;  %9497 = vst [vmem:[#allocation110_spill] sm:$0xff] %v6925_v46  ;;  %v6929_v20 = vld [vmem:[#allocation2 + $0x340] sm:$0xff]  ;;  %v6931_v23 = vld [vmem:[#allocation2 + $0x348] sm:$0xff] }
  0x78   :  { %9498 = vst [vmem:[#allocation111_spill] sm:$0xff] %v6927_v22  ;;  %9499 = vst [vmem:[#allocation112_spill] sm:$0xff] %v6929_v20  ;;  %v6933_v30 = vld [vmem:[#allocation2 + $0x350] sm:$0xff]  ;;  %v6935_v28 = vld [vmem:[#allocation2 + $0x358] sm:$0xff] }
  0x79   :  { %9500 = vst [vmem:[#allocation113_spill] sm:$0xff] %v6931_v23  ;;  %9501 = vst [vmem:[#allocation114_spill] sm:$0xff] %v6933_v30  ;;  %v6937_v31 = vld [vmem:[#allocation2 + $0x360] sm:$0xff]  ;;  %v6939_v38 = vld [vmem:[#allocation2 + $0x368] sm:$0xff] }
  0x7a   :  { %9502 = vst [vmem:[#allocation115_spill] sm:$0xff] %v6935_v28  ;;  %9503 = vst [vmem:[#allocation116_spill] sm:$0xff] %v6937_v31  ;;  %v6941_v21 = vld [vmem:[#allocation2 + $0x370] sm:$0xff]  ;;  %v6943_v1 = vld [vmem:[#allocation2 + $0x378] sm:$0xff] }
  0x7b   :  { %9504 = vst [vmem:[#allocation117_spill] sm:$0xff] %v6939_v38  ;;  %9505 = vst [vmem:[#allocation118_spill] sm:$0xff] %v6941_v21  ;;  %v6945_v9 = vld [vmem:[#allocation2 + $0x380] sm:$0xff]  ;;  %v6947_v46 = vld [vmem:[#allocation2 + $0x388] sm:$0xff] }
  0x7c   :  { %9506 = vst [vmem:[#allocation119_spill] sm:$0xff] %v6943_v1  ;;  %9507 = vst [vmem:[#allocation120_spill] sm:$0xff] %v6945_v9  ;;  %v6949_v22 = vld [vmem:[#allocation2 + $0x390] sm:$0xff]  ;;  %v6951_v20 = vld [vmem:[#allocation2 + $0x398] sm:$0xff] }
  0x7d   :  { %9508 = vst [vmem:[#allocation121_spill] sm:$0xff] %v6947_v46  ;;  %9509 = vst [vmem:[#allocation122_spill] sm:$0xff] %v6949_v22  ;;  %v6953_v23 = vld [vmem:[#allocation2 + $0x3a0] sm:$0xff]  ;;  %v6955_v30 = vld [vmem:[#allocation2 + $0x3a8] sm:$0xff] }
  0x7e   :  { %9510 = vst [vmem:[#allocation123_spill] sm:$0xff] %v6951_v20  ;;  %9511 = vst [vmem:[#allocation124_spill] sm:$0xff] %v6953_v23  ;;  %v6957_v28 = vld [vmem:[#allocation2 + $0x3b0] sm:$0xff]  ;;  %v6959_v31 = vld [vmem:[#allocation2 + $0x3b8] sm:$0xff] }
  0x7f   :  { %9512 = vst [vmem:[#allocation125_spill] sm:$0xff] %v6955_v30  ;;  %9513 = vst [vmem:[#allocation126_spill] sm:$0xff] %v6957_v28  ;;  %v6961_v38 = vld [vmem:[#allocation2 + $0x3c0] sm:$0xff]  ;;  %v6963_v21 = vld [vmem:[#allocation2 + $0x3c8] sm:$0xff] }
  0x80   :  { %9514 = vst [vmem:[#allocation127_spill] sm:$0xff] %v6959_v31  ;;  %9515 = vst [vmem:[#allocation128_spill] sm:$0xff] %v6961_v38  ;;  %v6965_v1 = vld [vmem:[#allocation2 + $0x3d0] sm:$0xff]  ;;  %v6967_v9 = vld [vmem:[#allocation2 + $0x3d8] sm:$0xff] }
  0x81   :  { %9516 = vst [vmem:[#allocation129_spill] sm:$0xff] %v6963_v21  ;;  %9517 = vst [vmem:[#allocation130_spill] sm:$0xff] %v6965_v1  ;;  %v6969_v46 = vld [vmem:[#allocation2 + $0x3e0] sm:$0xff]  ;;  %v6971_v22 = vld [vmem:[#allocation2 + $0x3e8] sm:$0xff] }
  0x82   :  { %9518 = vst [vmem:[#allocation131_spill] sm:$0xff] %v6967_v9  ;;  %9519 = vst [vmem:[#allocation132_spill] sm:$0xff] %v6969_v46  ;;  %v6973_v20 = vld [vmem:[#allocation2 + $0x3f0] sm:$0xff]  ;;  %v6975_v23 = vld [vmem:[#allocation2 + $0x3f8] sm:$0xff] }
  0x83   :  { %9520 = vst [vmem:[#allocation133_spill] sm:$0xff] %v6971_v22  ;;  %9521 = vst [vmem:[#allocation134_spill] sm:$0xff] %v6973_v20  ;;  %v6977_v30 = vld [vmem:[#allocation2 + $0x400] sm:$0xff]  ;;  %v6979_v28 = vld [vmem:[#allocation2 + $0x408] sm:$0xff] }
  0x84   :  { %9522 = vst [vmem:[#allocation135_spill] sm:$0xff] %v6975_v23  ;;  %9523 = vst [vmem:[#allocation136_spill] sm:$0xff] %v6977_v30  ;;  %v6981_v31 = vld [vmem:[#allocation2 + $0x410] sm:$0xff]  ;;  %v6983_v38 = vld [vmem:[#allocation2 + $0x418] sm:$0xff] }
  0x85   :  { %9524 = vst [vmem:[#allocation137_spill] sm:$0xff] %v6979_v28  ;;  %9525 = vst [vmem:[#allocation138_spill] sm:$0xff] %v6981_v31  ;;  %v6985_v21 = vld [vmem:[#allocation2 + $0x420] sm:$0xff]  ;;  %v6987_v1 = vld [vmem:[#allocation2 + $0x428] sm:$0xff] }
  0x86   :  { %9526 = vst [vmem:[#allocation139_spill] sm:$0xff] %v6983_v38  ;;  %9527 = vst [vmem:[#allocation140_spill] sm:$0xff] %v6985_v21  ;;  %v6989_v9 = vld [vmem:[#allocation2 + $0x430] sm:$0xff]  ;;  %v6991_v46 = vld [vmem:[#allocation2 + $0x438] sm:$0xff] }
  0x87   :  { %9528 = vst [vmem:[#allocation141_spill] sm:$0xff] %v6987_v1  ;;  %9529 = vst [vmem:[#allocation142_spill] sm:$0xff] %v6989_v9  ;;  %v6993_v22 = vld [vmem:[#allocation2 + $0x440] sm:$0xff]  ;;  %v6995_v20 = vld [vmem:[#allocation2 + $0x448] sm:$0xff] }
  0x88   :  { %9530 = vst [vmem:[#allocation143_spill] sm:$0xff] %v6991_v46  ;;  %9531 = vst [vmem:[#allocation144_spill] sm:$0xff] %v6993_v22  ;;  %v6997_v23 = vld [vmem:[#allocation2 + $0x450] sm:$0xff]  ;;  %v6999_v30 = vld [vmem:[#allocation2 + $0x458] sm:$0xff] }
  0x89   :  { %9532 = vst [vmem:[#allocation145_spill] sm:$0xff] %v6995_v20  ;;  %9533 = vst [vmem:[#allocation146_spill] sm:$0xff] %v6997_v23  ;;  %v7001_v28 = vld [vmem:[#allocation2 + $0x460] sm:$0xff]  ;;  %v7003_v31 = vld [vmem:[#allocation2 + $0x468] sm:$0xff] }
  0x8a   :  { %9534 = vst [vmem:[#allocation147_spill] sm:$0xff] %v6999_v30  ;;  %9535 = vst [vmem:[#allocation148_spill] sm:$0xff] %v7001_v28  ;;  %v7005_v38 = vld [vmem:[#allocation2 + $0x470] sm:$0xff]  ;;  %v7007_v21 = vld [vmem:[#allocation2 + $0x478] sm:$0xff] }
  0x8b   :  { %9536 = vst [vmem:[#allocation149_spill] sm:$0xff] %v7003_v31  ;;  %9537 = vst [vmem:[#allocation150_spill] sm:$0xff] %v7005_v38  ;;  %v7009_v1 = vld [vmem:[#allocation2 + $0x480] sm:$0xff]  ;;  %v7011_v9 = vld [vmem:[#allocation2 + $0x488] sm:$0xff] }
  0x8c   :  { %9538 = vst [vmem:[#allocation151_spill] sm:$0xff] %v7007_v21  ;;  %9539 = vst [vmem:[#allocation152_spill] sm:$0xff] %v7009_v1  ;;  %v7013_v46 = vld [vmem:[#allocation2 + $0x490] sm:$0xff]  ;;  %v7015_v22 = vld [vmem:[#allocation2 + $0x498] sm:$0xff] }
  0x8d   :  { %9540 = vst [vmem:[#allocation153_spill] sm:$0xff] %v7011_v9  ;;  %9541 = vst [vmem:[#allocation154_spill] sm:$0xff] %v7013_v46  ;;  %v7017_v20 = vld [vmem:[#allocation2 + $0x4a0] sm:$0xff]  ;;  %v7019_v23 = vld [vmem:[#allocation2 + $0x4a8] sm:$0xff] }
  0x8e   :  { %9542 = vst [vmem:[#allocation155_spill] sm:$0xff] %v7015_v22  ;;  %9543 = vst [vmem:[#allocation156_spill] sm:$0xff] %v7017_v20  ;;  %v7021_v30 = vld [vmem:[#allocation2 + $0x4b0] sm:$0xff]  ;;  %v7023_v28 = vld [vmem:[#allocation2 + $0x4b8] sm:$0xff] }
  0x8f   :  { %9544 = vst [vmem:[#allocation157_spill] sm:$0xff] %v7019_v23  ;;  %9545 = vst [vmem:[#allocation158_spill] sm:$0xff] %v7021_v30  ;;  %v7025_v31 = vld [vmem:[#allocation2 + $0x4c0] sm:$0xff]  ;;  %v7027_v38 = vld [vmem:[#allocation2 + $0x4c8] sm:$0xff] }
  0x90   :  { %9546 = vst [vmem:[#allocation159_spill] sm:$0xff] %v7023_v28  ;;  %9547 = vst [vmem:[#allocation160_spill] sm:$0xff] %v7025_v31  ;;  %v7029_v21 = vld [vmem:[#allocation2 + $0x4d0] sm:$0xff]  ;;  %v7031_v1 = vld [vmem:[#allocation2 + $0x4d8] sm:$0xff] }
  0x91   :  { %9548 = vst [vmem:[#allocation161_spill] sm:$0xff] %v7027_v38  ;;  %9549 = vst [vmem:[#allocation162_spill] sm:$0xff] %v7029_v21  ;;  %v7033_v9 = vld [vmem:[#allocation2 + $0x4e0] sm:$0xff]  ;;  %v7035_v46 = vld [vmem:[#allocation2 + $0x4e8] sm:$0xff] }
  0x92   :  { %9550 = vst [vmem:[#allocation163_spill] sm:$0xff] %v7031_v1  ;;  %9551 = vst [vmem:[#allocation164_spill] sm:$0xff] %v7033_v9  ;;  %v7037_v22 = vld [vmem:[#allocation2 + $0x4f0] sm:$0xff]  ;;  %v7039_v20 = vld [vmem:[#allocation2 + $0x4f8] sm:$0xff] }
  0x93   :  { %9552 = vst [vmem:[#allocation165_spill] sm:$0xff] %v7035_v46  ;;  %9553 = vst [vmem:[#allocation166_spill] sm:$0xff] %v7037_v22  ;;  %v7041_v23 = vld [vmem:[#allocation2 + $0x500] sm:$0xff]  ;;  %v7043_v30 = vld [vmem:[#allocation2 + $0x508] sm:$0xff] }
  0x94   :  { %9554 = vst [vmem:[#allocation167_spill] sm:$0xff] %v7039_v20  ;;  %9555 = vst [vmem:[#allocation168_spill] sm:$0xff] %v7041_v23  ;;  %v7045_v28 = vld [vmem:[#allocation2 + $0x510] sm:$0xff]  ;;  %v7047_v31 = vld [vmem:[#allocation2 + $0x518] sm:$0xff] }
  0x95   :  { %9556 = vst [vmem:[#allocation169_spill] sm:$0xff] %v7043_v30  ;;  %9557 = vst [vmem:[#allocation170_spill] sm:$0xff] %v7045_v28  ;;  %v7049_v38 = vld [vmem:[#allocation2 + $0x520] sm:$0xff]  ;;  %v7051_v21 = vld [vmem:[#allocation2 + $0x528] sm:$0xff] }
  0x96   :  { %9558 = vst [vmem:[#allocation171_spill] sm:$0xff] %v7047_v31  ;;  %9559 = vst [vmem:[#allocation172_spill] sm:$0xff] %v7049_v38  ;;  %v7053_v1 = vld [vmem:[#allocation2 + $0x530] sm:$0xff]  ;;  %v7055_v9 = vld [vmem:[#allocation2 + $0x538] sm:$0xff] }
  0x97   :  { %9560 = vst [vmem:[#allocation173_spill] sm:$0xff] %v7051_v21  ;;  %9561 = vst [vmem:[#allocation174_spill] sm:$0xff] %v7053_v1  ;;  %v7057_v46 = vld [vmem:[#allocation2 + $0x540] sm:$0xff]  ;;  %v7059_v22 = vld [vmem:[#allocation2 + $0x548] sm:$0xff] }
  0x98   :  { %9562 = vst [vmem:[#allocation175_spill] sm:$0xff] %v7055_v9  ;;  %9563 = vst [vmem:[#allocation176_spill] sm:$0xff] %v7057_v46  ;;  %v7061_v20 = vld [vmem:[#allocation2 + $0x550] sm:$0xff]  ;;  %v7063_v23 = vld [vmem:[#allocation2 + $0x558] sm:$0xff] }
  0x99   :  { %9564 = vst [vmem:[#allocation177_spill] sm:$0xff] %v7059_v22  ;;  %9565 = vst [vmem:[#allocation178_spill] sm:$0xff] %v7061_v20  ;;  %v7065_v30 = vld [vmem:[#allocation2 + $0x560] sm:$0xff]  ;;  %v7067_v28 = vld [vmem:[#allocation2 + $0x568] sm:$0xff] }
  0x9a   :  { %9566 = vst [vmem:[#allocation179_spill] sm:$0xff] %v7063_v23  ;;  %9567 = vst [vmem:[#allocation180_spill] sm:$0xff] %v7065_v30  ;;  %v7069_v31 = vld [vmem:[#allocation2 + $0x570] sm:$0xff]  ;;  %v7071_v38 = vld [vmem:[#allocation2 + $0x578] sm:$0xff] }
  0x9b   :  { %9568 = vst [vmem:[#allocation181_spill] sm:$0xff] %v7067_v28  ;;  %9569 = vst [vmem:[#allocation182_spill] sm:$0xff] %v7069_v31  ;;  %v7073_v21 = vld [vmem:[#allocation2 + $0x580] sm:$0xff]  ;;  %v7075_v1 = vld [vmem:[#allocation2 + $0x588] sm:$0xff] }
  0x9c   :  { %9570 = vst [vmem:[#allocation183_spill] sm:$0xff] %v7071_v38  ;;  %9571 = vst [vmem:[#allocation184_spill] sm:$0xff] %v7073_v21  ;;  %v7077_v9 = vld [vmem:[#allocation2 + $0x590] sm:$0xff]  ;;  %v7079_v46 = vld [vmem:[#allocation2 + $0x598] sm:$0xff] }
  0x9d   :  { %9572 = vst [vmem:[#allocation185_spill] sm:$0xff] %v7075_v1  ;;  %9573 = vst [vmem:[#allocation186_spill] sm:$0xff] %v7077_v9  ;;  %v7081_v22 = vld [vmem:[#allocation2 + $0x5a0] sm:$0xff]  ;;  %v7083_v20 = vld [vmem:[#allocation2 + $0x5a8] sm:$0xff] }
  0x9e   :  { %9574 = vst [vmem:[#allocation187_spill] sm:$0xff] %v7079_v46  ;;  %9575 = vst [vmem:[#allocation188_spill] sm:$0xff] %v7081_v22  ;;  %v7085_v23 = vld [vmem:[#allocation2 + $0x5b0] sm:$0xff]  ;;  %v7087_v30 = vld [vmem:[#allocation2 + $0x5b8] sm:$0xff] }
  0x9f   :  { %9576 = vst [vmem:[#allocation189_spill] sm:$0xff] %v7083_v20  ;;  %9577 = vst [vmem:[#allocation190_spill] sm:$0xff] %v7085_v23  ;;  %v7089_v28 = vld [vmem:[#allocation2 + $0x5c0] sm:$0xff]  ;;  %v7091_v31 = vld [vmem:[#allocation2 + $0x5c8] sm:$0xff] }
  0xa0   :  { %9578 = vst [vmem:[#allocation191_spill] sm:$0xff] %v7087_v30  ;;  %9579 = vst [vmem:[#allocation192_spill] sm:$0xff] %v7089_v28  ;;  %v7093_v38 = vld [vmem:[#allocation2 + $0x5d0] sm:$0xff]  ;;  %v7095_v21 = vld [vmem:[#allocation2 + $0x5d8] sm:$0xff] }
  0xa1   :  { %9580 = vst [vmem:[#allocation193_spill] sm:$0xff] %v7091_v31  ;;  %9581 = vst [vmem:[#allocation194_spill] sm:$0xff] %v7093_v38  ;;  %v7097_v1 = vld [vmem:[#allocation2 + $0x5e0] sm:$0xff]  ;;  %v7099_v9 = vld [vmem:[#allocation2 + $0x5e8] sm:$0xff] }
  0xa2   :  { %9582 = vst [vmem:[#allocation195_spill] sm:$0xff] %v7095_v21  ;;  %9583 = vst [vmem:[#allocation196_spill] sm:$0xff] %v7097_v1  ;;  %v7101_v46 = vld [vmem:[#allocation2 + $0x5f0] sm:$0xff]  ;;  %v7103_v22 = vld [vmem:[#allocation2 + $0x5f8] sm:$0xff] }
  0xa3   :  { %9584 = vst [vmem:[#allocation197_spill] sm:$0xff] %v7099_v9  ;;  %9585 = vst [vmem:[#allocation198_spill] sm:$0xff] %v7101_v46  ;;  %v7105_v20 = vld [vmem:[#allocation2 + $0x600] sm:$0xff]  ;;  %v7107_v23 = vld [vmem:[#allocation2 + $0x608] sm:$0xff] }
  0xa4   :  { %9586 = vst [vmem:[#allocation199_spill] sm:$0xff] %v7103_v22  ;;  %9587 = vst [vmem:[#allocation200_spill] sm:$0xff] %v7105_v20  ;;  %v7109_v30 = vld [vmem:[#allocation2 + $0x610] sm:$0xff]  ;;  %v7111_v28 = vld [vmem:[#allocation2 + $0x618] sm:$0xff] }
  0xa5   :  { %9588 = vst [vmem:[#allocation201_spill] sm:$0xff] %v7107_v23  ;;  %9589 = vst [vmem:[#allocation202_spill] sm:$0xff] %v7109_v30  ;;  %v7113_v31 = vld [vmem:[#allocation2 + $0x620] sm:$0xff]  ;;  %v7115_v38 = vld [vmem:[#allocation2 + $0x628] sm:$0xff] }
  0xa6   :  { %9590 = vst [vmem:[#allocation203_spill] sm:$0xff] %v7111_v28  ;;  %9591 = vst [vmem:[#allocation204_spill] sm:$0xff] %v7113_v31  ;;  %v7117_v21 = vld [vmem:[#allocation2 + $0x630] sm:$0xff]  ;;  %v7119_v1 = vld [vmem:[#allocation2 + $0x638] sm:$0xff] }
  0xa7   :  { %9592 = vst [vmem:[#allocation205_spill] sm:$0xff] %v7115_v38  ;;  %9593 = vst [vmem:[#allocation206_spill] sm:$0xff] %v7117_v21  ;;  %v7121_v9 = vld [vmem:[#allocation2 + $0x640] sm:$0xff]  ;;  %v7123_v46 = vld [vmem:[#allocation2 + $0x648] sm:$0xff] }
  0xa8   :  { %9594 = vst [vmem:[#allocation207_spill] sm:$0xff] %v7119_v1  ;;  %9595 = vst [vmem:[#allocation208_spill] sm:$0xff] %v7121_v9  ;;  %v7125_v22 = vld [vmem:[#allocation2 + $0x650] sm:$0xff]  ;;  %v7127_v20 = vld [vmem:[#allocation2 + $0x658] sm:$0xff] }
  0xa9   :  { %9596 = vst [vmem:[#allocation209_spill] sm:$0xff] %v7123_v46  ;;  %9597 = vst [vmem:[#allocation210_spill] sm:$0xff] %v7125_v22  ;;  %v7129_v23 = vld [vmem:[#allocation2 + $0x660] sm:$0xff]  ;;  %v7131_v30 = vld [vmem:[#allocation2 + $0x668] sm:$0xff] }
  0xaa   :  { %9598 = vst [vmem:[#allocation211_spill] sm:$0xff] %v7127_v20  ;;  %9599 = vst [vmem:[#allocation212_spill] sm:$0xff] %v7129_v23  ;;  %v7133_v28 = vld [vmem:[#allocation2 + $0x670] sm:$0xff]  ;;  %v7135_v31 = vld [vmem:[#allocation2 + $0x678] sm:$0xff] }
  0xab   :  { %9600 = vst [vmem:[#allocation213_spill] sm:$0xff] %v7131_v30  ;;  %9601 = vst [vmem:[#allocation214_spill] sm:$0xff] %v7133_v28  ;;  %v7137_v38 = vld [vmem:[#allocation2 + $0x680] sm:$0xff]  ;;  %v7139_v21 = vld [vmem:[#allocation2 + $0x688] sm:$0xff] }
  0xac   :  { %9602 = vst [vmem:[#allocation215_spill] sm:$0xff] %v7135_v31  ;;  %9603 = vst [vmem:[#allocation216_spill] sm:$0xff] %v7137_v38  ;;  %v7141_v1 = vld [vmem:[#allocation2 + $0x690] sm:$0xff]  ;;  %v7143_v9 = vld [vmem:[#allocation2 + $0x698] sm:$0xff] }
  0xad   :  { %9604 = vst [vmem:[#allocation217_spill] sm:$0xff] %v7139_v21  ;;  %9605 = vst [vmem:[#allocation218_spill] sm:$0xff] %v7141_v1  ;;  %v7145_v46 = vld [vmem:[#allocation2 + $0x6a0] sm:$0xff]  ;;  %v7147_v22 = vld [vmem:[#allocation2 + $0x6a8] sm:$0xff] }
  0xae   :  { %9606 = vst [vmem:[#allocation219_spill] sm:$0xff] %v7143_v9  ;;  %9607 = vst [vmem:[#allocation220_spill] sm:$0xff] %v7145_v46  ;;  %v7149_v20 = vld [vmem:[#allocation2 + $0x6b0] sm:$0xff]  ;;  %v7151_v23 = vld [vmem:[#allocation2 + $0x6b8] sm:$0xff] }
  0xaf   :  { %9608 = vst [vmem:[#allocation221_spill] sm:$0xff] %v7147_v22  ;;  %9609 = vst [vmem:[#allocation222_spill] sm:$0xff] %v7149_v20  ;;  %v7153_v30 = vld [vmem:[#allocation2 + $0x6c0] sm:$0xff]  ;;  %v7155_v28 = vld [vmem:[#allocation2 + $0x6c8] sm:$0xff] }
  0xb0   :  { %9610 = vst [vmem:[#allocation223_spill] sm:$0xff] %v7151_v23  ;;  %9611 = vst [vmem:[#allocation224_spill] sm:$0xff] %v7153_v30  ;;  %v7157_v31 = vld [vmem:[#allocation2 + $0x6d0] sm:$0xff]  ;;  %v7159_v38 = vld [vmem:[#allocation2 + $0x6d8] sm:$0xff] }
  0xb1   :  { %9612 = vst [vmem:[#allocation225_spill] sm:$0xff] %v7155_v28  ;;  %9613 = vst [vmem:[#allocation226_spill] sm:$0xff] %v7157_v31  ;;  %v7161_v21 = vld [vmem:[#allocation2 + $0x6e0] sm:$0xff]  ;;  %v7163_v1 = vld [vmem:[#allocation2 + $0x6e8] sm:$0xff] }
  0xb2   :  { %9614 = vst [vmem:[#allocation227_spill] sm:$0xff] %v7159_v38  ;;  %9615 = vst [vmem:[#allocation228_spill] sm:$0xff] %v7161_v21  ;;  %v7165_v9 = vld [vmem:[#allocation2 + $0x6f0] sm:$0xff]  ;;  %v7167_v46 = vld [vmem:[#allocation2 + $0x6f8] sm:$0xff] }
  0xb3   :  { %9616 = vst [vmem:[#allocation229_spill] sm:$0xff] %v7163_v1  ;;  %9617 = vst [vmem:[#allocation230_spill] sm:$0xff] %v7165_v9  ;;  %v7169_v22 = vld [vmem:[#allocation2 + $0x700] sm:$0xff]  ;;  %v7171_v20 = vld [vmem:[#allocation2 + $0x708] sm:$0xff] }
  0xb4   :  { %9618 = vst [vmem:[#allocation231_spill] sm:$0xff] %v7167_v46  ;;  %9619 = vst [vmem:[#allocation232_spill] sm:$0xff] %v7169_v22  ;;  %v7173_v23 = vld [vmem:[#allocation2 + $0x710] sm:$0xff]  ;;  %v7175_v30 = vld [vmem:[#allocation2 + $0x718] sm:$0xff] }
  0xb5   :  { %9620 = vst [vmem:[#allocation233_spill] sm:$0xff] %v7171_v20  ;;  %9621 = vst [vmem:[#allocation234_spill] sm:$0xff] %v7173_v23  ;;  %v7177_v28 = vld [vmem:[#allocation2 + $0x720] sm:$0xff]  ;;  %v7179_v31 = vld [vmem:[#allocation2 + $0x728] sm:$0xff] }
  0xb6   :  { %9622 = vst [vmem:[#allocation235_spill] sm:$0xff] %v7175_v30  ;;  %9623 = vst [vmem:[#allocation236_spill] sm:$0xff] %v7177_v28  ;;  %v7181_v38 = vld [vmem:[#allocation2 + $0x730] sm:$0xff]  ;;  %v7183_v21 = vld [vmem:[#allocation2 + $0x738] sm:$0xff] }
  0xb7   :  { %9624 = vst [vmem:[#allocation237_spill] sm:$0xff] %v7179_v31  ;;  %9625 = vst [vmem:[#allocation238_spill] sm:$0xff] %v7181_v38  ;;  %v7185_v1 = vld [vmem:[#allocation2 + $0x740] sm:$0xff]  ;;  %v7187_v9 = vld [vmem:[#allocation2 + $0x748] sm:$0xff] }
  0xb8   :  { %9626 = vst [vmem:[#allocation239_spill] sm:$0xff] %v7183_v21  ;;  %9627 = vst [vmem:[#allocation240_spill] sm:$0xff] %v7185_v1  ;;  %v7189_v46 = vld [vmem:[#allocation2 + $0x750] sm:$0xff]  ;;  %v7191_v22 = vld [vmem:[#allocation2 + $0x758] sm:$0xff] }
  0xb9   :  { %9628 = vst [vmem:[#allocation241_spill] sm:$0xff] %v7187_v9  ;;  %9629 = vst [vmem:[#allocation242_spill] sm:$0xff] %v7189_v46  ;;  %v7193_v20 = vld [vmem:[#allocation2 + $0x760] sm:$0xff]  ;;  %v7195_v23 = vld [vmem:[#allocation2 + $0x768] sm:$0xff] }
  0xba   :  { %9630 = vst [vmem:[#allocation243_spill] sm:$0xff] %v7191_v22  ;;  %9631 = vst [vmem:[#allocation244_spill] sm:$0xff] %v7193_v20  ;;  %v7197_v30 = vld [vmem:[#allocation2 + $0x770] sm:$0xff]  ;;  %v7199_v28 = vld [vmem:[#allocation2 + $0x778] sm:$0xff] }
  0xbb   :  { %9632 = vst [vmem:[#allocation245_spill] sm:$0xff] %v7195_v23  ;;  %9633 = vst [vmem:[#allocation246_spill] sm:$0xff] %v7197_v30  ;;  %v7201_v31 = vld [vmem:[#allocation2 + $0x780] sm:$0xff]  ;;  %v7203_v38 = vld [vmem:[#allocation2 + $0x788] sm:$0xff] }
  0xbc   :  { %9634 = vst [vmem:[#allocation247_spill] sm:$0xff] %v7199_v28  ;;  %9635 = vst [vmem:[#allocation248_spill] sm:$0xff] %v7201_v31  ;;  %v7205_v21 = vld [vmem:[#allocation2 + $0x790] sm:$0xff]  ;;  %v7207_v1 = vld [vmem:[#allocation2 + $0x798] sm:$0xff] }
  0xbd   :  { %9636 = vst [vmem:[#allocation249_spill] sm:$0xff] %v7203_v38  ;;  %9637 = vst [vmem:[#allocation250_spill] sm:$0xff] %v7205_v21  ;;  %v7209_v46 = vld [vmem:[#allocation2 + $0x7a0] sm:$0xff]  ;;  %v7211_v22 = vld [vmem:[#allocation2 + $0x7a8] sm:$0xff] }
  0xbe   :  { %9638 = vst [vmem:[#allocation251_spill] sm:$0xff] %v7207_v1  ;;  %9639 = vst [vmem:[#allocation252_spill] sm:$0xff] %v7209_v46  ;;  %v7213_v20 = vld [vmem:[#allocation2 + $0x7b0] sm:$0xff]  ;;  %v7215_v23 = vld [vmem:[#allocation2 + $0x7b8] sm:$0xff] }
  0xbf   :  { %9640 = vst [vmem:[#allocation253_spill] sm:$0xff] %v7211_v22  ;;  %9641 = vst [vmem:[#allocation254_spill] sm:$0xff] %v7213_v20  ;;  %v7217_v30 = vld [vmem:[#allocation2 + $0x7c0] sm:$0xff]  ;;  %v7219_v28 = vld [vmem:[#allocation2 + $0x7c8] sm:$0xff] }
  0xc0   :  { %9642 = vst [vmem:[#allocation255_spill] sm:$0xff] %v7215_v23  ;;  %9643 = vst [vmem:[#allocation256_spill] sm:$0xff] %v7217_v30  ;;  %v7221_v31 = vld [vmem:[#allocation2 + $0x7d0] sm:$0xff]  ;;  %v7223_v38 = vld [vmem:[#allocation2 + $0x7d8] sm:$0xff] }
  0xc1   :  { %9644 = vst [vmem:[#allocation257_spill] sm:$0xff] %v7219_v28  ;;  %9645 = vst [vmem:[#allocation258_spill] sm:$0xff] %v7221_v31  ;;  %v7228_v21 = vld [vmem:[#allocation2 + $0x7e0] sm:$0xff]  ;;  %v7230_v46 = vld [vmem:[#allocation2 + $0x7e8] sm:$0xff] }
  0xc2   :  { %9646 = vst [vmem:[#allocation259_spill] sm:$0xff] %v7223_v38  ;;  %9647 = vst [vmem:[#allocation260_spill] sm:$0xff] %v7228_v21  ;;  %v7232_v22 = vld [vmem:[#allocation2 + $0x7f0] sm:$0xff]  ;;  %v7234_v20 = vld [vmem:[#allocation2 + $0x7f8] sm:$0xff] }
  0xc3   :  { %9648 = vst [vmem:[#allocation261_spill] sm:$0xff] %v7230_v46  ;;  %9649 = vst [vmem:[#allocation262_spill] sm:$0xff] %v7232_v22 }
  0xc4   :  { %9650 = vst [vmem:[#allocation263_spill] sm:$0xff] %v7234_v20 }
  0xc5   :  { %440 = dma.general %s406_s12, 32768, %s71_s16, %s6540_s22, %s6545_s13, [#allocation20], %s6650_s19, 0  }
  0xc6   :  { %6513 = dma.done.wait [#allocation5 + $0x1], 32768 }
  0xc7   :  { %6514 = vsyncadd [#allocation5 + $0x1], 4294934528  ;;  %v7242_v23 = vcombine.high %v6674_v2, %v6696_v10  ;;  %1443 = sst [smem:[#allocation22]] %s6533_s4  ;;  %v444_v22 = vld [vmem:[#allocation2 + $0x808] sm:$0xff]  ;;  %v446_v21 = vld [vmem:[#allocation2 + $0x818] sm:$0xff]  ;;  %v7257_v39 = vcombine.low %v6674_v2, %v6696_v10  ;;  %s1427_s16 = scalar_lea.hbm %s9389_s1, 98304 }
  0xc8   :  { %1445 = sst [smem:[#allocation22 + $0x1]] %s6533_s4  ;;  %v443_v20 = vld [vmem:[#allocation2 + $0x800] sm:$0xff]  ;;  %719 = vmatprep.subr.bf16.mxu0 %v444_v22  ;;  %805 = vmatprep.subr.bf16.mxu1 %v446_v21  ;;  %v445_v46 = vld [vmem:[#allocation2 + $0x810] sm:$0xff]  ;;  %v452_v31 = vld [vmem:[#allocation2 + $0x848] sm:$0xff]  ;;  %s6546_s17 = smov [#allocation21]  }
  0xc9   :  { %751 = vmatprep.mubr.bf16.mxu0 %v7242_v23  ;;  %837 = vmatprep.mubr.bf16.mxu1 %v7242_v23  ;;  %1447 = sst [smem:[#allocation22 + $0x2]] %s6531_s8  ;;  %v454_v30 = vld [vmem:[#allocation2 + $0x858] sm:$0xff]  ;;  %v451_v38 = vld [vmem:[#allocation2 + $0x840] sm:$0xff]  ;;  %v453_v28 = vld [vmem:[#allocation2 + $0x850] sm:$0xff] }
  0xca   :  { %1449 = sst [smem:[#allocation22 + $0x3]] %s6534_s21  ;;  %720 = vmatpush1.bf16.msra.mxu0 %v443_v20  ;;  %806 = vmatpush1.bf16.msra.mxu1 %v445_v46  ;;  %v460_v1 = vld [vmem:[#allocation2 + $0x888] sm:$0xff]  ;;  %v462_v9 = vld [vmem:[#allocation2 + $0x898] sm:$0xff]  ;;  %v459_v36 = vld [vmem:[#allocation2 + $0x880] sm:$0xff] }
  0xcb   :  { %1451 = sst [smem:[#allocation22 + $0x4]] %s6530_s7  ;;  %721 = vmatprep.subr.bf16.mxu0 %v452_v31  ;;  %807 = vmatprep.subr.bf16.mxu1 %v454_v30  ;;  %v461_v22 = vld [vmem:[#allocation2 + $0x890] sm:$0xff]  ;;  %v468_v21 = vld [vmem:[#allocation2 + $0x8c8] sm:$0xff]  ;;  %v470_v29 = vld [vmem:[#allocation2 + $0x8d8] sm:$0xff] }
  0xcc   :  { %1453 = sst [smem:[#allocation22 + $0x5]] %s6537_s5  ;;  %v467_v20 = vld [vmem:[#allocation2 + $0x8c0] sm:$0xff]  ;;  %v469_v46 = vld [vmem:[#allocation2 + $0x8d0] sm:$0xff]  ;;  %v476_v31 = vld [vmem:[#allocation2 + $0x908] sm:$0xff] }
  0xcd   :  { %1455 = sst [smem:[#allocation22 + $0x6]] %s6538_s18  ;;  %v478_v30 = vld [vmem:[#allocation2 + $0x918] sm:$0xff]  ;;  %v579_v2 = vld [vmem:[#allocation2 + $0xc40] sm:$0xff]  ;;  %v581_v10 = vld [vmem:[#allocation2 + $0xc50] sm:$0xff] }
  0xce   :  { %1457 = sst [smem:[#allocation22 + $0x7]] %s6534_s21  ;;  %722 = vmatpush1.bf16.msra.mxu0 %v451_v38  ;;  %808 = vmatpush1.bf16.msra.mxu1 %v453_v28  ;;  %v475_v38 = vld [vmem:[#allocation2 + $0x900] sm:$0xff]  ;;  %v477_v28 = vld [vmem:[#allocation2 + $0x910] sm:$0xff] }
  0xcf   :  { %1459 = sst [smem:[#allocation22 + $0x8]] %s6539_s20  ;;  %723 = vmatprep.subr.bf16.mxu0 %v460_v1  ;;  %809 = vmatprep.subr.bf16.mxu1 %v462_v9  ;;  %v484_v1 = vld [vmem:[#allocation2 + $0x948] sm:$0xff]  ;;  %v486_v9 = vld [vmem:[#allocation2 + $0x958] sm:$0xff] }
  0xd2   :  { %724 = vmatpush1.bf16.msra.mxu0 %v459_v36  ;;  %810 = vmatpush1.bf16.msra.mxu1 %v461_v22  ;;  %v483_v36 = vld [vmem:[#allocation2 + $0x940] sm:$0xff]  ;;  %v485_v22 = vld [vmem:[#allocation2 + $0x950] sm:$0xff] }
  0xd3   :  { %725 = vmatprep.subr.bf16.mxu0 %v468_v21  ;;  %811 = vmatprep.subr.bf16.mxu1 %v470_v29  ;;  %v492_v21 = vld [vmem:[#allocation2 + $0x988] sm:$0xff]  ;;  %v494_v29 = vld [vmem:[#allocation2 + $0x998] sm:$0xff] }
  0xd6   :  { %726 = vmatpush1.bf16.msra.mxu0 %v467_v20  ;;  %812 = vmatpush1.bf16.msra.mxu1 %v469_v46  ;;  %v491_v20 = vld [vmem:[#allocation2 + $0x980] sm:$0xff]  ;;  %v493_v46 = vld [vmem:[#allocation2 + $0x990] sm:$0xff] }
  0xd7   :  { %727 = vmatprep.subr.bf16.mxu0 %v476_v31  ;;  %813 = vmatprep.subr.bf16.mxu1 %v478_v30  ;;  %v500_v31 = vld [vmem:[#allocation2 + $0x9c8] sm:$0xff]  ;;  %v502_v30 = vld [vmem:[#allocation2 + $0x9d8] sm:$0xff] }
  0xda   :  { %728 = vmatpush1.bf16.msra.mxu0 %v475_v38  ;;  %814 = vmatpush1.bf16.msra.mxu1 %v477_v28  ;;  %v499_v38 = vld [vmem:[#allocation2 + $0x9c0] sm:$0xff]  ;;  %v501_v28 = vld [vmem:[#allocation2 + $0x9d0] sm:$0xff] }
  0xdb   :  { %729 = vmatprep.subr.bf16.mxu0 %v484_v1  ;;  %815 = vmatprep.subr.bf16.mxu1 %v486_v9  ;;  %v508_v1 = vld [vmem:[#allocation2 + $0xa08] sm:$0xff]  ;;  %v510_v9 = vld [vmem:[#allocation2 + $0xa18] sm:$0xff] }
  0xde   :  { %730 = vmatpush1.bf16.msra.mxu0 %v483_v36  ;;  %816 = vmatpush1.bf16.msra.mxu1 %v485_v22  ;;  %v507_v36 = vld [vmem:[#allocation2 + $0xa00] sm:$0xff]  ;;  %v509_v22 = vld [vmem:[#allocation2 + $0xa10] sm:$0xff] }
  0xdf   :  { %731 = vmatprep.subr.bf16.mxu0 %v492_v21  ;;  %817 = vmatprep.subr.bf16.mxu1 %v494_v29  ;;  %v516_v21 = vld [vmem:[#allocation2 + $0xa48] sm:$0xff]  ;;  %v518_v29 = vld [vmem:[#allocation2 + $0xa58] sm:$0xff] }
  0xe2   :  { %732 = vmatpush1.bf16.msra.mxu0 %v491_v20  ;;  %818 = vmatpush1.bf16.msra.mxu1 %v493_v46  ;;  %v515_v20 = vld [vmem:[#allocation2 + $0xa40] sm:$0xff]  ;;  %v517_v46 = vld [vmem:[#allocation2 + $0xa50] sm:$0xff] }
  0xe3   :  { %733 = vmatprep.subr.bf16.mxu0 %v500_v31  ;;  %819 = vmatprep.subr.bf16.mxu1 %v502_v30  ;;  %v524_v31 = vld [vmem:[#allocation2 + $0xa88] sm:$0xff]  ;;  %v526_v30 = vld [vmem:[#allocation2 + $0xa98] sm:$0xff] }
  0xe6   :  { %734 = vmatpush1.bf16.msra.mxu0 %v499_v38  ;;  %820 = vmatpush1.bf16.msra.mxu1 %v501_v28  ;;  %v523_v38 = vld [vmem:[#allocation2 + $0xa80] sm:$0xff]  ;;  %v525_v28 = vld [vmem:[#allocation2 + $0xa90] sm:$0xff] }
  0xe7   :  { %735 = vmatprep.subr.bf16.mxu0 %v508_v1  ;;  %821 = vmatprep.subr.bf16.mxu1 %v510_v9  ;;  %v532_v1 = vld [vmem:[#allocation2 + $0xac8] sm:$0xff]  ;;  %v534_v9 = vld [vmem:[#allocation2 + $0xad8] sm:$0xff] }
  0xea   :  { %736 = vmatpush1.bf16.msra.mxu0 %v507_v36  ;;  %822 = vmatpush1.bf16.msra.mxu1 %v509_v22  ;;  %v531_v36 = vld [vmem:[#allocation2 + $0xac0] sm:$0xff]  ;;  %v533_v22 = vld [vmem:[#allocation2 + $0xad0] sm:$0xff] }
  0xeb   :  { %737 = vmatprep.subr.bf16.mxu0 %v516_v21  ;;  %823 = vmatprep.subr.bf16.mxu1 %v518_v29  ;;  %v540_v21 = vld [vmem:[#allocation2 + $0xb08] sm:$0xff]  ;;  %v542_v29 = vld [vmem:[#allocation2 + $0xb18] sm:$0xff] }
  0xee   :  { %738 = vmatpush1.bf16.msra.mxu0 %v515_v20  ;;  %824 = vmatpush1.bf16.msra.mxu1 %v517_v46  ;;  %v539_v20 = vld [vmem:[#allocation2 + $0xb00] sm:$0xff]  ;;  %v541_v46 = vld [vmem:[#allocation2 + $0xb10] sm:$0xff] }
  0xef   :  { %739 = vmatprep.subr.bf16.mxu0 %v524_v31  ;;  %825 = vmatprep.subr.bf16.mxu1 %v526_v30  ;;  %v548_v31 = vld [vmem:[#allocation2 + $0xb48] sm:$0xff]  ;;  %v550_v30 = vld [vmem:[#allocation2 + $0xb58] sm:$0xff] }
  0xf2   :  { %740 = vmatpush1.bf16.msra.mxu0 %v523_v38  ;;  %826 = vmatpush1.bf16.msra.mxu1 %v525_v28  ;;  %v547_v38 = vld [vmem:[#allocation2 + $0xb40] sm:$0xff]  ;;  %v549_v28 = vld [vmem:[#allocation2 + $0xb50] sm:$0xff] }
  0xf3   :  { %741 = vmatprep.subr.bf16.mxu0 %v532_v1  ;;  %827 = vmatprep.subr.bf16.mxu1 %v534_v9  ;;  %v556_v1 = vld [vmem:[#allocation2 + $0xb88] sm:$0xff]  ;;  %v558_v9 = vld [vmem:[#allocation2 + $0xb98] sm:$0xff] }
  0xf6   :  { %742 = vmatpush1.bf16.msra.mxu0 %v531_v36  ;;  %828 = vmatpush1.bf16.msra.mxu1 %v533_v22  ;;  %v555_v36 = vld [vmem:[#allocation2 + $0xb80] sm:$0xff]  ;;  %v557_v22 = vld [vmem:[#allocation2 + $0xb90] sm:$0xff] }
  0xf7   :  { %743 = vmatprep.subr.bf16.mxu0 %v540_v21  ;;  %829 = vmatprep.subr.bf16.mxu1 %v542_v29  ;;  %v564_v21 = vld [vmem:[#allocation2 + $0xbc8] sm:$0xff]  ;;  %v566_v29 = vld [vmem:[#allocation2 + $0xbd8] sm:$0xff] }
  0xfa   :  { %744 = vmatpush1.bf16.msra.mxu0 %v539_v20  ;;  %830 = vmatpush1.bf16.msra.mxu1 %v541_v46  ;;  %v563_v20 = vld [vmem:[#allocation2 + $0xbc0] sm:$0xff]  ;;  %v565_v46 = vld [vmem:[#allocation2 + $0xbd0] sm:$0xff] }
  0xfb   :  { %745 = vmatprep.subr.bf16.mxu0 %v548_v31  ;;  %831 = vmatprep.subr.bf16.mxu1 %v550_v30  ;;  %v572_v31 = vld [vmem:[#allocation2 + $0xc08] sm:$0xff]  ;;  %v574_v30 = vld [vmem:[#allocation2 + $0xc18] sm:$0xff] }
  0xfe   :  { %746 = vmatpush1.bf16.msra.mxu0 %v547_v38  ;;  %832 = vmatpush1.bf16.msra.mxu1 %v549_v28  ;;  %v571_v38 = vld [vmem:[#allocation2 + $0xc00] sm:$0xff]  ;;  %v573_v28 = vld [vmem:[#allocation2 + $0xc10] sm:$0xff] }
  0xff   :  { %747 = vmatprep.subr.bf16.mxu0 %v556_v1  ;;  %833 = vmatprep.subr.bf16.mxu1 %v558_v9  ;;  %v580_v1 = vld [vmem:[#allocation2 + $0xc48] sm:$0xff]  ;;  %v582_v9 = vld [vmem:[#allocation2 + $0xc58] sm:$0xff] }
 0x102   :  { %748 = vmatpush1.bf16.msra.mxu0 %v555_v36  ;;  %834 = vmatpush1.bf16.msra.mxu1 %v557_v22  ;;  %v7261_v36 = vcombine.high %v6677_v3, %v6698_v11  ;;  %v588_v22 = vld [vmem:[#allocation2 + $0xc88] sm:$0xff] }
 0x103   :  { %749 = vmatprep.subr.bf16.mxu0 %v564_v21  ;;  %835 = vmatprep.subr.bf16.mxu1 %v566_v29  ;;  %v590_v21 = vld [vmem:[#allocation2 + $0xc98] sm:$0xff]  ;;  %v587_v29 = vld [vmem:[#allocation2 + $0xc80] sm:$0xff] }
 0x106   :  { %750 = vmatpush1.bf16.msra.mxu0 %v563_v20  ;;  %836 = vmatpush1.bf16.msra.mxu1 %v565_v46  ;;  %v589_v20 = vld [vmem:[#allocation2 + $0xc90] sm:$0xff]  ;;  %v596_v46 = vld [vmem:[#allocation2 + $0xcc8] sm:$0xff] }
 0x107   :  { %762 = vmatprep.subr.bf16.mxu0 %v572_v31  ;;  %848 = vmatprep.subr.bf16.mxu1 %v574_v30  ;;  %v598_v31 = vld [vmem:[#allocation2 + $0xcd8] sm:$0xff]  ;;  %v595_v30 = vld [vmem:[#allocation2 + $0xcc0] sm:$0xff] }
 0x109   :  { %752 = vmatmul.mubr.bf16.vlgmr.msra.gmra.mrb[0].mxu0 %v7257_v39  ;;  %838 = vmatmul.mubr.bf16.vlgmr.msra.gmra.mrb[0].mxu1 %v7257_v39 }
 0x10a   :  { %763 = vmatpush1.bf16.msra.mxu0 %v571_v38  ;;  %849 = vmatpush1.bf16.msra.mxu1 %v573_v28  ;;  %v597_v38 = vld [vmem:[#allocation2 + $0xcd0] sm:$0xff]  ;;  %v604_v28 = vld [vmem:[#allocation2 + $0xd08] sm:$0xff] }
 0x10b   :  { %764 = vmatprep.subr.bf16.mxu0 %v580_v1  ;;  %850 = vmatprep.subr.bf16.mxu1 %v582_v9  ;;  %v606_v1 = vld [vmem:[#allocation2 + $0xd18] sm:$0xff]  ;;  %v603_v9 = vld [vmem:[#allocation2 + $0xd00] sm:$0xff] }
 0x10c   :  { %794 = vmatprep.mubr.bf16.mxu0 %v7261_v36  ;;  %880 = vmatprep.mubr.bf16.mxu1 %v7261_v36 }
 0x10e   :  { %765 = vmatpush1.bf16.msra.mxu0 %v579_v2  ;;  %851 = vmatpush1.bf16.msra.mxu1 %v581_v10  ;;  %v605_v2 = vld [vmem:[#allocation2 + $0xd10] sm:$0xff]  ;;  %v612_v10 = vld [vmem:[#allocation2 + $0xd48] sm:$0xff] }
 0x10f   :  { %766 = vmatprep.subr.bf16.mxu0 %v588_v22  ;;  %852 = vmatprep.subr.bf16.mxu1 %v590_v21  ;;  %v614_v22 = vld [vmem:[#allocation2 + $0xd58] sm:$0xff]  ;;  %v611_v21 = vld [vmem:[#allocation2 + $0xd40] sm:$0xff] }
 0x112   :  { %767 = vmatpush1.bf16.msra.mxu0 %v587_v29  ;;  %853 = vmatpush1.bf16.msra.mxu1 %v589_v20  ;;  %v613_v29 = vld [vmem:[#allocation2 + $0xd50] sm:$0xff]  ;;  %v620_v20 = vld [vmem:[#allocation2 + $0xd88] sm:$0xff] }
 0x113   :  { %768 = vmatprep.subr.bf16.mxu0 %v596_v46  ;;  %854 = vmatprep.subr.bf16.mxu1 %v598_v31  ;;  %v622_v46 = vld [vmem:[#allocation2 + $0xd98] sm:$0xff]  ;;  %v619_v31 = vld [vmem:[#allocation2 + $0xd80] sm:$0xff] }
 0x116   :  { %769 = vmatpush1.bf16.msra.mxu0 %v595_v30  ;;  %855 = vmatpush1.bf16.msra.mxu1 %v597_v38  ;;  %v621_v30 = vld [vmem:[#allocation2 + $0xd90] sm:$0xff]  ;;  %v628_v38 = vld [vmem:[#allocation2 + $0xdc8] sm:$0xff] }
 0x117   :  { %770 = vmatprep.subr.bf16.mxu0 %v604_v28  ;;  %856 = vmatprep.subr.bf16.mxu1 %v606_v1  ;;  %v630_v28 = vld [vmem:[#allocation2 + $0xdd8] sm:$0xff]  ;;  %v627_v1 = vld [vmem:[#allocation2 + $0xdc0] sm:$0xff] }
 0x11a   :  { %771 = vmatpush1.bf16.msra.mxu0 %v603_v9  ;;  %857 = vmatpush1.bf16.msra.mxu1 %v605_v2  ;;  %v629_v9 = vld [vmem:[#allocation2 + $0xdd0] sm:$0xff]  ;;  %v636_v2 = vld [vmem:[#allocation2 + $0xe08] sm:$0xff] }
 0x11b   :  { %772 = vmatprep.subr.bf16.mxu0 %v612_v10  ;;  %858 = vmatprep.subr.bf16.mxu1 %v614_v22  ;;  %v638_v10 = vld [vmem:[#allocation2 + $0xe18] sm:$0xff]  ;;  %v635_v22 = vld [vmem:[#allocation2 + $0xe00] sm:$0xff] }
 0x11e   :  { %773 = vmatpush1.bf16.msra.mxu0 %v611_v21  ;;  %859 = vmatpush1.bf16.msra.mxu1 %v613_v29  ;;  %v637_v21 = vld [vmem:[#allocation2 + $0xe10] sm:$0xff]  ;;  %v644_v29 = vld [vmem:[#allocation2 + $0xe48] sm:$0xff] }
 0x11f   :  { %774 = vmatprep.subr.bf16.mxu0 %v620_v20  ;;  %860 = vmatprep.subr.bf16.mxu1 %v622_v46  ;;  %v646_v20 = vld [vmem:[#allocation2 + $0xe58] sm:$0xff]  ;;  %v643_v46 = vld [vmem:[#allocation2 + $0xe40] sm:$0xff] }
 0x122   :  { %775 = vmatpush1.bf16.msra.mxu0 %v619_v31  ;;  %861 = vmatpush1.bf16.msra.mxu1 %v621_v30  ;;  %v645_v31 = vld [vmem:[#allocation2 + $0xe50] sm:$0xff]  ;;  %v652_v30 = vld [vmem:[#allocation2 + $0xe88] sm:$0xff] }
 0x123   :  { %776 = vmatprep.subr.bf16.mxu0 %v628_v38  ;;  %862 = vmatprep.subr.bf16.mxu1 %v630_v28  ;;  %v654_v38 = vld [vmem:[#allocation2 + $0xe98] sm:$0xff]  ;;  %v651_v28 = vld [vmem:[#allocation2 + $0xe80] sm:$0xff] }
 0x126   :  { %777 = vmatpush1.bf16.msra.mxu0 %v627_v1  ;;  %863 = vmatpush1.bf16.msra.mxu1 %v629_v9  ;;  %v653_v1 = vld [vmem:[#allocation2 + $0xe90] sm:$0xff]  ;;  %v660_v9 = vld [vmem:[#allocation2 + $0xec8] sm:$0xff] }
 0x127   :  { %778 = vmatprep.subr.bf16.mxu0 %v636_v2  ;;  %864 = vmatprep.subr.bf16.mxu1 %v638_v10  ;;  %v662_v2 = vld [vmem:[#allocation2 + $0xed8] sm:$0xff]  ;;  %v659_v10 = vld [vmem:[#allocation2 + $0xec0] sm:$0xff] }
 0x12a   :  { %779 = vmatpush1.bf16.msra.mxu0 %v635_v22  ;;  %865 = vmatpush1.bf16.msra.mxu1 %v637_v21  ;;  %v661_v22 = vld [vmem:[#allocation2 + $0xed0] sm:$0xff]  ;;  %v668_v21 = vld [vmem:[#allocation2 + $0xf08] sm:$0xff] }
 0x12b   :  { %780 = vmatprep.subr.bf16.mxu0 %v644_v29  ;;  %866 = vmatprep.subr.bf16.mxu1 %v646_v20  ;;  %v670_v29 = vld [vmem:[#allocation2 + $0xf18] sm:$0xff]  ;;  %v667_v20 = vld [vmem:[#allocation2 + $0xf00] sm:$0xff] }
 0x12e   :  { %781 = vmatpush1.bf16.msra.mxu0 %v643_v46  ;;  %867 = vmatpush1.bf16.msra.mxu1 %v645_v31  ;;  %v669_v46 = vld [vmem:[#allocation2 + $0xf10] sm:$0xff]  ;;  %v676_v31 = vld [vmem:[#allocation2 + $0xf48] sm:$0xff] }
 0x12f   :  { %782 = vmatprep.subr.bf16.mxu0 %v652_v30  ;;  %868 = vmatprep.subr.bf16.mxu1 %v654_v38  ;;  %v678_v30 = vld [vmem:[#allocation2 + $0xf58] sm:$0xff]  ;;  %v675_v38 = vld [vmem:[#allocation2 + $0xf40] sm:$0xff] }
 0x132   :  { %783 = vmatpush1.bf16.msra.mxu0 %v651_v28  ;;  %869 = vmatpush1.bf16.msra.mxu1 %v653_v1  ;;  %v677_v28 = vld [vmem:[#allocation2 + $0xf50] sm:$0xff]  ;;  %v684_v1 = vld [vmem:[#allocation2 + $0xf88] sm:$0xff] }
 0x133   :  { %784 = vmatprep.subr.bf16.mxu0 %v660_v9  ;;  %870 = vmatprep.subr.bf16.mxu1 %v662_v2  ;;  %v686_v9 = vld [vmem:[#allocation2 + $0xf98] sm:$0xff]  ;;  %v683_v2 = vld [vmem:[#allocation2 + $0xf80] sm:$0xff] }
 0x136   :  { %785 = vmatpush1.bf16.msra.mxu0 %v659_v10  ;;  %871 = vmatpush1.bf16.msra.mxu1 %v661_v22  ;;  %v685_v10 = vld [vmem:[#allocation2 + $0xf90] sm:$0xff]  ;;  %v692_v22 = vld [vmem:[#allocation2 + $0xfc8] sm:$0xff] }
 0x137   :  { %786 = vmatprep.subr.bf16.mxu0 %v668_v21  ;;  %872 = vmatprep.subr.bf16.mxu1 %v670_v29  ;;  %v694_v21 = vld [vmem:[#allocation2 + $0xfd8] sm:$0xff]  ;;  %v691_v29 = vld [vmem:[#allocation2 + $0xfc0] sm:$0xff] }
 0x13a   :  { %787 = vmatpush1.bf16.msra.mxu0 %v667_v20  ;;  %873 = vmatpush1.bf16.msra.mxu1 %v669_v46  ;;  %v693_v20 = vld [vmem:[#allocation2 + $0xfd0] sm:$0xff]  ;;  %v448_v46 = vld [vmem:[#allocation2 + $0x828] sm:$0xff] }
 0x13b   :  { %788 = vmatprep.subr.bf16.mxu0 %v676_v31  ;;  %874 = vmatprep.subr.bf16.mxu1 %v678_v30  ;;  %v450_v31 = vld [vmem:[#allocation2 + $0x838] sm:$0xff]  ;;  %v7269_v30 = vcombine.low %v6677_v3, %v6698_v11  ;;  %v464_v3 = vld [vmem:[#allocation2 + $0x8a8] sm:$0xff] }
 0x13c   :  { %v466_v11 = vld [vmem:[#allocation2 + $0x8b8] sm:$0xff] }
 0x13e   :  { %789 = vmatpush1.bf16.msra.mxu0 %v675_v38  ;;  %875 = vmatpush1.bf16.msra.mxu1 %v677_v28  ;;  %v447_v38 = vld [vmem:[#allocation2 + $0x820] sm:$0xff]  ;;  %v449_v28 = vld [vmem:[#allocation2 + $0x830] sm:$0xff] }
 0x13f   :  { %790 = vmatprep.subr.bf16.mxu0 %v684_v1  ;;  %876 = vmatprep.subr.bf16.mxu1 %v686_v9  ;;  %v456_v1 = vld [vmem:[#allocation2 + $0x868] sm:$0xff]  ;;  %v458_v9 = vld [vmem:[#allocation2 + $0x878] sm:$0xff] }
 0x142   :  { %791 = vmatpush1.bf16.msra.mxu0 %v683_v2  ;;  %877 = vmatpush1.bf16.msra.mxu1 %v685_v10  ;;  %v455_v2 = vld [vmem:[#allocation2 + $0x860] sm:$0xff]  ;;  %v457_v10 = vld [vmem:[#allocation2 + $0x870] sm:$0xff] }
 0x143   :  { %792 = vmatprep.subr.bf16.mxu0 %v692_v22  ;;  %878 = vmatprep.subr.bf16.mxu1 %v694_v21  ;;  %v463_v22 = vld [vmem:[#allocation2 + $0x8a0] sm:$0xff]  ;;  %v465_v21 = vld [vmem:[#allocation2 + $0x8b0] sm:$0xff] }
 0x146   :  { %793 = vmatpush1.bf16.msra.mxu0 %v691_v29  ;;  %879 = vmatpush1.bf16.msra.mxu1 %v693_v20  ;;  %v472_v29 = vld [vmem:[#allocation2 + $0x8e8] sm:$0xff]  ;;  %v474_v20 = vld [vmem:[#allocation2 + $0x8f8] sm:$0xff] }
 0x147   :  { %891 = vmatprep.subr.bf16.mxu0 %v448_v46  ;;  %977 = vmatprep.subr.bf16.mxu1 %v450_v31  ;;  %v471_v46 = vld [vmem:[#allocation2 + $0x8e0] sm:$0xff]  ;;  %v473_v31 = vld [vmem:[#allocation2 + $0x8f0] sm:$0xff] }
 0x149   :  { %795 = vmatmul.mubr.bf16.vlgmr.msra.gmra.mrb[0].mxu0 %v7269_v30  ;;  %881 = vmatmul.mubr.bf16.vlgmr.msra.gmra.mrb[0].mxu1 %v7269_v30 }
 0x14a   :  { %892 = vmatpush1.bf16.msra.mxu0 %v447_v38  ;;  %978 = vmatpush1.bf16.msra.mxu1 %v449_v28  ;;  %v480_v38 = vld [vmem:[#allocation2 + $0x928] sm:$0xff]  ;;  %v482_v28 = vld [vmem:[#allocation2 + $0x938] sm:$0xff] }
 0x14b   :  { %893 = vmatprep.subr.bf16.mxu0 %v456_v1  ;;  %979 = vmatprep.subr.bf16.mxu1 %v458_v9  ;;  %v481_v1 = vld [vmem:[#allocation2 + $0x930] sm:$0xff]  ;;  %v488_v9 = vld [vmem:[#allocation2 + $0x968] sm:$0xff] }
 0x14c   :  { %923 = vmatprep.mubr.bf16.mxu0 %v7242_v23  ;;  %1009 = vmatprep.mubr.bf16.mxu1 %v7242_v23  ;;  %v479_v23 = vld [vmem:[#allocation2 + $0x920] sm:$0xff] }
 0x14e   :  { %894 = vmatpush1.bf16.msra.mxu0 %v455_v2  ;;  %980 = vmatpush1.bf16.msra.mxu1 %v457_v10  ;;  %v490_v2 = vld [vmem:[#allocation2 + $0x978] sm:$0xff]  ;;  %v487_v10 = vld [vmem:[#allocation2 + $0x960] sm:$0xff] }
 0x14f   :  { %895 = vmatprep.subr.bf16.mxu0 %v464_v3  ;;  %981 = vmatprep.subr.bf16.mxu1 %v466_v11  ;;  %v489_v3 = vld [vmem:[#allocation2 + $0x970] sm:$0xff]  ;;  %v496_v11 = vld [vmem:[#allocation2 + $0x9a8] sm:$0xff] }
 0x152   :  { %896 = vmatpush1.bf16.msra.mxu0 %v463_v22  ;;  %982 = vmatpush1.bf16.msra.mxu1 %v465_v21  ;;  %v498_v22 = vld [vmem:[#allocation2 + $0x9b8] sm:$0xff]  ;;  %v495_v21 = vld [vmem:[#allocation2 + $0x9a0] sm:$0xff] }
 0x153   :  { %897 = vmatprep.subr.bf16.mxu0 %v472_v29  ;;  %983 = vmatprep.subr.bf16.mxu1 %v474_v20  ;;  %v497_v29 = vld [vmem:[#allocation2 + $0x9b0] sm:$0xff]  ;;  %v504_v20 = vld [vmem:[#allocation2 + $0x9e8] sm:$0xff] }
 0x156   :  { %898 = vmatpush1.bf16.msra.mxu0 %v471_v46  ;;  %984 = vmatpush1.bf16.msra.mxu1 %v473_v31  ;;  %v506_v46 = vld [vmem:[#allocation2 + $0x9f8] sm:$0xff]  ;;  %v503_v31 = vld [vmem:[#allocation2 + $0x9e0] sm:$0xff] }
 0x157   :  { %899 = vmatprep.subr.bf16.mxu0 %v480_v38  ;;  %985 = vmatprep.subr.bf16.mxu1 %v482_v28  ;;  %v505_v38 = vld [vmem:[#allocation2 + $0x9f0] sm:$0xff]  ;;  %v512_v28 = vld [vmem:[#allocation2 + $0xa28] sm:$0xff] }
 0x15a   :  { %900 = vmatpush1.bf16.msra.mxu0 %v479_v23  ;;  %986 = vmatpush1.bf16.msra.mxu1 %v481_v1  ;;  %v514_v23 = vld [vmem:[#allocation2 + $0xa38] sm:$0xff]  ;;  %v511_v1 = vld [vmem:[#allocation2 + $0xa20] sm:$0xff] }
 0x15b   :  { %901 = vmatprep.subr.bf16.mxu0 %v488_v9  ;;  %987 = vmatprep.subr.bf16.mxu1 %v490_v2  ;;  %v513_v9 = vld [vmem:[#allocation2 + $0xa30] sm:$0xff]  ;;  %v520_v2 = vld [vmem:[#allocation2 + $0xa68] sm:$0xff] }
 0x15e   :  { %902 = vmatpush1.bf16.msra.mxu0 %v487_v10  ;;  %988 = vmatpush1.bf16.msra.mxu1 %v489_v3  ;;  %v522_v10 = vld [vmem:[#allocation2 + $0xa78] sm:$0xff]  ;;  %v519_v3 = vld [vmem:[#allocation2 + $0xa60] sm:$0xff] }
 0x15f   :  { %903 = vmatprep.subr.bf16.mxu0 %v496_v11  ;;  %989 = vmatprep.subr.bf16.mxu1 %v498_v22  ;;  %v521_v11 = vld [vmem:[#allocation2 + $0xa70] sm:$0xff]  ;;  %v528_v22 = vld [vmem:[#allocation2 + $0xaa8] sm:$0xff] }
 0x162   :  { %904 = vmatpush1.bf16.msra.mxu0 %v495_v21  ;;  %990 = vmatpush1.bf16.msra.mxu1 %v497_v29  ;;  %v530_v21 = vld [vmem:[#allocation2 + $0xab8] sm:$0xff]  ;;  %v527_v29 = vld [vmem:[#allocation2 + $0xaa0] sm:$0xff] }
 0x163   :  { %905 = vmatprep.subr.bf16.mxu0 %v504_v20  ;;  %991 = vmatprep.subr.bf16.mxu1 %v506_v46  ;;  %v529_v20 = vld [vmem:[#allocation2 + $0xab0] sm:$0xff]  ;;  %v536_v46 = vld [vmem:[#allocation2 + $0xae8] sm:$0xff] }
 0x166   :  { %906 = vmatpush1.bf16.msra.mxu0 %v503_v31  ;;  %992 = vmatpush1.bf16.msra.mxu1 %v505_v38  ;;  %v538_v31 = vld [vmem:[#allocation2 + $0xaf8] sm:$0xff]  ;;  %v535_v38 = vld [vmem:[#allocation2 + $0xae0] sm:$0xff] }
 0x167   :  { %907 = vmatprep.subr.bf16.mxu0 %v512_v28  ;;  %993 = vmatprep.subr.bf16.mxu1 %v514_v23  ;;  %v537_v28 = vld [vmem:[#allocation2 + $0xaf0] sm:$0xff]  ;;  %v544_v23 = vld [vmem:[#allocation2 + $0xb28] sm:$0xff] }
 0x16a   :  { %908 = vmatpush1.bf16.msra.mxu0 %v511_v1  ;;  %994 = vmatpush1.bf16.msra.mxu1 %v513_v9  ;;  %v546_v1 = vld [vmem:[#allocation2 + $0xb38] sm:$0xff]  ;;  %v543_v9 = vld [vmem:[#allocation2 + $0xb20] sm:$0xff] }
 0x16b   :  { %909 = vmatprep.subr.bf16.mxu0 %v520_v2  ;;  %995 = vmatprep.subr.bf16.mxu1 %v522_v10  ;;  %v545_v2 = vld [vmem:[#allocation2 + $0xb30] sm:$0xff]  ;;  %v552_v10 = vld [vmem:[#allocation2 + $0xb68] sm:$0xff] }
 0x16e   :  { %910 = vmatpush1.bf16.msra.mxu0 %v519_v3  ;;  %996 = vmatpush1.bf16.msra.mxu1 %v521_v11  ;;  %v554_v3 = vld [vmem:[#allocation2 + $0xb78] sm:$0xff]  ;;  %v551_v11 = vld [vmem:[#allocation2 + $0xb60] sm:$0xff] }
 0x16f   :  { %911 = vmatprep.subr.bf16.mxu0 %v528_v22  ;;  %997 = vmatprep.subr.bf16.mxu1 %v530_v21  ;;  %v553_v22 = vld [vmem:[#allocation2 + $0xb70] sm:$0xff]  ;;  %v560_v21 = vld [vmem:[#allocation2 + $0xba8] sm:$0xff] }
 0x172   :  { %912 = vmatpush1.bf16.msra.mxu0 %v527_v29  ;;  %998 = vmatpush1.bf16.msra.mxu1 %v529_v20  ;;  %v562_v29 = vld [vmem:[#allocation2 + $0xbb8] sm:$0xff]  ;;  %v559_v20 = vld [vmem:[#allocation2 + $0xba0] sm:$0xff] }
 0x173   :  { %913 = vmatprep.subr.bf16.mxu0 %v536_v46  ;;  %999 = vmatprep.subr.bf16.mxu1 %v538_v31  ;;  %v561_v46 = vld [vmem:[#allocation2 + $0xbb0] sm:$0xff]  ;;  %v568_v31 = vld [vmem:[#allocation2 + $0xbe8] sm:$0xff] }
 0x176   :  { %914 = vmatpush1.bf16.msra.mxu0 %v535_v38  ;;  %1000 = vmatpush1.bf16.msra.mxu1 %v537_v28  ;;  %v570_v38 = vld [vmem:[#allocation2 + $0xbf8] sm:$0xff]  ;;  %v567_v28 = vld [vmem:[#allocation2 + $0xbe0] sm:$0xff] }
 0x177   :  { %915 = vmatprep.subr.bf16.mxu0 %v544_v23  ;;  %1001 = vmatprep.subr.bf16.mxu1 %v546_v1  ;;  %v569_v23 = vld [vmem:[#allocation2 + $0xbf0] sm:$0xff]  ;;  %v576_v1 = vld [vmem:[#allocation2 + $0xc28] sm:$0xff] }
 0x17a   :  { %916 = vmatpush1.bf16.msra.mxu0 %v543_v9  ;;  %1002 = vmatpush1.bf16.msra.mxu1 %v545_v2  ;;  %v578_v9 = vld [vmem:[#allocation2 + $0xc38] sm:$0xff]  ;;  %v575_v2 = vld [vmem:[#allocation2 + $0xc20] sm:$0xff] }
 0x17b   :  { %917 = vmatprep.subr.bf16.mxu0 %v552_v10  ;;  %1003 = vmatprep.subr.bf16.mxu1 %v554_v3  ;;  %v577_v10 = vld [vmem:[#allocation2 + $0xc30] sm:$0xff]  ;;  %v584_v3 = vld [vmem:[#allocation2 + $0xc68] sm:$0xff] }
 0x17e   :  { %918 = vmatpush1.bf16.msra.mxu0 %v551_v11  ;;  %1004 = vmatpush1.bf16.msra.mxu1 %v553_v22  ;;  %v586_v11 = vld [vmem:[#allocation2 + $0xc78] sm:$0xff]  ;;  %v583_v22 = vld [vmem:[#allocation2 + $0xc60] sm:$0xff] }
 0x17f   :  { %919 = vmatprep.subr.bf16.mxu0 %v560_v21  ;;  %1005 = vmatprep.subr.bf16.mxu1 %v562_v29  ;;  %v585_v21 = vld [vmem:[#allocation2 + $0xc70] sm:$0xff]  ;;  %v592_v29 = vld [vmem:[#allocation2 + $0xca8] sm:$0xff] }
 0x182   :  { %920 = vmatpush1.bf16.msra.mxu0 %v559_v20  ;;  %1006 = vmatpush1.bf16.msra.mxu1 %v561_v46  ;;  %v594_v20 = vld [vmem:[#allocation2 + $0xcb8] sm:$0xff]  ;;  %v591_v46 = vld [vmem:[#allocation2 + $0xca0] sm:$0xff] }
 0x183   :  { %921 = vmatprep.subr.bf16.mxu0 %v568_v31  ;;  %1007 = vmatprep.subr.bf16.mxu1 %v570_v38  ;;  %v593_v31 = vld [vmem:[#allocation2 + $0xcb0] sm:$0xff]  ;;  %v600_v38 = vld [vmem:[#allocation2 + $0xce8] sm:$0xff] }
 0x186   :  { %922 = vmatpush1.bf16.msra.mxu0 %v567_v28  ;;  %1008 = vmatpush1.bf16.msra.mxu1 %v569_v23  ;;  %v599_v28 = vld [vmem:[#allocation2 + $0xce0] sm:$0xff]  ;;  %v601_v23 = vld [vmem:[#allocation2 + $0xcf0] sm:$0xff] }
 0x187   :  { %934 = vmatprep.subr.bf16.mxu0 %v576_v1  ;;  %1020 = vmatprep.subr.bf16.mxu1 %v578_v9  ;;  %v608_v1 = vld [vmem:[#allocation2 + $0xd28] sm:$0xff]  ;;  %v610_v9 = vld [vmem:[#allocation2 + $0xd38] sm:$0xff] }
 0x189   :  { %924 = vmatmul.mubr.bf16.vlgmr.msra.gmra.mrb[4].mxu0 %v7257_v39  ;;  %1010 = vmatmul.mubr.bf16.vlgmr.msra.gmra.mrb[4].mxu1 %v7257_v39  ;;  %v602_v39 = vld [vmem:[#allocation2 + $0xcf8] sm:$0xff] }
 0x18a   :  { %935 = vmatpush1.bf16.msra.mxu0 %v575_v2  ;;  %1021 = vmatpush1.bf16.msra.mxu1 %v577_v10  ;;  %v609_v2 = vld [vmem:[#allocation2 + $0xd30] sm:$0xff]  ;;  %v616_v10 = vld [vmem:[#allocation2 + $0xd68] sm:$0xff] }
 0x18b   :  { %936 = vmatprep.subr.bf16.mxu0 %v584_v3  ;;  %1022 = vmatprep.subr.bf16.mxu1 %v586_v11  ;;  %v618_v3 = vld [vmem:[#allocation2 + $0xd78] sm:$0xff]  ;;  %v615_v11 = vld [vmem:[#allocation2 + $0xd60] sm:$0xff] }
 0x18c   :  { %966 = vmatprep.mubr.bf16.mxu0 %v7261_v36  ;;  %1052 = vmatprep.mubr.bf16.mxu1 %v7261_v36  ;;  %v607_v36 = vld [vmem:[#allocation2 + $0xd20] sm:$0xff] }
 0x18e   :  { %937 = vmatpush1.bf16.msra.mxu0 %v583_v22  ;;  %1023 = vmatpush1.bf16.msra.mxu1 %v585_v21  ;;  %v617_v22 = vld [vmem:[#allocation2 + $0xd70] sm:$0xff]  ;;  %v624_v21 = vld [vmem:[#allocation2 + $0xda8] sm:$0xff] }
 0x18f   :  { %938 = vmatprep.subr.bf16.mxu0 %v592_v29  ;;  %1024 = vmatprep.subr.bf16.mxu1 %v594_v20  ;;  %v626_v29 = vld [vmem:[#allocation2 + $0xdb8] sm:$0xff]  ;;  %v623_v20 = vld [vmem:[#allocation2 + $0xda0] sm:$0xff] }
 0x192   :  { %939 = vmatpush1.bf16.msra.mxu0 %v591_v46  ;;  %1025 = vmatpush1.bf16.msra.mxu1 %v593_v31  ;;  %v625_v46 = vld [vmem:[#allocation2 + $0xdb0] sm:$0xff]  ;;  %v632_v31 = vld [vmem:[#allocation2 + $0xde8] sm:$0xff] }
 0x193   :  { %940 = vmatprep.subr.bf16.mxu0 %v600_v38  ;;  %1026 = vmatprep.subr.bf16.mxu1 %v602_v39  ;;  %v634_v38 = vld [vmem:[#allocation2 + $0xdf8] sm:$0xff]  ;;  %v631_v39 = vld [vmem:[#allocation2 + $0xde0] sm:$0xff] }
 0x196   :  { %941 = vmatpush1.bf16.msra.mxu0 %v599_v28  ;;  %1027 = vmatpush1.bf16.msra.mxu1 %v601_v23  ;;  %v633_v28 = vld [vmem:[#allocation2 + $0xdf0] sm:$0xff]  ;;  %v640_v23 = vld [vmem:[#allocation2 + $0xe28] sm:$0xff] }
 0x197   :  { %942 = vmatprep.subr.bf16.mxu0 %v608_v1  ;;  %1028 = vmatprep.subr.bf16.mxu1 %v610_v9  ;;  %v642_v1 = vld [vmem:[#allocation2 + $0xe38] sm:$0xff]  ;;  %v639_v9 = vld [vmem:[#allocation2 + $0xe20] sm:$0xff] }
 0x19a   :  { %943 = vmatpush1.bf16.msra.mxu0 %v607_v36  ;;  %1029 = vmatpush1.bf16.msra.mxu1 %v609_v2  ;;  %v641_v36 = vld [vmem:[#allocation2 + $0xe30] sm:$0xff]  ;;  %v648_v2 = vld [vmem:[#allocation2 + $0xe68] sm:$0xff] }
 0x19b   :  { %944 = vmatprep.subr.bf16.mxu0 %v616_v10  ;;  %1030 = vmatprep.subr.bf16.mxu1 %v618_v3  ;;  %v650_v10 = vld [vmem:[#allocation2 + $0xe78] sm:$0xff]  ;;  %v647_v3 = vld [vmem:[#allocation2 + $0xe60] sm:$0xff] }
 0x19e   :  { %945 = vmatpush1.bf16.msra.mxu0 %v615_v11  ;;  %1031 = vmatpush1.bf16.msra.mxu1 %v617_v22  ;;  %v649_v11 = vld [vmem:[#allocation2 + $0xe70] sm:$0xff]  ;;  %v656_v22 = vld [vmem:[#allocation2 + $0xea8] sm:$0xff] }
 0x19f   :  { %946 = vmatprep.subr.bf16.mxu0 %v624_v21  ;;  %1032 = vmatprep.subr.bf16.mxu1 %v626_v29  ;;  %v658_v21 = vld [vmem:[#allocation2 + $0xeb8] sm:$0xff]  ;;  %v655_v29 = vld [vmem:[#allocation2 + $0xea0] sm:$0xff] }
 0x1a2   :  { %947 = vmatpush1.bf16.msra.mxu0 %v623_v20  ;;  %1033 = vmatpush1.bf16.msra.mxu1 %v625_v46  ;;  %v657_v20 = vld [vmem:[#allocation2 + $0xeb0] sm:$0xff]  ;;  %v664_v46 = vld [vmem:[#allocation2 + $0xee8] sm:$0xff] }
 0x1a3   :  { %948 = vmatprep.subr.bf16.mxu0 %v632_v31  ;;  %1034 = vmatprep.subr.bf16.mxu1 %v634_v38  ;;  %v666_v31 = vld [vmem:[#allocation2 + $0xef8] sm:$0xff]  ;;  %v663_v38 = vld [vmem:[#allocation2 + $0xee0] sm:$0xff] }
 0x1a6   :  { %949 = vmatpush1.bf16.msra.mxu0 %v631_v39  ;;  %1035 = vmatpush1.bf16.msra.mxu1 %v633_v28  ;;  %v665_v39 = vld [vmem:[#allocation2 + $0xef0] sm:$0xff]  ;;  %v672_v28 = vld [vmem:[#allocation2 + $0xf28] sm:$0xff] }
 0x1a7   :  { %950 = vmatprep.subr.bf16.mxu0 %v640_v23  ;;  %1036 = vmatprep.subr.bf16.mxu1 %v642_v1  ;;  %v674_v23 = vld [vmem:[#allocation2 + $0xf38] sm:$0xff]  ;;  %v671_v1 = vld [vmem:[#allocation2 + $0xf20] sm:$0xff] }
 0x1aa   :  { %951 = vmatpush1.bf16.msra.mxu0 %v639_v9  ;;  %1037 = vmatpush1.bf16.msra.mxu1 %v641_v36  ;;  %v673_v9 = vld [vmem:[#allocation2 + $0xf30] sm:$0xff]  ;;  %v680_v36 = vld [vmem:[#allocation2 + $0xf68] sm:$0xff] }
 0x1ab   :  { %952 = vmatprep.subr.bf16.mxu0 %v648_v2  ;;  %1038 = vmatprep.subr.bf16.mxu1 %v650_v10  ;;  %v682_v2 = vld [vmem:[#allocation2 + $0xf78] sm:$0xff]  ;;  %v679_v10 = vld [vmem:[#allocation2 + $0xf60] sm:$0xff] }
 0x1ae   :  { %953 = vmatpush1.bf16.msra.mxu0 %v647_v3  ;;  %1039 = vmatpush1.bf16.msra.mxu1 %v649_v11  ;;  %v681_v3 = vld [vmem:[#allocation2 + $0xf70] sm:$0xff]  ;;  %v688_v11 = vld [vmem:[#allocation2 + $0xfa8] sm:$0xff] }
 0x1af   :  { %954 = vmatprep.subr.bf16.mxu0 %v656_v22  ;;  %1040 = vmatprep.subr.bf16.mxu1 %v658_v21  ;;  %v690_v22 = vld [vmem:[#allocation2 + $0xfb8] sm:$0xff]  ;;  %v687_v21 = vld [vmem:[#allocation2 + $0xfa0] sm:$0xff] }
 0x1b2   :  { %955 = vmatpush1.bf16.msra.mxu0 %v655_v29  ;;  %1041 = vmatpush1.bf16.msra.mxu1 %v657_v20  ;;  %v689_v29 = vld [vmem:[#allocation2 + $0xfb0] sm:$0xff]  ;;  %v696_v20 = vld [vmem:[#allocation2 + $0xfe8] sm:$0xff] }
 0x1b3   :  { %956 = vmatprep.subr.bf16.mxu0 %v664_v46  ;;  %1042 = vmatprep.subr.bf16.mxu1 %v666_v31  ;;  %v698_v46 = vld [vmem:[#allocation2 + $0xff8] sm:$0xff]  ;;  %v695_v31 = vld [vmem:[#allocation2 + $0xfe0] sm:$0xff] }
 0x1b6   :  { %957 = vmatpush1.bf16.msra.mxu0 %v663_v38  ;;  %1043 = vmatpush1.bf16.msra.mxu1 %v665_v39  ;;  %v697_v38 = vld [vmem:[#allocation2 + $0xff0] sm:$0xff]  ;;  %v7283_v39 = vcombine.high %v6670_v0, %v6691_v8 }
 0x1b7   :  { %958 = vmatprep.subr.bf16.mxu0 %v672_v28  ;;  %1044 = vmatprep.subr.bf16.mxu1 %v674_v23  ;;  %v9696_v28 = vld [vmem:[#allocation178_spill] sm:$0xff]  ;;  %v9697_v23 = vld [vmem:[#allocation185_spill] sm:$0xff] }
 0x1ba   :  { %959 = vmatpush1.bf16.msra.mxu0 %v671_v1  ;;  %1045 = vmatpush1.bf16.msra.mxu1 %v673_v9  ;;  %v9698_v1 = vld [vmem:[#allocation187_spill] sm:$0xff]  ;;  %v9699_v9 = vld [vmem:[#allocation184_spill] sm:$0xff] }
 0x1bb   :  { %960 = vmatprep.subr.bf16.mxu0 %v680_v36  ;;  %1046 = vmatprep.subr.bf16.mxu1 %v682_v2  ;;  %v9700_v36 = vld [vmem:[#allocation186_spill] sm:$0xff]  ;;  %v9701_v2 = vld [vmem:[#allocation193_spill] sm:$0xff] }
 0x1be   :  { %961 = vmatpush1.bf16.msra.mxu0 %v679_v10  ;;  %1047 = vmatpush1.bf16.msra.mxu1 %v681_v3  ;;  %v9702_v10 = vld [vmem:[#allocation195_spill] sm:$0xff]  ;;  %v9703_v3 = vld [vmem:[#allocation192_spill] sm:$0xff] }
 0x1bf   :  { %962 = vmatprep.subr.bf16.mxu0 %v688_v11  ;;  %1048 = vmatprep.subr.bf16.mxu1 %v690_v22  ;;  %v9704_v11 = vld [vmem:[#allocation194_spill] sm:$0xff]  ;;  %v9705_v22 = vld [vmem:[#allocation201_spill] sm:$0xff] }
 0x1c2   :  { %963 = vmatpush1.bf16.msra.mxu0 %v687_v21  ;;  %1049 = vmatpush1.bf16.msra.mxu1 %v689_v29  ;;  %v9706_v21 = vld [vmem:[#allocation203_spill] sm:$0xff]  ;;  %v9707_v29 = vld [vmem:[#allocation200_spill] sm:$0xff] }
 0x1c3   :  { %964 = vmatprep.subr.bf16.mxu0 %v696_v20  ;;  %1050 = vmatprep.subr.bf16.mxu1 %v698_v46  ;;  %v9708_v20 = vld [vmem:[#allocation202_spill] sm:$0xff]  ;;  %v9709_v46 = vld [vmem:[#allocation209_spill] sm:$0xff] }
 0x1c6   :  { %965 = vmatpush1.bf16.msra.mxu0 %v695_v31  ;;  %1051 = vmatpush1.bf16.msra.mxu1 %v697_v38  ;;  %v9710_v31 = vld [vmem:[#allocation211_spill] sm:$0xff]  ;;  %v9711_v38 = vld [vmem:[#allocation208_spill] sm:$0xff] }
 0x1c7   :  { %1083 = vmatprep.subr.bf16.mxu0 %v6720_v17  ;;  %1169 = vmatprep.subr.bf16.mxu1 %v6725_v19  ;;  %v9660_v17 = vld [vmem:[#allocation115_spill] sm:$0xff]  ;;  %v9662_v19 = vld [vmem:[#allocation114_spill] sm:$0xff] }
 0x1c9   :  { %967 = vmatmul.mubr.bf16.vlgmr.msra.gmra.mrb[4].mxu0 %v7269_v30  ;;  %1053 = vmatmul.mubr.bf16.vlgmr.msra.gmra.mrb[4].mxu1 %v7269_v30  ;;  %v9695_v30 = vld [vmem:[#allocation176_spill] sm:$0xff] }
 0x1ca   :  { %1084 = vmatpush1.bf16.msra.mxu0 %v6718_v16  ;;  %1170 = vmatpush1.bf16.msra.mxu1 %v6722_v18  ;;  %v9659_v16 = vld [vmem:[#allocation113_spill] sm:$0xff]  ;;  %v9661_v18 = vld [vmem:[#allocation112_spill] sm:$0xff] }
 0x1cb   :  { %1085 = vmatprep.subr.bf16.mxu0 %v6739_v25  ;;  %1171 = vmatprep.subr.bf16.mxu1 %v6743_v27  ;;  %v9664_v25 = vld [vmem:[#allocation123_spill] sm:$0xff]  ;;  %v9666_v27 = vld [vmem:[#allocation122_spill] sm:$0xff] }
 0x1cc   :  { %1115 = vmatprep.mubr.bf16.mxu0 %v7283_v39  ;;  %1201 = vmatprep.mubr.bf16.mxu1 %v7283_v39 }
 0x1ce   :  { %1086 = vmatpush1.bf16.msra.mxu0 %v6736_v24  ;;  %1172 = vmatpush1.bf16.msra.mxu1 %v6741_v26  ;;  %v9663_v24 = vld [vmem:[#allocation121_spill] sm:$0xff]  ;;  %v9665_v26 = vld [vmem:[#allocation120_spill] sm:$0xff] }
 0x1cf   :  { %1087 = vmatprep.subr.bf16.mxu0 %v6755_v33  ;;  %1173 = vmatprep.subr.bf16.mxu1 %v6759_v35  ;;  %v9668_v33 = vld [vmem:[#allocation131_spill] sm:$0xff]  ;;  %v9669_v35 = vld [vmem:[#allocation128_spill] sm:$0xff] }
 0x1d2   :  { %1088 = vmatpush1.bf16.msra.mxu0 %v6753_v32  ;;  %1174 = vmatpush1.bf16.msra.mxu1 %v6757_v34  ;;  %v9667_v32 = vld [vmem:[#allocation129_spill] sm:$0xff]  ;;  %v7351_v34 = vcombine.low %v6670_v0, %v6691_v8  ;;  %v9676_v0 = vld [vmem:[#allocation138_spill] sm:$0xff] }
 0x1d3   :  { %1089 = vmatprep.subr.bf16.mxu0 %v6771_v41  ;;  %1175 = vmatprep.subr.bf16.mxu1 %v6775_v43  ;;  %v9672_v41 = vld [vmem:[#allocation139_spill] sm:$0xff]  ;;  %v9674_v43 = vld [vmem:[#allocation42_spill] sm:$0xff]  ;;  %v9677_v8 = vld [vmem:[#allocation145_spill] sm:$0xff] }
 0x1d6   :  { %1090 = vmatpush1.bf16.msra.mxu0 %v6769_v40  ;;  %1176 = vmatpush1.bf16.msra.mxu1 %v6773_v42  ;;  %v9671_v40 = vld [vmem:[#allocation137_spill] sm:$0xff]  ;;  %v9673_v42 = vld [vmem:[#allocation47_spill] sm:$0xff] }
 0x1d7   :  { %1091 = vmatprep.subr.bf16.mxu0 %v6787_v49  ;;  %1177 = vmatprep.subr.bf16.mxu1 %v6791_v51  ;;  %v9680_v49 = vld [vmem:[#allocation146_spill] sm:$0xff]  ;;  %v9682_v51 = vld [vmem:[#allocation155_spill] sm:$0xff] }
 0x1da   :  { %1092 = vmatpush1.bf16.msra.mxu0 %v6785_v48  ;;  %1178 = vmatpush1.bf16.msra.mxu1 %v6789_v50  ;;  %v9679_v48 = vld [vmem:[#allocation144_spill] sm:$0xff]  ;;  %v9681_v50 = vld [vmem:[#allocation153_spill] sm:$0xff] }
 0x1db   :  { %1093 = vmatprep.subr.bf16.mxu0 %v6803_v57  ;;  %1179 = vmatprep.subr.bf16.mxu1 %v6807_v59  ;;  %v9688_v57 = vld [vmem:[#allocation162_spill] sm:$0xff]  ;;  %v9690_v59 = vld [vmem:[#allocation171_spill] sm:$0xff] }
 0x1de   :  { %1094 = vmatpush1.bf16.msra.mxu0 %v6801_v56  ;;  %1180 = vmatpush1.bf16.msra.mxu1 %v6805_v58  ;;  %v9687_v56 = vld [vmem:[#allocation160_spill] sm:$0xff]  ;;  %v9689_v58 = vld [vmem:[#allocation169_spill] sm:$0xff] }
 0x1df   :  { %1095 = vmatprep.subr.bf16.mxu0 %v6819_v15  ;;  %1181 = vmatprep.subr.bf16.mxu1 %v6823_v14  ;;  %v9656_v14 = vld [vmem:[#allocation107_spill] sm:$0xff]  ;;  %v9658_v15 = vld [vmem:[#allocation106_spill] sm:$0xff] }
 0x1e2   :  { %1096 = vmatpush1.bf16.msra.mxu0 %v6817_v7  ;;  %1182 = vmatpush1.bf16.msra.mxu1 %v6821_v6  ;;  %v9652_v6 = vld [vmem:[#allocation99_spill] sm:$0xff]  ;;  %v9653_v7 = vld [vmem:[#allocation96_spill] sm:$0xff] }
 0x1e3   :  { %1097 = vmatprep.subr.bf16.mxu0 %v6835_v62  ;;  %1183 = vmatprep.subr.bf16.mxu1 %v6839_v61  ;;  %v9692_v61 = vld [vmem:[#allocation170_spill] sm:$0xff]  ;;  %v9693_v62 = vld [vmem:[#allocation177_spill] sm:$0xff] }
 0x1e6   :  { %1098 = vmatpush1.bf16.msra.mxu0 %v6833_v60  ;;  %1184 = vmatpush1.bf16.msra.mxu1 %v6837_v63  ;;  %v9691_v60 = vld [vmem:[#allocation168_spill] sm:$0xff]  ;;  %v9694_v63 = vld [vmem:[#allocation179_spill] sm:$0xff] }
 0x1e7   :  { %1099 = vmatprep.subr.bf16.mxu0 %v6851_v4  ;;  %1185 = vmatprep.subr.bf16.mxu1 %v6855_v53  ;;  %v9651_v4 = vld [vmem:[#allocation97_spill] sm:$0xff]  ;;  %v9684_v53 = vld [vmem:[#allocation154_spill] sm:$0xff] }
 0x1ea   :  { %1100 = vmatpush1.bf16.msra.mxu0 %v6849_v13  ;;  %1186 = vmatpush1.bf16.msra.mxu1 %v6853_v12  ;;  %v9654_v12 = vld [vmem:[#allocation98_spill] sm:$0xff]  ;;  %v9655_v13 = vld [vmem:[#allocation105_spill] sm:$0xff] }
 0x1eb   :  { %1101 = vmatprep.subr.bf16.mxu0 %v6867_v55  ;;  %1187 = vmatprep.subr.bf16.mxu1 %v6871_v45  ;;  %v9675_v45 = vld [vmem:[#allocation136_spill] sm:$0xff]  ;;  %v9686_v55 = vld [vmem:[#allocation163_spill] sm:$0xff] }
 0x1ee   :  { %1102 = vmatpush1.bf16.msra.mxu0 %v6865_v52  ;;  %1188 = vmatpush1.bf16.msra.mxu1 %v6869_v5  ;;  %v9657_v5 = vld [vmem:[#allocation104_spill] sm:$0xff] }
 0x1ef   :  { %1103 = vmatprep.subr.bf16.mxu0 %v6883_v47  ;;  %1189 = vmatprep.subr.bf16.mxu1 %v6887_v37  ;;  %v9670_v37 = vld [vmem:[#allocation130_spill] sm:$0xff]  ;;  %v9678_v47 = vld [vmem:[#allocation147_spill] sm:$0xff]  ;;  %v9683_v52 = vld [vmem:[#allocation152_spill] sm:$0xff] }
 0x1f2   :  { %1104 = vmatpush1.bf16.msra.mxu0 %v6881_v44  ;;  %1190 = vmatpush1.bf16.msra.mxu1 %v6885_v54  ;;  %v7359_v44 = vcombine.high %v9674_v43, %v9673_v42  ;;  %v9685_v54 = vld [vmem:[#allocation161_spill] sm:$0xff] }
 0x1f3   :  { %1105 = vmatprep.subr.bf16.mxu0 %v9651_v4  ;;  %1191 = vmatprep.subr.bf16.mxu1 %v9652_v6  ;;  %v9712_v4 = vld [vmem:[#allocation210_spill] sm:$0xff]  ;;  %v9713_v6 = vld [vmem:[#allocation217_spill] sm:$0xff] }
 0x1f6   :  { %1106 = vmatpush1.bf16.msra.mxu0 %v9653_v7  ;;  %1192 = vmatpush1.bf16.msra.mxu1 %v9654_v12  ;;  %v9714_v7 = vld [vmem:[#allocation219_spill] sm:$0xff]  ;;  %v9715_v12 = vld [vmem:[#allocation216_spill] sm:$0xff] }
 0x1f7   :  { %1107 = vmatprep.subr.bf16.mxu0 %v9655_v13  ;;  %1193 = vmatprep.subr.bf16.mxu1 %v9656_v14  ;;  %v9716_v13 = vld [vmem:[#allocation218_spill] sm:$0xff]  ;;  %v9717_v14 = vld [vmem:[#allocation225_spill] sm:$0xff] }
 0x1fa   :  { %1108 = vmatpush1.bf16.msra.mxu0 %v9657_v5  ;;  %1194 = vmatpush1.bf16.msra.mxu1 %v9658_v15  ;;  %v9718_v5 = vld [vmem:[#allocation227_spill] sm:$0xff]  ;;  %v9719_v15 = vld [vmem:[#allocation224_spill] sm:$0xff] }
 0x1fb   :  { %1109 = vmatprep.subr.bf16.mxu0 %v9659_v16  ;;  %1195 = vmatprep.subr.bf16.mxu1 %v9660_v17  ;;  %v9720_v16 = vld [vmem:[#allocation226_spill] sm:$0xff]  ;;  %v9721_v17 = vld [vmem:[#allocation233_spill] sm:$0xff] }
 0x1fe   :  { %1110 = vmatpush1.bf16.msra.mxu0 %v9661_v18  ;;  %1196 = vmatpush1.bf16.msra.mxu1 %v9662_v19  ;;  %v9722_v18 = vld [vmem:[#allocation235_spill] sm:$0xff]  ;;  %v9723_v19 = vld [vmem:[#allocation232_spill] sm:$0xff] }
 0x1ff   :  { %1111 = vmatprep.subr.bf16.mxu0 %v9663_v24  ;;  %1197 = vmatprep.subr.bf16.mxu1 %v9664_v25  ;;  %v9724_v24 = vld [vmem:[#allocation234_spill] sm:$0xff]  ;;  %v9725_v25 = vld [vmem:[#allocation241_spill] sm:$0xff] }
 0x202   :  { %1112 = vmatpush1.bf16.msra.mxu0 %v9665_v26  ;;  %1198 = vmatpush1.bf16.msra.mxu1 %v9666_v27  ;;  %v9726_v26 = vld [vmem:[#allocation243_spill] sm:$0xff]  ;;  %v9727_v27 = vld [vmem:[#allocation240_spill] sm:$0xff] }
 0x203   :  { %1113 = vmatprep.subr.bf16.mxu0 %v9667_v32  ;;  %1199 = vmatprep.subr.bf16.mxu1 %v9668_v33  ;;  %v9728_v32 = vld [vmem:[#allocation242_spill] sm:$0xff]  ;;  %v9729_v33 = vld [vmem:[#allocation249_spill] sm:$0xff] }
 0x206   :  { %1114 = vmatpush1.bf16.msra.mxu0 %v9669_v35  ;;  %1200 = vmatpush1.bf16.msra.mxu1 %v9670_v37  ;;  %v9730_v35 = vld [vmem:[#allocation251_spill] sm:$0xff]  ;;  %v9731_v37 = vld [vmem:[#allocation248_spill] sm:$0xff] }
 0x207   :  { %1126 = vmatprep.subr.bf16.mxu0 %v9671_v40  ;;  %1212 = vmatprep.subr.bf16.mxu1 %v9672_v41  ;;  %v9732_v40 = vld [vmem:[#allocation250_spill] sm:$0xff]  ;;  %v9733_v41 = vld [vmem:[#allocation257_spill] sm:$0xff] }
 0x209   :  { %1116 = vmatmul.mubr.bf16.vlgmr.msra.gmra.mrb[0].mxu0 %v7351_v34  ;;  %1202 = vmatmul.mubr.bf16.vlgmr.msra.gmra.mrb[0].mxu1 %v7351_v34 }
 0x20a   :  { %1127 = vmatpush1.bf16.msra.mxu0 %v9675_v45  ;;  %1213 = vmatpush1.bf16.msra.mxu1 %v9676_v0  ;;  %v9734_v45 = vld [vmem:[#allocation259_spill] sm:$0xff]  ;;  %v7427_v0 = vcombine.low %v9674_v43, %v9673_v42 }
 0x20b   :  { %1128 = vmatprep.subr.bf16.mxu0 %v9677_v8  ;;  %1214 = vmatprep.subr.bf16.mxu1 %v9678_v47  ;;  %v9735_v8 = vld [vmem:[#allocation256_spill] sm:$0xff]  ;;  %v9736_v47 = vld [vmem:[#allocation258_spill] sm:$0xff] }
 0x20c   :  { %1158 = vmatprep.mubr.bf16.mxu0 %v7359_v44  ;;  %1244 = vmatprep.mubr.bf16.mxu1 %v7359_v44 }
 0x20e   :  { %1129 = vmatpush1.bf16.msra.mxu0 %v9679_v48  ;;  %1215 = vmatpush1.bf16.msra.mxu1 %v9680_v49  ;;  %v9737_v48 = vld [vmem:[#allocation53_spill] sm:$0xff]  ;;  %v9738_v49 = vld [vmem:[#allocation55_spill] sm:$0xff] }
 0x20f   :  { %1130 = vmatprep.subr.bf16.mxu0 %v9681_v50  ;;  %1216 = vmatprep.subr.bf16.mxu1 %v9682_v51  ;;  %1461 = dma.general %s1427_s16, 32768, %s124_s27, %s6543_s9, %s6546_s17, [#allocation22], %s6650_s19, 0  }
 0x210   :  { %v9739_v42 = vld [vmem:[#allocation52_spill] sm:$0xff]  ;;  %v9740_v43 = vld [vmem:[#allocation54_spill] sm:$0xff]  ;;  %v9741_v50 = vld [vmem:[#allocation57_spill] sm:$0xff] }
 0x211   :  { %v9742_v51 = vld [vmem:[#allocation59_spill] sm:$0xff] }
 0x212   :  { %1131 = vmatpush1.bf16.msra.mxu0 %v9683_v52  ;;  %1217 = vmatpush1.bf16.msra.mxu1 %v9684_v53  ;;  %v9743_v52 = vld [vmem:[#allocation56_spill] sm:$0xff]  ;;  %v9744_v53 = vld [vmem:[#allocation58_spill] sm:$0xff] }
 0x213   :  { %1132 = vmatprep.subr.bf16.mxu0 %v9685_v54  ;;  %1218 = vmatprep.subr.bf16.mxu1 %v9686_v55  ;;  %v9745_v54 = vld [vmem:[#allocation61_spill] sm:$0xff]  ;;  %v9746_v55 = vld [vmem:[#allocation63_spill] sm:$0xff] }
 0x216   :  { %1133 = vmatpush1.bf16.msra.mxu0 %v9687_v56  ;;  %1219 = vmatpush1.bf16.msra.mxu1 %v9688_v57  ;;  %v9747_v56 = vld [vmem:[#allocation60_spill] sm:$0xff]  ;;  %v9748_v57 = vld [vmem:[#allocation62_spill] sm:$0xff] }
 0x217   :  { %1134 = vmatprep.subr.bf16.mxu0 %v9689_v58  ;;  %1220 = vmatprep.subr.bf16.mxu1 %v9690_v59  ;;  %v9749_v58 = vld [vmem:[#allocation65_spill] sm:$0xff]  ;;  %v9750_v59 = vld [vmem:[#allocation67_spill] sm:$0xff] }
 0x21a   :  { %1135 = vmatpush1.bf16.msra.mxu0 %v9691_v60  ;;  %1221 = vmatpush1.bf16.msra.mxu1 %v9692_v61  ;;  %v9751_v60 = vld [vmem:[#allocation64_spill] sm:$0xff]  ;;  %v9752_v61 = vld [vmem:[#allocation66_spill] sm:$0xff] }
 0x21b   :  { %1136 = vmatprep.subr.bf16.mxu0 %v9693_v62  ;;  %1222 = vmatprep.subr.bf16.mxu1 %v9694_v63  ;;  %v9754_v62 = vld [vmem:[#allocation71_spill] sm:$0xff]  ;;  %v9755_v63 = vld [vmem:[#allocation68_spill] sm:$0xff] }
 0x21e   :  { %1137 = vmatpush1.bf16.msra.mxu0 %v9695_v30  ;;  %1223 = vmatpush1.bf16.msra.mxu1 %v9696_v28  ;;  %v9756_v30 = vld [vmem:[#allocation70_spill] sm:$0xff]  ;;  %v9757_v28 = vld [vmem:[#allocation73_spill] sm:$0xff] }
 0x21f   :  { %1138 = vmatprep.subr.bf16.mxu0 %v9697_v23  ;;  %1224 = vmatprep.subr.bf16.mxu1 %v9698_v1  ;;  %v9758_v23 = vld [vmem:[#allocation75_spill] sm:$0xff]  ;;  %v9759_v1 = vld [vmem:[#allocation72_spill] sm:$0xff] }
 0x222   :  { %1139 = vmatpush1.bf16.msra.mxu0 %v9699_v9  ;;  %1225 = vmatpush1.bf16.msra.mxu1 %v9700_v36  ;;  %v9760_v9 = vld [vmem:[#allocation74_spill] sm:$0xff]  ;;  %v9761_v36 = vld [vmem:[#allocation77_spill] sm:$0xff] }
 0x223   :  { %1140 = vmatprep.subr.bf16.mxu0 %v9701_v2  ;;  %1226 = vmatprep.subr.bf16.mxu1 %v9702_v10  ;;  %v9762_v2 = vld [vmem:[#allocation79_spill] sm:$0xff]  ;;  %v9763_v10 = vld [vmem:[#allocation76_spill] sm:$0xff] }
 0x226   :  { %1141 = vmatpush1.bf16.msra.mxu0 %v9703_v3  ;;  %1227 = vmatpush1.bf16.msra.mxu1 %v9704_v11  ;;  %v9764_v3 = vld [vmem:[#allocation78_spill] sm:$0xff]  ;;  %v9765_v11 = vld [vmem:[#allocation81_spill] sm:$0xff] }
 0x227   :  { %1142 = vmatprep.subr.bf16.mxu0 %v9705_v22  ;;  %1228 = vmatprep.subr.bf16.mxu1 %v9706_v21  ;;  %v9766_v22 = vld [vmem:[#allocation83_spill] sm:$0xff]  ;;  %v9767_v21 = vld [vmem:[#allocation80_spill] sm:$0xff] }
 0x22a   :  { %1143 = vmatpush1.bf16.msra.mxu0 %v9707_v29  ;;  %1229 = vmatpush1.bf16.msra.mxu1 %v9708_v20  ;;  %v9768_v29 = vld [vmem:[#allocation82_spill] sm:$0xff]  ;;  %v9769_v20 = vld [vmem:[#allocation85_spill] sm:$0xff] }
 0x22b   :  { %1144 = vmatprep.subr.bf16.mxu0 %v9709_v46  ;;  %1230 = vmatprep.subr.bf16.mxu1 %v9710_v31  ;;  %v9770_v46 = vld [vmem:[#allocation87_spill] sm:$0xff]  ;;  %v9771_v31 = vld [vmem:[#allocation84_spill] sm:$0xff] }
 0x22e   :  { %1145 = vmatpush1.bf16.msra.mxu0 %v9711_v38  ;;  %1231 = vmatpush1.bf16.msra.mxu1 %v9712_v4  ;;  %v9772_v38 = vld [vmem:[#allocation86_spill] sm:$0xff]  ;;  %v9773_v4 = vld [vmem:[#allocation89_spill] sm:$0xff] }
 0x22f   :  { %1146 = vmatprep.subr.bf16.mxu0 %v9713_v6  ;;  %1232 = vmatprep.subr.bf16.mxu1 %v9714_v7  ;;  %v9774_v6 = vld [vmem:[#allocation91_spill] sm:$0xff]  ;;  %v9775_v7 = vld [vmem:[#allocation88_spill] sm:$0xff] }
 0x232   :  { %1147 = vmatpush1.bf16.msra.mxu0 %v9715_v12  ;;  %1233 = vmatpush1.bf16.msra.mxu1 %v9716_v13  ;;  %v9776_v12 = vld [vmem:[#allocation90_spill] sm:$0xff]  ;;  %v9777_v13 = vld [vmem:[#allocation93_spill] sm:$0xff] }
 0x233   :  { %1148 = vmatprep.subr.bf16.mxu0 %v9717_v14  ;;  %1234 = vmatprep.subr.bf16.mxu1 %v9718_v5  ;;  %v9778_v14 = vld [vmem:[#allocation95_spill] sm:$0xff]  ;;  %v9779_v5 = vld [vmem:[#allocation92_spill] sm:$0xff] }
 0x236   :  { %1149 = vmatpush1.bf16.msra.mxu0 %v9719_v15  ;;  %1235 = vmatpush1.bf16.msra.mxu1 %v9720_v16  ;;  %v9780_v15 = vld [vmem:[#allocation94_spill] sm:$0xff]  ;;  %v9781_v16 = vld [vmem:[#allocation101_spill] sm:$0xff] }
 0x237   :  { %1150 = vmatprep.subr.bf16.mxu0 %v9721_v17  ;;  %1236 = vmatprep.subr.bf16.mxu1 %v9722_v18  ;;  %v9782_v17 = vld [vmem:[#allocation103_spill] sm:$0xff]  ;;  %v9783_v18 = vld [vmem:[#allocation100_spill] sm:$0xff] }
 0x23a   :  { %1151 = vmatpush1.bf16.msra.mxu0 %v9723_v19  ;;  %1237 = vmatpush1.bf16.msra.mxu1 %v9724_v24  ;;  %v9784_v19 = vld [vmem:[#allocation102_spill] sm:$0xff]  ;;  %v9785_v24 = vld [vmem:[#allocation109_spill] sm:$0xff] }
 0x23b   :  { %1152 = vmatprep.subr.bf16.mxu0 %v9725_v25  ;;  %1238 = vmatprep.subr.bf16.mxu1 %v9726_v26  ;;  %v9786_v25 = vld [vmem:[#allocation111_spill] sm:$0xff]  ;;  %v9787_v26 = vld [vmem:[#allocation108_spill] sm:$0xff] }
 0x23e   :  { %1153 = vmatpush1.bf16.msra.mxu0 %v9727_v27  ;;  %1239 = vmatpush1.bf16.msra.mxu1 %v9728_v32  ;;  %v9788_v27 = vld [vmem:[#allocation110_spill] sm:$0xff]  ;;  %v9789_v32 = vld [vmem:[#allocation117_spill] sm:$0xff] }
 0x23f   :  { %1154 = vmatprep.subr.bf16.mxu0 %v9729_v33  ;;  %1240 = vmatprep.subr.bf16.mxu1 %v9730_v35  ;;  %v9790_v33 = vld [vmem:[#allocation119_spill] sm:$0xff]  ;;  %v9791_v35 = vld [vmem:[#allocation116_spill] sm:$0xff] }
 0x242   :  { %1155 = vmatpush1.bf16.msra.mxu0 %v9731_v37  ;;  %1241 = vmatpush1.bf16.msra.mxu1 %v9732_v40  ;;  %v9792_v37 = vld [vmem:[#allocation118_spill] sm:$0xff]  ;;  %v9793_v40 = vld [vmem:[#allocation125_spill] sm:$0xff] }
 0x243   :  { %1156 = vmatprep.subr.bf16.mxu0 %v9733_v41  ;;  %1242 = vmatprep.subr.bf16.mxu1 %v9734_v45  ;;  %v9794_v41 = vld [vmem:[#allocation127_spill] sm:$0xff]  ;;  %v9795_v45 = vld [vmem:[#allocation124_spill] sm:$0xff] }
 0x246   :  { %1157 = vmatpush1.bf16.msra.mxu0 %v9735_v8  ;;  %1243 = vmatpush1.bf16.msra.mxu1 %v9736_v47  ;;  %v9796_v8 = vld [vmem:[#allocation126_spill] sm:$0xff]  ;;  %v9797_v47 = vld [vmem:[#allocation133_spill] sm:$0xff] }
 0x247   :  { %1255 = vmatprep.subr.bf16.mxu0 %v9737_v48  ;;  %1341 = vmatprep.subr.bf16.mxu1 %v9738_v49  ;;  %v9798_v48 = vld [vmem:[#allocation135_spill] sm:$0xff]  ;;  %v9799_v49 = vld [vmem:[#allocation132_spill] sm:$0xff] }
 0x249   :  { %1159 = vmatmul.mubr.bf16.vlgmr.msra.gmra.mrb[0].mxu0 %v7427_v0  ;;  %1245 = vmatmul.mubr.bf16.vlgmr.msra.gmra.mrb[0].mxu1 %v7427_v0 }
 0x24a   :  { %1256 = vmatpush1.bf16.msra.mxu0 %v9739_v42  ;;  %1342 = vmatpush1.bf16.msra.mxu1 %v9740_v43  ;;  %v9800_v42 = vld [vmem:[#allocation134_spill] sm:$0xff]  ;;  %v9801_v43 = vld [vmem:[#allocation141_spill] sm:$0xff] }
 0x24b   :  { %1257 = vmatprep.subr.bf16.mxu0 %v9741_v50  ;;  %1343 = vmatprep.subr.bf16.mxu1 %v9742_v51  ;;  %v9802_v50 = vld [vmem:[#allocation143_spill] sm:$0xff]  ;;  %v9803_v51 = vld [vmem:[#allocation140_spill] sm:$0xff] }
 0x24c   :  { %1287 = vmatprep.mubr.bf16.mxu0 %v7283_v39  ;;  %1373 = vmatprep.mubr.bf16.mxu1 %v7283_v39  ;;  %v9753_v39 = vld [vmem:[#allocation69_spill] sm:$0xff] }
 0x24e   :  { %1258 = vmatpush1.bf16.msra.mxu0 %v9743_v52  ;;  %1344 = vmatpush1.bf16.msra.mxu1 %v9744_v53  ;;  %v9804_v52 = vld [vmem:[#allocation142_spill] sm:$0xff]  ;;  %v9805_v53 = vld [vmem:[#allocation149_spill] sm:$0xff] }
 0x24f   :  { %1259 = vmatprep.subr.bf16.mxu0 %v9745_v54  ;;  %1345 = vmatprep.subr.bf16.mxu1 %v9746_v55  ;;  %v9806_v54 = vld [vmem:[#allocation151_spill] sm:$0xff]  ;;  %v9807_v55 = vld [vmem:[#allocation148_spill] sm:$0xff] }
 0x252   :  { %1260 = vmatpush1.bf16.msra.mxu0 %v9747_v56  ;;  %1346 = vmatpush1.bf16.msra.mxu1 %v9748_v57  ;;  %v9808_v56 = vld [vmem:[#allocation150_spill] sm:$0xff]  ;;  %v9809_v57 = vld [vmem:[#allocation157_spill] sm:$0xff] }
 0x253   :  { %1261 = vmatprep.subr.bf16.mxu0 %v9749_v58  ;;  %1347 = vmatprep.subr.bf16.mxu1 %v9750_v59  ;;  %v9810_v58 = vld [vmem:[#allocation159_spill] sm:$0xff]  ;;  %v9812_v59 = vld [vmem:[#allocation158_spill] sm:$0xff] }
 0x256   :  { %1262 = vmatpush1.bf16.msra.mxu0 %v9751_v60  ;;  %1348 = vmatpush1.bf16.msra.mxu1 %v9752_v61  ;;  %v9813_v60 = vld [vmem:[#allocation165_spill] sm:$0xff]  ;;  %v9814_v61 = vld [vmem:[#allocation167_spill] sm:$0xff] }
 0x257   :  { %1263 = vmatprep.subr.bf16.mxu0 %v9753_v39  ;;  %1349 = vmatprep.subr.bf16.mxu1 %v9754_v62  ;;  %v9815_v39 = vld [vmem:[#allocation164_spill] sm:$0xff]  ;;  %v9816_v62 = vld [vmem:[#allocation166_spill] sm:$0xff] }
 0x25a   :  { %1264 = vmatpush1.bf16.msra.mxu0 %v9755_v63  ;;  %1350 = vmatpush1.bf16.msra.mxu1 %v9756_v30  ;;  %v9818_v63 = vld [vmem:[#allocation175_spill] sm:$0xff]  ;;  %v9819_v30 = vld [vmem:[#allocation172_spill] sm:$0xff] }
 0x25b   :  { %1265 = vmatprep.subr.bf16.mxu0 %v9757_v28  ;;  %1351 = vmatprep.subr.bf16.mxu1 %v9758_v23  ;;  %v9820_v28 = vld [vmem:[#allocation174_spill] sm:$0xff]  ;;  %v9821_v23 = vld [vmem:[#allocation181_spill] sm:$0xff] }
 0x25e   :  { %1266 = vmatpush1.bf16.msra.mxu0 %v9759_v1  ;;  %1352 = vmatpush1.bf16.msra.mxu1 %v9760_v9  ;;  %v9822_v1 = vld [vmem:[#allocation183_spill] sm:$0xff]  ;;  %v9823_v9 = vld [vmem:[#allocation180_spill] sm:$0xff] }
 0x25f   :  { %1267 = vmatprep.subr.bf16.mxu0 %v9761_v36  ;;  %1353 = vmatprep.subr.bf16.mxu1 %v9762_v2  ;;  %v9824_v36 = vld [vmem:[#allocation182_spill] sm:$0xff]  ;;  %v9825_v2 = vld [vmem:[#allocation189_spill] sm:$0xff] }
 0x262   :  { %1268 = vmatpush1.bf16.msra.mxu0 %v9763_v10  ;;  %1354 = vmatpush1.bf16.msra.mxu1 %v9764_v3  ;;  %v9826_v10 = vld [vmem:[#allocation191_spill] sm:$0xff]  ;;  %v9827_v3 = vld [vmem:[#allocation188_spill] sm:$0xff] }
 0x263   :  { %1269 = vmatprep.subr.bf16.mxu0 %v9765_v11  ;;  %1355 = vmatprep.subr.bf16.mxu1 %v9766_v22  ;;  %v9828_v11 = vld [vmem:[#allocation190_spill] sm:$0xff]  ;;  %v9829_v22 = vld [vmem:[#allocation197_spill] sm:$0xff] }
 0x266   :  { %1270 = vmatpush1.bf16.msra.mxu0 %v9767_v21  ;;  %1356 = vmatpush1.bf16.msra.mxu1 %v9768_v29  ;;  %v9830_v21 = vld [vmem:[#allocation199_spill] sm:$0xff]  ;;  %v9831_v29 = vld [vmem:[#allocation196_spill] sm:$0xff] }
 0x267   :  { %1271 = vmatprep.subr.bf16.mxu0 %v9769_v20  ;;  %1357 = vmatprep.subr.bf16.mxu1 %v9770_v46  ;;  %v9832_v20 = vld [vmem:[#allocation198_spill] sm:$0xff]  ;;  %v9833_v46 = vld [vmem:[#allocation205_spill] sm:$0xff] }
 0x26a   :  { %1272 = vmatpush1.bf16.msra.mxu0 %v9771_v31  ;;  %1358 = vmatpush1.bf16.msra.mxu1 %v9772_v38  ;;  %v9834_v31 = vld [vmem:[#allocation207_spill] sm:$0xff]  ;;  %v9835_v38 = vld [vmem:[#allocation204_spill] sm:$0xff] }
 0x26b   :  { %1273 = vmatprep.subr.bf16.mxu0 %v9773_v4  ;;  %1359 = vmatprep.subr.bf16.mxu1 %v9774_v6  ;;  %v9836_v4 = vld [vmem:[#allocation206_spill] sm:$0xff]  ;;  %v9837_v6 = vld [vmem:[#allocation213_spill] sm:$0xff] }
 0x26e   :  { %1274 = vmatpush1.bf16.msra.mxu0 %v9775_v7  ;;  %1360 = vmatpush1.bf16.msra.mxu1 %v9776_v12  ;;  %v9838_v7 = vld [vmem:[#allocation215_spill] sm:$0xff]  ;;  %v9839_v12 = vld [vmem:[#allocation212_spill] sm:$0xff] }
 0x26f   :  { %1275 = vmatprep.subr.bf16.mxu0 %v9777_v13  ;;  %1361 = vmatprep.subr.bf16.mxu1 %v9778_v14  ;;  %v9840_v13 = vld [vmem:[#allocation214_spill] sm:$0xff]  ;;  %v9841_v14 = vld [vmem:[#allocation221_spill] sm:$0xff] }
 0x272   :  { %1276 = vmatpush1.bf16.msra.mxu0 %v9779_v5  ;;  %1362 = vmatpush1.bf16.msra.mxu1 %v9780_v15  ;;  %v9842_v5 = vld [vmem:[#allocation223_spill] sm:$0xff]  ;;  %v9843_v15 = vld [vmem:[#allocation220_spill] sm:$0xff] }
 0x273   :  { %1277 = vmatprep.subr.bf16.mxu0 %v9781_v16  ;;  %1363 = vmatprep.subr.bf16.mxu1 %v9782_v17  ;;  %v9844_v16 = vld [vmem:[#allocation222_spill] sm:$0xff]  ;;  %v9845_v17 = vld [vmem:[#allocation229_spill] sm:$0xff] }
 0x276   :  { %1278 = vmatpush1.bf16.msra.mxu0 %v9783_v18  ;;  %1364 = vmatpush1.bf16.msra.mxu1 %v9784_v19  ;;  %v9846_v18 = vld [vmem:[#allocation231_spill] sm:$0xff]  ;;  %v9847_v19 = vld [vmem:[#allocation228_spill] sm:$0xff] }
 0x277   :  { %1279 = vmatprep.subr.bf16.mxu0 %v9785_v24  ;;  %1365 = vmatprep.subr.bf16.mxu1 %v9786_v25  ;;  %v9848_v24 = vld [vmem:[#allocation230_spill] sm:$0xff]  ;;  %v9849_v25 = vld [vmem:[#allocation237_spill] sm:$0xff] }
 0x27a   :  { %1280 = vmatpush1.bf16.msra.mxu0 %v9787_v26  ;;  %1366 = vmatpush1.bf16.msra.mxu1 %v9788_v27  ;;  %v9850_v26 = vld [vmem:[#allocation239_spill] sm:$0xff]  ;;  %v9851_v27 = vld [vmem:[#allocation236_spill] sm:$0xff] }
 0x27b   :  { %1281 = vmatprep.subr.bf16.mxu0 %v9789_v32  ;;  %1367 = vmatprep.subr.bf16.mxu1 %v9790_v33  ;;  %v9852_v32 = vld [vmem:[#allocation238_spill] sm:$0xff]  ;;  %v9853_v33 = vld [vmem:[#allocation245_spill] sm:$0xff] }
 0x27e   :  { %1282 = vmatpush1.bf16.msra.mxu0 %v9791_v35  ;;  %1368 = vmatpush1.bf16.msra.mxu1 %v9792_v37  ;;  %v9854_v35 = vld [vmem:[#allocation247_spill] sm:$0xff]  ;;  %v9855_v37 = vld [vmem:[#allocation244_spill] sm:$0xff] }
 0x27f   :  { %1283 = vmatprep.subr.bf16.mxu0 %v9793_v40  ;;  %1369 = vmatprep.subr.bf16.mxu1 %v9794_v41  ;;  %v9856_v40 = vld [vmem:[#allocation246_spill] sm:$0xff]  ;;  %v9857_v41 = vld [vmem:[#allocation253_spill] sm:$0xff] }
 0x282   :  { %1284 = vmatpush1.bf16.msra.mxu0 %v9795_v45  ;;  %1370 = vmatpush1.bf16.msra.mxu1 %v9796_v8  ;;  %v9858_v45 = vld [vmem:[#allocation255_spill] sm:$0xff]  ;;  %v9859_v8 = vld [vmem:[#allocation252_spill] sm:$0xff] }
 0x283   :  { %1285 = vmatprep.subr.bf16.mxu0 %v9797_v47  ;;  %1371 = vmatprep.subr.bf16.mxu1 %v9798_v48  ;;  %v9860_v47 = vld [vmem:[#allocation254_spill] sm:$0xff]  ;;  %v9861_v48 = vld [vmem:[#allocation261_spill] sm:$0xff] }
 0x286   :  { %1286 = vmatpush1.bf16.msra.mxu0 %v9799_v49  ;;  %1372 = vmatpush1.bf16.msra.mxu1 %v9800_v42  ;;  %v9862_v49 = vld [vmem:[#allocation263_spill] sm:$0xff]  ;;  %v9863_v42 = vld [vmem:[#allocation260_spill] sm:$0xff] }
 0x287   :  { %1298 = vmatprep.subr.bf16.mxu0 %v9801_v43  ;;  %1384 = vmatprep.subr.bf16.mxu1 %v9802_v50  ;;  %v9864_v43 = vld [vmem:[#allocation262_spill] sm:$0xff] }
 0x289   :  { %1288 = vmatmul.mubr.bf16.vlgmr.msra.gmra.mrb[4].mxu0 %v7351_v34  ;;  %1374 = vmatmul.mubr.bf16.vlgmr.msra.gmra.mrb[4].mxu1 %v7351_v34  ;;  %v9811_v34 = vld [vmem:[#allocation156_spill] sm:$0xff] }
 0x28a   :  { %1299 = vmatpush1.bf16.msra.mxu0 %v9803_v51  ;;  %1385 = vmatpush1.bf16.msra.mxu1 %v9804_v52 }
 0x28b   :  { %1300 = vmatprep.subr.bf16.mxu0 %v9805_v53  ;;  %1386 = vmatprep.subr.bf16.mxu1 %v9806_v54 }
 0x28c   :  { %1330 = vmatprep.mubr.bf16.mxu0 %v7359_v44  ;;  %1416 = vmatprep.mubr.bf16.mxu1 %v7359_v44  ;;  %v9817_v44 = vld [vmem:[#allocation173_spill] sm:$0xff] }
 0x28e   :  { %1301 = vmatpush1.bf16.msra.mxu0 %v9807_v55  ;;  %1387 = vmatpush1.bf16.msra.mxu1 %v9808_v56 }
 0x28f   :  { %1302 = vmatprep.subr.bf16.mxu0 %v9809_v57  ;;  %1388 = vmatprep.subr.bf16.mxu1 %v9810_v58 }
 0x292   :  { %1303 = vmatpush1.bf16.msra.mxu0 %v9811_v34  ;;  %1389 = vmatpush1.bf16.msra.mxu1 %v9812_v59 }
 0x293   :  { %1304 = vmatprep.subr.bf16.mxu0 %v9813_v60  ;;  %1390 = vmatprep.subr.bf16.mxu1 %v9814_v61 }
 0x296   :  { %1305 = vmatpush1.bf16.msra.mxu0 %v9815_v39  ;;  %1391 = vmatpush1.bf16.msra.mxu1 %v9816_v62 }
 0x297   :  { %1306 = vmatprep.subr.bf16.mxu0 %v9817_v44  ;;  %1392 = vmatprep.subr.bf16.mxu1 %v9818_v63 }
 0x29a   :  { %1307 = vmatpush1.bf16.msra.mxu0 %v9819_v30  ;;  %1393 = vmatpush1.bf16.msra.mxu1 %v9820_v28 }
 0x29b   :  { %1308 = vmatprep.subr.bf16.mxu0 %v9821_v23  ;;  %1394 = vmatprep.subr.bf16.mxu1 %v9822_v1 }
 0x29e   :  { %1309 = vmatpush1.bf16.msra.mxu0 %v9823_v9  ;;  %1395 = vmatpush1.bf16.msra.mxu1 %v9824_v36 }
 0x29f   :  { %1310 = vmatprep.subr.bf16.mxu0 %v9825_v2  ;;  %1396 = vmatprep.subr.bf16.mxu1 %v9826_v10 }
 0x2a2   :  { %1311 = vmatpush1.bf16.msra.mxu0 %v9827_v3  ;;  %1397 = vmatpush1.bf16.msra.mxu1 %v9828_v11 }
 0x2a3   :  { %1312 = vmatprep.subr.bf16.mxu0 %v9829_v22  ;;  %1398 = vmatprep.subr.bf16.mxu1 %v9830_v21 }
 0x2a6   :  { %1313 = vmatpush1.bf16.msra.mxu0 %v9831_v29  ;;  %1399 = vmatpush1.bf16.msra.mxu1 %v9832_v20 }
 0x2a7   :  { %1314 = vmatprep.subr.bf16.mxu0 %v9833_v46  ;;  %1400 = vmatprep.subr.bf16.mxu1 %v9834_v31 }
 0x2aa   :  { %1315 = vmatpush1.bf16.msra.mxu0 %v9835_v38  ;;  %1401 = vmatpush1.bf16.msra.mxu1 %v9836_v4 }
 0x2ab   :  { %1316 = vmatprep.subr.bf16.mxu0 %v9837_v6  ;;  %1402 = vmatprep.subr.bf16.mxu1 %v9838_v7 }
 0x2ae   :  { %1317 = vmatpush1.bf16.msra.mxu0 %v9839_v12  ;;  %1403 = vmatpush1.bf16.msra.mxu1 %v9840_v13 }
 0x2af   :  { %1318 = vmatprep.subr.bf16.mxu0 %v9841_v14  ;;  %1404 = vmatprep.subr.bf16.mxu1 %v9842_v5 }
 0x2b2   :  { %1319 = vmatpush1.bf16.msra.mxu0 %v9843_v15  ;;  %1405 = vmatpush1.bf16.msra.mxu1 %v9844_v16 }
 0x2b3   :  { %1320 = vmatprep.subr.bf16.mxu0 %v9845_v17  ;;  %1406 = vmatprep.subr.bf16.mxu1 %v9846_v18 }
 0x2b6   :  { %1321 = vmatpush1.bf16.msra.mxu0 %v9847_v19  ;;  %1407 = vmatpush1.bf16.msra.mxu1 %v9848_v24 }
 0x2b7   :  { %1322 = vmatprep.subr.bf16.mxu0 %v9849_v25  ;;  %1408 = vmatprep.subr.bf16.mxu1 %v9850_v26 }
 0x2ba   :  { %1323 = vmatpush1.bf16.msra.mxu0 %v9851_v27  ;;  %1409 = vmatpush1.bf16.msra.mxu1 %v9852_v32 }
 0x2bb   :  { %1324 = vmatprep.subr.bf16.mxu0 %v9853_v33  ;;  %1410 = vmatprep.subr.bf16.mxu1 %v9854_v35 }
 0x2be   :  { %1325 = vmatpush1.bf16.msra.mxu0 %v9855_v37  ;;  %1411 = vmatpush1.bf16.msra.mxu1 %v9856_v40 }
 0x2bf   :  { %1326 = vmatprep.subr.bf16.mxu0 %v9857_v41  ;;  %1412 = vmatprep.subr.bf16.mxu1 %v9858_v45 }
 0x2c2   :  { %1327 = vmatpush1.bf16.msra.mxu0 %v9859_v8  ;;  %1413 = vmatpush1.bf16.msra.mxu1 %v9860_v47 }
 0x2c3   :  { %1328 = vmatprep.subr.bf16.mxu0 %v9861_v48  ;;  %1414 = vmatprep.subr.bf16.mxu1 %v9862_v49 }
 0x2c6   :  { %1329 = vmatpush1.bf16.msra.mxu0 %v9863_v42  ;;  %1415 = vmatpush1.bf16.msra.mxu1 %v9864_v43 }
 0x2c9   :  { %1331 = vmatmul.mubr.bf16.vlgmr.msra.gmra.mrb[4].mxu0 %v7427_v0  ;;  %1417 = vmatmul.mubr.bf16.vlgmr.msra.gmra.mrb[4].mxu1 %v7427_v0 }
 0x2ca   :  { %6515 = dma.done.wait [#allocation5], 32768 }
 0x2cb   :  { %6516 = vsyncadd [#allocation5], 4294934528  ;;  %v9865_v50 = vld [vmem:[#allocation48_spill] sm:$0xff]  ;;  %v9866_v51 = vld [vmem:[#allocation43_spill] sm:$0xff]  ;;  %2115 = sst [smem:[#allocation24]] %s6533_s4  ;;  %s6547_s1 = smov [#allocation3]  }
 0x2cc   :  { %v7578_v52 = vcombine.high %v9866_v51, %v9865_v50  ;;  %2117 = sst [smem:[#allocation24 + $0x1]] %s6533_s4  ;;  %v1465_v0 = vld [vmem:[#allocation2 + $0x8] sm:$0xff]  ;;  %v1467_v53 = vld [vmem:[#allocation2 + $0x18] sm:$0xff]  ;;  %v1464_v54 = vld [vmem:[#allocation2] sm:$0xff]  ;;  %s2111_s22 = sshll.u32 %s6547_s1, 4  ;;  %s2112_s22 = int_to_ptr.vmem [resolvable:$true] %s2111_s22 }
 0x2cd   :  { %2119 = sst [smem:[#allocation24 + $0x2]] %s6531_s8  ;;  %1740 = vmatprep.subr.bf16.mxu0 %v1465_v0  ;;  %1826 = vmatprep.subr.bf16.mxu1 %v1467_v53  ;;  %v1466_v55 = vld [vmem:[#allocation2 + $0x10] sm:$0xff]  ;;  %v1473_v56 = vld [vmem:[#allocation2 + $0x48] sm:$0xff]  ;;  %v1475_v57 = vld [vmem:[#allocation2 + $0x58] sm:$0xff]  ;;  %s6548_s23 = smov [#allocation6]  }
 0x2ce   :  { %1772 = vmatprep.mubr.bf16.mxu0 %v7578_v52  ;;  %1858 = vmatprep.mubr.bf16.mxu1 %v7578_v52  ;;  %2121 = sst [smem:[#allocation24 + $0x3]] %s6534_s21  ;;  %v1472_v58 = vld [vmem:[#allocation2 + $0x40] sm:$0xff]  ;;  %v1474_v34 = vld [vmem:[#allocation2 + $0x50] sm:$0xff]  ;;  %v1481_v59 = vld [vmem:[#allocation2 + $0x88] sm:$0xff]  ;;  %s6549_s24 = smov [#allocation23]  }
 0x2cf   :  { %2123 = sst [smem:[#allocation24 + $0x4]] %s6530_s7  ;;  %1741 = vmatpush1.bf16.msra.mxu0 %v1464_v54  ;;  %1827 = vmatpush1.bf16.msra.mxu1 %v1466_v55  ;;  %v1483_v60 = vld [vmem:[#allocation2 + $0x98] sm:$0xff]  ;;  %v1480_v61 = vld [vmem:[#allocation2 + $0x80] sm:$0xff]  ;;  %v1482_v39 = vld [vmem:[#allocation2 + $0x90] sm:$0xff] }
 0x2d0   :  { %2125 = sst [smem:[#allocation24 + $0x5]] %s6537_s5  ;;  %1742 = vmatprep.subr.bf16.mxu0 %v1473_v56  ;;  %1828 = vmatprep.subr.bf16.mxu1 %v1475_v57  ;;  %v1489_v62 = vld [vmem:[#allocation2 + $0xc8] sm:$0xff]  ;;  %v1491_v44 = vld [vmem:[#allocation2 + $0xd8] sm:$0xff]  ;;  %v1488_v63 = vld [vmem:[#allocation2 + $0xc0] sm:$0xff]  ;;  %v7593_v57 = vcombine.low %v9866_v51, %v9865_v50 }
 0x2d1   :  { %2127 = sst [smem:[#allocation24 + $0x6]] %s6538_s18  ;;  %v1490_v30 = vld [vmem:[#allocation2 + $0xd0] sm:$0xff]  ;;  %v1497_v28 = vld [vmem:[#allocation2 + $0x108] sm:$0xff]  ;;  %v1499_v23 = vld [vmem:[#allocation2 + $0x118] sm:$0xff] }
 0x2d2   :  { %2129 = sst [smem:[#allocation24 + $0x7]] %s6534_s21  ;;  %v1496_v1 = vld [vmem:[#allocation2 + $0x100] sm:$0xff]  ;;  %v1498_v9 = vld [vmem:[#allocation2 + $0x110] sm:$0xff]  ;;  %v1505_v36 = vld [vmem:[#allocation2 + $0x148] sm:$0xff]  ;;  %9867 = vst [vmem:[#allocation97_spill] sm:$0xff] %v7593_v57 }
 0x2d3   :  { %2131 = sst [smem:[#allocation24 + $0x8]] %s6539_s20  ;;  %1743 = vmatpush1.bf16.msra.mxu0 %v1472_v58  ;;  %1829 = vmatpush1.bf16.msra.mxu1 %v1474_v34  ;;  %v1507_v2 = vld [vmem:[#allocation2 + $0x158] sm:$0xff]  ;;  %v1504_v10 = vld [vmem:[#allocation2 + $0x140] sm:$0xff]  ;;  %v1506_v3 = vld [vmem:[#allocation2 + $0x150] sm:$0xff] }
 0x2d4   :  { %1744 = vmatprep.subr.bf16.mxu0 %v1481_v59  ;;  %1830 = vmatprep.subr.bf16.mxu1 %v1483_v60  ;;  %v1513_v11 = vld [vmem:[#allocation2 + $0x188] sm:$0xff]  ;;  %v1515_v22 = vld [vmem:[#allocation2 + $0x198] sm:$0xff]  ;;  %v1512_v21 = vld [vmem:[#allocation2 + $0x180] sm:$0xff] }
 0x2d5   :  { %v1514_v29 = vld [vmem:[#allocation2 + $0x190] sm:$0xff]  ;;  %v1521_v20 = vld [vmem:[#allocation2 + $0x1c8] sm:$0xff]  ;;  %v1523_v46 = vld [vmem:[#allocation2 + $0x1d8] sm:$0xff] }
 0x2d6   :  { %v1520_v31 = vld [vmem:[#allocation2 + $0x1c0] sm:$0xff]  ;;  %v1522_v38 = vld [vmem:[#allocation2 + $0x1d0] sm:$0xff]  ;;  %v1529_v4 = vld [vmem:[#allocation2 + $0x208] sm:$0xff] }
 0x2d7   :  { %1745 = vmatpush1.bf16.msra.mxu0 %v1480_v61  ;;  %1831 = vmatpush1.bf16.msra.mxu1 %v1482_v39  ;;  %v1531_v6 = vld [vmem:[#allocation2 + $0x218] sm:$0xff]  ;;  %v1528_v7 = vld [vmem:[#allocation2 + $0x200] sm:$0xff]  ;;  %v1530_v12 = vld [vmem:[#allocation2 + $0x210] sm:$0xff] }
 0x2d8   :  { %1746 = vmatprep.subr.bf16.mxu0 %v1489_v62  ;;  %1832 = vmatprep.subr.bf16.mxu1 %v1491_v44  ;;  %v1537_v13 = vld [vmem:[#allocation2 + $0x248] sm:$0xff]  ;;  %v1539_v14 = vld [vmem:[#allocation2 + $0x258] sm:$0xff]  ;;  %v1536_v5 = vld [vmem:[#allocation2 + $0x240] sm:$0xff] }
 0x2d9   :  { %v1538_v15 = vld [vmem:[#allocation2 + $0x250] sm:$0xff]  ;;  %v1545_v16 = vld [vmem:[#allocation2 + $0x288] sm:$0xff]  ;;  %v1547_v17 = vld [vmem:[#allocation2 + $0x298] sm:$0xff] }
 0x2da   :  { %v1544_v18 = vld [vmem:[#allocation2 + $0x280] sm:$0xff]  ;;  %v1546_v19 = vld [vmem:[#allocation2 + $0x290] sm:$0xff]  ;;  %v1553_v24 = vld [vmem:[#allocation2 + $0x2c8] sm:$0xff] }
 0x2db   :  { %1747 = vmatpush1.bf16.msra.mxu0 %v1488_v63  ;;  %1833 = vmatpush1.bf16.msra.mxu1 %v1490_v30  ;;  %v1555_v25 = vld [vmem:[#allocation2 + $0x2d8] sm:$0xff]  ;;  %v1552_v26 = vld [vmem:[#allocation2 + $0x2c0] sm:$0xff]  ;;  %v1554_v27 = vld [vmem:[#allocation2 + $0x2d0] sm:$0xff] }
 0x2dc   :  { %1748 = vmatprep.subr.bf16.mxu0 %v1497_v28  ;;  %1834 = vmatprep.subr.bf16.mxu1 %v1499_v23  ;;  %v1561_v32 = vld [vmem:[#allocation2 + $0x308] sm:$0xff]  ;;  %v1563_v33 = vld [vmem:[#allocation2 + $0x318] sm:$0xff]  ;;  %v1560_v35 = vld [vmem:[#allocation2 + $0x300] sm:$0xff] }
 0x2dd   :  { %v1562_v37 = vld [vmem:[#allocation2 + $0x310] sm:$0xff]  ;;  %v1569_v40 = vld [vmem:[#allocation2 + $0x348] sm:$0xff]  ;;  %v1571_v41 = vld [vmem:[#allocation2 + $0x358] sm:$0xff] }
 0x2de   :  { %v1568_v45 = vld [vmem:[#allocation2 + $0x340] sm:$0xff]  ;;  %v1570_v8 = vld [vmem:[#allocation2 + $0x350] sm:$0xff]  ;;  %v1577_v47 = vld [vmem:[#allocation2 + $0x388] sm:$0xff] }
 0x2df   :  { %1749 = vmatpush1.bf16.msra.mxu0 %v1496_v1  ;;  %1835 = vmatpush1.bf16.msra.mxu1 %v1498_v9  ;;  %v1579_v48 = vld [vmem:[#allocation2 + $0x398] sm:$0xff]  ;;  %v1576_v49 = vld [vmem:[#allocation2 + $0x380] sm:$0xff]  ;;  %v1578_v42 = vld [vmem:[#allocation2 + $0x390] sm:$0xff] }
 0x2e0   :  { %1750 = vmatprep.subr.bf16.mxu0 %v1505_v36  ;;  %1836 = vmatprep.subr.bf16.mxu1 %v1507_v2  ;;  %v1585_v43 = vld [vmem:[#allocation2 + $0x3c8] sm:$0xff]  ;;  %v1587_v0 = vld [vmem:[#allocation2 + $0x3d8] sm:$0xff]  ;;  %v1584_v53 = vld [vmem:[#allocation2 + $0x3c0] sm:$0xff] }
 0x2e1   :  { %v1586_v54 = vld [vmem:[#allocation2 + $0x3d0] sm:$0xff]  ;;  %v1593_v55 = vld [vmem:[#allocation2 + $0x408] sm:$0xff]  ;;  %v1595_v56 = vld [vmem:[#allocation2 + $0x418] sm:$0xff] }
 0x2e2   :  { %v1592_v58 = vld [vmem:[#allocation2 + $0x400] sm:$0xff]  ;;  %v1594_v34 = vld [vmem:[#allocation2 + $0x410] sm:$0xff]  ;;  %v1601_v59 = vld [vmem:[#allocation2 + $0x448] sm:$0xff] }
 0x2e3   :  { %1751 = vmatpush1.bf16.msra.mxu0 %v1504_v10  ;;  %1837 = vmatpush1.bf16.msra.mxu1 %v1506_v3  ;;  %v1603_v60 = vld [vmem:[#allocation2 + $0x458] sm:$0xff]  ;;  %v9868_v61 = vld [vmem:[#allocation49_spill] sm:$0xff]  ;;  %v1602_v51 = vld [vmem:[#allocation2 + $0x450] sm:$0xff] }
 0x2e4   :  { %1752 = vmatprep.subr.bf16.mxu0 %v1513_v11  ;;  %1838 = vmatprep.subr.bf16.mxu1 %v1515_v22  ;;  %v9869_v39 = vld [vmem:[#allocation44_spill] sm:$0xff]  ;;  %v1609_v44 = vld [vmem:[#allocation2 + $0x488] sm:$0xff]  ;;  %v1610_v28 = vld [vmem:[#allocation2 + $0x490] sm:$0xff] }
 0x2e5   :  { %v7597_v62 = vcombine.high %v9869_v39, %v9868_v61  ;;  %v1600_v50 = vld [vmem:[#allocation2 + $0x440] sm:$0xff]  ;;  %v1611_v63 = vld [vmem:[#allocation2 + $0x498] sm:$0xff]  ;;  %v1617_v23 = vld [vmem:[#allocation2 + $0x4c8] sm:$0xff] }
 0x2e6   :  { %v1608_v30 = vld [vmem:[#allocation2 + $0x480] sm:$0xff]  ;;  %v1619_v1 = vld [vmem:[#allocation2 + $0x4d8] sm:$0xff]  ;;  %v1618_v36 = vld [vmem:[#allocation2 + $0x4d0] sm:$0xff] }
 0x2e7   :  { %1753 = vmatpush1.bf16.msra.mxu0 %v1512_v21  ;;  %1839 = vmatpush1.bf16.msra.mxu1 %v1514_v29  ;;  %9870 = vst [vmem:[#allocation99_spill] sm:$0xff] %v7597_v62  ;;  %v1616_v9 = vld [vmem:[#allocation2 + $0x4c0] sm:$0xff]  ;;  %v1625_v2 = vld [vmem:[#allocation2 + $0x508] sm:$0xff]  ;;  %v1627_v10 = vld [vmem:[#allocation2 + $0x518] sm:$0xff] }
 0x2e8   :  { %1754 = vmatprep.subr.bf16.mxu0 %v1521_v20  ;;  %1840 = vmatprep.subr.bf16.mxu1 %v1523_v46  ;;  %v1624_v3 = vld [vmem:[#allocation2 + $0x500] sm:$0xff]  ;;  %v1626_v11 = vld [vmem:[#allocation2 + $0x510] sm:$0xff]  ;;  %v1633_v22 = vld [vmem:[#allocation2 + $0x548] sm:$0xff] }
 0x2e9   :  { %v1635_v21 = vld [vmem:[#allocation2 + $0x558] sm:$0xff]  ;;  %v1632_v29 = vld [vmem:[#allocation2 + $0x540] sm:$0xff]  ;;  %v1634_v20 = vld [vmem:[#allocation2 + $0x550] sm:$0xff] }
 0x2ea   :  { %v1641_v46 = vld [vmem:[#allocation2 + $0x588] sm:$0xff] }
 0x2eb   :  { %1755 = vmatpush1.bf16.msra.mxu0 %v1520_v31  ;;  %1841 = vmatpush1.bf16.msra.mxu1 %v1522_v38  ;;  %v1643_v31 = vld [vmem:[#allocation2 + $0x598] sm:$0xff]  ;;  %v1640_v38 = vld [vmem:[#allocation2 + $0x580] sm:$0xff] }
 0x2ec   :  { %1756 = vmatprep.subr.bf16.mxu0 %v1529_v4  ;;  %1842 = vmatprep.subr.bf16.mxu1 %v1531_v6  ;;  %v1642_v4 = vld [vmem:[#allocation2 + $0x590] sm:$0xff]  ;;  %v1649_v6 = vld [vmem:[#allocation2 + $0x5c8] sm:$0xff] }
 0x2ef   :  { %1757 = vmatpush1.bf16.msra.mxu0 %v1528_v7  ;;  %1843 = vmatpush1.bf16.msra.mxu1 %v1530_v12  ;;  %v1651_v7 = vld [vmem:[#allocation2 + $0x5d8] sm:$0xff]  ;;  %v1648_v12 = vld [vmem:[#allocation2 + $0x5c0] sm:$0xff] }
 0x2f0   :  { %1758 = vmatprep.subr.bf16.mxu0 %v1537_v13  ;;  %1844 = vmatprep.subr.bf16.mxu1 %v1539_v14  ;;  %v1650_v13 = vld [vmem:[#allocation2 + $0x5d0] sm:$0xff]  ;;  %v1657_v14 = vld [vmem:[#allocation2 + $0x608] sm:$0xff] }
 0x2f3   :  { %1759 = vmatpush1.bf16.msra.mxu0 %v1536_v5  ;;  %1845 = vmatpush1.bf16.msra.mxu1 %v1538_v15  ;;  %v1659_v5 = vld [vmem:[#allocation2 + $0x618] sm:$0xff]  ;;  %v1656_v15 = vld [vmem:[#allocation2 + $0x600] sm:$0xff] }
 0x2f4   :  { %1760 = vmatprep.subr.bf16.mxu0 %v1545_v16  ;;  %1846 = vmatprep.subr.bf16.mxu1 %v1547_v17  ;;  %v1658_v16 = vld [vmem:[#allocation2 + $0x610] sm:$0xff]  ;;  %v1665_v17 = vld [vmem:[#allocation2 + $0x648] sm:$0xff] }
 0x2f7   :  { %1761 = vmatpush1.bf16.msra.mxu0 %v1544_v18  ;;  %1847 = vmatpush1.bf16.msra.mxu1 %v1546_v19  ;;  %v1667_v18 = vld [vmem:[#allocation2 + $0x658] sm:$0xff]  ;;  %v1664_v19 = vld [vmem:[#allocation2 + $0x640] sm:$0xff] }
 0x2f8   :  { %1762 = vmatprep.subr.bf16.mxu0 %v1553_v24  ;;  %1848 = vmatprep.subr.bf16.mxu1 %v1555_v25  ;;  %v1666_v24 = vld [vmem:[#allocation2 + $0x650] sm:$0xff]  ;;  %v1673_v25 = vld [vmem:[#allocation2 + $0x688] sm:$0xff] }
 0x2fb   :  { %1763 = vmatpush1.bf16.msra.mxu0 %v1552_v26  ;;  %1849 = vmatpush1.bf16.msra.mxu1 %v1554_v27  ;;  %v1675_v26 = vld [vmem:[#allocation2 + $0x698] sm:$0xff]  ;;  %v1672_v27 = vld [vmem:[#allocation2 + $0x680] sm:$0xff] }
 0x2fc   :  { %1764 = vmatprep.subr.bf16.mxu0 %v1561_v32  ;;  %1850 = vmatprep.subr.bf16.mxu1 %v1563_v33  ;;  %v1674_v32 = vld [vmem:[#allocation2 + $0x690] sm:$0xff]  ;;  %v1681_v33 = vld [vmem:[#allocation2 + $0x6c8] sm:$0xff] }
 0x2ff   :  { %1765 = vmatpush1.bf16.msra.mxu0 %v1560_v35  ;;  %1851 = vmatpush1.bf16.msra.mxu1 %v1562_v37  ;;  %v1683_v35 = vld [vmem:[#allocation2 + $0x6d8] sm:$0xff]  ;;  %v1680_v37 = vld [vmem:[#allocation2 + $0x6c0] sm:$0xff] }
 0x300   :  { %1766 = vmatprep.subr.bf16.mxu0 %v1569_v40  ;;  %1852 = vmatprep.subr.bf16.mxu1 %v1571_v41  ;;  %v1682_v40 = vld [vmem:[#allocation2 + $0x6d0] sm:$0xff]  ;;  %v1689_v41 = vld [vmem:[#allocation2 + $0x708] sm:$0xff] }
 0x303   :  { %1767 = vmatpush1.bf16.msra.mxu0 %v1568_v45  ;;  %1853 = vmatpush1.bf16.msra.mxu1 %v1570_v8  ;;  %v1691_v45 = vld [vmem:[#allocation2 + $0x718] sm:$0xff]  ;;  %v1688_v8 = vld [vmem:[#allocation2 + $0x700] sm:$0xff] }
 0x304   :  { %1768 = vmatprep.subr.bf16.mxu0 %v1577_v47  ;;  %1854 = vmatprep.subr.bf16.mxu1 %v1579_v48  ;;  %v1690_v47 = vld [vmem:[#allocation2 + $0x710] sm:$0xff]  ;;  %v1697_v48 = vld [vmem:[#allocation2 + $0x748] sm:$0xff] }
 0x307   :  { %1769 = vmatpush1.bf16.msra.mxu0 %v1576_v49  ;;  %1855 = vmatpush1.bf16.msra.mxu1 %v1578_v42  ;;  %v1699_v49 = vld [vmem:[#allocation2 + $0x758] sm:$0xff]  ;;  %v1696_v42 = vld [vmem:[#allocation2 + $0x740] sm:$0xff] }
 0x308   :  { %1770 = vmatprep.subr.bf16.mxu0 %v1585_v43  ;;  %1856 = vmatprep.subr.bf16.mxu1 %v1587_v0  ;;  %v1698_v43 = vld [vmem:[#allocation2 + $0x750] sm:$0xff]  ;;  %v1705_v0 = vld [vmem:[#allocation2 + $0x788] sm:$0xff] }
 0x30b   :  { %1771 = vmatpush1.bf16.msra.mxu0 %v1584_v53  ;;  %1857 = vmatpush1.bf16.msra.mxu1 %v1586_v54  ;;  %v1707_v53 = vld [vmem:[#allocation2 + $0x798] sm:$0xff]  ;;  %v1704_v54 = vld [vmem:[#allocation2 + $0x780] sm:$0xff] }
 0x30c   :  { %1783 = vmatprep.subr.bf16.mxu0 %v1593_v55  ;;  %1869 = vmatprep.subr.bf16.mxu1 %v1595_v56  ;;  %v1706_v55 = vld [vmem:[#allocation2 + $0x790] sm:$0xff]  ;;  %v1713_v56 = vld [vmem:[#allocation2 + $0x7c8] sm:$0xff] }
 0x30e   :  { %1773 = vmatmul.mubr.bf16.vlgmr.msra.gmra.mrb[0].mxu0 %v7593_v57  ;;  %1859 = vmatmul.mubr.bf16.vlgmr.msra.gmra.mrb[0].mxu1 %v7593_v57  ;;  %v7729_v57 = vld [vmem:[#allocation2 + $0x3f0] sm:$0xff] }
 0x30f   :  { %1784 = vmatpush1.bf16.msra.mxu0 %v1592_v58  ;;  %1870 = vmatpush1.bf16.msra.mxu1 %v1594_v34  ;;  %v1715_v58 = vld [vmem:[#allocation2 + $0x7d8] sm:$0xff]  ;;  %v1712_v34 = vld [vmem:[#allocation2 + $0x7c0] sm:$0xff]  ;;  %9881 = vst [vmem:[#allocation121_spill] sm:$0xff] %v7729_v57 }
 0x310   :  { %1785 = vmatprep.subr.bf16.mxu0 %v1601_v59  ;;  %1871 = vmatprep.subr.bf16.mxu1 %v1603_v60  ;;  %v1714_v59 = vld [vmem:[#allocation2 + $0x7d0] sm:$0xff]  ;;  %v1469_v60 = vld [vmem:[#allocation2 + $0x28] sm:$0xff]  ;;  %v7751_v57 = vld [vmem:[#allocation2 + $0x4a0] sm:$0xff] }
 0x311   :  { %1815 = vmatprep.mubr.bf16.mxu0 %v7597_v62  ;;  %1901 = vmatprep.mubr.bf16.mxu1 %v7597_v62  ;;  %v7727_v62 = vld [vmem:[#allocation2 + $0x3e0] sm:$0xff]  ;;  %9892 = vst [vmem:[#allocation42_spill] sm:$0xff] %v7751_v57  ;;  %v7773_v57 = vld [vmem:[#allocation2 + $0x578] sm:$0xff] }
 0x312   :  { %9880 = vst [vmem:[#allocation114_spill] sm:$0xff] %v7727_v62  ;;  %v7749_v62 = vld [vmem:[#allocation2 + $0x4b8] sm:$0xff]  ;;  %9903 = vst [vmem:[#allocation161_spill] sm:$0xff] %v7773_v57  ;;  %v7795_v57 = vld [vmem:[#allocation2 + $0x628] sm:$0xff] }
 0x313   :  { %1786 = vmatpush1.bf16.msra.mxu0 %v1600_v50  ;;  %1872 = vmatpush1.bf16.msra.mxu1 %v1602_v51  ;;  %v1471_v50 = vld [vmem:[#allocation2 + $0x38] sm:$0xff]  ;;  %v7605_v51 = vcombine.low %v9869_v39, %v9868_v61  ;;  %v7623_v39 = vld [vmem:[#allocation2 + $0xa0] sm:$0xff]  ;;  %9891 = vst [vmem:[#allocation47_spill] sm:$0xff] %v7749_v62  ;;  %v7771_v62 = vld [vmem:[#allocation2 + $0x568] sm:$0xff] }
 0x314   :  { %1787 = vmatprep.subr.bf16.mxu0 %v1609_v44  ;;  %1873 = vmatprep.subr.bf16.mxu1 %v1611_v63  ;;  %v7607_v44 = vld [vmem:[#allocation2 + $0x20] sm:$0xff]  ;;  %v7609_v63 = vld [vmem:[#allocation2 + $0x30] sm:$0xff]  ;;  %v7621_v61 = vld [vmem:[#allocation2 + $0xb8] sm:$0xff]  ;;  %9902 = vst [vmem:[#allocation154_spill] sm:$0xff] %v7771_v62 }
 0x315   :  { %v7793_v62 = vld [vmem:[#allocation2 + $0x5f0] sm:$0xff]  ;;  %9914 = vst [vmem:[#allocation178_spill] sm:$0xff] %v7795_v57 }
 0x316   :  { %9913 = vst [vmem:[#allocation176_spill] sm:$0xff] %v7793_v62  ;;  %v7815_v62 = vld [vmem:[#allocation2 + $0x6a0] sm:$0xff]  ;;  %v7817_v57 = vld [vmem:[#allocation2 + $0x6b0] sm:$0xff] }
 0x317   :  { %1788 = vmatpush1.bf16.msra.mxu0 %v1608_v30  ;;  %1874 = vmatpush1.bf16.msra.mxu1 %v1610_v28  ;;  %v7611_v30 = vld [vmem:[#allocation2 + $0x68] sm:$0xff]  ;;  %v7613_v28 = vld [vmem:[#allocation2 + $0x78] sm:$0xff]  ;;  %9924 = vst [vmem:[#allocation203_spill] sm:$0xff] %v7815_v62  ;;  %9925 = vst [vmem:[#allocation200_spill] sm:$0xff] %v7817_v57 }
 0x318   :  { %1789 = vmatprep.subr.bf16.mxu0 %v1617_v23  ;;  %1875 = vmatprep.subr.bf16.mxu1 %v1619_v1  ;;  %v7615_v23 = vld [vmem:[#allocation2 + $0x60] sm:$0xff]  ;;  %v7617_v1 = vld [vmem:[#allocation2 + $0x70] sm:$0xff]  ;;  %v7837_v62 = vld [vmem:[#allocation2 + $0x778] sm:$0xff] }
 0x319   :  { %v7839_v57 = vld [vmem:[#allocation2 + $0x760] sm:$0xff] }
 0x31a   :  { %9932 = vst [vmem:[#allocation219_spill] sm:$0xff] %v7839_v57  ;;  %v7855_v57 = vld [vmem:[#allocation2 + $0x7f8] sm:$0xff] }
 0x31b   :  { %1790 = vmatpush1.bf16.msra.mxu0 %v1616_v9  ;;  %1876 = vmatpush1.bf16.msra.mxu1 %v1618_v36  ;;  %v7619_v9 = vld [vmem:[#allocation2 + $0xa8] sm:$0xff]  ;;  %v7625_v36 = vld [vmem:[#allocation2 + $0xb0] sm:$0xff] }
 0x31c   :  { %1791 = vmatprep.subr.bf16.mxu0 %v1625_v2  ;;  %1877 = vmatprep.subr.bf16.mxu1 %v1627_v10  ;;  %v7627_v2 = vld [vmem:[#allocation2 + $0xe8] sm:$0xff]  ;;  %v7629_v10 = vld [vmem:[#allocation2 + $0xf8] sm:$0xff] }
 0x31f   :  { %1792 = vmatpush1.bf16.msra.mxu0 %v1624_v3  ;;  %1878 = vmatpush1.bf16.msra.mxu1 %v1626_v11  ;;  %v7631_v3 = vld [vmem:[#allocation2 + $0xe0] sm:$0xff]  ;;  %v7633_v11 = vld [vmem:[#allocation2 + $0xf0] sm:$0xff] }
 0x320   :  { %1793 = vmatprep.subr.bf16.mxu0 %v1633_v22  ;;  %1879 = vmatprep.subr.bf16.mxu1 %v1635_v21  ;;  %v7635_v22 = vld [vmem:[#allocation2 + $0x128] sm:$0xff]  ;;  %v7637_v21 = vld [vmem:[#allocation2 + $0x138] sm:$0xff] }
 0x323   :  { %1794 = vmatpush1.bf16.msra.mxu0 %v1632_v29  ;;  %1880 = vmatpush1.bf16.msra.mxu1 %v1634_v20  ;;  %v7639_v29 = vld [vmem:[#allocation2 + $0x120] sm:$0xff]  ;;  %v7641_v20 = vld [vmem:[#allocation2 + $0x130] sm:$0xff] }
 0x324   :  { %1795 = vmatprep.subr.bf16.mxu0 %v1641_v46  ;;  %1881 = vmatprep.subr.bf16.mxu1 %v1643_v31  ;;  %v7643_v46 = vld [vmem:[#allocation2 + $0x168] sm:$0xff]  ;;  %v7645_v31 = vld [vmem:[#allocation2 + $0x178] sm:$0xff] }
 0x327   :  { %1796 = vmatpush1.bf16.msra.mxu0 %v1640_v38  ;;  %1882 = vmatpush1.bf16.msra.mxu1 %v1642_v4  ;;  %v7647_v38 = vld [vmem:[#allocation2 + $0x160] sm:$0xff]  ;;  %v7649_v4 = vld [vmem:[#allocation2 + $0x170] sm:$0xff] }
 0x328   :  { %1797 = vmatprep.subr.bf16.mxu0 %v1649_v6  ;;  %1883 = vmatprep.subr.bf16.mxu1 %v1651_v7  ;;  %v7651_v6 = vld [vmem:[#allocation2 + $0x1a8] sm:$0xff]  ;;  %v7653_v7 = vld [vmem:[#allocation2 + $0x1b8] sm:$0xff] }
 0x32b   :  { %1798 = vmatpush1.bf16.msra.mxu0 %v1648_v12  ;;  %1884 = vmatpush1.bf16.msra.mxu1 %v1650_v13  ;;  %v7655_v12 = vld [vmem:[#allocation2 + $0x1a0] sm:$0xff]  ;;  %v7657_v13 = vld [vmem:[#allocation2 + $0x1b0] sm:$0xff] }
 0x32c   :  { %1799 = vmatprep.subr.bf16.mxu0 %v1657_v14  ;;  %1885 = vmatprep.subr.bf16.mxu1 %v1659_v5  ;;  %v7659_v14 = vld [vmem:[#allocation2 + $0x1e8] sm:$0xff]  ;;  %v7661_v5 = vld [vmem:[#allocation2 + $0x1f8] sm:$0xff] }
 0x32f   :  { %1800 = vmatpush1.bf16.msra.mxu0 %v1656_v15  ;;  %1886 = vmatpush1.bf16.msra.mxu1 %v1658_v16  ;;  %v7663_v15 = vld [vmem:[#allocation2 + $0x1e0] sm:$0xff]  ;;  %v7665_v16 = vld [vmem:[#allocation2 + $0x1f0] sm:$0xff] }
 0x330   :  { %1801 = vmatprep.subr.bf16.mxu0 %v1665_v17  ;;  %1887 = vmatprep.subr.bf16.mxu1 %v1667_v18  ;;  %v7667_v17 = vld [vmem:[#allocation2 + $0x228] sm:$0xff]  ;;  %v7669_v18 = vld [vmem:[#allocation2 + $0x238] sm:$0xff] }
 0x333   :  { %1802 = vmatpush1.bf16.msra.mxu0 %v1664_v19  ;;  %1888 = vmatpush1.bf16.msra.mxu1 %v1666_v24  ;;  %v7671_v19 = vld [vmem:[#allocation2 + $0x220] sm:$0xff]  ;;  %v7673_v24 = vld [vmem:[#allocation2 + $0x230] sm:$0xff] }
 0x334   :  { %1803 = vmatprep.subr.bf16.mxu0 %v1673_v25  ;;  %1889 = vmatprep.subr.bf16.mxu1 %v1675_v26  ;;  %v7675_v25 = vld [vmem:[#allocation2 + $0x268] sm:$0xff]  ;;  %v7677_v26 = vld [vmem:[#allocation2 + $0x278] sm:$0xff] }
 0x337   :  { %1804 = vmatpush1.bf16.msra.mxu0 %v1672_v27  ;;  %1890 = vmatpush1.bf16.msra.mxu1 %v1674_v32  ;;  %v7679_v27 = vld [vmem:[#allocation2 + $0x260] sm:$0xff]  ;;  %v7681_v32 = vld [vmem:[#allocation2 + $0x270] sm:$0xff] }
 0x338   :  { %1805 = vmatprep.subr.bf16.mxu0 %v1681_v33  ;;  %1891 = vmatprep.subr.bf16.mxu1 %v1683_v35  ;;  %v7683_v33 = vld [vmem:[#allocation2 + $0x2a8] sm:$0xff]  ;;  %v7685_v35 = vld [vmem:[#allocation2 + $0x2b8] sm:$0xff] }
 0x33b   :  { %1806 = vmatpush1.bf16.msra.mxu0 %v1680_v37  ;;  %1892 = vmatpush1.bf16.msra.mxu1 %v1682_v40  ;;  %v7687_v37 = vld [vmem:[#allocation2 + $0x2a0] sm:$0xff]  ;;  %v7689_v40 = vld [vmem:[#allocation2 + $0x2b0] sm:$0xff] }
 0x33c   :  { %1807 = vmatprep.subr.bf16.mxu0 %v1689_v41  ;;  %1893 = vmatprep.subr.bf16.mxu1 %v1691_v45  ;;  %v7691_v41 = vld [vmem:[#allocation2 + $0x2e8] sm:$0xff]  ;;  %v7693_v45 = vld [vmem:[#allocation2 + $0x2f8] sm:$0xff] }
 0x33f   :  { %1808 = vmatpush1.bf16.msra.mxu0 %v1688_v8  ;;  %1894 = vmatpush1.bf16.msra.mxu1 %v1690_v47  ;;  %v7695_v8 = vld [vmem:[#allocation2 + $0x2e0] sm:$0xff]  ;;  %v7697_v47 = vld [vmem:[#allocation2 + $0x2f0] sm:$0xff] }
 0x340   :  { %1809 = vmatprep.subr.bf16.mxu0 %v1697_v48  ;;  %1895 = vmatprep.subr.bf16.mxu1 %v1699_v49  ;;  %v7699_v48 = vld [vmem:[#allocation2 + $0x328] sm:$0xff]  ;;  %v7701_v49 = vld [vmem:[#allocation2 + $0x338] sm:$0xff] }
 0x343   :  { %1810 = vmatpush1.bf16.msra.mxu0 %v1696_v42  ;;  %1896 = vmatpush1.bf16.msra.mxu1 %v1698_v43  ;;  %v7703_v42 = vld [vmem:[#allocation2 + $0x320] sm:$0xff]  ;;  %v7705_v43 = vld [vmem:[#allocation2 + $0x330] sm:$0xff] }
 0x344   :  { %1811 = vmatprep.subr.bf16.mxu0 %v1705_v0  ;;  %1897 = vmatprep.subr.bf16.mxu1 %v1707_v53  ;;  %v7707_v0 = vld [vmem:[#allocation2 + $0x368] sm:$0xff]  ;;  %v7709_v53 = vld [vmem:[#allocation2 + $0x378] sm:$0xff] }
 0x345   :  { %9871 = vst [vmem:[#allocation96_spill] sm:$0xff] %v7709_v53  ;;  %v7731_v53 = vld [vmem:[#allocation2 + $0x428] sm:$0xff] }
 0x346   :  { %9882 = vst [vmem:[#allocation123_spill] sm:$0xff] %v7731_v53  ;;  %v7753_v53 = vld [vmem:[#allocation2 + $0x4b0] sm:$0xff] }
 0x347   :  { %1812 = vmatpush1.bf16.msra.mxu0 %v1704_v54  ;;  %1898 = vmatpush1.bf16.msra.mxu1 %v1706_v55  ;;  %v7711_v54 = vld [vmem:[#allocation2 + $0x360] sm:$0xff]  ;;  %v7713_v55 = vld [vmem:[#allocation2 + $0x370] sm:$0xff]  ;;  %9893 = vst [vmem:[#allocation136_spill] sm:$0xff] %v7753_v53 }
 0x348   :  { %1813 = vmatprep.subr.bf16.mxu0 %v1713_v56  ;;  %1899 = vmatprep.subr.bf16.mxu1 %v1715_v58  ;;  %9872 = vst [vmem:[#allocation98_spill] sm:$0xff] %v7711_v54  ;;  %9873 = vst [vmem:[#allocation105_spill] sm:$0xff] %v7713_v55  ;;  %v7715_v56 = vld [vmem:[#allocation2 + $0x3a8] sm:$0xff]  ;;  %v7717_v58 = vld [vmem:[#allocation2 + $0x3b8] sm:$0xff] }
 0x349   :  { %9874 = vst [vmem:[#allocation107_spill] sm:$0xff] %v7715_v56  ;;  %9875 = vst [vmem:[#allocation104_spill] sm:$0xff] %v7717_v58  ;;  %v7733_v54 = vld [vmem:[#allocation2 + $0x438] sm:$0xff]  ;;  %v7735_v55 = vld [vmem:[#allocation2 + $0x420] sm:$0xff] }
 0x34a   :  { %9883 = vst [vmem:[#allocation120_spill] sm:$0xff] %v7733_v54  ;;  %9884 = vst [vmem:[#allocation122_spill] sm:$0xff] %v7735_v55  ;;  %v7737_v56 = vld [vmem:[#allocation2 + $0x430] sm:$0xff]  ;;  %v7739_v58 = vld [vmem:[#allocation2 + $0x468] sm:$0xff] }
 0x34b   :  { %1814 = vmatpush1.bf16.msra.mxu0 %v1712_v34  ;;  %1900 = vmatpush1.bf16.msra.mxu1 %v1714_v59  ;;  %v7719_v34 = vld [vmem:[#allocation2 + $0x3a0] sm:$0xff]  ;;  %v7721_v59 = vld [vmem:[#allocation2 + $0x3b0] sm:$0xff]  ;;  %9885 = vst [vmem:[#allocation129_spill] sm:$0xff] %v7737_v56  ;;  %9886 = vst [vmem:[#allocation131_spill] sm:$0xff] %v7739_v58 }
 0x34c   :  { %1912 = vmatprep.subr.bf16.mxu0 %v1469_v60  ;;  %1998 = vmatprep.subr.bf16.mxu1 %v1471_v50  ;;  %9876 = vst [vmem:[#allocation106_spill] sm:$0xff] %v7719_v34  ;;  %9877 = vst [vmem:[#allocation113_spill] sm:$0xff] %v7721_v59  ;;  %v7723_v60 = vld [vmem:[#allocation2 + $0x3e8] sm:$0xff]  ;;  %v7725_v50 = vld [vmem:[#allocation2 + $0x3f8] sm:$0xff] }
 0x34d   :  { %9878 = vst [vmem:[#allocation115_spill] sm:$0xff] %v7723_v60  ;;  %9879 = vst [vmem:[#allocation112_spill] sm:$0xff] %v7725_v50  ;;  %v7741_v34 = vld [vmem:[#allocation2 + $0x478] sm:$0xff]  ;;  %v7743_v59 = vld [vmem:[#allocation2 + $0x460] sm:$0xff] }
 0x34e   :  { %9887 = vst [vmem:[#allocation128_spill] sm:$0xff] %v7741_v34  ;;  %9888 = vst [vmem:[#allocation130_spill] sm:$0xff] %v7743_v59  ;;  %v7745_v60 = vld [vmem:[#allocation2 + $0x470] sm:$0xff]  ;;  %v7747_v50 = vld [vmem:[#allocation2 + $0x4a8] sm:$0xff]  ;;  %1816 = vmatmul.mubr.bf16.vlgmr.msra.gmra.mrb[0].mxu0 %v7605_v51  ;;  %1902 = vmatmul.mubr.bf16.vlgmr.msra.gmra.mrb[0].mxu1 %v7605_v51 }
 0x34f   :  { %9889 = vst [vmem:[#allocation137_spill] sm:$0xff] %v7745_v60  ;;  %9890 = vst [vmem:[#allocation139_spill] sm:$0xff] %v7747_v50  ;;  %v7755_v54 = vld [vmem:[#allocation2 + $0x4e8] sm:$0xff]  ;;  %v7757_v55 = vld [vmem:[#allocation2 + $0x4f8] sm:$0xff]  ;;  %1913 = vmatpush1.bf16.msra.mxu0 %v7607_v44  ;;  %1999 = vmatpush1.bf16.msra.mxu1 %v7609_v63 }
 0x350   :  { %9894 = vst [vmem:[#allocation138_spill] sm:$0xff] %v7755_v54  ;;  %9895 = vst [vmem:[#allocation145_spill] sm:$0xff] %v7757_v55  ;;  %v7759_v56 = vld [vmem:[#allocation2 + $0x4e0] sm:$0xff]  ;;  %v7761_v58 = vld [vmem:[#allocation2 + $0x4f0] sm:$0xff]  ;;  %1914 = vmatprep.subr.bf16.mxu0 %v7611_v30  ;;  %2000 = vmatprep.subr.bf16.mxu1 %v7613_v28 }
 0x351   :  { %9896 = vst [vmem:[#allocation147_spill] sm:$0xff] %v7759_v56  ;;  %9897 = vst [vmem:[#allocation144_spill] sm:$0xff] %v7761_v58  ;;  %v7763_v34 = vld [vmem:[#allocation2 + $0x528] sm:$0xff]  ;;  %v7765_v59 = vld [vmem:[#allocation2 + $0x538] sm:$0xff]  ;;  %1944 = vmatprep.mubr.bf16.mxu0 %v7578_v52  ;;  %2030 = vmatprep.mubr.bf16.mxu1 %v7578_v52 }
 0x352   :  { %9898 = vst [vmem:[#allocation146_spill] sm:$0xff] %v7763_v34  ;;  %9899 = vst [vmem:[#allocation153_spill] sm:$0xff] %v7765_v59  ;;  %v7767_v60 = vld [vmem:[#allocation2 + $0x520] sm:$0xff]  ;;  %v7769_v50 = vld [vmem:[#allocation2 + $0x530] sm:$0xff] }
 0x353   :  { %9900 = vst [vmem:[#allocation155_spill] sm:$0xff] %v7767_v60  ;;  %9901 = vst [vmem:[#allocation152_spill] sm:$0xff] %v7769_v50  ;;  %v7775_v53 = vld [vmem:[#allocation2 + $0x560] sm:$0xff]  ;;  %v7777_v54 = vld [vmem:[#allocation2 + $0x570] sm:$0xff]  ;;  %1915 = vmatpush1.bf16.msra.mxu0 %v7615_v23  ;;  %2001 = vmatpush1.bf16.msra.mxu1 %v7617_v1 }
 0x354   :  { %9904 = vst [vmem:[#allocation163_spill] sm:$0xff] %v7775_v53  ;;  %9905 = vst [vmem:[#allocation160_spill] sm:$0xff] %v7777_v54  ;;  %v7779_v55 = vld [vmem:[#allocation2 + $0x5a8] sm:$0xff]  ;;  %v7781_v56 = vld [vmem:[#allocation2 + $0x5b8] sm:$0xff]  ;;  %1916 = vmatprep.subr.bf16.mxu0 %v7619_v9  ;;  %2002 = vmatprep.subr.bf16.mxu1 %v7621_v61 }
 0x355   :  { %9906 = vst [vmem:[#allocation162_spill] sm:$0xff] %v7779_v55  ;;  %9907 = vst [vmem:[#allocation169_spill] sm:$0xff] %v7781_v56  ;;  %v7783_v58 = vld [vmem:[#allocation2 + $0x5a0] sm:$0xff]  ;;  %v7785_v34 = vld [vmem:[#allocation2 + $0x5b0] sm:$0xff] }
 0x356   :  { %9908 = vst [vmem:[#allocation171_spill] sm:$0xff] %v7783_v58  ;;  %9909 = vst [vmem:[#allocation168_spill] sm:$0xff] %v7785_v34  ;;  %v7787_v59 = vld [vmem:[#allocation2 + $0x5e8] sm:$0xff]  ;;  %v7789_v60 = vld [vmem:[#allocation2 + $0x5f8] sm:$0xff] }
 0x357   :  { %9910 = vst [vmem:[#allocation170_spill] sm:$0xff] %v7787_v59  ;;  %9911 = vst [vmem:[#allocation177_spill] sm:$0xff] %v7789_v60  ;;  %v7791_v50 = vld [vmem:[#allocation2 + $0x5e0] sm:$0xff]  ;;  %v7797_v53 = vld [vmem:[#allocation2 + $0x638] sm:$0xff]  ;;  %1917 = vmatpush1.bf16.msra.mxu0 %v7623_v39  ;;  %2003 = vmatpush1.bf16.msra.mxu1 %v7625_v36 }
 0x358   :  { %9912 = vst [vmem:[#allocation179_spill] sm:$0xff] %v7791_v50  ;;  %9915 = vst [vmem:[#allocation185_spill] sm:$0xff] %v7797_v53  ;;  %v7799_v54 = vld [vmem:[#allocation2 + $0x620] sm:$0xff]  ;;  %v7801_v55 = vld [vmem:[#allocation2 + $0x630] sm:$0xff]  ;;  %1918 = vmatprep.subr.bf16.mxu0 %v7627_v2  ;;  %2004 = vmatprep.subr.bf16.mxu1 %v7629_v10 }
 0x359   :  { %9916 = vst [vmem:[#allocation187_spill] sm:$0xff] %v7799_v54  ;;  %9917 = vst [vmem:[#allocation184_spill] sm:$0xff] %v7801_v55  ;;  %v7803_v56 = vld [vmem:[#allocation2 + $0x668] sm:$0xff]  ;;  %v7805_v58 = vld [vmem:[#allocation2 + $0x678] sm:$0xff] }
 0x35a   :  { %9918 = vst [vmem:[#allocation186_spill] sm:$0xff] %v7803_v56  ;;  %9919 = vst [vmem:[#allocation193_spill] sm:$0xff] %v7805_v58  ;;  %v7807_v34 = vld [vmem:[#allocation2 + $0x660] sm:$0xff]  ;;  %v7809_v59 = vld [vmem:[#allocation2 + $0x670] sm:$0xff] }
 0x35b   :  { %9920 = vst [vmem:[#allocation195_spill] sm:$0xff] %v7807_v34  ;;  %9921 = vst [vmem:[#allocation192_spill] sm:$0xff] %v7809_v59  ;;  %v7811_v60 = vld [vmem:[#allocation2 + $0x6a8] sm:$0xff]  ;;  %v7813_v50 = vld [vmem:[#allocation2 + $0x6b8] sm:$0xff]  ;;  %1919 = vmatpush1.bf16.msra.mxu0 %v7631_v3  ;;  %2005 = vmatpush1.bf16.msra.mxu1 %v7633_v11 }
 0x35c   :  { %9922 = vst [vmem:[#allocation194_spill] sm:$0xff] %v7811_v60  ;;  %9923 = vst [vmem:[#allocation201_spill] sm:$0xff] %v7813_v50  ;;  %v7819_v53 = vld [vmem:[#allocation2 + $0x6e8] sm:$0xff]  ;;  %v7821_v54 = vld [vmem:[#allocation2 + $0x6f8] sm:$0xff]  ;;  %1920 = vmatprep.subr.bf16.mxu0 %v7635_v22  ;;  %2006 = vmatprep.subr.bf16.mxu1 %v7637_v21 }
 0x35d   :  { %9926 = vst [vmem:[#allocation202_spill] sm:$0xff] %v7819_v53  ;;  %9927 = vst [vmem:[#allocation209_spill] sm:$0xff] %v7821_v54  ;;  %v7823_v55 = vld [vmem:[#allocation2 + $0x6e0] sm:$0xff]  ;;  %v7825_v56 = vld [vmem:[#allocation2 + $0x6f0] sm:$0xff] }
 0x35e   :  { %9928 = vst [vmem:[#allocation211_spill] sm:$0xff] %v7823_v55  ;;  %v7827_v58 = vld [vmem:[#allocation2 + $0x728] sm:$0xff]  ;;  %v7829_v34 = vld [vmem:[#allocation2 + $0x738] sm:$0xff]  ;;  %v7831_v59 = vld [vmem:[#allocation2 + $0x720] sm:$0xff] }
 0x35f   :  { %9929 = vst [vmem:[#allocation208_spill] sm:$0xff] %v7829_v34  ;;  %9930 = vst [vmem:[#allocation210_spill] sm:$0xff] %v7831_v59  ;;  %v7833_v60 = vld [vmem:[#allocation2 + $0x730] sm:$0xff]  ;;  %v7835_v50 = vld [vmem:[#allocation2 + $0x768] sm:$0xff]  ;;  %1921 = vmatpush1.bf16.msra.mxu0 %v7639_v29  ;;  %2007 = vmatpush1.bf16.msra.mxu1 %v7641_v20 }
 0x360   :  { %9931 = vst [vmem:[#allocation217_spill] sm:$0xff] %v7833_v60  ;;  %v7841_v53 = vld [vmem:[#allocation2 + $0x770] sm:$0xff]  ;;  %v7843_v54 = vld [vmem:[#allocation2 + $0x7a8] sm:$0xff]  ;;  %v7845_v55 = vld [vmem:[#allocation2 + $0x7b8] sm:$0xff]  ;;  %1922 = vmatprep.subr.bf16.mxu0 %v7643_v46  ;;  %2008 = vmatprep.subr.bf16.mxu1 %v7645_v31 }
 0x361   :  { %9933 = vst [vmem:[#allocation216_spill] sm:$0xff] %v7841_v53  ;;  %9934 = vst [vmem:[#allocation218_spill] sm:$0xff] %v7843_v54  ;;  %v7847_v34 = vld [vmem:[#allocation2 + $0x7a0] sm:$0xff]  ;;  %v7849_v59 = vld [vmem:[#allocation2 + $0x7b0] sm:$0xff] }
 0x362   :  { %v7851_v60 = vld [vmem:[#allocation2 + $0x7e8] sm:$0xff]  ;;  %v7857_v53 = vld [vmem:[#allocation2 + $0x7e0] sm:$0xff]  ;;  %v7859_v54 = vld [vmem:[#allocation2 + $0x7f0] sm:$0xff] }
 0x363   :  { %2133 = dma.general %s9390_s2, 32768, %s2112_s22, %s6548_s23, %s6549_s24, [#allocation24], %s6650_s19, 0   ;;  %1923 = vmatpush1.bf16.msra.mxu0 %v7647_v38  ;;  %2009 = vmatpush1.bf16.msra.mxu1 %v7649_v4 }
 0x364   :  { %1924 = vmatprep.subr.bf16.mxu0 %v7651_v6  ;;  %2010 = vmatprep.subr.bf16.mxu1 %v7653_v7  ;;  %v9935_v52 = vld [vmem:[#allocation96_spill] sm:$0xff]  ;;  %v9936_v44 = vld [vmem:[#allocation98_spill] sm:$0xff]  ;;  %v9937_v63 = vld [vmem:[#allocation105_spill] sm:$0xff] }
 0x365   :  { %v9938_v30 = vld [vmem:[#allocation107_spill] sm:$0xff]  ;;  %v9939_v28 = vld [vmem:[#allocation104_spill] sm:$0xff]  ;;  %v9940_v23 = vld [vmem:[#allocation106_spill] sm:$0xff] }
 0x366   :  { %v9941_v1 = vld [vmem:[#allocation113_spill] sm:$0xff]  ;;  %v9942_v9 = vld [vmem:[#allocation115_spill] sm:$0xff]  ;;  %v9943_v61 = vld [vmem:[#allocation112_spill] sm:$0xff] }
 0x367   :  { %1925 = vmatpush1.bf16.msra.mxu0 %v7655_v12  ;;  %2011 = vmatpush1.bf16.msra.mxu1 %v7657_v13  ;;  %v9944_v39 = vld [vmem:[#allocation114_spill] sm:$0xff]  ;;  %v9945_v36 = vld [vmem:[#allocation121_spill] sm:$0xff]  ;;  %v9946_v2 = vld [vmem:[#allocation123_spill] sm:$0xff] }
 0x368   :  { %1926 = vmatprep.subr.bf16.mxu0 %v7659_v14  ;;  %2012 = vmatprep.subr.bf16.mxu1 %v7661_v5  ;;  %v9947_v10 = vld [vmem:[#allocation120_spill] sm:$0xff]  ;;  %v9948_v3 = vld [vmem:[#allocation97_spill] sm:$0xff]  ;;  %v9949_v11 = vld [vmem:[#allocation122_spill] sm:$0xff] }
 0x369   :  { %v9950_v22 = vld [vmem:[#allocation129_spill] sm:$0xff]  ;;  %v9951_v21 = vld [vmem:[#allocation131_spill] sm:$0xff]  ;;  %v9952_v29 = vld [vmem:[#allocation128_spill] sm:$0xff] }
 0x36a   :  { %v9953_v20 = vld [vmem:[#allocation99_spill] sm:$0xff]  ;;  %v9954_v46 = vld [vmem:[#allocation130_spill] sm:$0xff]  ;;  %v9955_v31 = vld [vmem:[#allocation137_spill] sm:$0xff] }
 0x36b   :  { %1927 = vmatpush1.bf16.msra.mxu0 %v7663_v15  ;;  %2013 = vmatpush1.bf16.msra.mxu1 %v7665_v16  ;;  %v9956_v38 = vld [vmem:[#allocation139_spill] sm:$0xff]  ;;  %v9958_v6 = vld [vmem:[#allocation42_spill] sm:$0xff]  ;;  %v9959_v7 = vld [vmem:[#allocation136_spill] sm:$0xff] }
 0x36c   :  { %1928 = vmatprep.subr.bf16.mxu0 %v7667_v17  ;;  %2014 = vmatprep.subr.bf16.mxu1 %v7669_v18  ;;  %v9957_v4 = vld [vmem:[#allocation47_spill] sm:$0xff]  ;;  %v9960_v12 = vld [vmem:[#allocation138_spill] sm:$0xff]  ;;  %v9961_v13 = vld [vmem:[#allocation145_spill] sm:$0xff] }
 0x36d   :  { %v9962_v14 = vld [vmem:[#allocation147_spill] sm:$0xff]  ;;  %v9963_v5 = vld [vmem:[#allocation144_spill] sm:$0xff]  ;;  %v9964_v15 = vld [vmem:[#allocation146_spill] sm:$0xff] }
 0x36e   :  { %v9965_v16 = vld [vmem:[#allocation153_spill] sm:$0xff]  ;;  %v9966_v17 = vld [vmem:[#allocation155_spill] sm:$0xff]  ;;  %v9967_v18 = vld [vmem:[#allocation152_spill] sm:$0xff] }
 0x36f   :  { %1929 = vmatpush1.bf16.msra.mxu0 %v7671_v19  ;;  %2015 = vmatpush1.bf16.msra.mxu1 %v7673_v24  ;;  %v9968_v19 = vld [vmem:[#allocation154_spill] sm:$0xff]  ;;  %v9969_v24 = vld [vmem:[#allocation161_spill] sm:$0xff] }
 0x370   :  { %1930 = vmatprep.subr.bf16.mxu0 %v7675_v25  ;;  %2016 = vmatprep.subr.bf16.mxu1 %v7677_v26  ;;  %v9970_v25 = vld [vmem:[#allocation163_spill] sm:$0xff]  ;;  %v9971_v26 = vld [vmem:[#allocation160_spill] sm:$0xff] }
 0x373   :  { %1931 = vmatpush1.bf16.msra.mxu0 %v7679_v27  ;;  %2017 = vmatpush1.bf16.msra.mxu1 %v7681_v32  ;;  %v9972_v27 = vld [vmem:[#allocation162_spill] sm:$0xff]  ;;  %v9973_v32 = vld [vmem:[#allocation169_spill] sm:$0xff] }
 0x374   :  { %1932 = vmatprep.subr.bf16.mxu0 %v7683_v33  ;;  %2018 = vmatprep.subr.bf16.mxu1 %v7685_v35  ;;  %v9974_v33 = vld [vmem:[#allocation171_spill] sm:$0xff]  ;;  %v9975_v35 = vld [vmem:[#allocation168_spill] sm:$0xff] }
 0x377   :  { %1933 = vmatpush1.bf16.msra.mxu0 %v7687_v37  ;;  %2019 = vmatpush1.bf16.msra.mxu1 %v7689_v40  ;;  %v9976_v37 = vld [vmem:[#allocation170_spill] sm:$0xff]  ;;  %v9977_v40 = vld [vmem:[#allocation177_spill] sm:$0xff] }
 0x378   :  { %1934 = vmatprep.subr.bf16.mxu0 %v7691_v41  ;;  %2020 = vmatprep.subr.bf16.mxu1 %v7693_v45  ;;  %v9978_v41 = vld [vmem:[#allocation179_spill] sm:$0xff]  ;;  %v9979_v45 = vld [vmem:[#allocation176_spill] sm:$0xff] }
 0x37b   :  { %1935 = vmatpush1.bf16.msra.mxu0 %v7695_v8  ;;  %2021 = vmatpush1.bf16.msra.mxu1 %v7697_v47  ;;  %v9980_v8 = vld [vmem:[#allocation178_spill] sm:$0xff]  ;;  %v9981_v47 = vld [vmem:[#allocation185_spill] sm:$0xff] }
 0x37c   :  { %1936 = vmatprep.subr.bf16.mxu0 %v7699_v48  ;;  %2022 = vmatprep.subr.bf16.mxu1 %v7701_v49  ;;  %v9982_v48 = vld [vmem:[#allocation187_spill] sm:$0xff]  ;;  %v9983_v49 = vld [vmem:[#allocation184_spill] sm:$0xff] }
 0x37f   :  { %1937 = vmatpush1.bf16.msra.mxu0 %v7703_v42  ;;  %2023 = vmatpush1.bf16.msra.mxu1 %v7705_v43  ;;  %v9984_v42 = vld [vmem:[#allocation186_spill] sm:$0xff]  ;;  %v9985_v43 = vld [vmem:[#allocation193_spill] sm:$0xff] }
 0x380   :  { %1938 = vmatprep.subr.bf16.mxu0 %v7707_v0  ;;  %2024 = vmatprep.subr.bf16.mxu1 %v9935_v52  ;;  %v9986_v0 = vld [vmem:[#allocation195_spill] sm:$0xff]  ;;  %v9987_v52 = vld [vmem:[#allocation192_spill] sm:$0xff] }
 0x383   :  { %1939 = vmatpush1.bf16.msra.mxu0 %v9936_v44  ;;  %2025 = vmatpush1.bf16.msra.mxu1 %v9937_v63  ;;  %v9988_v44 = vld [vmem:[#allocation194_spill] sm:$0xff]  ;;  %v9989_v63 = vld [vmem:[#allocation201_spill] sm:$0xff] }
 0x384   :  { %1940 = vmatprep.subr.bf16.mxu0 %v9938_v30  ;;  %2026 = vmatprep.subr.bf16.mxu1 %v9939_v28  ;;  %v9990_v30 = vld [vmem:[#allocation203_spill] sm:$0xff]  ;;  %v9991_v28 = vld [vmem:[#allocation200_spill] sm:$0xff] }
 0x387   :  { %1941 = vmatpush1.bf16.msra.mxu0 %v9940_v23  ;;  %2027 = vmatpush1.bf16.msra.mxu1 %v9941_v1  ;;  %v9992_v23 = vld [vmem:[#allocation202_spill] sm:$0xff]  ;;  %v9993_v1 = vld [vmem:[#allocation209_spill] sm:$0xff] }
 0x388   :  { %1942 = vmatprep.subr.bf16.mxu0 %v9942_v9  ;;  %2028 = vmatprep.subr.bf16.mxu1 %v9943_v61  ;;  %v9994_v9 = vld [vmem:[#allocation211_spill] sm:$0xff]  ;;  %v9995_v61 = vld [vmem:[#allocation208_spill] sm:$0xff] }
 0x38b   :  { %1943 = vmatpush1.bf16.msra.mxu0 %v9944_v39  ;;  %2029 = vmatpush1.bf16.msra.mxu1 %v9945_v36  ;;  %v9996_v39 = vld [vmem:[#allocation210_spill] sm:$0xff]  ;;  %v9997_v36 = vld [vmem:[#allocation217_spill] sm:$0xff] }
 0x38c   :  { %1955 = vmatprep.subr.bf16.mxu0 %v9946_v2  ;;  %2041 = vmatprep.subr.bf16.mxu1 %v9947_v10  ;;  %v9998_v2 = vld [vmem:[#allocation219_spill] sm:$0xff]  ;;  %v9999_v10 = vld [vmem:[#allocation216_spill] sm:$0xff] }
 0x38e   :  { %1945 = vmatmul.mubr.bf16.vlgmr.msra.gmra.mrb[4].mxu0 %v9948_v3  ;;  %2031 = vmatmul.mubr.bf16.vlgmr.msra.gmra.mrb[4].mxu1 %v9948_v3  ;;  %v10000_v3 = vld [vmem:[#allocation218_spill] sm:$0xff] }
 0x38f   :  { %1956 = vmatpush1.bf16.msra.mxu0 %v9949_v11  ;;  %2042 = vmatpush1.bf16.msra.mxu1 %v9950_v22 }
 0x390   :  { %1957 = vmatprep.subr.bf16.mxu0 %v9951_v21  ;;  %2043 = vmatprep.subr.bf16.mxu1 %v9952_v29 }
 0x391   :  { %1987 = vmatprep.mubr.bf16.mxu0 %v9953_v20  ;;  %2073 = vmatprep.mubr.bf16.mxu1 %v9953_v20 }
 0x393   :  { %1958 = vmatpush1.bf16.msra.mxu0 %v9954_v46  ;;  %2044 = vmatpush1.bf16.msra.mxu1 %v9955_v31 }
 0x394   :  { %1959 = vmatprep.subr.bf16.mxu0 %v9956_v38  ;;  %2045 = vmatprep.subr.bf16.mxu1 %v9957_v4 }
 0x397   :  { %1960 = vmatpush1.bf16.msra.mxu0 %v9958_v6  ;;  %2046 = vmatpush1.bf16.msra.mxu1 %v9959_v7 }
 0x398   :  { %1961 = vmatprep.subr.bf16.mxu0 %v9960_v12  ;;  %2047 = vmatprep.subr.bf16.mxu1 %v9961_v13 }
 0x39b   :  { %1962 = vmatpush1.bf16.msra.mxu0 %v9962_v14  ;;  %2048 = vmatpush1.bf16.msra.mxu1 %v9963_v5 }
 0x39c   :  { %1963 = vmatprep.subr.bf16.mxu0 %v9964_v15  ;;  %2049 = vmatprep.subr.bf16.mxu1 %v9965_v16 }
 0x39f   :  { %1964 = vmatpush1.bf16.msra.mxu0 %v9966_v17  ;;  %2050 = vmatpush1.bf16.msra.mxu1 %v9967_v18 }
 0x3a0   :  { %1965 = vmatprep.subr.bf16.mxu0 %v9968_v19  ;;  %2051 = vmatprep.subr.bf16.mxu1 %v9969_v24 }
 0x3a3   :  { %1966 = vmatpush1.bf16.msra.mxu0 %v9970_v25  ;;  %2052 = vmatpush1.bf16.msra.mxu1 %v9971_v26 }
 0x3a4   :  { %1967 = vmatprep.subr.bf16.mxu0 %v9972_v27  ;;  %2053 = vmatprep.subr.bf16.mxu1 %v9973_v32 }
 0x3a7   :  { %1968 = vmatpush1.bf16.msra.mxu0 %v9974_v33  ;;  %2054 = vmatpush1.bf16.msra.mxu1 %v9975_v35 }
 0x3a8   :  { %1969 = vmatprep.subr.bf16.mxu0 %v9976_v37  ;;  %2055 = vmatprep.subr.bf16.mxu1 %v9977_v40 }
 0x3ab   :  { %1970 = vmatpush1.bf16.msra.mxu0 %v9978_v41  ;;  %2056 = vmatpush1.bf16.msra.mxu1 %v9979_v45 }
 0x3ac   :  { %1971 = vmatprep.subr.bf16.mxu0 %v9980_v8  ;;  %2057 = vmatprep.subr.bf16.mxu1 %v9981_v47 }
 0x3af   :  { %1972 = vmatpush1.bf16.msra.mxu0 %v9982_v48  ;;  %2058 = vmatpush1.bf16.msra.mxu1 %v9983_v49 }
 0x3b0   :  { %1973 = vmatprep.subr.bf16.mxu0 %v9984_v42  ;;  %2059 = vmatprep.subr.bf16.mxu1 %v9985_v43 }
 0x3b3   :  { %1974 = vmatpush1.bf16.msra.mxu0 %v9986_v0  ;;  %2060 = vmatpush1.bf16.msra.mxu1 %v9987_v52 }
 0x3b4   :  { %1975 = vmatprep.subr.bf16.mxu0 %v9988_v44  ;;  %2061 = vmatprep.subr.bf16.mxu1 %v9989_v63 }
 0x3b7   :  { %1976 = vmatpush1.bf16.msra.mxu0 %v9990_v30  ;;  %2062 = vmatpush1.bf16.msra.mxu1 %v9991_v28 }
 0x3b8   :  { %1977 = vmatprep.subr.bf16.mxu0 %v9992_v23  ;;  %2063 = vmatprep.subr.bf16.mxu1 %v9993_v1 }
 0x3bb   :  { %1978 = vmatpush1.bf16.msra.mxu0 %v9994_v9  ;;  %2064 = vmatpush1.bf16.msra.mxu1 %v7825_v56 }
 0x3bc   :  { %1979 = vmatprep.subr.bf16.mxu0 %v7827_v58  ;;  %2065 = vmatprep.subr.bf16.mxu1 %v9995_v61 }
 0x3bf   :  { %1980 = vmatpush1.bf16.msra.mxu0 %v9996_v39  ;;  %2066 = vmatpush1.bf16.msra.mxu1 %v9997_v36 }
 0x3c0   :  { %1981 = vmatprep.subr.bf16.mxu0 %v7835_v50  ;;  %2067 = vmatprep.subr.bf16.mxu1 %v7837_v62 }
 0x3c3   :  { %1982 = vmatpush1.bf16.msra.mxu0 %v9998_v2  ;;  %2068 = vmatpush1.bf16.msra.mxu1 %v9999_v10 }
 0x3c4   :  { %1983 = vmatprep.subr.bf16.mxu0 %v10000_v3  ;;  %2069 = vmatprep.subr.bf16.mxu1 %v7845_v55 }
 0x3c7   :  { %1984 = vmatpush1.bf16.msra.mxu0 %v7847_v34  ;;  %2070 = vmatpush1.bf16.msra.mxu1 %v7849_v59 }
 0x3c8   :  { %1985 = vmatprep.subr.bf16.mxu0 %v7851_v60  ;;  %2071 = vmatprep.subr.bf16.mxu1 %v7855_v57 }
 0x3cb   :  { %1986 = vmatpush1.bf16.msra.mxu0 %v7857_v53  ;;  %2072 = vmatpush1.bf16.msra.mxu1 %v7859_v54 }
 0x3ce   :  { %1988 = vmatmul.mubr.bf16.vlgmr.msra.gmra.mrb[4].mxu0 %v7605_v51  ;;  %2074 = vmatmul.mubr.bf16.vlgmr.msra.gmra.mrb[4].mxu1 %v7605_v51 }
 0x3cf   :  { %6517 = dma.done.wait [#allocation5 + $0x1], 32768 }
 0x3d0   :  { %6518 = vsyncadd [#allocation5 + $0x1], 4294934528  ;;  %v10001_v62 = vld [vmem:[#allocation50_spill] sm:$0xff]  ;;  %v10002_v55 = vld [vmem:[#allocation45_spill] sm:$0xff]  ;;  %2872 = sst [smem:[#allocation26]] %s6533_s4  ;;  %s2854_s30 = scalar_lea.hbm %s9390_s2, 32768 }
 0x3d1   :  { %v8001_v56 = vcombine.high %v10002_v55, %v10001_v62  ;;  %2874 = sst [smem:[#allocation26 + $0x1]] %s6533_s4  ;;  %v2137_v57 = vld [vmem:[#allocation2 + $0x808] sm:$0xff]  ;;  %v2139_v51 = vld [vmem:[#allocation2 + $0x818] sm:$0xff]  ;;  %v2136_v53 = vld [vmem:[#allocation2 + $0x800] sm:$0xff]  ;;  %s6550_s4 = smov [#allocation3 + $0x800]  }
 0x3d2   :  { %2876 = sst [smem:[#allocation26 + $0x2]] %s6531_s8  ;;  %2412 = vmatprep.subr.bf16.mxu0 %v2137_v57  ;;  %2498 = vmatprep.subr.bf16.mxu1 %v2139_v51  ;;  %v2138_v54 = vld [vmem:[#allocation2 + $0x810] sm:$0xff]  ;;  %v2145_v58 = vld [vmem:[#allocation2 + $0x848] sm:$0xff]  ;;  %v2147_v34 = vld [vmem:[#allocation2 + $0x858] sm:$0xff]  ;;  %s2868_s27 = sshll.u32 %s6550_s4, 4  ;;  %s2869_s27 = int_to_ptr.vmem [resolvable:$true] %s2868_s27 }
 0x3d3   :  { %2444 = vmatprep.mubr.bf16.mxu0 %v8001_v56  ;;  %2530 = vmatprep.mubr.bf16.mxu1 %v8001_v56  ;;  %2878 = sst [smem:[#allocation26 + $0x3]] %s6534_s21  ;;  %v2144_v59 = vld [vmem:[#allocation2 + $0x840] sm:$0xff]  ;;  %v2146_v60 = vld [vmem:[#allocation2 + $0x850] sm:$0xff]  ;;  %v2153_v50 = vld [vmem:[#allocation2 + $0x888] sm:$0xff]  ;;  %s6551_s9 = smov [#allocation6 + $0x1]  }
 0x3d4   :  { %2880 = sst [smem:[#allocation26 + $0x4]] %s6530_s7  ;;  %2413 = vmatpush1.bf16.msra.mxu0 %v2136_v53  ;;  %2499 = vmatpush1.bf16.msra.mxu1 %v2138_v54  ;;  %v2155_v11 = vld [vmem:[#allocation2 + $0x898] sm:$0xff]  ;;  %v2152_v22 = vld [vmem:[#allocation2 + $0x880] sm:$0xff]  ;;  %v2154_v21 = vld [vmem:[#allocation2 + $0x890] sm:$0xff]  ;;  %s6552_s10 = smov [#allocation25]  }
 0x3d5   :  { %2882 = sst [smem:[#allocation26 + $0x5]] %s6537_s5  ;;  %2414 = vmatprep.subr.bf16.mxu0 %v2145_v58  ;;  %2500 = vmatprep.subr.bf16.mxu1 %v2147_v34  ;;  %v2161_v29 = vld [vmem:[#allocation2 + $0x8c8] sm:$0xff]  ;;  %v2163_v20 = vld [vmem:[#allocation2 + $0x8d8] sm:$0xff]  ;;  %v2160_v46 = vld [vmem:[#allocation2 + $0x8c0] sm:$0xff]  ;;  %v8016_v34 = vcombine.low %v10002_v55, %v10001_v62 }
 0x3d6   :  { %2884 = sst [smem:[#allocation26 + $0x6]] %s6538_s18  ;;  %v2162_v31 = vld [vmem:[#allocation2 + $0x8d0] sm:$0xff]  ;;  %v2169_v38 = vld [vmem:[#allocation2 + $0x908] sm:$0xff]  ;;  %v2171_v4 = vld [vmem:[#allocation2 + $0x918] sm:$0xff] }
 0x3d7   :  { %2886 = sst [smem:[#allocation26 + $0x7]] %s6534_s21  ;;  %v2168_v6 = vld [vmem:[#allocation2 + $0x900] sm:$0xff]  ;;  %v2170_v7 = vld [vmem:[#allocation2 + $0x910] sm:$0xff]  ;;  %v2177_v12 = vld [vmem:[#allocation2 + $0x948] sm:$0xff] }
 0x3d8   :  { %2888 = sst [smem:[#allocation26 + $0x8]] %s6539_s20  ;;  %2415 = vmatpush1.bf16.msra.mxu0 %v2144_v59  ;;  %2501 = vmatpush1.bf16.msra.mxu1 %v2146_v60  ;;  %v2179_v13 = vld [vmem:[#allocation2 + $0x958] sm:$0xff]  ;;  %v2176_v14 = vld [vmem:[#allocation2 + $0x940] sm:$0xff]  ;;  %v2178_v5 = vld [vmem:[#allocation2 + $0x950] sm:$0xff] }
 0x3d9   :  { %2416 = vmatprep.subr.bf16.mxu0 %v2153_v50  ;;  %2502 = vmatprep.subr.bf16.mxu1 %v2155_v11  ;;  %v2185_v15 = vld [vmem:[#allocation2 + $0x988] sm:$0xff]  ;;  %v2187_v16 = vld [vmem:[#allocation2 + $0x998] sm:$0xff]  ;;  %v2184_v17 = vld [vmem:[#allocation2 + $0x980] sm:$0xff] }
 0x3da   :  { %v2186_v18 = vld [vmem:[#allocation2 + $0x990] sm:$0xff]  ;;  %v2193_v19 = vld [vmem:[#allocation2 + $0x9c8] sm:$0xff]  ;;  %v2195_v24 = vld [vmem:[#allocation2 + $0x9d8] sm:$0xff] }
 0x3db   :  { %v2192_v25 = vld [vmem:[#allocation2 + $0x9c0] sm:$0xff]  ;;  %v2194_v26 = vld [vmem:[#allocation2 + $0x9d0] sm:$0xff]  ;;  %v2201_v27 = vld [vmem:[#allocation2 + $0xa08] sm:$0xff] }
 0x3dc   :  { %2417 = vmatpush1.bf16.msra.mxu0 %v2152_v22  ;;  %2503 = vmatpush1.bf16.msra.mxu1 %v2154_v21  ;;  %v2203_v32 = vld [vmem:[#allocation2 + $0xa18] sm:$0xff]  ;;  %v2200_v33 = vld [vmem:[#allocation2 + $0xa00] sm:$0xff]  ;;  %v2202_v35 = vld [vmem:[#allocation2 + $0xa10] sm:$0xff] }
 0x3dd   :  { %2418 = vmatprep.subr.bf16.mxu0 %v2161_v29  ;;  %2504 = vmatprep.subr.bf16.mxu1 %v2163_v20  ;;  %v2209_v37 = vld [vmem:[#allocation2 + $0xa48] sm:$0xff]  ;;  %v2211_v40 = vld [vmem:[#allocation2 + $0xa58] sm:$0xff]  ;;  %v2208_v41 = vld [vmem:[#allocation2 + $0xa40] sm:$0xff] }
 0x3de   :  { %v2210_v45 = vld [vmem:[#allocation2 + $0xa50] sm:$0xff]  ;;  %v2217_v8 = vld [vmem:[#allocation2 + $0xa88] sm:$0xff]  ;;  %v2219_v47 = vld [vmem:[#allocation2 + $0xa98] sm:$0xff] }
 0x3df   :  { %v2216_v48 = vld [vmem:[#allocation2 + $0xa80] sm:$0xff]  ;;  %v2218_v49 = vld [vmem:[#allocation2 + $0xa90] sm:$0xff]  ;;  %v2225_v42 = vld [vmem:[#allocation2 + $0xac8] sm:$0xff] }
 0x3e0   :  { %2419 = vmatpush1.bf16.msra.mxu0 %v2160_v46  ;;  %2505 = vmatpush1.bf16.msra.mxu1 %v2162_v31  ;;  %v2227_v43 = vld [vmem:[#allocation2 + $0xad8] sm:$0xff]  ;;  %v2224_v0 = vld [vmem:[#allocation2 + $0xac0] sm:$0xff]  ;;  %v2226_v52 = vld [vmem:[#allocation2 + $0xad0] sm:$0xff] }
 0x3e1   :  { %2420 = vmatprep.subr.bf16.mxu0 %v2169_v38  ;;  %2506 = vmatprep.subr.bf16.mxu1 %v2171_v4  ;;  %v2233_v44 = vld [vmem:[#allocation2 + $0xb08] sm:$0xff]  ;;  %v2235_v63 = vld [vmem:[#allocation2 + $0xb18] sm:$0xff]  ;;  %v2232_v30 = vld [vmem:[#allocation2 + $0xb00] sm:$0xff] }
 0x3e2   :  { %v2234_v28 = vld [vmem:[#allocation2 + $0xb10] sm:$0xff]  ;;  %v2241_v23 = vld [vmem:[#allocation2 + $0xb48] sm:$0xff]  ;;  %v2243_v1 = vld [vmem:[#allocation2 + $0xb58] sm:$0xff] }
 0x3e3   :  { %v2240_v9 = vld [vmem:[#allocation2 + $0xb40] sm:$0xff]  ;;  %v2242_v61 = vld [vmem:[#allocation2 + $0xb50] sm:$0xff]  ;;  %v2249_v39 = vld [vmem:[#allocation2 + $0xb88] sm:$0xff] }
 0x3e4   :  { %2421 = vmatpush1.bf16.msra.mxu0 %v2168_v6  ;;  %2507 = vmatpush1.bf16.msra.mxu1 %v2170_v7  ;;  %v2251_v36 = vld [vmem:[#allocation2 + $0xb98] sm:$0xff]  ;;  %v2248_v2 = vld [vmem:[#allocation2 + $0xb80] sm:$0xff]  ;;  %v2250_v10 = vld [vmem:[#allocation2 + $0xb90] sm:$0xff] }
 0x3e5   :  { %2422 = vmatprep.subr.bf16.mxu0 %v2177_v12  ;;  %2508 = vmatprep.subr.bf16.mxu1 %v2179_v13  ;;  %v2257_v3 = vld [vmem:[#allocation2 + $0xbc8] sm:$0xff]  ;;  %v2259_v57 = vld [vmem:[#allocation2 + $0xbd8] sm:$0xff]  ;;  %v2256_v51 = vld [vmem:[#allocation2 + $0xbc0] sm:$0xff] }
 0x3e6   :  { %v2258_v53 = vld [vmem:[#allocation2 + $0xbd0] sm:$0xff]  ;;  %v2265_v54 = vld [vmem:[#allocation2 + $0xc08] sm:$0xff]  ;;  %v2267_v58 = vld [vmem:[#allocation2 + $0xc18] sm:$0xff] }
 0x3e7   :  { %v2264_v59 = vld [vmem:[#allocation2 + $0xc00] sm:$0xff]  ;;  %v2266_v60 = vld [vmem:[#allocation2 + $0xc10] sm:$0xff]  ;;  %v2273_v50 = vld [vmem:[#allocation2 + $0xc48] sm:$0xff] }
 0x3e8   :  { %2423 = vmatpush1.bf16.msra.mxu0 %v2176_v14  ;;  %2509 = vmatpush1.bf16.msra.mxu1 %v2178_v5  ;;  %v2275_v11 = vld [vmem:[#allocation2 + $0xc58] sm:$0xff]  ;;  %v10004_v21 = vld [vmem:[#allocation46_spill] sm:$0xff]  ;;  %v2272_v62 = vld [vmem:[#allocation2 + $0xc40] sm:$0xff] }
 0x3e9   :  { %2424 = vmatprep.subr.bf16.mxu0 %v2185_v15  ;;  %2510 = vmatprep.subr.bf16.mxu1 %v2187_v16  ;;  %v10003_v22 = vld [vmem:[#allocation51_spill] sm:$0xff]  ;;  %v2281_v20 = vld [vmem:[#allocation2 + $0xc88] sm:$0xff]  ;;  %v2280_v31 = vld [vmem:[#allocation2 + $0xc80] sm:$0xff] }
 0x3ea   :  { %v8020_v29 = vcombine.high %v10004_v21, %v10003_v22  ;;  %v2274_v55 = vld [vmem:[#allocation2 + $0xc50] sm:$0xff]  ;;  %v2283_v46 = vld [vmem:[#allocation2 + $0xc98] sm:$0xff]  ;;  %v2289_v4 = vld [vmem:[#allocation2 + $0xcc8] sm:$0xff] }
 0x3eb   :  { %v2282_v38 = vld [vmem:[#allocation2 + $0xc90] sm:$0xff]  ;;  %v2291_v6 = vld [vmem:[#allocation2 + $0xcd8] sm:$0xff]  ;;  %v2288_v7 = vld [vmem:[#allocation2 + $0xcc0] sm:$0xff] }
 0x3ec   :  { %2425 = vmatpush1.bf16.msra.mxu0 %v2184_v17  ;;  %2511 = vmatpush1.bf16.msra.mxu1 %v2186_v18  ;;  %v2290_v12 = vld [vmem:[#allocation2 + $0xcd0] sm:$0xff]  ;;  %v2297_v13 = vld [vmem:[#allocation2 + $0xd08] sm:$0xff]  ;;  %v2299_v14 = vld [vmem:[#allocation2 + $0xd18] sm:$0xff] }
 0x3ed   :  { %2426 = vmatprep.subr.bf16.mxu0 %v2193_v19  ;;  %2512 = vmatprep.subr.bf16.mxu1 %v2195_v24  ;;  %v2296_v5 = vld [vmem:[#allocation2 + $0xd00] sm:$0xff]  ;;  %v2298_v15 = vld [vmem:[#allocation2 + $0xd10] sm:$0xff]  ;;  %v2305_v16 = vld [vmem:[#allocation2 + $0xd48] sm:$0xff] }
 0x3ee   :  { %v2307_v17 = vld [vmem:[#allocation2 + $0xd58] sm:$0xff]  ;;  %v2304_v18 = vld [vmem:[#allocation2 + $0xd40] sm:$0xff]  ;;  %v2306_v19 = vld [vmem:[#allocation2 + $0xd50] sm:$0xff] }
 0x3ef   :  { %v2313_v24 = vld [vmem:[#allocation2 + $0xd88] sm:$0xff] }
 0x3f0   :  { %2427 = vmatpush1.bf16.msra.mxu0 %v2192_v25  ;;  %2513 = vmatpush1.bf16.msra.mxu1 %v2194_v26  ;;  %v2315_v25 = vld [vmem:[#allocation2 + $0xd98] sm:$0xff]  ;;  %v2312_v26 = vld [vmem:[#allocation2 + $0xd80] sm:$0xff] }
 0x3f1   :  { %2428 = vmatprep.subr.bf16.mxu0 %v2201_v27  ;;  %2514 = vmatprep.subr.bf16.mxu1 %v2203_v32  ;;  %v2314_v27 = vld [vmem:[#allocation2 + $0xd90] sm:$0xff]  ;;  %v2321_v32 = vld [vmem:[#allocation2 + $0xdc8] sm:$0xff] }
 0x3f4   :  { %2429 = vmatpush1.bf16.msra.mxu0 %v2200_v33  ;;  %2515 = vmatpush1.bf16.msra.mxu1 %v2202_v35  ;;  %v2323_v33 = vld [vmem:[#allocation2 + $0xdd8] sm:$0xff]  ;;  %v2320_v35 = vld [vmem:[#allocation2 + $0xdc0] sm:$0xff] }
 0x3f5   :  { %2430 = vmatprep.subr.bf16.mxu0 %v2209_v37  ;;  %2516 = vmatprep.subr.bf16.mxu1 %v2211_v40  ;;  %v2322_v37 = vld [vmem:[#allocation2 + $0xdd0] sm:$0xff]  ;;  %v2329_v40 = vld [vmem:[#allocation2 + $0xe08] sm:$0xff] }
 0x3f8   :  { %2431 = vmatpush1.bf16.msra.mxu0 %v2208_v41  ;;  %2517 = vmatpush1.bf16.msra.mxu1 %v2210_v45  ;;  %v2331_v41 = vld [vmem:[#allocation2 + $0xe18] sm:$0xff]  ;;  %v2328_v45 = vld [vmem:[#allocation2 + $0xe00] sm:$0xff] }
 0x3f9   :  { %2432 = vmatprep.subr.bf16.mxu0 %v2217_v8  ;;  %2518 = vmatprep.subr.bf16.mxu1 %v2219_v47  ;;  %v2330_v8 = vld [vmem:[#allocation2 + $0xe10] sm:$0xff]  ;;  %v2337_v47 = vld [vmem:[#allocation2 + $0xe48] sm:$0xff] }
 0x3fc   :  { %2433 = vmatpush1.bf16.msra.mxu0 %v2216_v48  ;;  %2519 = vmatpush1.bf16.msra.mxu1 %v2218_v49  ;;  %v2339_v48 = vld [vmem:[#allocation2 + $0xe58] sm:$0xff]  ;;  %v2336_v49 = vld [vmem:[#allocation2 + $0xe40] sm:$0xff] }
 0x3fd   :  { %2434 = vmatprep.subr.bf16.mxu0 %v2225_v42  ;;  %2520 = vmatprep.subr.bf16.mxu1 %v2227_v43  ;;  %v2338_v42 = vld [vmem:[#allocation2 + $0xe50] sm:$0xff]  ;;  %v2345_v43 = vld [vmem:[#allocation2 + $0xe88] sm:$0xff] }
 0x400   :  { %2435 = vmatpush1.bf16.msra.mxu0 %v2224_v0  ;;  %2521 = vmatpush1.bf16.msra.mxu1 %v2226_v52  ;;  %v2347_v0 = vld [vmem:[#allocation2 + $0xe98] sm:$0xff]  ;;  %v2344_v52 = vld [vmem:[#allocation2 + $0xe80] sm:$0xff] }
 0x401   :  { %2436 = vmatprep.subr.bf16.mxu0 %v2233_v44  ;;  %2522 = vmatprep.subr.bf16.mxu1 %v2235_v63  ;;  %v2346_v44 = vld [vmem:[#allocation2 + $0xe90] sm:$0xff]  ;;  %v2353_v63 = vld [vmem:[#allocation2 + $0xec8] sm:$0xff] }
 0x404   :  { %2437 = vmatpush1.bf16.msra.mxu0 %v2232_v30  ;;  %2523 = vmatpush1.bf16.msra.mxu1 %v2234_v28  ;;  %v2355_v30 = vld [vmem:[#allocation2 + $0xed8] sm:$0xff]  ;;  %v2352_v28 = vld [vmem:[#allocation2 + $0xec0] sm:$0xff] }
 0x405   :  { %2438 = vmatprep.subr.bf16.mxu0 %v2241_v23  ;;  %2524 = vmatprep.subr.bf16.mxu1 %v2243_v1  ;;  %v2354_v23 = vld [vmem:[#allocation2 + $0xed0] sm:$0xff]  ;;  %v2361_v1 = vld [vmem:[#allocation2 + $0xf08] sm:$0xff] }
 0x408   :  { %2439 = vmatpush1.bf16.msra.mxu0 %v2240_v9  ;;  %2525 = vmatpush1.bf16.msra.mxu1 %v2242_v61  ;;  %v2363_v9 = vld [vmem:[#allocation2 + $0xf18] sm:$0xff]  ;;  %v2360_v61 = vld [vmem:[#allocation2 + $0xf00] sm:$0xff] }
 0x409   :  { %2440 = vmatprep.subr.bf16.mxu0 %v2249_v39  ;;  %2526 = vmatprep.subr.bf16.mxu1 %v2251_v36  ;;  %v2362_v39 = vld [vmem:[#allocation2 + $0xf10] sm:$0xff]  ;;  %v2369_v36 = vld [vmem:[#allocation2 + $0xf48] sm:$0xff] }
 0x40c   :  { %2441 = vmatpush1.bf16.msra.mxu0 %v2248_v2  ;;  %2527 = vmatpush1.bf16.msra.mxu1 %v2250_v10  ;;  %v2371_v2 = vld [vmem:[#allocation2 + $0xf58] sm:$0xff]  ;;  %v2368_v10 = vld [vmem:[#allocation2 + $0xf40] sm:$0xff] }
 0x40d   :  { %2442 = vmatprep.subr.bf16.mxu0 %v2257_v3  ;;  %2528 = vmatprep.subr.bf16.mxu1 %v2259_v57  ;;  %v2370_v3 = vld [vmem:[#allocation2 + $0xf50] sm:$0xff]  ;;  %v2377_v57 = vld [vmem:[#allocation2 + $0xf88] sm:$0xff] }
 0x410   :  { %2443 = vmatpush1.bf16.msra.mxu0 %v2256_v51  ;;  %2529 = vmatpush1.bf16.msra.mxu1 %v2258_v53  ;;  %v2379_v51 = vld [vmem:[#allocation2 + $0xf98] sm:$0xff]  ;;  %v2376_v53 = vld [vmem:[#allocation2 + $0xf80] sm:$0xff] }
 0x411   :  { %2455 = vmatprep.subr.bf16.mxu0 %v2265_v54  ;;  %2541 = vmatprep.subr.bf16.mxu1 %v2267_v58  ;;  %v2378_v54 = vld [vmem:[#allocation2 + $0xf90] sm:$0xff]  ;;  %v2385_v58 = vld [vmem:[#allocation2 + $0xfc8] sm:$0xff] }
 0x413   :  { %2445 = vmatmul.mubr.bf16.vlgmr.msra.gmra.mrb[0].mxu0 %v8016_v34  ;;  %2531 = vmatmul.mubr.bf16.vlgmr.msra.gmra.mrb[0].mxu1 %v8016_v34 }
 0x414   :  { %2456 = vmatpush1.bf16.msra.mxu0 %v2264_v59  ;;  %2542 = vmatpush1.bf16.msra.mxu1 %v2266_v60  ;;  %v2387_v59 = vld [vmem:[#allocation2 + $0xfd8] sm:$0xff]  ;;  %v2384_v60 = vld [vmem:[#allocation2 + $0xfc0] sm:$0xff] }
 0x415   :  { %2457 = vmatprep.subr.bf16.mxu0 %v2273_v50  ;;  %2543 = vmatprep.subr.bf16.mxu1 %v2275_v11  ;;  %v2386_v50 = vld [vmem:[#allocation2 + $0xfd0] sm:$0xff]  ;;  %v2141_v11 = vld [vmem:[#allocation2 + $0x828] sm:$0xff] }
 0x416   :  { %2487 = vmatprep.mubr.bf16.mxu0 %v8020_v29  ;;  %2573 = vmatprep.mubr.bf16.mxu1 %v8020_v29 }
 0x418   :  { %2458 = vmatpush1.bf16.msra.mxu0 %v2272_v62  ;;  %2544 = vmatpush1.bf16.msra.mxu1 %v2274_v55  ;;  %v2143_v62 = vld [vmem:[#allocation2 + $0x838] sm:$0xff]  ;;  %v8028_v55 = vcombine.low %v10004_v21, %v10003_v22  ;;  %v2157_v22 = vld [vmem:[#allocation2 + $0x8a8] sm:$0xff] }
 0x419   :  { %2459 = vmatprep.subr.bf16.mxu0 %v2281_v20  ;;  %2545 = vmatprep.subr.bf16.mxu1 %v2283_v46  ;;  %v2140_v20 = vld [vmem:[#allocation2 + $0x820] sm:$0xff]  ;;  %v2142_v46 = vld [vmem:[#allocation2 + $0x830] sm:$0xff]  ;;  %v2159_v21 = vld [vmem:[#allocation2 + $0x8b8] sm:$0xff] }
 0x41c   :  { %2460 = vmatpush1.bf16.msra.mxu0 %v2280_v31  ;;  %2546 = vmatpush1.bf16.msra.mxu1 %v2282_v38  ;;  %v2149_v31 = vld [vmem:[#allocation2 + $0x868] sm:$0xff]  ;;  %v2151_v38 = vld [vmem:[#allocation2 + $0x878] sm:$0xff] }
 0x41d   :  { %2461 = vmatprep.subr.bf16.mxu0 %v2289_v4  ;;  %2547 = vmatprep.subr.bf16.mxu1 %v2291_v6  ;;  %v2148_v4 = vld [vmem:[#allocation2 + $0x860] sm:$0xff]  ;;  %v2150_v6 = vld [vmem:[#allocation2 + $0x870] sm:$0xff] }
 0x420   :  { %2462 = vmatpush1.bf16.msra.mxu0 %v2288_v7  ;;  %2548 = vmatpush1.bf16.msra.mxu1 %v2290_v12  ;;  %v2156_v7 = vld [vmem:[#allocation2 + $0x8a0] sm:$0xff]  ;;  %v2158_v12 = vld [vmem:[#allocation2 + $0x8b0] sm:$0xff] }
 0x421   :  { %2463 = vmatprep.subr.bf16.mxu0 %v2297_v13  ;;  %2549 = vmatprep.subr.bf16.mxu1 %v2299_v14  ;;  %v2165_v13 = vld [vmem:[#allocation2 + $0x8e8] sm:$0xff]  ;;  %v2167_v14 = vld [vmem:[#allocation2 + $0x8f8] sm:$0xff] }
 0x424   :  { %2464 = vmatpush1.bf16.msra.mxu0 %v2296_v5  ;;  %2550 = vmatpush1.bf16.msra.mxu1 %v2298_v15  ;;  %v2164_v5 = vld [vmem:[#allocation2 + $0x8e0] sm:$0xff]  ;;  %v2166_v15 = vld [vmem:[#allocation2 + $0x8f0] sm:$0xff] }
 0x425   :  { %2465 = vmatprep.subr.bf16.mxu0 %v2305_v16  ;;  %2551 = vmatprep.subr.bf16.mxu1 %v2307_v17  ;;  %v2173_v16 = vld [vmem:[#allocation2 + $0x928] sm:$0xff]  ;;  %v2175_v17 = vld [vmem:[#allocation2 + $0x938] sm:$0xff] }
 0x428   :  { %2466 = vmatpush1.bf16.msra.mxu0 %v2304_v18  ;;  %2552 = vmatpush1.bf16.msra.mxu1 %v2306_v19  ;;  %v2174_v18 = vld [vmem:[#allocation2 + $0x930] sm:$0xff]  ;;  %v2181_v19 = vld [vmem:[#allocation2 + $0x968] sm:$0xff] }
 0x429   :  { %2467 = vmatprep.subr.bf16.mxu0 %v2313_v24  ;;  %2553 = vmatprep.subr.bf16.mxu1 %v2315_v25  ;;  %v2183_v24 = vld [vmem:[#allocation2 + $0x978] sm:$0xff]  ;;  %v2180_v25 = vld [vmem:[#allocation2 + $0x960] sm:$0xff] }
 0x42c   :  { %2468 = vmatpush1.bf16.msra.mxu0 %v2312_v26  ;;  %2554 = vmatpush1.bf16.msra.mxu1 %v2314_v27  ;;  %v2182_v26 = vld [vmem:[#allocation2 + $0x970] sm:$0xff]  ;;  %v2189_v27 = vld [vmem:[#allocation2 + $0x9a8] sm:$0xff] }
 0x42d   :  { %2469 = vmatprep.subr.bf16.mxu0 %v2321_v32  ;;  %2555 = vmatprep.subr.bf16.mxu1 %v2323_v33  ;;  %v2191_v32 = vld [vmem:[#allocation2 + $0x9b8] sm:$0xff]  ;;  %v2188_v33 = vld [vmem:[#allocation2 + $0x9a0] sm:$0xff] }
 0x430   :  { %2470 = vmatpush1.bf16.msra.mxu0 %v2320_v35  ;;  %2556 = vmatpush1.bf16.msra.mxu1 %v2322_v37  ;;  %v2190_v35 = vld [vmem:[#allocation2 + $0x9b0] sm:$0xff]  ;;  %v2197_v37 = vld [vmem:[#allocation2 + $0x9e8] sm:$0xff] }
 0x431   :  { %2471 = vmatprep.subr.bf16.mxu0 %v2329_v40  ;;  %2557 = vmatprep.subr.bf16.mxu1 %v2331_v41  ;;  %v2199_v40 = vld [vmem:[#allocation2 + $0x9f8] sm:$0xff]  ;;  %v2196_v41 = vld [vmem:[#allocation2 + $0x9e0] sm:$0xff] }
 0x434   :  { %2472 = vmatpush1.bf16.msra.mxu0 %v2328_v45  ;;  %2558 = vmatpush1.bf16.msra.mxu1 %v2330_v8  ;;  %v2198_v45 = vld [vmem:[#allocation2 + $0x9f0] sm:$0xff]  ;;  %v2205_v8 = vld [vmem:[#allocation2 + $0xa28] sm:$0xff] }
 0x435   :  { %2473 = vmatprep.subr.bf16.mxu0 %v2337_v47  ;;  %2559 = vmatprep.subr.bf16.mxu1 %v2339_v48  ;;  %v2207_v47 = vld [vmem:[#allocation2 + $0xa38] sm:$0xff]  ;;  %v2204_v48 = vld [vmem:[#allocation2 + $0xa20] sm:$0xff] }
 0x438   :  { %2474 = vmatpush1.bf16.msra.mxu0 %v2336_v49  ;;  %2560 = vmatpush1.bf16.msra.mxu1 %v2338_v42  ;;  %v2206_v49 = vld [vmem:[#allocation2 + $0xa30] sm:$0xff]  ;;  %v2213_v42 = vld [vmem:[#allocation2 + $0xa68] sm:$0xff] }
 0x439   :  { %2475 = vmatprep.subr.bf16.mxu0 %v2345_v43  ;;  %2561 = vmatprep.subr.bf16.mxu1 %v2347_v0  ;;  %v2215_v43 = vld [vmem:[#allocation2 + $0xa78] sm:$0xff]  ;;  %v2212_v0 = vld [vmem:[#allocation2 + $0xa60] sm:$0xff] }
 0x43c   :  { %2476 = vmatpush1.bf16.msra.mxu0 %v2344_v52  ;;  %2562 = vmatpush1.bf16.msra.mxu1 %v2346_v44  ;;  %v2214_v52 = vld [vmem:[#allocation2 + $0xa70] sm:$0xff]  ;;  %v2221_v44 = vld [vmem:[#allocation2 + $0xaa8] sm:$0xff] }
 0x43d   :  { %2477 = vmatprep.subr.bf16.mxu0 %v2353_v63  ;;  %2563 = vmatprep.subr.bf16.mxu1 %v2355_v30  ;;  %v2223_v63 = vld [vmem:[#allocation2 + $0xab8] sm:$0xff]  ;;  %v2220_v30 = vld [vmem:[#allocation2 + $0xaa0] sm:$0xff] }
 0x440   :  { %2478 = vmatpush1.bf16.msra.mxu0 %v2352_v28  ;;  %2564 = vmatpush1.bf16.msra.mxu1 %v2354_v23  ;;  %v2222_v28 = vld [vmem:[#allocation2 + $0xab0] sm:$0xff]  ;;  %v2229_v23 = vld [vmem:[#allocation2 + $0xae8] sm:$0xff] }
 0x441   :  { %2479 = vmatprep.subr.bf16.mxu0 %v2361_v1  ;;  %2565 = vmatprep.subr.bf16.mxu1 %v2363_v9  ;;  %v2231_v1 = vld [vmem:[#allocation2 + $0xaf8] sm:$0xff]  ;;  %v2228_v9 = vld [vmem:[#allocation2 + $0xae0] sm:$0xff] }
 0x444   :  { %2480 = vmatpush1.bf16.msra.mxu0 %v2360_v61  ;;  %2566 = vmatpush1.bf16.msra.mxu1 %v2362_v39  ;;  %v2230_v61 = vld [vmem:[#allocation2 + $0xaf0] sm:$0xff]  ;;  %v2237_v39 = vld [vmem:[#allocation2 + $0xb28] sm:$0xff] }
 0x445   :  { %2481 = vmatprep.subr.bf16.mxu0 %v2369_v36  ;;  %2567 = vmatprep.subr.bf16.mxu1 %v2371_v2  ;;  %v2239_v36 = vld [vmem:[#allocation2 + $0xb38] sm:$0xff]  ;;  %v2236_v2 = vld [vmem:[#allocation2 + $0xb20] sm:$0xff] }
 0x448   :  { %2482 = vmatpush1.bf16.msra.mxu0 %v2368_v10  ;;  %2568 = vmatpush1.bf16.msra.mxu1 %v2370_v3  ;;  %v2238_v10 = vld [vmem:[#allocation2 + $0xb30] sm:$0xff]  ;;  %v2245_v3 = vld [vmem:[#allocation2 + $0xb68] sm:$0xff] }
 0x449   :  { %2483 = vmatprep.subr.bf16.mxu0 %v2377_v57  ;;  %2569 = vmatprep.subr.bf16.mxu1 %v2379_v51  ;;  %v2247_v57 = vld [vmem:[#allocation2 + $0xb78] sm:$0xff]  ;;  %v2244_v51 = vld [vmem:[#allocation2 + $0xb60] sm:$0xff] }
 0x44c   :  { %2484 = vmatpush1.bf16.msra.mxu0 %v2376_v53  ;;  %2570 = vmatpush1.bf16.msra.mxu1 %v2378_v54  ;;  %v2246_v53 = vld [vmem:[#allocation2 + $0xb70] sm:$0xff]  ;;  %v2253_v54 = vld [vmem:[#allocation2 + $0xba8] sm:$0xff] }
 0x44d   :  { %2485 = vmatprep.subr.bf16.mxu0 %v2385_v58  ;;  %2571 = vmatprep.subr.bf16.mxu1 %v2387_v59  ;;  %v2255_v58 = vld [vmem:[#allocation2 + $0xbb8] sm:$0xff]  ;;  %v2252_v59 = vld [vmem:[#allocation2 + $0xba0] sm:$0xff] }
 0x450   :  { %2486 = vmatpush1.bf16.msra.mxu0 %v2384_v60  ;;  %2572 = vmatpush1.bf16.msra.mxu1 %v2386_v50  ;;  %v2254_v60 = vld [vmem:[#allocation2 + $0xbb0] sm:$0xff]  ;;  %v2261_v50 = vld [vmem:[#allocation2 + $0xbe8] sm:$0xff] }
 0x451   :  { %2584 = vmatprep.subr.bf16.mxu0 %v2141_v11  ;;  %2670 = vmatprep.subr.bf16.mxu1 %v2143_v62  ;;  %v2263_v11 = vld [vmem:[#allocation2 + $0xbf8] sm:$0xff]  ;;  %v2260_v62 = vld [vmem:[#allocation2 + $0xbe0] sm:$0xff] }
 0x453   :  { %2488 = vmatmul.mubr.bf16.vlgmr.msra.gmra.mrb[0].mxu0 %v8028_v55  ;;  %2574 = vmatmul.mubr.bf16.vlgmr.msra.gmra.mrb[0].mxu1 %v8028_v55 }
 0x454   :  { %2585 = vmatpush1.bf16.msra.mxu0 %v2140_v20  ;;  %2671 = vmatpush1.bf16.msra.mxu1 %v2142_v46  ;;  %v2262_v20 = vld [vmem:[#allocation2 + $0xbf0] sm:$0xff]  ;;  %v2269_v46 = vld [vmem:[#allocation2 + $0xc28] sm:$0xff] }
 0x455   :  { %2586 = vmatprep.subr.bf16.mxu0 %v2149_v31  ;;  %2672 = vmatprep.subr.bf16.mxu1 %v2151_v38  ;;  %v2271_v31 = vld [vmem:[#allocation2 + $0xc38] sm:$0xff]  ;;  %v2268_v38 = vld [vmem:[#allocation2 + $0xc20] sm:$0xff] }
 0x456   :  { %2616 = vmatprep.mubr.bf16.mxu0 %v8001_v56  ;;  %2702 = vmatprep.mubr.bf16.mxu1 %v8001_v56  ;;  %v2172_v56 = vld [vmem:[#allocation2 + $0x920] sm:$0xff] }
 0x458   :  { %2587 = vmatpush1.bf16.msra.mxu0 %v2148_v4  ;;  %2673 = vmatpush1.bf16.msra.mxu1 %v2150_v6  ;;  %v2270_v4 = vld [vmem:[#allocation2 + $0xc30] sm:$0xff]  ;;  %v2277_v6 = vld [vmem:[#allocation2 + $0xc68] sm:$0xff] }
 0x459   :  { %2588 = vmatprep.subr.bf16.mxu0 %v2157_v22  ;;  %2674 = vmatprep.subr.bf16.mxu1 %v2159_v21  ;;  %v2279_v22 = vld [vmem:[#allocation2 + $0xc78] sm:$0xff]  ;;  %v2276_v21 = vld [vmem:[#allocation2 + $0xc60] sm:$0xff] }
 0x45c   :  { %2589 = vmatpush1.bf16.msra.mxu0 %v2156_v7  ;;  %2675 = vmatpush1.bf16.msra.mxu1 %v2158_v12  ;;  %v2278_v7 = vld [vmem:[#allocation2 + $0xc70] sm:$0xff]  ;;  %v2285_v12 = vld [vmem:[#allocation2 + $0xca8] sm:$0xff] }
 0x45d   :  { %2590 = vmatprep.subr.bf16.mxu0 %v2165_v13  ;;  %2676 = vmatprep.subr.bf16.mxu1 %v2167_v14  ;;  %v2287_v13 = vld [vmem:[#allocation2 + $0xcb8] sm:$0xff]  ;;  %v2284_v14 = vld [vmem:[#allocation2 + $0xca0] sm:$0xff] }
 0x460   :  { %2591 = vmatpush1.bf16.msra.mxu0 %v2164_v5  ;;  %2677 = vmatpush1.bf16.msra.mxu1 %v2166_v15  ;;  %v2286_v5 = vld [vmem:[#allocation2 + $0xcb0] sm:$0xff]  ;;  %v2293_v15 = vld [vmem:[#allocation2 + $0xce8] sm:$0xff] }
 0x461   :  { %2592 = vmatprep.subr.bf16.mxu0 %v2173_v16  ;;  %2678 = vmatprep.subr.bf16.mxu1 %v2175_v17  ;;  %v2292_v16 = vld [vmem:[#allocation2 + $0xce0] sm:$0xff]  ;;  %v2294_v17 = vld [vmem:[#allocation2 + $0xcf0] sm:$0xff] }
 0x464   :  { %2593 = vmatpush1.bf16.msra.mxu0 %v2172_v56  ;;  %2679 = vmatpush1.bf16.msra.mxu1 %v2174_v18  ;;  %v2301_v56 = vld [vmem:[#allocation2 + $0xd28] sm:$0xff]  ;;  %v2303_v18 = vld [vmem:[#allocation2 + $0xd38] sm:$0xff] }
 0x465   :  { %2594 = vmatprep.subr.bf16.mxu0 %v2181_v19  ;;  %2680 = vmatprep.subr.bf16.mxu1 %v2183_v24  ;;  %v2302_v19 = vld [vmem:[#allocation2 + $0xd30] sm:$0xff]  ;;  %v2309_v24 = vld [vmem:[#allocation2 + $0xd68] sm:$0xff] }
 0x468   :  { %2595 = vmatpush1.bf16.msra.mxu0 %v2180_v25  ;;  %2681 = vmatpush1.bf16.msra.mxu1 %v2182_v26  ;;  %v2311_v25 = vld [vmem:[#allocation2 + $0xd78] sm:$0xff]  ;;  %v2308_v26 = vld [vmem:[#allocation2 + $0xd60] sm:$0xff] }
 0x469   :  { %2596 = vmatprep.subr.bf16.mxu0 %v2189_v27  ;;  %2682 = vmatprep.subr.bf16.mxu1 %v2191_v32  ;;  %v2310_v27 = vld [vmem:[#allocation2 + $0xd70] sm:$0xff]  ;;  %v2317_v32 = vld [vmem:[#allocation2 + $0xda8] sm:$0xff] }
 0x46c   :  { %2597 = vmatpush1.bf16.msra.mxu0 %v2188_v33  ;;  %2683 = vmatpush1.bf16.msra.mxu1 %v2190_v35  ;;  %v2319_v33 = vld [vmem:[#allocation2 + $0xdb8] sm:$0xff]  ;;  %v2316_v35 = vld [vmem:[#allocation2 + $0xda0] sm:$0xff] }
 0x46d   :  { %2598 = vmatprep.subr.bf16.mxu0 %v2197_v37  ;;  %2684 = vmatprep.subr.bf16.mxu1 %v2199_v40  ;;  %v2318_v37 = vld [vmem:[#allocation2 + $0xdb0] sm:$0xff]  ;;  %v2325_v40 = vld [vmem:[#allocation2 + $0xde8] sm:$0xff] }
 0x470   :  { %2599 = vmatpush1.bf16.msra.mxu0 %v2196_v41  ;;  %2685 = vmatpush1.bf16.msra.mxu1 %v2198_v45  ;;  %v2327_v41 = vld [vmem:[#allocation2 + $0xdf8] sm:$0xff]  ;;  %v2324_v45 = vld [vmem:[#allocation2 + $0xde0] sm:$0xff] }
 0x471   :  { %2600 = vmatprep.subr.bf16.mxu0 %v2205_v8  ;;  %2686 = vmatprep.subr.bf16.mxu1 %v2207_v47  ;;  %v2326_v8 = vld [vmem:[#allocation2 + $0xdf0] sm:$0xff]  ;;  %v2333_v47 = vld [vmem:[#allocation2 + $0xe28] sm:$0xff] }
 0x474   :  { %2601 = vmatpush1.bf16.msra.mxu0 %v2204_v48  ;;  %2687 = vmatpush1.bf16.msra.mxu1 %v2206_v49  ;;  %v2335_v48 = vld [vmem:[#allocation2 + $0xe38] sm:$0xff]  ;;  %v2332_v49 = vld [vmem:[#allocation2 + $0xe20] sm:$0xff] }
 0x475   :  { %2602 = vmatprep.subr.bf16.mxu0 %v2213_v42  ;;  %2688 = vmatprep.subr.bf16.mxu1 %v2215_v43  ;;  %v2334_v42 = vld [vmem:[#allocation2 + $0xe30] sm:$0xff]  ;;  %v2341_v43 = vld [vmem:[#allocation2 + $0xe68] sm:$0xff] }
 0x478   :  { %2603 = vmatpush1.bf16.msra.mxu0 %v2212_v0  ;;  %2689 = vmatpush1.bf16.msra.mxu1 %v2214_v52  ;;  %v2343_v0 = vld [vmem:[#allocation2 + $0xe78] sm:$0xff]  ;;  %v2340_v52 = vld [vmem:[#allocation2 + $0xe60] sm:$0xff] }
 0x479   :  { %2604 = vmatprep.subr.bf16.mxu0 %v2221_v44  ;;  %2690 = vmatprep.subr.bf16.mxu1 %v2223_v63  ;;  %v2342_v44 = vld [vmem:[#allocation2 + $0xe70] sm:$0xff]  ;;  %v2349_v63 = vld [vmem:[#allocation2 + $0xea8] sm:$0xff] }
 0x47c   :  { %2605 = vmatpush1.bf16.msra.mxu0 %v2220_v30  ;;  %2691 = vmatpush1.bf16.msra.mxu1 %v2222_v28  ;;  %v2351_v30 = vld [vmem:[#allocation2 + $0xeb8] sm:$0xff]  ;;  %v2348_v28 = vld [vmem:[#allocation2 + $0xea0] sm:$0xff] }
 0x47d   :  { %2606 = vmatprep.subr.bf16.mxu0 %v2229_v23  ;;  %2692 = vmatprep.subr.bf16.mxu1 %v2231_v1  ;;  %v2350_v23 = vld [vmem:[#allocation2 + $0xeb0] sm:$0xff]  ;;  %v2357_v1 = vld [vmem:[#allocation2 + $0xee8] sm:$0xff] }
 0x480   :  { %2607 = vmatpush1.bf16.msra.mxu0 %v2228_v9  ;;  %2693 = vmatpush1.bf16.msra.mxu1 %v2230_v61  ;;  %v2359_v9 = vld [vmem:[#allocation2 + $0xef8] sm:$0xff]  ;;  %v2356_v61 = vld [vmem:[#allocation2 + $0xee0] sm:$0xff] }
 0x481   :  { %2608 = vmatprep.subr.bf16.mxu0 %v2237_v39  ;;  %2694 = vmatprep.subr.bf16.mxu1 %v2239_v36  ;;  %v2358_v39 = vld [vmem:[#allocation2 + $0xef0] sm:$0xff]  ;;  %v2365_v36 = vld [vmem:[#allocation2 + $0xf28] sm:$0xff] }
 0x484   :  { %2609 = vmatpush1.bf16.msra.mxu0 %v2236_v2  ;;  %2695 = vmatpush1.bf16.msra.mxu1 %v2238_v10  ;;  %v2367_v2 = vld [vmem:[#allocation2 + $0xf38] sm:$0xff]  ;;  %v2364_v10 = vld [vmem:[#allocation2 + $0xf20] sm:$0xff] }
 0x485   :  { %2610 = vmatprep.subr.bf16.mxu0 %v2245_v3  ;;  %2696 = vmatprep.subr.bf16.mxu1 %v2247_v57  ;;  %v2366_v3 = vld [vmem:[#allocation2 + $0xf30] sm:$0xff]  ;;  %v2373_v57 = vld [vmem:[#allocation2 + $0xf68] sm:$0xff] }
 0x488   :  { %2611 = vmatpush1.bf16.msra.mxu0 %v2244_v51  ;;  %2697 = vmatpush1.bf16.msra.mxu1 %v2246_v53  ;;  %v2375_v51 = vld [vmem:[#allocation2 + $0xf78] sm:$0xff]  ;;  %v2372_v53 = vld [vmem:[#allocation2 + $0xf60] sm:$0xff] }
 0x489   :  { %2612 = vmatprep.subr.bf16.mxu0 %v2253_v54  ;;  %2698 = vmatprep.subr.bf16.mxu1 %v2255_v58  ;;  %v2374_v54 = vld [vmem:[#allocation2 + $0xf70] sm:$0xff]  ;;  %v2381_v58 = vld [vmem:[#allocation2 + $0xfa8] sm:$0xff] }
 0x48c   :  { %2613 = vmatpush1.bf16.msra.mxu0 %v2252_v59  ;;  %2699 = vmatpush1.bf16.msra.mxu1 %v2254_v60  ;;  %v2383_v59 = vld [vmem:[#allocation2 + $0xfb8] sm:$0xff]  ;;  %v2380_v60 = vld [vmem:[#allocation2 + $0xfa0] sm:$0xff] }
 0x48d   :  { %2614 = vmatprep.subr.bf16.mxu0 %v2261_v50  ;;  %2700 = vmatprep.subr.bf16.mxu1 %v2263_v11  ;;  %v2382_v50 = vld [vmem:[#allocation2 + $0xfb0] sm:$0xff]  ;;  %v2389_v11 = vld [vmem:[#allocation2 + $0xfe8] sm:$0xff] }
 0x490   :  { %2615 = vmatpush1.bf16.msra.mxu0 %v2260_v62  ;;  %2701 = vmatpush1.bf16.msra.mxu1 %v2262_v20  ;;  %v2391_v62 = vld [vmem:[#allocation2 + $0xff8] sm:$0xff]  ;;  %v2388_v20 = vld [vmem:[#allocation2 + $0xfe0] sm:$0xff] }
 0x491   :  { %2627 = vmatprep.subr.bf16.mxu0 %v2269_v46  ;;  %2713 = vmatprep.subr.bf16.mxu1 %v2271_v31  ;;  %v2390_v46 = vld [vmem:[#allocation2 + $0xff0] sm:$0xff]  ;;  %v2774_v31 = vlaneseq }
 0x493   :  { %2617 = vmatmul.mubr.bf16.vlgmr.msra.gmra.mrb[4].mxu0 %v8016_v34  ;;  %2703 = vmatmul.mubr.bf16.vlgmr.msra.gmra.mrb[4].mxu1 %v8016_v34  ;;  %v2295_v34 = vld [vmem:[#allocation2 + $0xcf8] sm:$0xff] }
 0x494   :  { %2628 = vmatpush1.bf16.msra.mxu0 %v2268_v38  ;;  %2714 = vmatpush1.bf16.msra.mxu1 %v2270_v4  ;;  %v8040_v38 = vshrl.u32 %v2774_v31, 7 }
 0x495   :  { %2629 = vmatprep.subr.bf16.mxu0 %v2277_v6  ;;  %2715 = vmatprep.subr.bf16.mxu1 %v2279_v22  ;;  %v2772_v22 = vld [vmem:[#allocation13] sm:$0xff] }
 0x496   :  { %2659 = vmatprep.mubr.bf16.mxu0 %v8020_v29  ;;  %2745 = vmatprep.mubr.bf16.mxu1 %v8020_v29  ;;  %v2300_v29 = vld [vmem:[#allocation2 + $0xd20] sm:$0xff]  ;;  %10005 = vst [vmem:[#allocation225_spill] sm:$0xff] %v8040_v38  ;;  %v8043_v4 = vsub.s32 0, %v8040_v38  ;;  %v8046_v6 = vsub.s32 2, %v8040_v38 }
 0x498   :  { %2630 = vmatpush1.bf16.msra.mxu0 %v2276_v21  ;;  %2716 = vmatpush1.bf16.msra.mxu1 %v2278_v7  ;;  %10006 = vst [vmem:[#allocation227_spill] sm:$0xff] %v8043_v4  ;;  %10007 = vst [vmem:[#allocation224_spill] sm:$0xff] %v8046_v6  ;;  %v8049_v21 = vsub.s32 1, %v8040_v38  ;;  %v8052_v7 = vsub.s32 3, %v8040_v38 }
 0x499   :  { %2631 = vmatprep.subr.bf16.mxu0 %v2285_v12  ;;  %2717 = vmatprep.subr.bf16.mxu1 %v2287_v13  ;;  %v2777_v12 = vrot.slane %v2772_v22, %v8043_v4 }
 0x49a   :  { %10008 = vst [vmem:[#allocation226_spill] sm:$0xff] %v8049_v21  ;;  %10009 = vst [vmem:[#allocation233_spill] sm:$0xff] %v8052_v7  ;;  %v2781_v13 = vrot.slane %v2772_v22, %v8049_v21 }
 0x49c   :  { %2632 = vmatpush1.bf16.msra.mxu0 %v2284_v14  ;;  %2718 = vmatpush1.bf16.msra.mxu1 %v2286_v5  ;;  %v2789_v14 = vrot.slane %v2772_v22, %v8052_v7 }
 0x49d   :  { %2633 = vmatprep.subr.bf16.mxu0 %v2293_v15  ;;  %2719 = vmatprep.subr.bf16.mxu1 %v2295_v34 }
 0x4a0   :  { %2634 = vmatpush1.bf16.msra.mxu0 %v2292_v16  ;;  %2720 = vmatpush1.bf16.msra.mxu1 %v2294_v17 }
 0x4a1   :  { %2635 = vmatprep.subr.bf16.mxu0 %v2301_v56  ;;  %2721 = vmatprep.subr.bf16.mxu1 %v2303_v18 }
 0x4a4   :  { %2636 = vmatpush1.bf16.msra.mxu0 %v2300_v29  ;;  %2722 = vmatpush1.bf16.msra.mxu1 %v2302_v19 }
 0x4a5   :  { %2637 = vmatprep.subr.bf16.mxu0 %v2309_v24  ;;  %2723 = vmatprep.subr.bf16.mxu1 %v2311_v25 }
 0x4a8   :  { %2638 = vmatpush1.bf16.msra.mxu0 %v2308_v26  ;;  %2724 = vmatpush1.bf16.msra.mxu1 %v2310_v27 }
 0x4a9   :  { %2639 = vmatprep.subr.bf16.mxu0 %v2317_v32  ;;  %2725 = vmatprep.subr.bf16.mxu1 %v2319_v33 }
 0x4ac   :  { %2640 = vmatpush1.bf16.msra.mxu0 %v2316_v35  ;;  %2726 = vmatpush1.bf16.msra.mxu1 %v2318_v37 }
 0x4ad   :  { %2641 = vmatprep.subr.bf16.mxu0 %v2325_v40  ;;  %2727 = vmatprep.subr.bf16.mxu1 %v2327_v41 }
 0x4b0   :  { %2642 = vmatpush1.bf16.msra.mxu0 %v2324_v45  ;;  %2728 = vmatpush1.bf16.msra.mxu1 %v2326_v8 }
 0x4b1   :  { %2643 = vmatprep.subr.bf16.mxu0 %v2333_v47  ;;  %2729 = vmatprep.subr.bf16.mxu1 %v2335_v48 }
 0x4b4   :  { %2644 = vmatpush1.bf16.msra.mxu0 %v2332_v49  ;;  %2730 = vmatpush1.bf16.msra.mxu1 %v2334_v42 }
 0x4b5   :  { %2645 = vmatprep.subr.bf16.mxu0 %v2341_v43  ;;  %2731 = vmatprep.subr.bf16.mxu1 %v2343_v0 }
 0x4b8   :  { %2646 = vmatpush1.bf16.msra.mxu0 %v2340_v52  ;;  %2732 = vmatpush1.bf16.msra.mxu1 %v2342_v44  ;;  %v9412_v44 = vsub.s32 4, %v8040_v38 }
 0x4b9   :  { %2647 = vmatprep.subr.bf16.mxu0 %v2349_v63  ;;  %2733 = vmatprep.subr.bf16.mxu1 %v2351_v30  ;;  %v9411_v63 = vsub.s32 6, %v8040_v38  ;;  %v9410_v30 = vsub.s32 5, %v8040_v38 }
 0x4bc   :  { %2648 = vmatpush1.bf16.msra.mxu0 %v2348_v28  ;;  %2734 = vmatpush1.bf16.msra.mxu1 %v2350_v23  ;;  %v9409_v28 = vsub.s32 7, %v8040_v38  ;;  %v2793_v23 = vrot.slane %v2772_v22, %v9412_v44 }
 0x4bd   :  { %2649 = vmatprep.subr.bf16.mxu0 %v2357_v1  ;;  %2735 = vmatprep.subr.bf16.mxu1 %v2359_v9  ;;  %v2801_v1 = vrot.slane %v2772_v22, %v9411_v63  ;;  %v2797_v9 = vrot.slane %v2772_v22, %v9410_v30 }
 0x4c0   :  { %2650 = vmatpush1.bf16.msra.mxu0 %v2356_v61  ;;  %2736 = vmatpush1.bf16.msra.mxu1 %v2358_v39  ;;  %v2805_v61 = vrot.slane %v2772_v22, %v9409_v28 }
 0x4c1   :  { %2651 = vmatprep.subr.bf16.mxu0 %v2365_v36  ;;  %2737 = vmatprep.subr.bf16.mxu1 %v2367_v2 }
 0x4c4   :  { %2652 = vmatpush1.bf16.msra.mxu0 %v2364_v10  ;;  %2738 = vmatpush1.bf16.msra.mxu1 %v2366_v3 }
 0x4c5   :  { %2653 = vmatprep.subr.bf16.mxu0 %v2373_v57  ;;  %2739 = vmatprep.subr.bf16.mxu1 %v2375_v51 }
 0x4c8   :  { %2654 = vmatpush1.bf16.msra.mxu0 %v2372_v53  ;;  %2740 = vmatpush1.bf16.msra.mxu1 %v2374_v54 }
 0x4c9   :  { %2655 = vmatprep.subr.bf16.mxu0 %v2381_v58  ;;  %2741 = vmatprep.subr.bf16.mxu1 %v2383_v59 }
 0x4cc   :  { %2656 = vmatpush1.bf16.msra.mxu0 %v2380_v60  ;;  %2742 = vmatpush1.bf16.msra.mxu1 %v2382_v50 }
 0x4cd   :  { %2657 = vmatprep.subr.bf16.mxu0 %v2389_v11  ;;  %2743 = vmatprep.subr.bf16.mxu1 %v2391_v62 }
 0x4d0   :  { %2658 = vmatpush1.bf16.msra.mxu0 %v2388_v20  ;;  %2744 = vmatpush1.bf16.msra.mxu1 %v2390_v46 }
 0x4d3   :  { %2660 = vmatmul.mubr.bf16.vlgmr.msra.gmra.mrb[4].mxu0 %v8028_v55  ;;  %2746 = vmatmul.mubr.bf16.vlgmr.msra.gmra.mrb[4].mxu1 %v8028_v55  ;;  %v2785_v55 = vrot.slane %v2772_v22, %v8046_v6 }
 0x526   :  { %v2489_v5 = vpop.f32.mrb[0].mxu0  ;;  %v2575_v15 = vpop.f32.mrb[0].mxu1 }
 0x527   :  { %v2814_v34 = vadd.f32 %v2777_v12, %v2489_v5  ;;  %v2816_v16 = vadd.f32 %v2785_v55, %v2575_v15  ;;  %v2491_v17 = vpop.f32.mrb[1].mxu0  ;;  %v2577_v56 = vpop.f32.mrb[1].mxu1 }
 0x528   :  { %v2815_v18 = vadd.f32 %v2781_v13, %v2491_v17  ;;  %v2817_v29 = vadd.f32 %v2789_v14, %v2577_v56  ;;  %v2493_v19 = vpop.f32.mrb[2].mxu0  ;;  %v2579_v24 = vpop.f32.mrb[2].mxu1 }
 0x529   :  { %v2822_v25 = vadd.f32 %v2777_v12, %v2493_v19  ;;  %v2824_v26 = vadd.f32 %v2785_v55, %v2579_v24  ;;  %v2495_v27 = vpop.f32.mrb[3].mxu0  ;;  %v2581_v32 = vpop.f32.mrb[3].mxu1  ;;  %v2830_v37 = vmax.f32 %v2814_v34, 0.0  ;;  %v2832_v40 = vmax.f32 %v2816_v16, 0.0 }
 0x52a   :  { %v2823_v33 = vadd.f32 %v2781_v13, %v2495_v27  ;;  %v2825_v35 = vadd.f32 %v2789_v14, %v2581_v32  ;;  %v2831_v8 = vmax.f32 %v2815_v18, 0.0  ;;  %v2833_v47 = vmax.f32 %v2817_v29, 0.0 }
 0x52b   :  { %v2838_v41 = vmax.f32 %v2822_v25, 0.0  ;;  %v2840_v45 = vmax.f32 %v2824_v26, 0.0 }
 0x52c   :  { %v2839_v48 = vmax.f32 %v2823_v33, 0.0  ;;  %v2841_v49 = vmax.f32 %v2825_v35, 0.0 }
 0x52d   :  { %v8058_v42 = vpack.c.bf16 %v2838_v41, %v2830_v37  ;;  %v8060_v43 = vpack.c.bf16 %v2840_v45, %v2832_v40 }
 0x52e   :  { %v8065_v0 = vpack.c.bf16 %v2839_v48, %v2831_v8  ;;  %v8067_v52 = vpack.c.bf16 %v2841_v49, %v2833_v47 }
 0x52f   :  { %10010 = vst [vmem:[#allocation235_spill] sm:$0xff] %v8058_v42  ;;  %10011 = vst [vmem:[#allocation232_spill] sm:$0xff] %v8060_v43 }
 0x530   :  { %10012 = vst [vmem:[#allocation234_spill] sm:$0xff] %v8067_v52 }
 0x531   :  { %2890 = dma.general %s2854_s30, 32768, %s2869_s27, %s6551_s9, %s6552_s10, [#allocation26], %s6650_s19, 0  }
 0x5a6   :  { %v2661_v39 = vpop.f32.mrb[4].mxu0  ;;  %v2747_v36 = vpop.f32.mrb[4].mxu1 }
 0x5a7   :  { %v2818_v2 = vadd.f32 %v2793_v23, %v2661_v39  ;;  %v2820_v10 = vadd.f32 %v2801_v1, %v2747_v36  ;;  %v2663_v3 = vpop.f32.mrb[5].mxu0  ;;  %v2749_v57 = vpop.f32.mrb[5].mxu1 }
 0x5a8   :  { %v2819_v51 = vadd.f32 %v2797_v9, %v2663_v3  ;;  %v2821_v53 = vadd.f32 %v2805_v61, %v2749_v57  ;;  %v2665_v54 = vpop.f32.mrb[6].mxu0  ;;  %v2751_v58 = vpop.f32.mrb[6].mxu1 }
 0x5a9   :  { %v2826_v59 = vadd.f32 %v2793_v23, %v2665_v54  ;;  %v2828_v60 = vadd.f32 %v2801_v1, %v2751_v58  ;;  %v2667_v50 = vpop.f32.mrb[7].mxu0  ;;  %v2753_v11 = vpop.f32.mrb[7].mxu1  ;;  %v2834_v46 = vmax.f32 %v2818_v2, 0.0  ;;  %v2836_v31 = vmax.f32 %v2820_v10, 0.0 }
 0x5aa   :  { %v2827_v62 = vadd.f32 %v2797_v9, %v2667_v50  ;;  %v2829_v20 = vadd.f32 %v2805_v61, %v2753_v11  ;;  %v2835_v55 = vmax.f32 %v2819_v51, 0.0  ;;  %v2837_v13 = vmax.f32 %v2821_v53, 0.0 }
 0x5ab   :  { %v2842_v12 = vmax.f32 %v2826_v59, 0.0  ;;  %v2844_v22 = vmax.f32 %v2828_v60, 0.0 }
 0x5ac   :  { %v2843_v14 = vmax.f32 %v2827_v62, 0.0  ;;  %v2845_v5 = vmax.f32 %v2829_v20, 0.0 }
 0x5ad   :  { %v8082_v15 = vpack.c.bf16 %v2842_v12, %v2834_v46  ;;  %v8084_v34 = vpack.c.bf16 %v2844_v22, %v2836_v31 }
 0x5ae   :  { %v8086_v16 = vpack.c.bf16 %v2843_v14, %v2835_v55  ;;  %v8088_v17 = vpack.c.bf16 %v2845_v5, %v2837_v13 }
 0x5af   :  { %6519 = dma.done.wait [#allocation6], 32768 }
 0x5b0   :  { %6520 = vsyncadd [#allocation6], 4294934528  ;;  %3164 = sst [smem:[#allocation28]] %s6538_s18  ;;  %v8096_v56 = vld [vmem:[#allocation3] sm:$0xff]  ;;  %v8098_v18 = vld [vmem:[#allocation3 + $0x8] sm:$0xff]  ;;  %s6553_s2 = smov 256  }
 0x5b1   :  { %3166 = sst [smem:[#allocation28 + $0x1]] %s6538_s18  ;;  %v8100_v29 = vld [vmem:[#allocation3 + $0x10] sm:$0xff]  ;;  %v8103_v19 = vld [vmem:[#allocation3 + $0x18] sm:$0xff]  ;;  %v8105_v24 = vld [vmem:[#allocation3 + $0x20] sm:$0xff]  ;;  %s6554_s11 = smov [#allocation4]  }
 0x5b2   :  { %3168 = sst [smem:[#allocation28 + $0x2]] %s6539_s20  ;;  %10013 = vst [vmem:[#allocation241_spill] sm:$0xff] %v8105_v24  ;;  %v8107_v25 = vld [vmem:[#allocation3 + $0x28] sm:$0xff]  ;;  %v8110_v26 = vld [vmem:[#allocation3 + $0x30] sm:$0xff]  ;;  %v8112_v27 = vld [vmem:[#allocation3 + $0x38] sm:$0xff]  ;;  %s3160_s0 = sshll.u32 %s6554_s11, 4  ;;  %s3161_s0 = int_to_ptr.vmem [resolvable:$true] %s3160_s0 }
 0x5b3   :  { %3170 = sst [smem:[#allocation28 + $0x3]] %s6534_s21  ;;  %10014 = vst [vmem:[#allocation243_spill] sm:$0xff] %v8107_v25  ;;  %10015 = vst [vmem:[#allocation240_spill] sm:$0xff] %v8110_v26  ;;  %v8114_v32 = vld [vmem:[#allocation3 + $0x40] sm:$0xff]  ;;  %v8117_v33 = vld [vmem:[#allocation3 + $0x48] sm:$0xff]  ;;  %s6555_s12 = smov [#allocation7]  }
 0x5b4   :  { %3172 = sst [smem:[#allocation28 + $0x4]] %s6530_s7  ;;  %10016 = vst [vmem:[#allocation242_spill] sm:$0xff] %v8112_v27  ;;  %v8119_v35 = vld [vmem:[#allocation3 + $0x50] sm:$0xff]  ;;  %v8121_v37 = vld [vmem:[#allocation3 + $0x58] sm:$0xff]  ;;  %v8123_v40 = vld [vmem:[#allocation3 + $0x60] sm:$0xff]  ;;  %s6556_s13 = smov [#allocation27]  }
 0x5b5   :  { %3174 = sst [smem:[#allocation28 + $0x5]] %s6537_s5  ;;  %10017 = vst [vmem:[#allocation249_spill] sm:$0xff] %v8123_v40  ;;  %v8125_v41 = vld [vmem:[#allocation3 + $0x68] sm:$0xff]  ;;  %v8127_v45 = vld [vmem:[#allocation3 + $0x70] sm:$0xff]  ;;  %v8129_v8 = vld [vmem:[#allocation3 + $0x78] sm:$0xff] }
 0x5b6   :  { %3176 = sst [smem:[#allocation28 + $0x6]] %s6553_s2  ;;  %10018 = vst [vmem:[#allocation251_spill] sm:$0xff] %v8125_v41  ;;  %10019 = vst [vmem:[#allocation248_spill] sm:$0xff] %v8127_v45  ;;  %v8131_v47 = vld [vmem:[#allocation3 + $0x80] sm:$0xff]  ;;  %v8133_v48 = vld [vmem:[#allocation3 + $0x88] sm:$0xff] }
 0x5b7   :  { %3178 = sst [smem:[#allocation28 + $0x7]] %s6534_s21  ;;  %10020 = vst [vmem:[#allocation250_spill] sm:$0xff] %v8129_v8  ;;  %v8135_v49 = vld [vmem:[#allocation3 + $0x90] sm:$0xff]  ;;  %v8137_v23 = vld [vmem:[#allocation3 + $0x98] sm:$0xff]  ;;  %v8139_v1 = vld [vmem:[#allocation3 + $0xa0] sm:$0xff] }
 0x5b8   :  { %3180 = sst [smem:[#allocation28 + $0x8]] %s6539_s20  ;;  %10021 = vst [vmem:[#allocation257_spill] sm:$0xff] %v8139_v1  ;;  %v8141_v9 = vld [vmem:[#allocation3 + $0xa8] sm:$0xff]  ;;  %v8143_v61 = vld [vmem:[#allocation3 + $0xb0] sm:$0xff]  ;;  %v8145_v39 = vld [vmem:[#allocation3 + $0xb8] sm:$0xff] }
 0x5b9   :  { %10022 = vst [vmem:[#allocation259_spill] sm:$0xff] %v8141_v9  ;;  %10023 = vst [vmem:[#allocation256_spill] sm:$0xff] %v8143_v61  ;;  %v8147_v36 = vld [vmem:[#allocation3 + $0xc0] sm:$0xff]  ;;  %v8149_v2 = vld [vmem:[#allocation3 + $0xc8] sm:$0xff] }
 0x5ba   :  { %10024 = vst [vmem:[#allocation258_spill] sm:$0xff] %v8145_v39  ;;  %v8151_v10 = vld [vmem:[#allocation3 + $0xd0] sm:$0xff]  ;;  %v8153_v3 = vld [vmem:[#allocation3 + $0xd8] sm:$0xff]  ;;  %v8155_v57 = vld [vmem:[#allocation3 + $0xe0] sm:$0xff] }
 0x5bb   :  { %10025 = vst [vmem:[#allocation53_spill] sm:$0xff] %v8155_v57  ;;  %v8157_v51 = vld [vmem:[#allocation3 + $0xe8] sm:$0xff]  ;;  %v8159_v53 = vld [vmem:[#allocation3 + $0xf0] sm:$0xff]  ;;  %v8161_v54 = vld [vmem:[#allocation3 + $0xf8] sm:$0xff] }
 0x5bc   :  { %10026 = vst [vmem:[#allocation55_spill] sm:$0xff] %v8157_v51  ;;  %10027 = vst [vmem:[#allocation52_spill] sm:$0xff] %v8159_v53  ;;  %v8163_v58 = vld [vmem:[#allocation3 + $0x100] sm:$0xff]  ;;  %v8165_v59 = vld [vmem:[#allocation3 + $0x108] sm:$0xff] }
 0x5bd   :  { %10028 = vst [vmem:[#allocation54_spill] sm:$0xff] %v8161_v54  ;;  %v8167_v60 = vld [vmem:[#allocation3 + $0x110] sm:$0xff]  ;;  %v8169_v50 = vld [vmem:[#allocation3 + $0x118] sm:$0xff]  ;;  %v8171_v11 = vld [vmem:[#allocation3 + $0x120] sm:$0xff] }
 0x5be   :  { %10029 = vst [vmem:[#allocation57_spill] sm:$0xff] %v8171_v11  ;;  %v8173_v62 = vld [vmem:[#allocation3 + $0x128] sm:$0xff]  ;;  %v8175_v20 = vld [vmem:[#allocation3 + $0x130] sm:$0xff]  ;;  %v8177_v46 = vld [vmem:[#allocation3 + $0x138] sm:$0xff] }
 0x5bf   :  { %10030 = vst [vmem:[#allocation59_spill] sm:$0xff] %v8173_v62  ;;  %10031 = vst [vmem:[#allocation56_spill] sm:$0xff] %v8175_v20  ;;  %v8179_v31 = vld [vmem:[#allocation3 + $0x140] sm:$0xff]  ;;  %v8181_v12 = vld [vmem:[#allocation3 + $0x148] sm:$0xff] }
 0x5c0   :  { %10032 = vst [vmem:[#allocation58_spill] sm:$0xff] %v8177_v46  ;;  %v8183_v22 = vld [vmem:[#allocation3 + $0x150] sm:$0xff]  ;;  %v8185_v55 = vld [vmem:[#allocation3 + $0x158] sm:$0xff]  ;;  %v8187_v13 = vld [vmem:[#allocation3 + $0x160] sm:$0xff] }
 0x5c1   :  { %10033 = vst [vmem:[#allocation61_spill] sm:$0xff] %v8187_v13  ;;  %v8189_v14 = vld [vmem:[#allocation3 + $0x168] sm:$0xff]  ;;  %v8191_v5 = vld [vmem:[#allocation3 + $0x170] sm:$0xff]  ;;  %v8193_v28 = vld [vmem:[#allocation3 + $0x178] sm:$0xff] }
 0x5c2   :  { %10034 = vst [vmem:[#allocation63_spill] sm:$0xff] %v8189_v14  ;;  %10035 = vst [vmem:[#allocation60_spill] sm:$0xff] %v8191_v5  ;;  %v8195_v30 = vld [vmem:[#allocation3 + $0x180] sm:$0xff]  ;;  %v8197_v63 = vld [vmem:[#allocation3 + $0x188] sm:$0xff] }
 0x5c3   :  { %10036 = vst [vmem:[#allocation62_spill] sm:$0xff] %v8193_v28  ;;  %v8199_v44 = vld [vmem:[#allocation3 + $0x190] sm:$0xff]  ;;  %v8201_v38 = vld [vmem:[#allocation3 + $0x198] sm:$0xff]  ;;  %v8203_v7 = vld [vmem:[#allocation3 + $0x1a0] sm:$0xff] }
 0x5c4   :  { %10037 = vst [vmem:[#allocation65_spill] sm:$0xff] %v8203_v7  ;;  %v8205_v21 = vld [vmem:[#allocation3 + $0x1a8] sm:$0xff]  ;;  %v8207_v6 = vld [vmem:[#allocation3 + $0x1b0] sm:$0xff]  ;;  %v8209_v4 = vld [vmem:[#allocation3 + $0x1b8] sm:$0xff] }
 0x5c5   :  { %10038 = vst [vmem:[#allocation67_spill] sm:$0xff] %v8205_v21  ;;  %10039 = vst [vmem:[#allocation64_spill] sm:$0xff] %v8207_v6  ;;  %v8211_v13 = vld [vmem:[#allocation3 + $0x1c0] sm:$0xff]  ;;  %v8213_v5 = vld [vmem:[#allocation3 + $0x1c8] sm:$0xff] }
 0x5c6   :  { %10040 = vst [vmem:[#allocation66_spill] sm:$0xff] %v8209_v4  ;;  %v8215_v28 = vld [vmem:[#allocation3 + $0x1d0] sm:$0xff]  ;;  %v8217_v14 = vld [vmem:[#allocation3 + $0x1d8] sm:$0xff]  ;;  %v8219_v20 = vld [vmem:[#allocation3 + $0x1e0] sm:$0xff] }
 0x5c7   :  { %10041 = vst [vmem:[#allocation69_spill] sm:$0xff] %v8219_v20  ;;  %v8221_v11 = vld [vmem:[#allocation3 + $0x1e8] sm:$0xff]  ;;  %v8223_v46 = vld [vmem:[#allocation3 + $0x1f0] sm:$0xff]  ;;  %v8225_v7 = vld [vmem:[#allocation3 + $0x1f8] sm:$0xff] }
 0x5c8   :  { %10042 = vst [vmem:[#allocation71_spill] sm:$0xff] %v8221_v11  ;;  %10043 = vst [vmem:[#allocation68_spill] sm:$0xff] %v8223_v46  ;;  %v8227_v21 = vld [vmem:[#allocation3 + $0x200] sm:$0xff]  ;;  %v8229_v6 = vld [vmem:[#allocation3 + $0x208] sm:$0xff] }
 0x5c9   :  { %10044 = vst [vmem:[#allocation70_spill] sm:$0xff] %v8225_v7  ;;  %v8231_v4 = vld [vmem:[#allocation3 + $0x210] sm:$0xff]  ;;  %v8233_v62 = vld [vmem:[#allocation3 + $0x218] sm:$0xff]  ;;  %v8235_v53 = vld [vmem:[#allocation3 + $0x220] sm:$0xff] }
 0x5ca   :  { %10045 = vst [vmem:[#allocation73_spill] sm:$0xff] %v8235_v53  ;;  %v8237_v57 = vld [vmem:[#allocation3 + $0x228] sm:$0xff]  ;;  %v8239_v54 = vld [vmem:[#allocation3 + $0x230] sm:$0xff]  ;;  %v8241_v20 = vld [vmem:[#allocation3 + $0x238] sm:$0xff] }
 0x5cb   :  { %10046 = vst [vmem:[#allocation75_spill] sm:$0xff] %v8237_v57  ;;  %10047 = vst [vmem:[#allocation72_spill] sm:$0xff] %v8239_v54  ;;  %v8243_v11 = vld [vmem:[#allocation3 + $0x240] sm:$0xff]  ;;  %v8245_v46 = vld [vmem:[#allocation3 + $0x248] sm:$0xff] }
 0x5cc   :  { %10048 = vst [vmem:[#allocation74_spill] sm:$0xff] %v8241_v20  ;;  %v8247_v7 = vld [vmem:[#allocation3 + $0x250] sm:$0xff]  ;;  %v8249_v51 = vld [vmem:[#allocation3 + $0x258] sm:$0xff]  ;;  %v8251_v61 = vld [vmem:[#allocation3 + $0x260] sm:$0xff] }
 0x5cd   :  { %10049 = vst [vmem:[#allocation77_spill] sm:$0xff] %v8251_v61  ;;  %v8253_v1 = vld [vmem:[#allocation3 + $0x268] sm:$0xff]  ;;  %v8255_v39 = vld [vmem:[#allocation3 + $0x270] sm:$0xff]  ;;  %v8257_v53 = vld [vmem:[#allocation3 + $0x278] sm:$0xff] }
 0x5ce   :  { %10050 = vst [vmem:[#allocation79_spill] sm:$0xff] %v8253_v1  ;;  %10051 = vst [vmem:[#allocation76_spill] sm:$0xff] %v8255_v39  ;;  %v8259_v57 = vld [vmem:[#allocation3 + $0x280] sm:$0xff]  ;;  %v8261_v54 = vld [vmem:[#allocation3 + $0x288] sm:$0xff] }
 0x5cf   :  { %10052 = vst [vmem:[#allocation78_spill] sm:$0xff] %v8257_v53  ;;  %v8263_v20 = vld [vmem:[#allocation3 + $0x290] sm:$0xff]  ;;  %v8265_v9 = vld [vmem:[#allocation3 + $0x298] sm:$0xff]  ;;  %v8267_v45 = vld [vmem:[#allocation3 + $0x2a0] sm:$0xff] }
 0x5d0   :  { %10053 = vst [vmem:[#allocation81_spill] sm:$0xff] %v8267_v45  ;;  %v8269_v40 = vld [vmem:[#allocation3 + $0x2a8] sm:$0xff]  ;;  %v8271_v8 = vld [vmem:[#allocation3 + $0x2b0] sm:$0xff]  ;;  %v8273_v61 = vld [vmem:[#allocation3 + $0x2b8] sm:$0xff] }
 0x5d1   :  { %10054 = vst [vmem:[#allocation83_spill] sm:$0xff] %v8269_v40  ;;  %10055 = vst [vmem:[#allocation80_spill] sm:$0xff] %v8271_v8  ;;  %v8275_v1 = vld [vmem:[#allocation3 + $0x2c0] sm:$0xff]  ;;  %v8277_v39 = vld [vmem:[#allocation3 + $0x2c8] sm:$0xff] }
 0x5d2   :  { %10056 = vst [vmem:[#allocation82_spill] sm:$0xff] %v8273_v61  ;;  %v8279_v53 = vld [vmem:[#allocation3 + $0x2d0] sm:$0xff]  ;;  %v8281_v41 = vld [vmem:[#allocation3 + $0x2d8] sm:$0xff]  ;;  %v8283_v26 = vld [vmem:[#allocation3 + $0x2e0] sm:$0xff] }
 0x5d3   :  { %10057 = vst [vmem:[#allocation85_spill] sm:$0xff] %v8279_v53  ;;  %10058 = vst [vmem:[#allocation87_spill] sm:$0xff] %v8283_v26  ;;  %v8285_v24 = vld [vmem:[#allocation3 + $0x2e8] sm:$0xff]  ;;  %v8287_v43 = vld [vmem:[#allocation3 + $0x2f0] sm:$0xff] }
 0x5d4   :  { %10059 = vst [vmem:[#allocation84_spill] sm:$0xff] %v8285_v24  ;;  %10060 = vst [vmem:[#allocation86_spill] sm:$0xff] %v8287_v43  ;;  %v8289_v45 = vld [vmem:[#allocation3 + $0x2f8] sm:$0xff]  ;;  %v8291_v40 = vld [vmem:[#allocation3 + $0x300] sm:$0xff] }
 0x5d5   :  { %10061 = vst [vmem:[#allocation89_spill] sm:$0xff] %v8289_v45  ;;  %10062 = vst [vmem:[#allocation91_spill] sm:$0xff] %v8291_v40  ;;  %v8293_v8 = vld [vmem:[#allocation3 + $0x308] sm:$0xff]  ;;  %v8295_v61 = vld [vmem:[#allocation3 + $0x310] sm:$0xff] }
 0x5d6   :  { %10063 = vst [vmem:[#allocation88_spill] sm:$0xff] %v8293_v8  ;;  %10064 = vst [vmem:[#allocation90_spill] sm:$0xff] %v8295_v61  ;;  %v8297_v27 = vld [vmem:[#allocation3 + $0x318] sm:$0xff]  ;;  %v8299_v25 = vld [vmem:[#allocation3 + $0x320] sm:$0xff] }
 0x5d7   :  { %10065 = vst [vmem:[#allocation93_spill] sm:$0xff] %v8297_v27  ;;  %10066 = vst [vmem:[#allocation95_spill] sm:$0xff] %v8299_v25  ;;  %v8301_v52 = vld [vmem:[#allocation3 + $0x328] sm:$0xff]  ;;  %v8303_v42 = vld [vmem:[#allocation3 + $0x330] sm:$0xff] }
 0x5d8   :  { %10067 = vst [vmem:[#allocation92_spill] sm:$0xff] %v8301_v52  ;;  %10068 = vst [vmem:[#allocation94_spill] sm:$0xff] %v8303_v42  ;;  %v8305_v26 = vld [vmem:[#allocation3 + $0x338] sm:$0xff]  ;;  %v8307_v24 = vld [vmem:[#allocation3 + $0x340] sm:$0xff] }
 0x5d9   :  { %10069 = vst [vmem:[#allocation101_spill] sm:$0xff] %v8305_v26  ;;  %10070 = vst [vmem:[#allocation103_spill] sm:$0xff] %v8307_v24  ;;  %v8309_v43 = vld [vmem:[#allocation3 + $0x348] sm:$0xff]  ;;  %v8311_v45 = vld [vmem:[#allocation3 + $0x350] sm:$0xff] }
 0x5da   :  { %10071 = vst [vmem:[#allocation100_spill] sm:$0xff] %v8309_v43  ;;  %10072 = vst [vmem:[#allocation102_spill] sm:$0xff] %v8311_v45  ;;  %v8313_v40 = vld [vmem:[#allocation3 + $0x358] sm:$0xff]  ;;  %v8315_v8 = vld [vmem:[#allocation3 + $0x360] sm:$0xff] }
 0x5db   :  { %10073 = vst [vmem:[#allocation109_spill] sm:$0xff] %v8313_v40  ;;  %10074 = vst [vmem:[#allocation111_spill] sm:$0xff] %v8315_v8  ;;  %v8317_v61 = vld [vmem:[#allocation3 + $0x368] sm:$0xff]  ;;  %v8319_v27 = vld [vmem:[#allocation3 + $0x370] sm:$0xff] }
 0x5dc   :  { %10075 = vst [vmem:[#allocation108_spill] sm:$0xff] %v8317_v61  ;;  %10076 = vst [vmem:[#allocation110_spill] sm:$0xff] %v8319_v27  ;;  %v8321_v25 = vld [vmem:[#allocation3 + $0x378] sm:$0xff]  ;;  %v8323_v52 = vld [vmem:[#allocation3 + $0x380] sm:$0xff] }
 0x5dd   :  { %10077 = vst [vmem:[#allocation117_spill] sm:$0xff] %v8321_v25  ;;  %10078 = vst [vmem:[#allocation119_spill] sm:$0xff] %v8323_v52  ;;  %v8325_v42 = vld [vmem:[#allocation3 + $0x388] sm:$0xff]  ;;  %v8327_v26 = vld [vmem:[#allocation3 + $0x390] sm:$0xff] }
 0x5de   :  { %10079 = vst [vmem:[#allocation116_spill] sm:$0xff] %v8325_v42  ;;  %10080 = vst [vmem:[#allocation118_spill] sm:$0xff] %v8327_v26  ;;  %v8329_v24 = vld [vmem:[#allocation3 + $0x398] sm:$0xff]  ;;  %v8331_v43 = vld [vmem:[#allocation3 + $0x3a0] sm:$0xff] }
 0x5df   :  { %10081 = vst [vmem:[#allocation125_spill] sm:$0xff] %v8329_v24  ;;  %10082 = vst [vmem:[#allocation127_spill] sm:$0xff] %v8331_v43  ;;  %v8333_v45 = vld [vmem:[#allocation3 + $0x3a8] sm:$0xff]  ;;  %v8335_v40 = vld [vmem:[#allocation3 + $0x3b0] sm:$0xff] }
 0x5e0   :  { %10083 = vst [vmem:[#allocation124_spill] sm:$0xff] %v8333_v45  ;;  %10084 = vst [vmem:[#allocation126_spill] sm:$0xff] %v8335_v40  ;;  %v8337_v8 = vld [vmem:[#allocation3 + $0x3b8] sm:$0xff]  ;;  %v8339_v61 = vld [vmem:[#allocation3 + $0x3c0] sm:$0xff] }
 0x5e1   :  { %10085 = vst [vmem:[#allocation133_spill] sm:$0xff] %v8337_v8  ;;  %10086 = vst [vmem:[#allocation135_spill] sm:$0xff] %v8339_v61  ;;  %v8341_v27 = vld [vmem:[#allocation3 + $0x3c8] sm:$0xff]  ;;  %v8343_v25 = vld [vmem:[#allocation3 + $0x3d0] sm:$0xff] }
 0x5e2   :  { %10087 = vst [vmem:[#allocation132_spill] sm:$0xff] %v8341_v27  ;;  %10088 = vst [vmem:[#allocation134_spill] sm:$0xff] %v8343_v25  ;;  %v8345_v52 = vld [vmem:[#allocation3 + $0x3d8] sm:$0xff]  ;;  %v8347_v42 = vld [vmem:[#allocation3 + $0x3e0] sm:$0xff] }
 0x5e3   :  { %10089 = vst [vmem:[#allocation141_spill] sm:$0xff] %v8345_v52  ;;  %10090 = vst [vmem:[#allocation143_spill] sm:$0xff] %v8347_v42  ;;  %v8349_v26 = vld [vmem:[#allocation3 + $0x3e8] sm:$0xff]  ;;  %v8351_v24 = vld [vmem:[#allocation3 + $0x3f0] sm:$0xff] }
 0x5e4   :  { %10091 = vst [vmem:[#allocation140_spill] sm:$0xff] %v8349_v26  ;;  %10092 = vst [vmem:[#allocation142_spill] sm:$0xff] %v8351_v24  ;;  %v8353_v43 = vld [vmem:[#allocation3 + $0x3f8] sm:$0xff]  ;;  %v8355_v45 = vld [vmem:[#allocation3 + $0x400] sm:$0xff] }
 0x5e5   :  { %10093 = vst [vmem:[#allocation149_spill] sm:$0xff] %v8353_v43  ;;  %10094 = vst [vmem:[#allocation151_spill] sm:$0xff] %v8355_v45  ;;  %v8357_v40 = vld [vmem:[#allocation3 + $0x408] sm:$0xff]  ;;  %v8359_v8 = vld [vmem:[#allocation3 + $0x410] sm:$0xff] }
 0x5e6   :  { %10095 = vst [vmem:[#allocation148_spill] sm:$0xff] %v8357_v40  ;;  %10096 = vst [vmem:[#allocation150_spill] sm:$0xff] %v8359_v8  ;;  %v8361_v61 = vld [vmem:[#allocation3 + $0x418] sm:$0xff]  ;;  %v8363_v27 = vld [vmem:[#allocation3 + $0x420] sm:$0xff] }
 0x5e7   :  { %10097 = vst [vmem:[#allocation157_spill] sm:$0xff] %v8361_v61  ;;  %10098 = vst [vmem:[#allocation159_spill] sm:$0xff] %v8363_v27  ;;  %v8365_v25 = vld [vmem:[#allocation3 + $0x428] sm:$0xff]  ;;  %v8367_v52 = vld [vmem:[#allocation3 + $0x430] sm:$0xff] }
 0x5e8   :  { %10099 = vst [vmem:[#allocation156_spill] sm:$0xff] %v8365_v25  ;;  %10100 = vst [vmem:[#allocation158_spill] sm:$0xff] %v8367_v52  ;;  %v8369_v42 = vld [vmem:[#allocation3 + $0x438] sm:$0xff]  ;;  %v8371_v26 = vld [vmem:[#allocation3 + $0x440] sm:$0xff] }
 0x5e9   :  { %10101 = vst [vmem:[#allocation165_spill] sm:$0xff] %v8369_v42  ;;  %10102 = vst [vmem:[#allocation167_spill] sm:$0xff] %v8371_v26  ;;  %v8373_v24 = vld [vmem:[#allocation3 + $0x448] sm:$0xff]  ;;  %v8375_v43 = vld [vmem:[#allocation3 + $0x450] sm:$0xff] }
 0x5ea   :  { %10103 = vst [vmem:[#allocation164_spill] sm:$0xff] %v8373_v24  ;;  %10104 = vst [vmem:[#allocation166_spill] sm:$0xff] %v8375_v43  ;;  %v8377_v45 = vld [vmem:[#allocation3 + $0x458] sm:$0xff]  ;;  %v8379_v40 = vld [vmem:[#allocation3 + $0x460] sm:$0xff] }
 0x5eb   :  { %10105 = vst [vmem:[#allocation173_spill] sm:$0xff] %v8377_v45  ;;  %10106 = vst [vmem:[#allocation175_spill] sm:$0xff] %v8379_v40  ;;  %v8381_v8 = vld [vmem:[#allocation3 + $0x468] sm:$0xff]  ;;  %v8383_v61 = vld [vmem:[#allocation3 + $0x470] sm:$0xff] }
 0x5ec   :  { %10107 = vst [vmem:[#allocation172_spill] sm:$0xff] %v8381_v8  ;;  %10108 = vst [vmem:[#allocation174_spill] sm:$0xff] %v8383_v61  ;;  %v8385_v27 = vld [vmem:[#allocation3 + $0x478] sm:$0xff]  ;;  %v8387_v25 = vld [vmem:[#allocation3 + $0x480] sm:$0xff] }
 0x5ed   :  { %10109 = vst [vmem:[#allocation181_spill] sm:$0xff] %v8385_v27  ;;  %10110 = vst [vmem:[#allocation183_spill] sm:$0xff] %v8387_v25  ;;  %v8389_v52 = vld [vmem:[#allocation3 + $0x488] sm:$0xff]  ;;  %v8391_v42 = vld [vmem:[#allocation3 + $0x490] sm:$0xff] }
 0x5ee   :  { %10111 = vst [vmem:[#allocation180_spill] sm:$0xff] %v8389_v52  ;;  %10112 = vst [vmem:[#allocation182_spill] sm:$0xff] %v8391_v42  ;;  %v8393_v26 = vld [vmem:[#allocation3 + $0x498] sm:$0xff]  ;;  %v8395_v24 = vld [vmem:[#allocation3 + $0x4a0] sm:$0xff] }
 0x5ef   :  { %10113 = vst [vmem:[#allocation189_spill] sm:$0xff] %v8393_v26  ;;  %10114 = vst [vmem:[#allocation191_spill] sm:$0xff] %v8395_v24  ;;  %v8397_v43 = vld [vmem:[#allocation3 + $0x4a8] sm:$0xff]  ;;  %v8399_v45 = vld [vmem:[#allocation3 + $0x4b0] sm:$0xff] }
 0x5f0   :  { %10115 = vst [vmem:[#allocation188_spill] sm:$0xff] %v8397_v43  ;;  %10116 = vst [vmem:[#allocation190_spill] sm:$0xff] %v8399_v45  ;;  %v8401_v40 = vld [vmem:[#allocation3 + $0x4b8] sm:$0xff]  ;;  %v8403_v8 = vld [vmem:[#allocation3 + $0x4c0] sm:$0xff] }
 0x5f1   :  { %10117 = vst [vmem:[#allocation197_spill] sm:$0xff] %v8401_v40  ;;  %10118 = vst [vmem:[#allocation199_spill] sm:$0xff] %v8403_v8  ;;  %v8405_v61 = vld [vmem:[#allocation3 + $0x4c8] sm:$0xff]  ;;  %v8407_v27 = vld [vmem:[#allocation3 + $0x4d0] sm:$0xff] }
 0x5f2   :  { %10119 = vst [vmem:[#allocation196_spill] sm:$0xff] %v8405_v61  ;;  %10120 = vst [vmem:[#allocation198_spill] sm:$0xff] %v8407_v27  ;;  %v8409_v25 = vld [vmem:[#allocation3 + $0x4d8] sm:$0xff]  ;;  %v8411_v52 = vld [vmem:[#allocation3 + $0x4e0] sm:$0xff] }
 0x5f3   :  { %10121 = vst [vmem:[#allocation205_spill] sm:$0xff] %v8409_v25  ;;  %10122 = vst [vmem:[#allocation207_spill] sm:$0xff] %v8411_v52  ;;  %v8413_v42 = vld [vmem:[#allocation3 + $0x4e8] sm:$0xff]  ;;  %v8415_v26 = vld [vmem:[#allocation3 + $0x4f0] sm:$0xff] }
 0x5f4   :  { %10123 = vst [vmem:[#allocation204_spill] sm:$0xff] %v8413_v42  ;;  %10124 = vst [vmem:[#allocation206_spill] sm:$0xff] %v8415_v26  ;;  %v8417_v24 = vld [vmem:[#allocation3 + $0x4f8] sm:$0xff]  ;;  %v8419_v43 = vld [vmem:[#allocation3 + $0x500] sm:$0xff] }
 0x5f5   :  { %10125 = vst [vmem:[#allocation213_spill] sm:$0xff] %v8417_v24  ;;  %10126 = vst [vmem:[#allocation215_spill] sm:$0xff] %v8419_v43  ;;  %v8421_v45 = vld [vmem:[#allocation3 + $0x508] sm:$0xff]  ;;  %v8423_v40 = vld [vmem:[#allocation3 + $0x510] sm:$0xff] }
 0x5f6   :  { %10127 = vst [vmem:[#allocation212_spill] sm:$0xff] %v8421_v45  ;;  %10128 = vst [vmem:[#allocation214_spill] sm:$0xff] %v8423_v40  ;;  %v8425_v8 = vld [vmem:[#allocation3 + $0x518] sm:$0xff]  ;;  %v8427_v61 = vld [vmem:[#allocation3 + $0x520] sm:$0xff] }
 0x5f7   :  { %10129 = vst [vmem:[#allocation221_spill] sm:$0xff] %v8425_v8  ;;  %10130 = vst [vmem:[#allocation223_spill] sm:$0xff] %v8427_v61  ;;  %v8429_v27 = vld [vmem:[#allocation3 + $0x528] sm:$0xff]  ;;  %v8431_v25 = vld [vmem:[#allocation3 + $0x530] sm:$0xff] }
 0x5f8   :  { %10131 = vst [vmem:[#allocation220_spill] sm:$0xff] %v8429_v27  ;;  %10132 = vst [vmem:[#allocation222_spill] sm:$0xff] %v8431_v25  ;;  %v8433_v52 = vld [vmem:[#allocation3 + $0x538] sm:$0xff]  ;;  %v8435_v42 = vld [vmem:[#allocation3 + $0x540] sm:$0xff] }
 0x5f9   :  { %10133 = vst [vmem:[#allocation229_spill] sm:$0xff] %v8433_v52  ;;  %10134 = vst [vmem:[#allocation231_spill] sm:$0xff] %v8435_v42  ;;  %v8437_v26 = vld [vmem:[#allocation3 + $0x548] sm:$0xff]  ;;  %v8439_v24 = vld [vmem:[#allocation3 + $0x550] sm:$0xff] }
 0x5fa   :  { %10135 = vst [vmem:[#allocation228_spill] sm:$0xff] %v8437_v26  ;;  %10136 = vst [vmem:[#allocation230_spill] sm:$0xff] %v8439_v24  ;;  %v8441_v43 = vld [vmem:[#allocation3 + $0x558] sm:$0xff]  ;;  %v8443_v45 = vld [vmem:[#allocation3 + $0x560] sm:$0xff] }
 0x5fb   :  { %10137 = vst [vmem:[#allocation237_spill] sm:$0xff] %v8441_v43  ;;  %10138 = vst [vmem:[#allocation239_spill] sm:$0xff] %v8443_v45  ;;  %v8445_v40 = vld [vmem:[#allocation3 + $0x568] sm:$0xff]  ;;  %v8447_v8 = vld [vmem:[#allocation3 + $0x570] sm:$0xff] }
 0x5fc   :  { %10139 = vst [vmem:[#allocation236_spill] sm:$0xff] %v8445_v40  ;;  %10140 = vst [vmem:[#allocation238_spill] sm:$0xff] %v8447_v8  ;;  %v8449_v61 = vld [vmem:[#allocation3 + $0x578] sm:$0xff]  ;;  %v8451_v27 = vld [vmem:[#allocation3 + $0x580] sm:$0xff] }
 0x5fd   :  { %10141 = vst [vmem:[#allocation245_spill] sm:$0xff] %v8449_v61  ;;  %10142 = vst [vmem:[#allocation247_spill] sm:$0xff] %v8451_v27  ;;  %v8453_v25 = vld [vmem:[#allocation3 + $0x588] sm:$0xff]  ;;  %v8455_v52 = vld [vmem:[#allocation3 + $0x590] sm:$0xff] }
 0x5fe   :  { %10143 = vst [vmem:[#allocation244_spill] sm:$0xff] %v8453_v25  ;;  %10144 = vst [vmem:[#allocation246_spill] sm:$0xff] %v8455_v52  ;;  %v8457_v42 = vld [vmem:[#allocation3 + $0x598] sm:$0xff]  ;;  %v8459_v26 = vld [vmem:[#allocation3 + $0x5a0] sm:$0xff] }
 0x5ff   :  { %10145 = vst [vmem:[#allocation253_spill] sm:$0xff] %v8457_v42  ;;  %10146 = vst [vmem:[#allocation255_spill] sm:$0xff] %v8459_v26  ;;  %v8461_v24 = vld [vmem:[#allocation3 + $0x5a8] sm:$0xff]  ;;  %v8463_v43 = vld [vmem:[#allocation3 + $0x5b0] sm:$0xff] }
 0x600   :  { %10147 = vst [vmem:[#allocation252_spill] sm:$0xff] %v8461_v24  ;;  %10148 = vst [vmem:[#allocation254_spill] sm:$0xff] %v8463_v43  ;;  %v8465_v45 = vld [vmem:[#allocation3 + $0x5b8] sm:$0xff]  ;;  %v8467_v40 = vld [vmem:[#allocation3 + $0x5c0] sm:$0xff] }
 0x601   :  { %10149 = vst [vmem:[#allocation261_spill] sm:$0xff] %v8465_v45  ;;  %10150 = vst [vmem:[#allocation263_spill] sm:$0xff] %v8467_v40  ;;  %v8469_v8 = vld [vmem:[#allocation3 + $0x5c8] sm:$0xff]  ;;  %v8471_v61 = vld [vmem:[#allocation3 + $0x5d0] sm:$0xff] }
 0x602   :  { %10151 = vst [vmem:[#allocation260_spill] sm:$0xff] %v8469_v8  ;;  %10152 = vst [vmem:[#allocation262_spill] sm:$0xff] %v8471_v61  ;;  %v8473_v27 = vld [vmem:[#allocation3 + $0x5d8] sm:$0xff]  ;;  %v8475_v25 = vld [vmem:[#allocation3 + $0x5e0] sm:$0xff] }
 0x603   :  { %10153 = vst [vmem:[#allocation48_spill] sm:$0xff] %v8473_v27  ;;  %10154 = vst [vmem:[#allocation43_spill] sm:$0xff] %v8475_v25  ;;  %v8477_v52 = vld [vmem:[#allocation3 + $0x5e8] sm:$0xff]  ;;  %v8479_v42 = vld [vmem:[#allocation3 + $0x5f0] sm:$0xff] }
 0x604   :  { %10155 = vst [vmem:[#allocation49_spill] sm:$0xff] %v8477_v52  ;;  %10156 = vst [vmem:[#allocation44_spill] sm:$0xff] %v8479_v42  ;;  %v8481_v26 = vld [vmem:[#allocation3 + $0x5f8] sm:$0xff]  ;;  %v8483_v24 = vld [vmem:[#allocation3 + $0x600] sm:$0xff] }
 0x605   :  { %10157 = vst [vmem:[#allocation96_spill] sm:$0xff] %v8481_v26  ;;  %10158 = vst [vmem:[#allocation98_spill] sm:$0xff] %v8483_v24  ;;  %v8485_v43 = vld [vmem:[#allocation3 + $0x608] sm:$0xff]  ;;  %v8487_v45 = vld [vmem:[#allocation3 + $0x610] sm:$0xff] }
 0x606   :  { %10159 = vst [vmem:[#allocation105_spill] sm:$0xff] %v8485_v43  ;;  %10160 = vst [vmem:[#allocation107_spill] sm:$0xff] %v8487_v45  ;;  %v8489_v40 = vld [vmem:[#allocation3 + $0x618] sm:$0xff]  ;;  %v8491_v8 = vld [vmem:[#allocation3 + $0x620] sm:$0xff] }
 0x607   :  { %10161 = vst [vmem:[#allocation104_spill] sm:$0xff] %v8489_v40  ;;  %10162 = vst [vmem:[#allocation106_spill] sm:$0xff] %v8491_v8  ;;  %v8493_v61 = vld [vmem:[#allocation3 + $0x628] sm:$0xff]  ;;  %v8495_v27 = vld [vmem:[#allocation3 + $0x630] sm:$0xff] }
 0x608   :  { %10163 = vst [vmem:[#allocation113_spill] sm:$0xff] %v8493_v61  ;;  %10164 = vst [vmem:[#allocation115_spill] sm:$0xff] %v8495_v27  ;;  %v8497_v25 = vld [vmem:[#allocation3 + $0x638] sm:$0xff]  ;;  %v8499_v52 = vld [vmem:[#allocation3 + $0x640] sm:$0xff] }
 0x609   :  { %10165 = vst [vmem:[#allocation112_spill] sm:$0xff] %v8497_v25  ;;  %10166 = vst [vmem:[#allocation114_spill] sm:$0xff] %v8499_v52  ;;  %v8501_v42 = vld [vmem:[#allocation3 + $0x648] sm:$0xff]  ;;  %v8503_v26 = vld [vmem:[#allocation3 + $0x650] sm:$0xff] }
 0x60a   :  { %10167 = vst [vmem:[#allocation121_spill] sm:$0xff] %v8501_v42  ;;  %10168 = vst [vmem:[#allocation123_spill] sm:$0xff] %v8503_v26  ;;  %v8505_v24 = vld [vmem:[#allocation3 + $0x658] sm:$0xff]  ;;  %v8507_v43 = vld [vmem:[#allocation3 + $0x660] sm:$0xff] }
 0x60b   :  { %10169 = vst [vmem:[#allocation120_spill] sm:$0xff] %v8505_v24  ;;  %10170 = vst [vmem:[#allocation97_spill] sm:$0xff] %v8507_v43  ;;  %v8509_v45 = vld [vmem:[#allocation3 + $0x668] sm:$0xff]  ;;  %v8511_v40 = vld [vmem:[#allocation3 + $0x670] sm:$0xff] }
 0x60c   :  { %10171 = vst [vmem:[#allocation122_spill] sm:$0xff] %v8509_v45  ;;  %10172 = vst [vmem:[#allocation129_spill] sm:$0xff] %v8511_v40  ;;  %v8513_v8 = vld [vmem:[#allocation3 + $0x678] sm:$0xff]  ;;  %v8515_v61 = vld [vmem:[#allocation3 + $0x680] sm:$0xff] }
 0x60d   :  { %10173 = vst [vmem:[#allocation131_spill] sm:$0xff] %v8513_v8  ;;  %10174 = vst [vmem:[#allocation128_spill] sm:$0xff] %v8515_v61  ;;  %v8517_v27 = vld [vmem:[#allocation3 + $0x688] sm:$0xff]  ;;  %v8519_v25 = vld [vmem:[#allocation3 + $0x690] sm:$0xff] }
 0x60e   :  { %10175 = vst [vmem:[#allocation99_spill] sm:$0xff] %v8517_v27  ;;  %10176 = vst [vmem:[#allocation130_spill] sm:$0xff] %v8519_v25  ;;  %v8521_v52 = vld [vmem:[#allocation3 + $0x698] sm:$0xff]  ;;  %v8523_v42 = vld [vmem:[#allocation3 + $0x6a0] sm:$0xff] }
 0x60f   :  { %10177 = vst [vmem:[#allocation137_spill] sm:$0xff] %v8521_v52  ;;  %10178 = vst [vmem:[#allocation139_spill] sm:$0xff] %v8523_v42  ;;  %v8525_v26 = vld [vmem:[#allocation3 + $0x6a8] sm:$0xff]  ;;  %v8527_v24 = vld [vmem:[#allocation3 + $0x6b0] sm:$0xff] }
 0x610   :  { %10179 = vst [vmem:[#allocation47_spill] sm:$0xff] %v8525_v26  ;;  %10180 = vst [vmem:[#allocation42_spill] sm:$0xff] %v8527_v24  ;;  %v8529_v43 = vld [vmem:[#allocation3 + $0x6b8] sm:$0xff]  ;;  %v8531_v45 = vld [vmem:[#allocation3 + $0x6c0] sm:$0xff] }
 0x611   :  { %10181 = vst [vmem:[#allocation136_spill] sm:$0xff] %v8529_v43  ;;  %10182 = vst [vmem:[#allocation138_spill] sm:$0xff] %v8531_v45  ;;  %v8533_v40 = vld [vmem:[#allocation3 + $0x6c8] sm:$0xff]  ;;  %v8535_v8 = vld [vmem:[#allocation3 + $0x6d0] sm:$0xff] }
 0x612   :  { %10183 = vst [vmem:[#allocation145_spill] sm:$0xff] %v8533_v40  ;;  %10184 = vst [vmem:[#allocation147_spill] sm:$0xff] %v8535_v8  ;;  %v8537_v61 = vld [vmem:[#allocation3 + $0x6d8] sm:$0xff]  ;;  %v8539_v27 = vld [vmem:[#allocation3 + $0x6e0] sm:$0xff] }
 0x613   :  { %10185 = vst [vmem:[#allocation144_spill] sm:$0xff] %v8537_v61  ;;  %10186 = vst [vmem:[#allocation146_spill] sm:$0xff] %v8539_v27  ;;  %v8541_v25 = vld [vmem:[#allocation3 + $0x6e8] sm:$0xff]  ;;  %v8543_v52 = vld [vmem:[#allocation3 + $0x6f0] sm:$0xff] }
 0x614   :  { %10187 = vst [vmem:[#allocation153_spill] sm:$0xff] %v8541_v25  ;;  %10188 = vst [vmem:[#allocation155_spill] sm:$0xff] %v8543_v52  ;;  %v8545_v42 = vld [vmem:[#allocation3 + $0x6f8] sm:$0xff]  ;;  %v8547_v26 = vld [vmem:[#allocation3 + $0x700] sm:$0xff] }
 0x615   :  { %10189 = vst [vmem:[#allocation152_spill] sm:$0xff] %v8545_v42  ;;  %10190 = vst [vmem:[#allocation154_spill] sm:$0xff] %v8547_v26  ;;  %v8549_v24 = vld [vmem:[#allocation3 + $0x708] sm:$0xff]  ;;  %v8551_v43 = vld [vmem:[#allocation3 + $0x710] sm:$0xff] }
 0x616   :  { %10191 = vst [vmem:[#allocation161_spill] sm:$0xff] %v8549_v24  ;;  %10192 = vst [vmem:[#allocation163_spill] sm:$0xff] %v8551_v43  ;;  %v8553_v45 = vld [vmem:[#allocation3 + $0x718] sm:$0xff]  ;;  %v8555_v40 = vld [vmem:[#allocation3 + $0x720] sm:$0xff] }
 0x617   :  { %10193 = vst [vmem:[#allocation160_spill] sm:$0xff] %v8553_v45  ;;  %10194 = vst [vmem:[#allocation162_spill] sm:$0xff] %v8555_v40  ;;  %v8557_v8 = vld [vmem:[#allocation3 + $0x728] sm:$0xff]  ;;  %v8559_v61 = vld [vmem:[#allocation3 + $0x730] sm:$0xff] }
 0x618   :  { %10195 = vst [vmem:[#allocation169_spill] sm:$0xff] %v8557_v8  ;;  %10196 = vst [vmem:[#allocation171_spill] sm:$0xff] %v8559_v61  ;;  %v8561_v27 = vld [vmem:[#allocation3 + $0x738] sm:$0xff]  ;;  %v8563_v25 = vld [vmem:[#allocation3 + $0x740] sm:$0xff] }
 0x619   :  { %10197 = vst [vmem:[#allocation168_spill] sm:$0xff] %v8561_v27  ;;  %10198 = vst [vmem:[#allocation170_spill] sm:$0xff] %v8563_v25  ;;  %v8565_v52 = vld [vmem:[#allocation3 + $0x748] sm:$0xff]  ;;  %v8567_v42 = vld [vmem:[#allocation3 + $0x750] sm:$0xff] }
 0x61a   :  { %10199 = vst [vmem:[#allocation177_spill] sm:$0xff] %v8565_v52  ;;  %10200 = vst [vmem:[#allocation179_spill] sm:$0xff] %v8567_v42  ;;  %v8569_v26 = vld [vmem:[#allocation3 + $0x758] sm:$0xff]  ;;  %v8571_v24 = vld [vmem:[#allocation3 + $0x760] sm:$0xff] }
 0x61b   :  { %10201 = vst [vmem:[#allocation176_spill] sm:$0xff] %v8569_v26  ;;  %10202 = vst [vmem:[#allocation178_spill] sm:$0xff] %v8571_v24  ;;  %v8573_v43 = vld [vmem:[#allocation3 + $0x768] sm:$0xff]  ;;  %v8575_v45 = vld [vmem:[#allocation3 + $0x770] sm:$0xff] }
 0x61c   :  { %10203 = vst [vmem:[#allocation185_spill] sm:$0xff] %v8573_v43  ;;  %10204 = vst [vmem:[#allocation187_spill] sm:$0xff] %v8575_v45  ;;  %v8577_v40 = vld [vmem:[#allocation3 + $0x778] sm:$0xff]  ;;  %v8579_v61 = vld [vmem:[#allocation3 + $0x780] sm:$0xff] }
 0x61d   :  { %10205 = vst [vmem:[#allocation184_spill] sm:$0xff] %v8577_v40  ;;  %10206 = vst [vmem:[#allocation186_spill] sm:$0xff] %v8579_v61  ;;  %v8581_v27 = vld [vmem:[#allocation3 + $0x788] sm:$0xff]  ;;  %v8583_v8 = vld [vmem:[#allocation3 + $0x790] sm:$0xff] }
 0x61e   :  { %10207 = vst [vmem:[#allocation193_spill] sm:$0xff] %v8581_v27  ;;  %10208 = vst [vmem:[#allocation195_spill] sm:$0xff] %v8583_v8  ;;  %v8585_v25 = vld [vmem:[#allocation3 + $0x798] sm:$0xff]  ;;  %v8587_v42 = vld [vmem:[#allocation3 + $0x7a0] sm:$0xff] }
 0x61f   :  { %10209 = vst [vmem:[#allocation192_spill] sm:$0xff] %v8585_v25  ;;  %10210 = vst [vmem:[#allocation194_spill] sm:$0xff] %v8587_v42  ;;  %v8589_v24 = vld [vmem:[#allocation3 + $0x7a8] sm:$0xff]  ;;  %v8591_v43 = vld [vmem:[#allocation3 + $0x7b0] sm:$0xff] }
 0x620   :  { %10211 = vst [vmem:[#allocation201_spill] sm:$0xff] %v8589_v24  ;;  %10212 = vst [vmem:[#allocation203_spill] sm:$0xff] %v8591_v43  ;;  %v8593_v45 = vld [vmem:[#allocation3 + $0x7b8] sm:$0xff]  ;;  %v8595_v40 = vld [vmem:[#allocation3 + $0x7c0] sm:$0xff] }
 0x621   :  { %10213 = vst [vmem:[#allocation200_spill] sm:$0xff] %v8593_v45  ;;  %10214 = vst [vmem:[#allocation202_spill] sm:$0xff] %v8595_v40  ;;  %v8597_v26 = vld [vmem:[#allocation3 + $0x7c8] sm:$0xff]  ;;  %v8599_v61 = vld [vmem:[#allocation3 + $0x7d0] sm:$0xff] }
 0x622   :  { %10215 = vst [vmem:[#allocation209_spill] sm:$0xff] %v8597_v26  ;;  %10216 = vst [vmem:[#allocation211_spill] sm:$0xff] %v8599_v61  ;;  %v8601_v27 = vld [vmem:[#allocation3 + $0x7d8] sm:$0xff]  ;;  %v8603_v8 = vld [vmem:[#allocation3 + $0x7e0] sm:$0xff] }
 0x623   :  { %10217 = vst [vmem:[#allocation208_spill] sm:$0xff] %v8601_v27  ;;  %10218 = vst [vmem:[#allocation210_spill] sm:$0xff] %v8603_v8  ;;  %v8605_v25 = vld [vmem:[#allocation3 + $0x7e8] sm:$0xff]  ;;  %v8607_v42 = vld [vmem:[#allocation3 + $0x7f0] sm:$0xff] }
 0x624   :  { %10219 = vst [vmem:[#allocation217_spill] sm:$0xff] %v8605_v25  ;;  %10220 = vst [vmem:[#allocation219_spill] sm:$0xff] %v8607_v42  ;;  %v8609_v24 = vld [vmem:[#allocation3 + $0x7f8] sm:$0xff] }
 0x625   :  { %10221 = vst [vmem:[#allocation216_spill] sm:$0xff] %v8609_v24 }
 0x626   :  { %3182 = dma.general %s9391_s3, 16384, %s3161_s0, %s6555_s12, %s6556_s13, [#allocation28], %s6650_s19, 0  }
 0x627   :  { %6521 = dma.done.wait [#allocation6 + $0x1], 32768 }
 0x628   :  { %6522 = vsyncadd [#allocation6 + $0x1], 4294934528  ;;  %3473 = vmatprep.mubr.bf16.mxu0 %v8086_v16  ;;  %3559 = vmatprep.mubr.bf16.mxu1 %v8086_v16  ;;  %4229 = sst [smem:[#allocation30]] %s6538_s18  ;;  %v3186_v42 = vld [vmem:[#allocation3 + $0x808] sm:$0xff]  ;;  %v3188_v8 = vld [vmem:[#allocation3 + $0x818] sm:$0xff]  ;;  %s4211_s16 = scalar_lea.hbm %s9391_s3, 16384 }
 0x629   :  { %4231 = sst [smem:[#allocation30 + $0x1]] %s6538_s18  ;;  %v3185_v24 = vld [vmem:[#allocation3 + $0x800] sm:$0xff]  ;;  %3441 = vmatprep.subr.bf16.mxu0 %v3186_v42  ;;  %3527 = vmatprep.subr.bf16.mxu1 %v3188_v8  ;;  %v3187_v25 = vld [vmem:[#allocation3 + $0x810] sm:$0xff]  ;;  %v3194_v43 = vld [vmem:[#allocation3 + $0x848] sm:$0xff]  ;;  %s6558_s17 = smov [#allocation7 + $0x1]  }
 0x62a   :  { %4233 = sst [smem:[#allocation30 + $0x2]] %s6539_s20  ;;  %v3196_v45 = vld [vmem:[#allocation3 + $0x858] sm:$0xff]  ;;  %3442 = vmatpush1.bf16.msra.mxu0 %v3185_v24  ;;  %3528 = vmatpush1.bf16.msra.mxu1 %v3187_v25  ;;  %v3193_v61 = vld [vmem:[#allocation3 + $0x840] sm:$0xff]  ;;  %v3195_v40 = vld [vmem:[#allocation3 + $0x850] sm:$0xff]  ;;  %s6559_s1 = smov [#allocation29]  }
 0x62b   :  { %4235 = sst [smem:[#allocation30 + $0x3]] %s6534_s21  ;;  %3443 = vmatprep.subr.bf16.mxu0 %v3194_v43  ;;  %3529 = vmatprep.subr.bf16.mxu1 %v3196_v45  ;;  %v3202_v27 = vld [vmem:[#allocation3 + $0x888] sm:$0xff]  ;;  %v3204_v26 = vld [vmem:[#allocation3 + $0x898] sm:$0xff]  ;;  %v3201_v52 = vld [vmem:[#allocation3 + $0x880] sm:$0xff] }
 0x62c   :  { %4237 = sst [smem:[#allocation30 + $0x4]] %s6530_s7  ;;  %v3203_v42 = vld [vmem:[#allocation3 + $0x890] sm:$0xff]  ;;  %v3210_v8 = vld [vmem:[#allocation3 + $0x8c8] sm:$0xff]  ;;  %v3212_v53 = vld [vmem:[#allocation3 + $0x8d8] sm:$0xff] }
 0x62d   :  { %4239 = sst [smem:[#allocation30 + $0x5]] %s6537_s5  ;;  %v3209_v24 = vld [vmem:[#allocation3 + $0x8c0] sm:$0xff]  ;;  %v3211_v25 = vld [vmem:[#allocation3 + $0x8d0] sm:$0xff]  ;;  %v3218_v43 = vld [vmem:[#allocation3 + $0x908] sm:$0xff] }
 0x62e   :  { %4241 = sst [smem:[#allocation30 + $0x6]] %s6553_s2  ;;  %3444 = vmatpush1.bf16.msra.mxu0 %v3193_v61  ;;  %3530 = vmatpush1.bf16.msra.mxu1 %v3195_v40  ;;  %v3220_v45 = vld [vmem:[#allocation3 + $0x918] sm:$0xff]  ;;  %v3217_v61 = vld [vmem:[#allocation3 + $0x900] sm:$0xff]  ;;  %v3219_v40 = vld [vmem:[#allocation3 + $0x910] sm:$0xff] }
 0x62f   :  { %4243 = sst [smem:[#allocation30 + $0x7]] %s6534_s21  ;;  %3445 = vmatprep.subr.bf16.mxu0 %v3202_v27  ;;  %3531 = vmatprep.subr.bf16.mxu1 %v3204_v26  ;;  %v3226_v27 = vld [vmem:[#allocation3 + $0x948] sm:$0xff]  ;;  %v3228_v26 = vld [vmem:[#allocation3 + $0x958] sm:$0xff]  ;;  %s6557_s21 = smov [#allocation4 + $0x400]  }
 0x630   :  { %4245 = sst [smem:[#allocation30 + $0x8]] %s6539_s20  ;;  %s4225_s5 = sshll.u32 %s6557_s21, 4  ;;  %s4226_s5 = int_to_ptr.vmem [resolvable:$true] %s4225_s5 }
 0x632   :  { %3446 = vmatpush1.bf16.msra.mxu0 %v3201_v52  ;;  %3532 = vmatpush1.bf16.msra.mxu1 %v3203_v42  ;;  %v3225_v52 = vld [vmem:[#allocation3 + $0x940] sm:$0xff]  ;;  %v3227_v42 = vld [vmem:[#allocation3 + $0x950] sm:$0xff] }
 0x633   :  { %3447 = vmatprep.subr.bf16.mxu0 %v3210_v8  ;;  %3533 = vmatprep.subr.bf16.mxu1 %v3212_v53  ;;  %v3234_v8 = vld [vmem:[#allocation3 + $0x988] sm:$0xff]  ;;  %v3236_v53 = vld [vmem:[#allocation3 + $0x998] sm:$0xff] }
 0x636   :  { %3448 = vmatpush1.bf16.msra.mxu0 %v3209_v24  ;;  %3534 = vmatpush1.bf16.msra.mxu1 %v3211_v25  ;;  %v3233_v24 = vld [vmem:[#allocation3 + $0x980] sm:$0xff]  ;;  %v3235_v25 = vld [vmem:[#allocation3 + $0x990] sm:$0xff] }
 0x637   :  { %3449 = vmatprep.subr.bf16.mxu0 %v3218_v43  ;;  %3535 = vmatprep.subr.bf16.mxu1 %v3220_v45  ;;  %v3242_v43 = vld [vmem:[#allocation3 + $0x9c8] sm:$0xff]  ;;  %v3244_v45 = vld [vmem:[#allocation3 + $0x9d8] sm:$0xff] }
 0x63a   :  { %3450 = vmatpush1.bf16.msra.mxu0 %v3217_v61  ;;  %3536 = vmatpush1.bf16.msra.mxu1 %v3219_v40  ;;  %v3241_v61 = vld [vmem:[#allocation3 + $0x9c0] sm:$0xff]  ;;  %v3243_v40 = vld [vmem:[#allocation3 + $0x9d0] sm:$0xff] }
 0x63b   :  { %3451 = vmatprep.subr.bf16.mxu0 %v3226_v27  ;;  %3537 = vmatprep.subr.bf16.mxu1 %v3228_v26  ;;  %v3250_v27 = vld [vmem:[#allocation3 + $0xa08] sm:$0xff]  ;;  %v3252_v26 = vld [vmem:[#allocation3 + $0xa18] sm:$0xff] }
 0x63e   :  { %3452 = vmatpush1.bf16.msra.mxu0 %v3225_v52  ;;  %3538 = vmatpush1.bf16.msra.mxu1 %v3227_v42  ;;  %v3249_v52 = vld [vmem:[#allocation3 + $0xa00] sm:$0xff]  ;;  %v3251_v42 = vld [vmem:[#allocation3 + $0xa10] sm:$0xff] }
 0x63f   :  { %3453 = vmatprep.subr.bf16.mxu0 %v3234_v8  ;;  %3539 = vmatprep.subr.bf16.mxu1 %v3236_v53  ;;  %v3258_v8 = vld [vmem:[#allocation3 + $0xa48] sm:$0xff]  ;;  %v3260_v53 = vld [vmem:[#allocation3 + $0xa58] sm:$0xff] }
 0x642   :  { %3454 = vmatpush1.bf16.msra.mxu0 %v3233_v24  ;;  %3540 = vmatpush1.bf16.msra.mxu1 %v3235_v25  ;;  %v3257_v24 = vld [vmem:[#allocation3 + $0xa40] sm:$0xff]  ;;  %v3259_v25 = vld [vmem:[#allocation3 + $0xa50] sm:$0xff] }
 0x643   :  { %3455 = vmatprep.subr.bf16.mxu0 %v3242_v43  ;;  %3541 = vmatprep.subr.bf16.mxu1 %v3244_v45  ;;  %v3266_v43 = vld [vmem:[#allocation3 + $0xa88] sm:$0xff]  ;;  %v3268_v45 = vld [vmem:[#allocation3 + $0xa98] sm:$0xff] }
 0x646   :  { %3456 = vmatpush1.bf16.msra.mxu0 %v3241_v61  ;;  %3542 = vmatpush1.bf16.msra.mxu1 %v3243_v40  ;;  %v3265_v61 = vld [vmem:[#allocation3 + $0xa80] sm:$0xff]  ;;  %v3267_v40 = vld [vmem:[#allocation3 + $0xa90] sm:$0xff] }
 0x647   :  { %3457 = vmatprep.subr.bf16.mxu0 %v3250_v27  ;;  %3543 = vmatprep.subr.bf16.mxu1 %v3252_v26  ;;  %v3274_v27 = vld [vmem:[#allocation3 + $0xac8] sm:$0xff]  ;;  %v3276_v26 = vld [vmem:[#allocation3 + $0xad8] sm:$0xff] }
 0x64a   :  { %3458 = vmatpush1.bf16.msra.mxu0 %v3249_v52  ;;  %3544 = vmatpush1.bf16.msra.mxu1 %v3251_v42  ;;  %v3273_v52 = vld [vmem:[#allocation3 + $0xac0] sm:$0xff]  ;;  %v3275_v42 = vld [vmem:[#allocation3 + $0xad0] sm:$0xff] }
 0x64b   :  { %3459 = vmatprep.subr.bf16.mxu0 %v3258_v8  ;;  %3545 = vmatprep.subr.bf16.mxu1 %v3260_v53  ;;  %v3282_v8 = vld [vmem:[#allocation3 + $0xb08] sm:$0xff]  ;;  %v3284_v53 = vld [vmem:[#allocation3 + $0xb18] sm:$0xff] }
 0x64e   :  { %3460 = vmatpush1.bf16.msra.mxu0 %v3257_v24  ;;  %3546 = vmatpush1.bf16.msra.mxu1 %v3259_v25  ;;  %v3281_v24 = vld [vmem:[#allocation3 + $0xb00] sm:$0xff]  ;;  %v3283_v25 = vld [vmem:[#allocation3 + $0xb10] sm:$0xff] }
 0x64f   :  { %3461 = vmatprep.subr.bf16.mxu0 %v3266_v43  ;;  %3547 = vmatprep.subr.bf16.mxu1 %v3268_v45  ;;  %v3290_v43 = vld [vmem:[#allocation3 + $0xb48] sm:$0xff]  ;;  %v3292_v45 = vld [vmem:[#allocation3 + $0xb58] sm:$0xff] }
 0x652   :  { %3462 = vmatpush1.bf16.msra.mxu0 %v3265_v61  ;;  %3548 = vmatpush1.bf16.msra.mxu1 %v3267_v40  ;;  %v3289_v61 = vld [vmem:[#allocation3 + $0xb40] sm:$0xff]  ;;  %v3291_v40 = vld [vmem:[#allocation3 + $0xb50] sm:$0xff] }
 0x653   :  { %3463 = vmatprep.subr.bf16.mxu0 %v3274_v27  ;;  %3549 = vmatprep.subr.bf16.mxu1 %v3276_v26  ;;  %v3298_v27 = vld [vmem:[#allocation3 + $0xb88] sm:$0xff]  ;;  %v3300_v26 = vld [vmem:[#allocation3 + $0xb98] sm:$0xff] }
 0x656   :  { %3464 = vmatpush1.bf16.msra.mxu0 %v3273_v52  ;;  %3550 = vmatpush1.bf16.msra.mxu1 %v3275_v42  ;;  %v3297_v52 = vld [vmem:[#allocation3 + $0xb80] sm:$0xff]  ;;  %v3299_v42 = vld [vmem:[#allocation3 + $0xb90] sm:$0xff] }
 0x657   :  { %3465 = vmatprep.subr.bf16.mxu0 %v3282_v8  ;;  %3551 = vmatprep.subr.bf16.mxu1 %v3284_v53  ;;  %v3306_v8 = vld [vmem:[#allocation3 + $0xbc8] sm:$0xff]  ;;  %v3308_v53 = vld [vmem:[#allocation3 + $0xbd8] sm:$0xff] }
 0x65a   :  { %3466 = vmatpush1.bf16.msra.mxu0 %v3281_v24  ;;  %3552 = vmatpush1.bf16.msra.mxu1 %v3283_v25  ;;  %v3305_v24 = vld [vmem:[#allocation3 + $0xbc0] sm:$0xff]  ;;  %v3307_v25 = vld [vmem:[#allocation3 + $0xbd0] sm:$0xff] }
 0x65b   :  { %3467 = vmatprep.subr.bf16.mxu0 %v3290_v43  ;;  %3553 = vmatprep.subr.bf16.mxu1 %v3292_v45  ;;  %v3314_v43 = vld [vmem:[#allocation3 + $0xc08] sm:$0xff]  ;;  %v3316_v45 = vld [vmem:[#allocation3 + $0xc18] sm:$0xff] }
 0x65e   :  { %3468 = vmatpush1.bf16.msra.mxu0 %v3289_v61  ;;  %3554 = vmatpush1.bf16.msra.mxu1 %v3291_v40  ;;  %v3313_v61 = vld [vmem:[#allocation3 + $0xc00] sm:$0xff]  ;;  %v3315_v40 = vld [vmem:[#allocation3 + $0xc10] sm:$0xff] }
 0x65f   :  { %3469 = vmatprep.subr.bf16.mxu0 %v3298_v27  ;;  %3555 = vmatprep.subr.bf16.mxu1 %v3300_v26  ;;  %v3322_v27 = vld [vmem:[#allocation3 + $0xc48] sm:$0xff]  ;;  %v3324_v26 = vld [vmem:[#allocation3 + $0xc58] sm:$0xff] }
 0x662   :  { %3470 = vmatpush1.bf16.msra.mxu0 %v3297_v52  ;;  %3556 = vmatpush1.bf16.msra.mxu1 %v3299_v42  ;;  %v3321_v52 = vld [vmem:[#allocation3 + $0xc40] sm:$0xff]  ;;  %v3323_v42 = vld [vmem:[#allocation3 + $0xc50] sm:$0xff] }
 0x663   :  { %3471 = vmatprep.subr.bf16.mxu0 %v3306_v8  ;;  %3557 = vmatprep.subr.bf16.mxu1 %v3308_v53  ;;  %v3330_v8 = vld [vmem:[#allocation3 + $0xc88] sm:$0xff]  ;;  %v3332_v53 = vld [vmem:[#allocation3 + $0xc98] sm:$0xff] }
 0x666   :  { %3472 = vmatpush1.bf16.msra.mxu0 %v3305_v24  ;;  %3558 = vmatpush1.bf16.msra.mxu1 %v3307_v25  ;;  %v3329_v24 = vld [vmem:[#allocation3 + $0xc80] sm:$0xff]  ;;  %v3331_v25 = vld [vmem:[#allocation3 + $0xc90] sm:$0xff] }
 0x667   :  { %3484 = vmatprep.subr.bf16.mxu0 %v3314_v43  ;;  %3570 = vmatprep.subr.bf16.mxu1 %v3316_v45  ;;  %v3338_v43 = vld [vmem:[#allocation3 + $0xcc8] sm:$0xff]  ;;  %v3340_v45 = vld [vmem:[#allocation3 + $0xcd8] sm:$0xff] }
 0x669   :  { %3474 = vmatmul.mubr.bf16.vlgmr.msra.gmra.mrb[8].mxu0 %v8082_v15  ;;  %3560 = vmatmul.mubr.bf16.vlgmr.msra.gmra.mrb[8].mxu1 %v8082_v15 }
 0x66a   :  { %3485 = vmatpush1.bf16.msra.mxu0 %v3313_v61  ;;  %3571 = vmatpush1.bf16.msra.mxu1 %v3315_v40  ;;  %v3337_v61 = vld [vmem:[#allocation3 + $0xcc0] sm:$0xff]  ;;  %v3339_v40 = vld [vmem:[#allocation3 + $0xcd0] sm:$0xff] }
 0x66b   :  { %3486 = vmatprep.subr.bf16.mxu0 %v3322_v27  ;;  %3572 = vmatprep.subr.bf16.mxu1 %v3324_v26  ;;  %v3346_v27 = vld [vmem:[#allocation3 + $0xd08] sm:$0xff]  ;;  %v3348_v26 = vld [vmem:[#allocation3 + $0xd18] sm:$0xff] }
 0x66c   :  { %3516 = vmatprep.mubr.bf16.mxu0 %v8088_v17  ;;  %3602 = vmatprep.mubr.bf16.mxu1 %v8088_v17 }
 0x66e   :  { %3487 = vmatpush1.bf16.msra.mxu0 %v3321_v52  ;;  %3573 = vmatpush1.bf16.msra.mxu1 %v3323_v42  ;;  %v3345_v52 = vld [vmem:[#allocation3 + $0xd00] sm:$0xff]  ;;  %v3347_v42 = vld [vmem:[#allocation3 + $0xd10] sm:$0xff] }
 0x66f   :  { %3488 = vmatprep.subr.bf16.mxu0 %v3330_v8  ;;  %3574 = vmatprep.subr.bf16.mxu1 %v3332_v53  ;;  %v3354_v8 = vld [vmem:[#allocation3 + $0xd48] sm:$0xff]  ;;  %v3356_v53 = vld [vmem:[#allocation3 + $0xd58] sm:$0xff] }
 0x672   :  { %3489 = vmatpush1.bf16.msra.mxu0 %v3329_v24  ;;  %3575 = vmatpush1.bf16.msra.mxu1 %v3331_v25  ;;  %v3353_v24 = vld [vmem:[#allocation3 + $0xd40] sm:$0xff]  ;;  %v3355_v25 = vld [vmem:[#allocation3 + $0xd50] sm:$0xff] }
 0x673   :  { %3490 = vmatprep.subr.bf16.mxu0 %v3338_v43  ;;  %3576 = vmatprep.subr.bf16.mxu1 %v3340_v45  ;;  %v3362_v43 = vld [vmem:[#allocation3 + $0xd88] sm:$0xff]  ;;  %v3364_v45 = vld [vmem:[#allocation3 + $0xd98] sm:$0xff] }
 0x676   :  { %3491 = vmatpush1.bf16.msra.mxu0 %v3337_v61  ;;  %3577 = vmatpush1.bf16.msra.mxu1 %v3339_v40  ;;  %v3361_v61 = vld [vmem:[#allocation3 + $0xd80] sm:$0xff]  ;;  %v3363_v40 = vld [vmem:[#allocation3 + $0xd90] sm:$0xff] }
 0x677   :  { %3492 = vmatprep.subr.bf16.mxu0 %v3346_v27  ;;  %3578 = vmatprep.subr.bf16.mxu1 %v3348_v26  ;;  %v3370_v27 = vld [vmem:[#allocation3 + $0xdc8] sm:$0xff]  ;;  %v3372_v26 = vld [vmem:[#allocation3 + $0xdd8] sm:$0xff] }
 0x67a   :  { %3493 = vmatpush1.bf16.msra.mxu0 %v3345_v52  ;;  %3579 = vmatpush1.bf16.msra.mxu1 %v3347_v42  ;;  %v3369_v52 = vld [vmem:[#allocation3 + $0xdc0] sm:$0xff]  ;;  %v3371_v42 = vld [vmem:[#allocation3 + $0xdd0] sm:$0xff] }
 0x67b   :  { %3494 = vmatprep.subr.bf16.mxu0 %v3354_v8  ;;  %3580 = vmatprep.subr.bf16.mxu1 %v3356_v53  ;;  %v3378_v8 = vld [vmem:[#allocation3 + $0xe08] sm:$0xff]  ;;  %v3380_v53 = vld [vmem:[#allocation3 + $0xe18] sm:$0xff] }
 0x67e   :  { %3495 = vmatpush1.bf16.msra.mxu0 %v3353_v24  ;;  %3581 = vmatpush1.bf16.msra.mxu1 %v3355_v25  ;;  %v3377_v24 = vld [vmem:[#allocation3 + $0xe00] sm:$0xff]  ;;  %v3379_v25 = vld [vmem:[#allocation3 + $0xe10] sm:$0xff] }
 0x67f   :  { %3496 = vmatprep.subr.bf16.mxu0 %v3362_v43  ;;  %3582 = vmatprep.subr.bf16.mxu1 %v3364_v45  ;;  %v3386_v43 = vld [vmem:[#allocation3 + $0xe48] sm:$0xff]  ;;  %v3388_v45 = vld [vmem:[#allocation3 + $0xe58] sm:$0xff] }
 0x682   :  { %3497 = vmatpush1.bf16.msra.mxu0 %v3361_v61  ;;  %3583 = vmatpush1.bf16.msra.mxu1 %v3363_v40  ;;  %v3385_v61 = vld [vmem:[#allocation3 + $0xe40] sm:$0xff]  ;;  %v3387_v40 = vld [vmem:[#allocation3 + $0xe50] sm:$0xff] }
 0x683   :  { %3498 = vmatprep.subr.bf16.mxu0 %v3370_v27  ;;  %3584 = vmatprep.subr.bf16.mxu1 %v3372_v26  ;;  %v3394_v27 = vld [vmem:[#allocation3 + $0xe88] sm:$0xff]  ;;  %v3396_v26 = vld [vmem:[#allocation3 + $0xe98] sm:$0xff] }
 0x686   :  { %3499 = vmatpush1.bf16.msra.mxu0 %v3369_v52  ;;  %3585 = vmatpush1.bf16.msra.mxu1 %v3371_v42  ;;  %v3393_v52 = vld [vmem:[#allocation3 + $0xe80] sm:$0xff]  ;;  %v3395_v42 = vld [vmem:[#allocation3 + $0xe90] sm:$0xff] }
 0x687   :  { %3500 = vmatprep.subr.bf16.mxu0 %v3378_v8  ;;  %3586 = vmatprep.subr.bf16.mxu1 %v3380_v53  ;;  %v3402_v8 = vld [vmem:[#allocation3 + $0xec8] sm:$0xff]  ;;  %v3404_v53 = vld [vmem:[#allocation3 + $0xed8] sm:$0xff] }
 0x68a   :  { %3501 = vmatpush1.bf16.msra.mxu0 %v3377_v24  ;;  %3587 = vmatpush1.bf16.msra.mxu1 %v3379_v25  ;;  %v3401_v24 = vld [vmem:[#allocation3 + $0xec0] sm:$0xff]  ;;  %v3403_v25 = vld [vmem:[#allocation3 + $0xed0] sm:$0xff] }
 0x68b   :  { %3502 = vmatprep.subr.bf16.mxu0 %v3386_v43  ;;  %3588 = vmatprep.subr.bf16.mxu1 %v3388_v45  ;;  %v3410_v43 = vld [vmem:[#allocation3 + $0xf08] sm:$0xff]  ;;  %v3412_v45 = vld [vmem:[#allocation3 + $0xf18] sm:$0xff] }
 0x68e   :  { %3503 = vmatpush1.bf16.msra.mxu0 %v3385_v61  ;;  %3589 = vmatpush1.bf16.msra.mxu1 %v3387_v40  ;;  %v3409_v61 = vld [vmem:[#allocation3 + $0xf00] sm:$0xff]  ;;  %v3411_v40 = vld [vmem:[#allocation3 + $0xf10] sm:$0xff] }
 0x68f   :  { %3504 = vmatprep.subr.bf16.mxu0 %v3394_v27  ;;  %3590 = vmatprep.subr.bf16.mxu1 %v3396_v26  ;;  %v3418_v27 = vld [vmem:[#allocation3 + $0xf48] sm:$0xff]  ;;  %v3420_v26 = vld [vmem:[#allocation3 + $0xf58] sm:$0xff] }
 0x692   :  { %3505 = vmatpush1.bf16.msra.mxu0 %v3393_v52  ;;  %3591 = vmatpush1.bf16.msra.mxu1 %v3395_v42  ;;  %v3417_v52 = vld [vmem:[#allocation3 + $0xf40] sm:$0xff]  ;;  %v3419_v42 = vld [vmem:[#allocation3 + $0xf50] sm:$0xff] }
 0x693   :  { %3506 = vmatprep.subr.bf16.mxu0 %v3402_v8  ;;  %3592 = vmatprep.subr.bf16.mxu1 %v3404_v53  ;;  %v3426_v8 = vld [vmem:[#allocation3 + $0xf88] sm:$0xff]  ;;  %v3428_v53 = vld [vmem:[#allocation3 + $0xf98] sm:$0xff] }
 0x696   :  { %3507 = vmatpush1.bf16.msra.mxu0 %v3401_v24  ;;  %3593 = vmatpush1.bf16.msra.mxu1 %v3403_v25  ;;  %v3425_v24 = vld [vmem:[#allocation3 + $0xf80] sm:$0xff]  ;;  %v3427_v25 = vld [vmem:[#allocation3 + $0xf90] sm:$0xff] }
 0x697   :  { %3508 = vmatprep.subr.bf16.mxu0 %v3410_v43  ;;  %3594 = vmatprep.subr.bf16.mxu1 %v3412_v45  ;;  %v3434_v43 = vld [vmem:[#allocation3 + $0xfc8] sm:$0xff]  ;;  %v3436_v45 = vld [vmem:[#allocation3 + $0xfd8] sm:$0xff] }
 0x69a   :  { %3509 = vmatpush1.bf16.msra.mxu0 %v3409_v61  ;;  %3595 = vmatpush1.bf16.msra.mxu1 %v3411_v40  ;;  %v3433_v61 = vld [vmem:[#allocation3 + $0xfc0] sm:$0xff]  ;;  %v3435_v40 = vld [vmem:[#allocation3 + $0xfd0] sm:$0xff] }
 0x69b   :  { %3510 = vmatprep.subr.bf16.mxu0 %v3418_v27  ;;  %3596 = vmatprep.subr.bf16.mxu1 %v3420_v26  ;;  %v3190_v27 = vld [vmem:[#allocation3 + $0x828] sm:$0xff]  ;;  %v3192_v26 = vld [vmem:[#allocation3 + $0x838] sm:$0xff] }
 0x69e   :  { %3511 = vmatpush1.bf16.msra.mxu0 %v3417_v52  ;;  %3597 = vmatpush1.bf16.msra.mxu1 %v3419_v42  ;;  %v3189_v52 = vld [vmem:[#allocation3 + $0x820] sm:$0xff]  ;;  %v3191_v42 = vld [vmem:[#allocation3 + $0x830] sm:$0xff] }
 0x69f   :  { %3512 = vmatprep.subr.bf16.mxu0 %v3426_v8  ;;  %3598 = vmatprep.subr.bf16.mxu1 %v3428_v53  ;;  %v3198_v8 = vld [vmem:[#allocation3 + $0x868] sm:$0xff]  ;;  %v3200_v53 = vld [vmem:[#allocation3 + $0x878] sm:$0xff] }
 0x6a2   :  { %3513 = vmatpush1.bf16.msra.mxu0 %v3425_v24  ;;  %3599 = vmatpush1.bf16.msra.mxu1 %v3427_v25  ;;  %v3197_v24 = vld [vmem:[#allocation3 + $0x860] sm:$0xff]  ;;  %v3199_v25 = vld [vmem:[#allocation3 + $0x870] sm:$0xff] }
 0x6a3   :  { %3514 = vmatprep.subr.bf16.mxu0 %v3434_v43  ;;  %3600 = vmatprep.subr.bf16.mxu1 %v3436_v45  ;;  %v3206_v43 = vld [vmem:[#allocation3 + $0x8a8] sm:$0xff]  ;;  %v3208_v45 = vld [vmem:[#allocation3 + $0x8b8] sm:$0xff] }
 0x6a6   :  { %3515 = vmatpush1.bf16.msra.mxu0 %v3433_v61  ;;  %3601 = vmatpush1.bf16.msra.mxu1 %v3435_v40  ;;  %v3205_v61 = vld [vmem:[#allocation3 + $0x8a0] sm:$0xff]  ;;  %v3207_v40 = vld [vmem:[#allocation3 + $0x8b0] sm:$0xff] }
 0x6a7   :  { %3613 = vmatprep.subr.bf16.mxu0 %v3190_v27  ;;  %3699 = vmatprep.subr.bf16.mxu1 %v3192_v26  ;;  %v3214_v27 = vld [vmem:[#allocation3 + $0x8e8] sm:$0xff]  ;;  %v3216_v26 = vld [vmem:[#allocation3 + $0x8f8] sm:$0xff] }
 0x6a9   :  { %3517 = vmatmul.mubr.bf16.vlgmr.msra.gmra.mrb[8].mxu0 %v8084_v34  ;;  %3603 = vmatmul.mubr.bf16.vlgmr.msra.gmra.mrb[8].mxu1 %v8084_v34 }
 0x6aa   :  { %3614 = vmatpush1.bf16.msra.mxu0 %v3189_v52  ;;  %3700 = vmatpush1.bf16.msra.mxu1 %v3191_v42  ;;  %v3213_v52 = vld [vmem:[#allocation3 + $0x8e0] sm:$0xff]  ;;  %v3215_v42 = vld [vmem:[#allocation3 + $0x8f0] sm:$0xff] }
 0x6ab   :  { %3615 = vmatprep.subr.bf16.mxu0 %v3198_v8  ;;  %3701 = vmatprep.subr.bf16.mxu1 %v3200_v53  ;;  %v3222_v8 = vld [vmem:[#allocation3 + $0x928] sm:$0xff]  ;;  %v3224_v53 = vld [vmem:[#allocation3 + $0x938] sm:$0xff] }
 0x6ac   :  { %3645 = vmatprep.mubr.bf16.mxu0 %v8086_v16  ;;  %3731 = vmatprep.mubr.bf16.mxu1 %v8086_v16  ;;  %v3221_v16 = vld [vmem:[#allocation3 + $0x920] sm:$0xff] }
 0x6ae   :  { %3616 = vmatpush1.bf16.msra.mxu0 %v3197_v24  ;;  %3702 = vmatpush1.bf16.msra.mxu1 %v3199_v25  ;;  %v3223_v24 = vld [vmem:[#allocation3 + $0x930] sm:$0xff]  ;;  %v3230_v25 = vld [vmem:[#allocation3 + $0x968] sm:$0xff] }
 0x6af   :  { %3617 = vmatprep.subr.bf16.mxu0 %v3206_v43  ;;  %3703 = vmatprep.subr.bf16.mxu1 %v3208_v45  ;;  %v3232_v43 = vld [vmem:[#allocation3 + $0x978] sm:$0xff]  ;;  %v3229_v45 = vld [vmem:[#allocation3 + $0x960] sm:$0xff] }
 0x6b2   :  { %3618 = vmatpush1.bf16.msra.mxu0 %v3205_v61  ;;  %3704 = vmatpush1.bf16.msra.mxu1 %v3207_v40  ;;  %v3231_v61 = vld [vmem:[#allocation3 + $0x970] sm:$0xff]  ;;  %v3238_v40 = vld [vmem:[#allocation3 + $0x9a8] sm:$0xff] }
 0x6b3   :  { %3619 = vmatprep.subr.bf16.mxu0 %v3214_v27  ;;  %3705 = vmatprep.subr.bf16.mxu1 %v3216_v26  ;;  %v3240_v27 = vld [vmem:[#allocation3 + $0x9b8] sm:$0xff]  ;;  %v3237_v26 = vld [vmem:[#allocation3 + $0x9a0] sm:$0xff] }
 0x6b6   :  { %3620 = vmatpush1.bf16.msra.mxu0 %v3213_v52  ;;  %3706 = vmatpush1.bf16.msra.mxu1 %v3215_v42  ;;  %v3239_v52 = vld [vmem:[#allocation3 + $0x9b0] sm:$0xff]  ;;  %v3246_v42 = vld [vmem:[#allocation3 + $0x9e8] sm:$0xff] }
 0x6b7   :  { %3621 = vmatprep.subr.bf16.mxu0 %v3222_v8  ;;  %3707 = vmatprep.subr.bf16.mxu1 %v3224_v53  ;;  %v3248_v8 = vld [vmem:[#allocation3 + $0x9f8] sm:$0xff]  ;;  %v3245_v53 = vld [vmem:[#allocation3 + $0x9e0] sm:$0xff] }
 0x6ba   :  { %3622 = vmatpush1.bf16.msra.mxu0 %v3221_v16  ;;  %3708 = vmatpush1.bf16.msra.mxu1 %v3223_v24  ;;  %v3247_v16 = vld [vmem:[#allocation3 + $0x9f0] sm:$0xff]  ;;  %v3254_v24 = vld [vmem:[#allocation3 + $0xa28] sm:$0xff] }
 0x6bb   :  { %3623 = vmatprep.subr.bf16.mxu0 %v3230_v25  ;;  %3709 = vmatprep.subr.bf16.mxu1 %v3232_v43  ;;  %v3256_v25 = vld [vmem:[#allocation3 + $0xa38] sm:$0xff]  ;;  %v3253_v43 = vld [vmem:[#allocation3 + $0xa20] sm:$0xff] }
 0x6be   :  { %3624 = vmatpush1.bf16.msra.mxu0 %v3229_v45  ;;  %3710 = vmatpush1.bf16.msra.mxu1 %v3231_v61  ;;  %v3255_v45 = vld [vmem:[#allocation3 + $0xa30] sm:$0xff]  ;;  %v3262_v61 = vld [vmem:[#allocation3 + $0xa68] sm:$0xff] }
 0x6bf   :  { %3625 = vmatprep.subr.bf16.mxu0 %v3238_v40  ;;  %3711 = vmatprep.subr.bf16.mxu1 %v3240_v27  ;;  %v3264_v40 = vld [vmem:[#allocation3 + $0xa78] sm:$0xff]  ;;  %v3261_v27 = vld [vmem:[#allocation3 + $0xa60] sm:$0xff] }
 0x6c2   :  { %3626 = vmatpush1.bf16.msra.mxu0 %v3237_v26  ;;  %3712 = vmatpush1.bf16.msra.mxu1 %v3239_v52  ;;  %v3263_v26 = vld [vmem:[#allocation3 + $0xa70] sm:$0xff]  ;;  %v3270_v52 = vld [vmem:[#allocation3 + $0xaa8] sm:$0xff] }
 0x6c3   :  { %3627 = vmatprep.subr.bf16.mxu0 %v3246_v42  ;;  %3713 = vmatprep.subr.bf16.mxu1 %v3248_v8  ;;  %v3272_v42 = vld [vmem:[#allocation3 + $0xab8] sm:$0xff]  ;;  %v3269_v8 = vld [vmem:[#allocation3 + $0xaa0] sm:$0xff] }
 0x6c6   :  { %3628 = vmatpush1.bf16.msra.mxu0 %v3245_v53  ;;  %3714 = vmatpush1.bf16.msra.mxu1 %v3247_v16  ;;  %v3271_v53 = vld [vmem:[#allocation3 + $0xab0] sm:$0xff]  ;;  %v3278_v16 = vld [vmem:[#allocation3 + $0xae8] sm:$0xff] }
 0x6c7   :  { %3629 = vmatprep.subr.bf16.mxu0 %v3254_v24  ;;  %3715 = vmatprep.subr.bf16.mxu1 %v3256_v25  ;;  %v3280_v24 = vld [vmem:[#allocation3 + $0xaf8] sm:$0xff]  ;;  %v3277_v25 = vld [vmem:[#allocation3 + $0xae0] sm:$0xff] }
 0x6ca   :  { %3630 = vmatpush1.bf16.msra.mxu0 %v3253_v43  ;;  %3716 = vmatpush1.bf16.msra.mxu1 %v3255_v45  ;;  %v3279_v43 = vld [vmem:[#allocation3 + $0xaf0] sm:$0xff]  ;;  %v3286_v45 = vld [vmem:[#allocation3 + $0xb28] sm:$0xff] }
 0x6cb   :  { %3631 = vmatprep.subr.bf16.mxu0 %v3262_v61  ;;  %3717 = vmatprep.subr.bf16.mxu1 %v3264_v40  ;;  %v3288_v61 = vld [vmem:[#allocation3 + $0xb38] sm:$0xff]  ;;  %v3285_v40 = vld [vmem:[#allocation3 + $0xb20] sm:$0xff] }
 0x6ce   :  { %3632 = vmatpush1.bf16.msra.mxu0 %v3261_v27  ;;  %3718 = vmatpush1.bf16.msra.mxu1 %v3263_v26  ;;  %v3287_v27 = vld [vmem:[#allocation3 + $0xb30] sm:$0xff]  ;;  %v3294_v26 = vld [vmem:[#allocation3 + $0xb68] sm:$0xff] }
 0x6cf   :  { %3633 = vmatprep.subr.bf16.mxu0 %v3270_v52  ;;  %3719 = vmatprep.subr.bf16.mxu1 %v3272_v42  ;;  %v3296_v52 = vld [vmem:[#allocation3 + $0xb78] sm:$0xff]  ;;  %v3293_v42 = vld [vmem:[#allocation3 + $0xb60] sm:$0xff] }
 0x6d2   :  { %3634 = vmatpush1.bf16.msra.mxu0 %v3269_v8  ;;  %3720 = vmatpush1.bf16.msra.mxu1 %v3271_v53  ;;  %v3295_v8 = vld [vmem:[#allocation3 + $0xb70] sm:$0xff]  ;;  %v3302_v53 = vld [vmem:[#allocation3 + $0xba8] sm:$0xff] }
 0x6d3   :  { %3635 = vmatprep.subr.bf16.mxu0 %v3278_v16  ;;  %3721 = vmatprep.subr.bf16.mxu1 %v3280_v24  ;;  %v3304_v16 = vld [vmem:[#allocation3 + $0xbb8] sm:$0xff]  ;;  %v3301_v24 = vld [vmem:[#allocation3 + $0xba0] sm:$0xff] }
 0x6d6   :  { %3636 = vmatpush1.bf16.msra.mxu0 %v3277_v25  ;;  %3722 = vmatpush1.bf16.msra.mxu1 %v3279_v43  ;;  %v3303_v25 = vld [vmem:[#allocation3 + $0xbb0] sm:$0xff]  ;;  %v3310_v43 = vld [vmem:[#allocation3 + $0xbe8] sm:$0xff] }
 0x6d7   :  { %3637 = vmatprep.subr.bf16.mxu0 %v3286_v45  ;;  %3723 = vmatprep.subr.bf16.mxu1 %v3288_v61  ;;  %v3312_v45 = vld [vmem:[#allocation3 + $0xbf8] sm:$0xff]  ;;  %v3309_v61 = vld [vmem:[#allocation3 + $0xbe0] sm:$0xff] }
 0x6da   :  { %3638 = vmatpush1.bf16.msra.mxu0 %v3285_v40  ;;  %3724 = vmatpush1.bf16.msra.mxu1 %v3287_v27  ;;  %v3311_v40 = vld [vmem:[#allocation3 + $0xbf0] sm:$0xff]  ;;  %v3318_v27 = vld [vmem:[#allocation3 + $0xc28] sm:$0xff] }
 0x6db   :  { %3639 = vmatprep.subr.bf16.mxu0 %v3294_v26  ;;  %3725 = vmatprep.subr.bf16.mxu1 %v3296_v52  ;;  %v3320_v26 = vld [vmem:[#allocation3 + $0xc38] sm:$0xff]  ;;  %v3317_v52 = vld [vmem:[#allocation3 + $0xc20] sm:$0xff] }
 0x6de   :  { %3640 = vmatpush1.bf16.msra.mxu0 %v3293_v42  ;;  %3726 = vmatpush1.bf16.msra.mxu1 %v3295_v8  ;;  %v3319_v42 = vld [vmem:[#allocation3 + $0xc30] sm:$0xff]  ;;  %v3326_v8 = vld [vmem:[#allocation3 + $0xc68] sm:$0xff] }
 0x6df   :  { %3641 = vmatprep.subr.bf16.mxu0 %v3302_v53  ;;  %3727 = vmatprep.subr.bf16.mxu1 %v3304_v16  ;;  %v3328_v53 = vld [vmem:[#allocation3 + $0xc78] sm:$0xff]  ;;  %v3325_v16 = vld [vmem:[#allocation3 + $0xc60] sm:$0xff] }
 0x6e2   :  { %3642 = vmatpush1.bf16.msra.mxu0 %v3301_v24  ;;  %3728 = vmatpush1.bf16.msra.mxu1 %v3303_v25  ;;  %v3327_v24 = vld [vmem:[#allocation3 + $0xc70] sm:$0xff]  ;;  %v3334_v25 = vld [vmem:[#allocation3 + $0xca8] sm:$0xff] }
 0x6e3   :  { %3643 = vmatprep.subr.bf16.mxu0 %v3310_v43  ;;  %3729 = vmatprep.subr.bf16.mxu1 %v3312_v45  ;;  %v3336_v43 = vld [vmem:[#allocation3 + $0xcb8] sm:$0xff]  ;;  %v3333_v45 = vld [vmem:[#allocation3 + $0xca0] sm:$0xff] }
 0x6e6   :  { %3644 = vmatpush1.bf16.msra.mxu0 %v3309_v61  ;;  %3730 = vmatpush1.bf16.msra.mxu1 %v3311_v40  ;;  %v3335_v61 = vld [vmem:[#allocation3 + $0xcb0] sm:$0xff]  ;;  %v3342_v40 = vld [vmem:[#allocation3 + $0xce8] sm:$0xff] }
 0x6e7   :  { %3656 = vmatprep.subr.bf16.mxu0 %v3318_v27  ;;  %3742 = vmatprep.subr.bf16.mxu1 %v3320_v26  ;;  %v3341_v27 = vld [vmem:[#allocation3 + $0xce0] sm:$0xff]  ;;  %v3343_v26 = vld [vmem:[#allocation3 + $0xcf0] sm:$0xff] }
 0x6e9   :  { %3646 = vmatmul.mubr.bf16.vlgmr.msra.gmra.mrb[12].mxu0 %v8082_v15  ;;  %3732 = vmatmul.mubr.bf16.vlgmr.msra.gmra.mrb[12].mxu1 %v8082_v15  ;;  %v3344_v15 = vld [vmem:[#allocation3 + $0xcf8] sm:$0xff] }
 0x6ea   :  { %3657 = vmatpush1.bf16.msra.mxu0 %v3317_v52  ;;  %3743 = vmatpush1.bf16.msra.mxu1 %v3319_v42  ;;  %v3350_v52 = vld [vmem:[#allocation3 + $0xd28] sm:$0xff]  ;;  %v3352_v42 = vld [vmem:[#allocation3 + $0xd38] sm:$0xff] }
 0x6eb   :  { %3658 = vmatprep.subr.bf16.mxu0 %v3326_v8  ;;  %3744 = vmatprep.subr.bf16.mxu1 %v3328_v53  ;;  %v3351_v8 = vld [vmem:[#allocation3 + $0xd30] sm:$0xff]  ;;  %v3358_v53 = vld [vmem:[#allocation3 + $0xd68] sm:$0xff] }
 0x6ec   :  { %3688 = vmatprep.mubr.bf16.mxu0 %v8088_v17  ;;  %3774 = vmatprep.mubr.bf16.mxu1 %v8088_v17  ;;  %v3349_v17 = vld [vmem:[#allocation3 + $0xd20] sm:$0xff] }
 0x6ee   :  { %3659 = vmatpush1.bf16.msra.mxu0 %v3325_v16  ;;  %3745 = vmatpush1.bf16.msra.mxu1 %v3327_v24  ;;  %v3360_v16 = vld [vmem:[#allocation3 + $0xd78] sm:$0xff]  ;;  %v3357_v24 = vld [vmem:[#allocation3 + $0xd60] sm:$0xff] }
 0x6ef   :  { %3660 = vmatprep.subr.bf16.mxu0 %v3334_v25  ;;  %3746 = vmatprep.subr.bf16.mxu1 %v3336_v43  ;;  %v3359_v25 = vld [vmem:[#allocation3 + $0xd70] sm:$0xff]  ;;  %v3366_v43 = vld [vmem:[#allocation3 + $0xda8] sm:$0xff] }
 0x6f2   :  { %3661 = vmatpush1.bf16.msra.mxu0 %v3333_v45  ;;  %3747 = vmatpush1.bf16.msra.mxu1 %v3335_v61  ;;  %v3368_v45 = vld [vmem:[#allocation3 + $0xdb8] sm:$0xff]  ;;  %v3365_v61 = vld [vmem:[#allocation3 + $0xda0] sm:$0xff] }
 0x6f3   :  { %3662 = vmatprep.subr.bf16.mxu0 %v3342_v40  ;;  %3748 = vmatprep.subr.bf16.mxu1 %v3344_v15  ;;  %v3367_v40 = vld [vmem:[#allocation3 + $0xdb0] sm:$0xff]  ;;  %v3374_v15 = vld [vmem:[#allocation3 + $0xde8] sm:$0xff] }
 0x6f6   :  { %3663 = vmatpush1.bf16.msra.mxu0 %v3341_v27  ;;  %3749 = vmatpush1.bf16.msra.mxu1 %v3343_v26  ;;  %v3376_v27 = vld [vmem:[#allocation3 + $0xdf8] sm:$0xff]  ;;  %v3373_v26 = vld [vmem:[#allocation3 + $0xde0] sm:$0xff] }
 0x6f7   :  { %3664 = vmatprep.subr.bf16.mxu0 %v3350_v52  ;;  %3750 = vmatprep.subr.bf16.mxu1 %v3352_v42  ;;  %v3375_v52 = vld [vmem:[#allocation3 + $0xdf0] sm:$0xff]  ;;  %v3382_v42 = vld [vmem:[#allocation3 + $0xe28] sm:$0xff] }
 0x6fa   :  { %3665 = vmatpush1.bf16.msra.mxu0 %v3349_v17  ;;  %3751 = vmatpush1.bf16.msra.mxu1 %v3351_v8  ;;  %v3384_v17 = vld [vmem:[#allocation3 + $0xe38] sm:$0xff]  ;;  %v3381_v8 = vld [vmem:[#allocation3 + $0xe20] sm:$0xff] }
 0x6fb   :  { %3666 = vmatprep.subr.bf16.mxu0 %v3358_v53  ;;  %3752 = vmatprep.subr.bf16.mxu1 %v3360_v16  ;;  %v3383_v53 = vld [vmem:[#allocation3 + $0xe30] sm:$0xff]  ;;  %v3390_v16 = vld [vmem:[#allocation3 + $0xe68] sm:$0xff] }
 0x6fe   :  { %3667 = vmatpush1.bf16.msra.mxu0 %v3357_v24  ;;  %3753 = vmatpush1.bf16.msra.mxu1 %v3359_v25  ;;  %v3392_v24 = vld [vmem:[#allocation3 + $0xe78] sm:$0xff]  ;;  %v3389_v25 = vld [vmem:[#allocation3 + $0xe60] sm:$0xff] }
 0x6ff   :  { %3668 = vmatprep.subr.bf16.mxu0 %v3366_v43  ;;  %3754 = vmatprep.subr.bf16.mxu1 %v3368_v45  ;;  %v3391_v43 = vld [vmem:[#allocation3 + $0xe70] sm:$0xff]  ;;  %v3398_v45 = vld [vmem:[#allocation3 + $0xea8] sm:$0xff] }
 0x702   :  { %3669 = vmatpush1.bf16.msra.mxu0 %v3365_v61  ;;  %3755 = vmatpush1.bf16.msra.mxu1 %v3367_v40  ;;  %v3400_v61 = vld [vmem:[#allocation3 + $0xeb8] sm:$0xff]  ;;  %v3397_v40 = vld [vmem:[#allocation3 + $0xea0] sm:$0xff] }
 0x703   :  { %3670 = vmatprep.subr.bf16.mxu0 %v3374_v15  ;;  %3756 = vmatprep.subr.bf16.mxu1 %v3376_v27  ;;  %v3399_v15 = vld [vmem:[#allocation3 + $0xeb0] sm:$0xff]  ;;  %v3406_v27 = vld [vmem:[#allocation3 + $0xee8] sm:$0xff] }
 0x706   :  { %3671 = vmatpush1.bf16.msra.mxu0 %v3373_v26  ;;  %3757 = vmatpush1.bf16.msra.mxu1 %v3375_v52  ;;  %v3408_v26 = vld [vmem:[#allocation3 + $0xef8] sm:$0xff]  ;;  %v3405_v52 = vld [vmem:[#allocation3 + $0xee0] sm:$0xff] }
 0x707   :  { %3672 = vmatprep.subr.bf16.mxu0 %v3382_v42  ;;  %3758 = vmatprep.subr.bf16.mxu1 %v3384_v17  ;;  %v3407_v42 = vld [vmem:[#allocation3 + $0xef0] sm:$0xff]  ;;  %v3414_v17 = vld [vmem:[#allocation3 + $0xf28] sm:$0xff] }
 0x70a   :  { %3673 = vmatpush1.bf16.msra.mxu0 %v3381_v8  ;;  %3759 = vmatpush1.bf16.msra.mxu1 %v3383_v53  ;;  %v3416_v8 = vld [vmem:[#allocation3 + $0xf38] sm:$0xff]  ;;  %v3413_v53 = vld [vmem:[#allocation3 + $0xf20] sm:$0xff] }
 0x70b   :  { %3674 = vmatprep.subr.bf16.mxu0 %v3390_v16  ;;  %3760 = vmatprep.subr.bf16.mxu1 %v3392_v24  ;;  %v3415_v16 = vld [vmem:[#allocation3 + $0xf30] sm:$0xff]  ;;  %v3422_v24 = vld [vmem:[#allocation3 + $0xf68] sm:$0xff] }
 0x70e   :  { %3675 = vmatpush1.bf16.msra.mxu0 %v3389_v25  ;;  %3761 = vmatpush1.bf16.msra.mxu1 %v3391_v43  ;;  %v3424_v25 = vld [vmem:[#allocation3 + $0xf78] sm:$0xff]  ;;  %v3421_v43 = vld [vmem:[#allocation3 + $0xf60] sm:$0xff] }
 0x70f   :  { %3676 = vmatprep.subr.bf16.mxu0 %v3398_v45  ;;  %3762 = vmatprep.subr.bf16.mxu1 %v3400_v61  ;;  %v3423_v45 = vld [vmem:[#allocation3 + $0xf70] sm:$0xff]  ;;  %v3430_v61 = vld [vmem:[#allocation3 + $0xfa8] sm:$0xff] }
 0x712   :  { %3677 = vmatpush1.bf16.msra.mxu0 %v3397_v40  ;;  %3763 = vmatpush1.bf16.msra.mxu1 %v3399_v15  ;;  %v3432_v40 = vld [vmem:[#allocation3 + $0xfb8] sm:$0xff]  ;;  %v3429_v15 = vld [vmem:[#allocation3 + $0xfa0] sm:$0xff] }
 0x713   :  { %3678 = vmatprep.subr.bf16.mxu0 %v3406_v27  ;;  %3764 = vmatprep.subr.bf16.mxu1 %v3408_v26  ;;  %v3431_v27 = vld [vmem:[#allocation3 + $0xfb0] sm:$0xff]  ;;  %v3438_v26 = vld [vmem:[#allocation3 + $0xfe8] sm:$0xff] }
 0x716   :  { %3679 = vmatpush1.bf16.msra.mxu0 %v3405_v52  ;;  %3765 = vmatpush1.bf16.msra.mxu1 %v3407_v42  ;;  %v3440_v52 = vld [vmem:[#allocation3 + $0xff8] sm:$0xff]  ;;  %v3437_v42 = vld [vmem:[#allocation3 + $0xfe0] sm:$0xff] }
 0x717   :  { %3680 = vmatprep.subr.bf16.mxu0 %v3414_v17  ;;  %3766 = vmatprep.subr.bf16.mxu1 %v3416_v8  ;;  %v3439_v17 = vld [vmem:[#allocation3 + $0xff0] sm:$0xff]  ;;  %v10270_v8 = vld [vmem:[#allocation48_spill] sm:$0xff] }
 0x71a   :  { %3681 = vmatpush1.bf16.msra.mxu0 %v3413_v53  ;;  %3767 = vmatpush1.bf16.msra.mxu1 %v3415_v16  ;;  %v10271_v53 = vld [vmem:[#allocation263_spill] sm:$0xff]  ;;  %v10272_v16 = vld [vmem:[#allocation262_spill] sm:$0xff] }
 0x71b   :  { %3682 = vmatprep.subr.bf16.mxu0 %v3422_v24  ;;  %3768 = vmatprep.subr.bf16.mxu1 %v3424_v25  ;;  %v10273_v24 = vld [vmem:[#allocation105_spill] sm:$0xff]  ;;  %v10274_v25 = vld [vmem:[#allocation104_spill] sm:$0xff] }
 0x71e   :  { %3683 = vmatpush1.bf16.msra.mxu0 %v3421_v43  ;;  %3769 = vmatpush1.bf16.msra.mxu1 %v3423_v45  ;;  %v10275_v43 = vld [vmem:[#allocation98_spill] sm:$0xff]  ;;  %v10276_v45 = vld [vmem:[#allocation107_spill] sm:$0xff] }
 0x71f   :  { %3684 = vmatprep.subr.bf16.mxu0 %v3430_v61  ;;  %3770 = vmatprep.subr.bf16.mxu1 %v3432_v40  ;;  %v10277_v61 = vld [vmem:[#allocation121_spill] sm:$0xff]  ;;  %v10278_v40 = vld [vmem:[#allocation120_spill] sm:$0xff] }
 0x722   :  { %3685 = vmatpush1.bf16.msra.mxu0 %v3429_v15  ;;  %3771 = vmatpush1.bf16.msra.mxu1 %v3431_v27  ;;  %v10279_v15 = vld [vmem:[#allocation114_spill] sm:$0xff]  ;;  %v10280_v27 = vld [vmem:[#allocation123_spill] sm:$0xff] }
 0x723   :  { %3686 = vmatprep.subr.bf16.mxu0 %v3438_v26  ;;  %3772 = vmatprep.subr.bf16.mxu1 %v3440_v52  ;;  %v10281_v26 = vld [vmem:[#allocation99_spill] sm:$0xff]  ;;  %v10282_v52 = vld [vmem:[#allocation137_spill] sm:$0xff] }
 0x726   :  { %3687 = vmatpush1.bf16.msra.mxu0 %v3437_v42  ;;  %3773 = vmatpush1.bf16.msra.mxu1 %v3439_v17  ;;  %v10283_v42 = vld [vmem:[#allocation128_spill] sm:$0xff]  ;;  %v10284_v17 = vld [vmem:[#allocation130_spill] sm:$0xff] }
 0x727   :  { %3785 = vmatprep.subr.bf16.mxu0 %v8098_v18  ;;  %3871 = vmatprep.subr.bf16.mxu1 %v8103_v19  ;;  %v10233_v18 = vld [vmem:[#allocation119_spill] sm:$0xff]  ;;  %v10235_v19 = vld [vmem:[#allocation132_spill] sm:$0xff] }
 0x729   :  { %3689 = vmatmul.mubr.bf16.vlgmr.msra.gmra.mrb[12].mxu0 %v8084_v34  ;;  %3775 = vmatmul.mubr.bf16.vlgmr.msra.gmra.mrb[12].mxu1 %v8084_v34  ;;  %v10231_v34 = vld [vmem:[#allocation116_spill] sm:$0xff] }
 0x72a   :  { %3786 = vmatpush1.bf16.msra.mxu0 %v8096_v56  ;;  %3872 = vmatpush1.bf16.msra.mxu1 %v8100_v29  ;;  %v10232_v56 = vld [vmem:[#allocation125_spill] sm:$0xff]  ;;  %v10234_v29 = vld [vmem:[#allocation118_spill] sm:$0xff] }
 0x72b   :  { %3787 = vmatprep.subr.bf16.mxu0 %v8117_v33  ;;  %3873 = vmatprep.subr.bf16.mxu1 %v8121_v37  ;;  %v10237_v33 = vld [vmem:[#allocation135_spill] sm:$0xff]  ;;  %v10239_v37 = vld [vmem:[#allocation148_spill] sm:$0xff] }
 0x72c   :  { %3817 = vmatprep.mubr.bf16.mxu0 %v8065_v0  ;;  %3903 = vmatprep.mubr.bf16.mxu1 %v8065_v0 }
 0x72e   :  { %3788 = vmatpush1.bf16.msra.mxu0 %v8114_v32  ;;  %3874 = vmatpush1.bf16.msra.mxu1 %v8119_v35  ;;  %v10236_v32 = vld [vmem:[#allocation141_spill] sm:$0xff]  ;;  %v10238_v35 = vld [vmem:[#allocation134_spill] sm:$0xff] }
 0x72f   :  { %3789 = vmatprep.subr.bf16.mxu0 %v8133_v48  ;;  %3875 = vmatprep.subr.bf16.mxu1 %v8137_v23  ;;  %v10242_v48 = vld [vmem:[#allocation151_spill] sm:$0xff]  ;;  %v10244_v23 = vld [vmem:[#allocation164_spill] sm:$0xff] }
 0x732   :  { %3790 = vmatpush1.bf16.msra.mxu0 %v8131_v47  ;;  %3876 = vmatpush1.bf16.msra.mxu1 %v8135_v49  ;;  %v10241_v47 = vld [vmem:[#allocation235_spill] sm:$0xff]  ;;  %v10243_v49 = vld [vmem:[#allocation150_spill] sm:$0xff] }
 0x733   :  { %3791 = vmatprep.subr.bf16.mxu0 %v8149_v2  ;;  %3877 = vmatprep.subr.bf16.mxu1 %v8153_v3  ;;  %v10249_v2 = vld [vmem:[#allocation180_spill] sm:$0xff]  ;;  %v10251_v3 = vld [vmem:[#allocation183_spill] sm:$0xff] }
 0x736   :  { %3792 = vmatpush1.bf16.msra.mxu0 %v8147_v36  ;;  %3878 = vmatpush1.bf16.msra.mxu1 %v8151_v10  ;;  %v10248_v36 = vld [vmem:[#allocation166_spill] sm:$0xff]  ;;  %v10250_v10 = vld [vmem:[#allocation189_spill] sm:$0xff] }
 0x737   :  { %3793 = vmatprep.subr.bf16.mxu0 %v8165_v59  ;;  %3879 = vmatprep.subr.bf16.mxu1 %v8169_v50  ;;  %v10256_v59 = vld [vmem:[#allocation198_spill] sm:$0xff]  ;;  %v10258_v50 = vld [vmem:[#allocation221_spill] sm:$0xff] }
 0x73a   :  { %3794 = vmatpush1.bf16.msra.mxu0 %v8163_v58  ;;  %3880 = vmatpush1.bf16.msra.mxu1 %v8167_v60  ;;  %v10255_v58 = vld [vmem:[#allocation199_spill] sm:$0xff]  ;;  %v10257_v60 = vld [vmem:[#allocation212_spill] sm:$0xff] }
 0x73b   :  { %3795 = vmatprep.subr.bf16.mxu0 %v8181_v12  ;;  %3881 = vmatprep.subr.bf16.mxu1 %v8185_v55  ;;  %v10264_v12 = vld [vmem:[#allocation230_spill] sm:$0xff]  ;;  %v10266_v55 = vld [vmem:[#allocation253_spill] sm:$0xff] }
 0x73e   :  { %3796 = vmatpush1.bf16.msra.mxu0 %v8179_v31  ;;  %3882 = vmatpush1.bf16.msra.mxu1 %v8183_v22  ;;  %v10263_v31 = vld [vmem:[#allocation231_spill] sm:$0xff]  ;;  %v10265_v22 = vld [vmem:[#allocation244_spill] sm:$0xff] }
 0x73f   :  { %3797 = vmatprep.subr.bf16.mxu0 %v8197_v63  ;;  %3883 = vmatprep.subr.bf16.mxu1 %v8201_v38  ;;  %v10222_v38 = vld [vmem:[#allocation85_spill] sm:$0xff] }
 0x740   :  { %v10228_v63 = vld [vmem:[#allocation109_spill] sm:$0xff] }
 0x742   :  { %3798 = vmatpush1.bf16.msra.mxu0 %v8195_v30  ;;  %3884 = vmatpush1.bf16.msra.mxu1 %v8199_v44  ;;  %v10227_v44 = vld [vmem:[#allocation100_spill] sm:$0xff]  ;;  %v10229_v30 = vld [vmem:[#allocation103_spill] sm:$0xff] }
 0x743   :  { %3799 = vmatprep.subr.bf16.mxu0 %v8213_v5  ;;  %3885 = vmatprep.subr.bf16.mxu1 %v8217_v14  ;;  %v10268_v14 = vld [vmem:[#allocation246_spill] sm:$0xff]  ;;  %v10269_v5 = vld [vmem:[#allocation260_spill] sm:$0xff] }
 0x746   :  { %3800 = vmatpush1.bf16.msra.mxu0 %v8211_v13  ;;  %3886 = vmatpush1.bf16.msra.mxu1 %v8215_v28  ;;  %v10230_v28 = vld [vmem:[#allocation102_spill] sm:$0xff]  ;;  %v10267_v13 = vld [vmem:[#allocation247_spill] sm:$0xff] }
 0x747   :  { %3801 = vmatprep.subr.bf16.mxu0 %v8229_v6  ;;  %3887 = vmatprep.subr.bf16.mxu1 %v8233_v62  ;;  %v10224_v6 = vld [vmem:[#allocation93_spill] sm:$0xff]  ;;  %v10260_v62 = vld [vmem:[#allocation214_spill] sm:$0xff] }
 0x74a   :  { %3802 = vmatpush1.bf16.msra.mxu0 %v8227_v21  ;;  %3888 = vmatpush1.bf16.msra.mxu1 %v8231_v4  ;;  %v10223_v4 = vld [vmem:[#allocation88_spill] sm:$0xff]  ;;  %v10225_v21 = vld [vmem:[#allocation91_spill] sm:$0xff] }
 0x74b   :  { %3803 = vmatprep.subr.bf16.mxu0 %v8245_v46  ;;  %3889 = vmatprep.subr.bf16.mxu1 %v8249_v51  ;;  %v10253_v51 = vld [vmem:[#allocation196_spill] sm:$0xff]  ;;  %v10262_v46 = vld [vmem:[#allocation237_spill] sm:$0xff] }
 0x74e   :  { %3804 = vmatpush1.bf16.msra.mxu0 %v8243_v11  ;;  %3890 = vmatpush1.bf16.msra.mxu1 %v8247_v7  ;;  %v10226_v7 = vld [vmem:[#allocation90_spill] sm:$0xff]  ;;  %v10259_v11 = vld [vmem:[#allocation215_spill] sm:$0xff] }
 0x74f   :  { %3805 = vmatprep.subr.bf16.mxu0 %v8261_v54  ;;  %3891 = vmatprep.subr.bf16.mxu1 %v8265_v9  ;;  %v10246_v9 = vld [vmem:[#allocation234_spill] sm:$0xff]  ;;  %v10254_v54 = vld [vmem:[#allocation205_spill] sm:$0xff] }
 0x752   :  { %3806 = vmatpush1.bf16.msra.mxu0 %v8259_v57  ;;  %3892 = vmatpush1.bf16.msra.mxu1 %v8263_v20  ;;  %v10252_v57 = vld [vmem:[#allocation182_spill] sm:$0xff]  ;;  %v10261_v20 = vld [vmem:[#allocation228_spill] sm:$0xff] }
 0x753   :  { %3807 = vmatprep.subr.bf16.mxu0 %v8277_v39  ;;  %3893 = vmatprep.subr.bf16.mxu1 %v8281_v41  ;;  %v10240_v41 = vld [vmem:[#allocation157_spill] sm:$0xff]  ;;  %v10247_v39 = vld [vmem:[#allocation167_spill] sm:$0xff] }
 0x756   :  { %3808 = vmatpush1.bf16.msra.mxu0 %v8275_v1  ;;  %3894 = vmatpush1.bf16.msra.mxu1 %v10222_v38  ;;  %v10245_v1 = vld [vmem:[#allocation173_spill] sm:$0xff] }
 0x757   :  { %3809 = vmatprep.subr.bf16.mxu0 %v10223_v4  ;;  %3895 = vmatprep.subr.bf16.mxu1 %v10224_v6  ;;  %v10285_v38 = vld [vmem:[#allocation145_spill] sm:$0xff]  ;;  %v10286_v4 = vld [vmem:[#allocation144_spill] sm:$0xff]  ;;  %v10287_v6 = vld [vmem:[#allocation138_spill] sm:$0xff] }
 0x75a   :  { %3810 = vmatpush1.bf16.msra.mxu0 %v10225_v21  ;;  %3896 = vmatpush1.bf16.msra.mxu1 %v10226_v7  ;;  %v10288_v21 = vld [vmem:[#allocation147_spill] sm:$0xff]  ;;  %v10289_v7 = vld [vmem:[#allocation161_spill] sm:$0xff] }
 0x75b   :  { %3811 = vmatprep.subr.bf16.mxu0 %v10227_v44  ;;  %3897 = vmatprep.subr.bf16.mxu1 %v10228_v63  ;;  %v10290_v44 = vld [vmem:[#allocation160_spill] sm:$0xff]  ;;  %v10291_v63 = vld [vmem:[#allocation154_spill] sm:$0xff] }
 0x75e   :  { %3812 = vmatpush1.bf16.msra.mxu0 %v10229_v30  ;;  %3898 = vmatpush1.bf16.msra.mxu1 %v10230_v28  ;;  %v10292_v30 = vld [vmem:[#allocation163_spill] sm:$0xff]  ;;  %v10293_v28 = vld [vmem:[#allocation177_spill] sm:$0xff] }
 0x75f   :  { %3813 = vmatprep.subr.bf16.mxu0 %v10231_v34  ;;  %3899 = vmatprep.subr.bf16.mxu1 %v10232_v56  ;;  %v10294_v34 = vld [vmem:[#allocation176_spill] sm:$0xff]  ;;  %v10295_v56 = vld [vmem:[#allocation170_spill] sm:$0xff] }
 0x762   :  { %3814 = vmatpush1.bf16.msra.mxu0 %v10233_v18  ;;  %3900 = vmatpush1.bf16.msra.mxu1 %v10234_v29  ;;  %v10296_v18 = vld [vmem:[#allocation179_spill] sm:$0xff]  ;;  %v10297_v29 = vld [vmem:[#allocation193_spill] sm:$0xff] }
 0x763   :  { %3815 = vmatprep.subr.bf16.mxu0 %v10235_v19  ;;  %3901 = vmatprep.subr.bf16.mxu1 %v10236_v32  ;;  %v10298_v19 = vld [vmem:[#allocation192_spill] sm:$0xff]  ;;  %v10299_v32 = vld [vmem:[#allocation186_spill] sm:$0xff] }
 0x766   :  { %3816 = vmatpush1.bf16.msra.mxu0 %v10237_v33  ;;  %3902 = vmatpush1.bf16.msra.mxu1 %v10238_v35  ;;  %v10300_v33 = vld [vmem:[#allocation195_spill] sm:$0xff]  ;;  %v10301_v35 = vld [vmem:[#allocation209_spill] sm:$0xff] }
 0x767   :  { %3828 = vmatprep.subr.bf16.mxu0 %v10239_v37  ;;  %3914 = vmatprep.subr.bf16.mxu1 %v10240_v41  ;;  %v10302_v37 = vld [vmem:[#allocation208_spill] sm:$0xff]  ;;  %v10303_v41 = vld [vmem:[#allocation202_spill] sm:$0xff] }
 0x769   :  { %3818 = vmatmul.mubr.bf16.vlgmr.msra.gmra.mrb[8].mxu0 %v10241_v47  ;;  %3904 = vmatmul.mubr.bf16.vlgmr.msra.gmra.mrb[8].mxu1 %v10241_v47 }
 0x76a   :  { %3829 = vmatpush1.bf16.msra.mxu0 %v10242_v48  ;;  %3915 = vmatpush1.bf16.msra.mxu1 %v10243_v49  ;;  %v10304_v48 = vld [vmem:[#allocation211_spill] sm:$0xff] }
 0x76b   :  { %3830 = vmatprep.subr.bf16.mxu0 %v10244_v23  ;;  %3916 = vmatprep.subr.bf16.mxu1 %v10245_v1  ;;  %v10305_v49 = vld [vmem:[#allocation243_spill] sm:$0xff]  ;;  %v10306_v23 = vld [vmem:[#allocation242_spill] sm:$0xff]  ;;  %v10307_v1 = vld [vmem:[#allocation232_spill] sm:$0xff] }
 0x76c   :  { %3860 = vmatprep.mubr.bf16.mxu0 %v10246_v9  ;;  %3946 = vmatprep.mubr.bf16.mxu1 %v10246_v9 }
 0x76e   :  { %3831 = vmatpush1.bf16.msra.mxu0 %v10247_v39  ;;  %3917 = vmatpush1.bf16.msra.mxu1 %v10248_v36  ;;  %v10308_v39 = vld [vmem:[#allocation241_spill] sm:$0xff]  ;;  %v10309_v36 = vld [vmem:[#allocation240_spill] sm:$0xff] }
 0x76f   :  { %3832 = vmatprep.subr.bf16.mxu0 %v10249_v2  ;;  %3918 = vmatprep.subr.bf16.mxu1 %v10250_v10  ;;  %v10310_v2 = vld [vmem:[#allocation251_spill] sm:$0xff]  ;;  %v10311_v10 = vld [vmem:[#allocation250_spill] sm:$0xff] }
 0x772   :  { %3833 = vmatpush1.bf16.msra.mxu0 %v10251_v3  ;;  %3919 = vmatpush1.bf16.msra.mxu1 %v10252_v57  ;;  %v10312_v3 = vld [vmem:[#allocation249_spill] sm:$0xff]  ;;  %v10313_v57 = vld [vmem:[#allocation248_spill] sm:$0xff] }
 0x773   :  { %3834 = vmatprep.subr.bf16.mxu0 %v10253_v51  ;;  %3920 = vmatprep.subr.bf16.mxu1 %v10254_v54  ;;  %v10314_v51 = vld [vmem:[#allocation259_spill] sm:$0xff]  ;;  %v10315_v54 = vld [vmem:[#allocation258_spill] sm:$0xff] }
 0x776   :  { %3835 = vmatpush1.bf16.msra.mxu0 %v10255_v58  ;;  %3921 = vmatpush1.bf16.msra.mxu1 %v10256_v59  ;;  %v10316_v58 = vld [vmem:[#allocation257_spill] sm:$0xff]  ;;  %v10317_v59 = vld [vmem:[#allocation256_spill] sm:$0xff] }
 0x777   :  { %3836 = vmatprep.subr.bf16.mxu0 %v10257_v60  ;;  %3922 = vmatprep.subr.bf16.mxu1 %v10258_v50  ;;  %v10318_v60 = vld [vmem:[#allocation55_spill] sm:$0xff]  ;;  %v10319_v50 = vld [vmem:[#allocation54_spill] sm:$0xff] }
 0x77a   :  { %3837 = vmatpush1.bf16.msra.mxu0 %v10259_v11  ;;  %3923 = vmatpush1.bf16.msra.mxu1 %v10260_v62  ;;  %v10320_v11 = vld [vmem:[#allocation53_spill] sm:$0xff]  ;;  %v10321_v62 = vld [vmem:[#allocation52_spill] sm:$0xff] }
 0x77b   :  { %3838 = vmatprep.subr.bf16.mxu0 %v10261_v20  ;;  %3924 = vmatprep.subr.bf16.mxu1 %v10262_v46  ;;  %v10323_v20 = vld [vmem:[#allocation58_spill] sm:$0xff]  ;;  %v10324_v46 = vld [vmem:[#allocation57_spill] sm:$0xff] }
 0x77e   :  { %3839 = vmatpush1.bf16.msra.mxu0 %v10263_v31  ;;  %3925 = vmatpush1.bf16.msra.mxu1 %v10264_v12  ;;  %v10325_v31 = vld [vmem:[#allocation56_spill] sm:$0xff]  ;;  %v10326_v12 = vld [vmem:[#allocation63_spill] sm:$0xff] }
 0x77f   :  { %3840 = vmatprep.subr.bf16.mxu0 %v10265_v22  ;;  %3926 = vmatprep.subr.bf16.mxu1 %v10266_v55  ;;  %v10327_v22 = vld [vmem:[#allocation62_spill] sm:$0xff]  ;;  %v10328_v55 = vld [vmem:[#allocation61_spill] sm:$0xff] }
 0x782   :  { %3841 = vmatpush1.bf16.msra.mxu0 %v10267_v13  ;;  %3927 = vmatpush1.bf16.msra.mxu1 %v10268_v14  ;;  %v10329_v13 = vld [vmem:[#allocation60_spill] sm:$0xff]  ;;  %v10330_v14 = vld [vmem:[#allocation67_spill] sm:$0xff] }
 0x783   :  { %3842 = vmatprep.subr.bf16.mxu0 %v10269_v5  ;;  %3928 = vmatprep.subr.bf16.mxu1 %v10270_v8  ;;  %v10331_v5 = vld [vmem:[#allocation66_spill] sm:$0xff]  ;;  %v10332_v8 = vld [vmem:[#allocation65_spill] sm:$0xff] }
 0x786   :  { %3843 = vmatpush1.bf16.msra.mxu0 %v10271_v53  ;;  %3929 = vmatpush1.bf16.msra.mxu1 %v10272_v16  ;;  %v10333_v53 = vld [vmem:[#allocation64_spill] sm:$0xff]  ;;  %v10334_v16 = vld [vmem:[#allocation71_spill] sm:$0xff] }
 0x787   :  { %3844 = vmatprep.subr.bf16.mxu0 %v10273_v24  ;;  %3930 = vmatprep.subr.bf16.mxu1 %v10274_v25  ;;  %v10335_v24 = vld [vmem:[#allocation70_spill] sm:$0xff]  ;;  %v10336_v25 = vld [vmem:[#allocation69_spill] sm:$0xff] }
 0x78a   :  { %3845 = vmatpush1.bf16.msra.mxu0 %v10275_v43  ;;  %3931 = vmatpush1.bf16.msra.mxu1 %v10276_v45  ;;  %v10337_v43 = vld [vmem:[#allocation68_spill] sm:$0xff]  ;;  %v10338_v45 = vld [vmem:[#allocation75_spill] sm:$0xff] }
 0x78b   :  { %3846 = vmatprep.subr.bf16.mxu0 %v10277_v61  ;;  %3932 = vmatprep.subr.bf16.mxu1 %v10278_v40  ;;  %v10339_v61 = vld [vmem:[#allocation74_spill] sm:$0xff]  ;;  %v10340_v40 = vld [vmem:[#allocation73_spill] sm:$0xff] }
 0x78e   :  { %3847 = vmatpush1.bf16.msra.mxu0 %v10279_v15  ;;  %3933 = vmatpush1.bf16.msra.mxu1 %v10280_v27  ;;  %v10341_v15 = vld [vmem:[#allocation72_spill] sm:$0xff]  ;;  %v10342_v27 = vld [vmem:[#allocation79_spill] sm:$0xff] }
 0x78f   :  { %3848 = vmatprep.subr.bf16.mxu0 %v10281_v26  ;;  %3934 = vmatprep.subr.bf16.mxu1 %v10282_v52  ;;  %v10343_v26 = vld [vmem:[#allocation78_spill] sm:$0xff]  ;;  %v10344_v52 = vld [vmem:[#allocation77_spill] sm:$0xff] }
 0x792   :  { %3849 = vmatpush1.bf16.msra.mxu0 %v10283_v42  ;;  %3935 = vmatpush1.bf16.msra.mxu1 %v10284_v17  ;;  %v10345_v42 = vld [vmem:[#allocation76_spill] sm:$0xff]  ;;  %v10346_v17 = vld [vmem:[#allocation83_spill] sm:$0xff] }
 0x793   :  { %3850 = vmatprep.subr.bf16.mxu0 %v10285_v38  ;;  %3936 = vmatprep.subr.bf16.mxu1 %v10286_v4  ;;  %v10347_v38 = vld [vmem:[#allocation82_spill] sm:$0xff]  ;;  %v10348_v4 = vld [vmem:[#allocation81_spill] sm:$0xff] }
 0x796   :  { %3851 = vmatpush1.bf16.msra.mxu0 %v10287_v6  ;;  %3937 = vmatpush1.bf16.msra.mxu1 %v10288_v21  ;;  %v10349_v6 = vld [vmem:[#allocation80_spill] sm:$0xff] }
 0x797   :  { %3852 = vmatprep.subr.bf16.mxu0 %v10289_v7  ;;  %3938 = vmatprep.subr.bf16.mxu1 %v10290_v44  ;;  %v10350_v21 = vld [vmem:[#allocation84_spill] sm:$0xff]  ;;  %v10351_v7 = vld [vmem:[#allocation89_spill] sm:$0xff]  ;;  %v10352_v44 = vld [vmem:[#allocation87_spill] sm:$0xff] }
 0x79a   :  { %3853 = vmatpush1.bf16.msra.mxu0 %v10291_v63  ;;  %3939 = vmatpush1.bf16.msra.mxu1 %v10292_v30  ;;  %v10353_v63 = vld [vmem:[#allocation86_spill] sm:$0xff]  ;;  %v10354_v30 = vld [vmem:[#allocation92_spill] sm:$0xff] }
 0x79b   :  { %3854 = vmatprep.subr.bf16.mxu0 %v10293_v28  ;;  %3940 = vmatprep.subr.bf16.mxu1 %v10294_v34  ;;  %v10355_v28 = vld [vmem:[#allocation101_spill] sm:$0xff]  ;;  %v10356_v34 = vld [vmem:[#allocation95_spill] sm:$0xff] }
 0x79e   :  { %3855 = vmatpush1.bf16.msra.mxu0 %v10295_v56  ;;  %3941 = vmatpush1.bf16.msra.mxu1 %v10296_v18  ;;  %v10357_v56 = vld [vmem:[#allocation94_spill] sm:$0xff]  ;;  %v10358_v18 = vld [vmem:[#allocation108_spill] sm:$0xff] }
 0x79f   :  { %3856 = vmatprep.subr.bf16.mxu0 %v10297_v29  ;;  %3942 = vmatprep.subr.bf16.mxu1 %v10298_v19  ;;  %v10359_v29 = vld [vmem:[#allocation117_spill] sm:$0xff]  ;;  %v10360_v19 = vld [vmem:[#allocation111_spill] sm:$0xff] }
 0x7a2   :  { %3857 = vmatpush1.bf16.msra.mxu0 %v10299_v32  ;;  %3943 = vmatpush1.bf16.msra.mxu1 %v10300_v33  ;;  %v10361_v32 = vld [vmem:[#allocation110_spill] sm:$0xff]  ;;  %v10362_v33 = vld [vmem:[#allocation124_spill] sm:$0xff] }
 0x7a3   :  { %3858 = vmatprep.subr.bf16.mxu0 %v10301_v35  ;;  %3944 = vmatprep.subr.bf16.mxu1 %v10302_v37  ;;  %v10363_v35 = vld [vmem:[#allocation133_spill] sm:$0xff]  ;;  %v10364_v37 = vld [vmem:[#allocation127_spill] sm:$0xff] }
 0x7a6   :  { %3859 = vmatpush1.bf16.msra.mxu0 %v10303_v41  ;;  %3945 = vmatpush1.bf16.msra.mxu1 %v10304_v48  ;;  %v10365_v41 = vld [vmem:[#allocation126_spill] sm:$0xff]  ;;  %v10366_v48 = vld [vmem:[#allocation140_spill] sm:$0xff] }
 0x7a7   :  { %3957 = vmatprep.subr.bf16.mxu0 %v10305_v49  ;;  %4043 = vmatprep.subr.bf16.mxu1 %v10306_v23  ;;  %v10367_v49 = vld [vmem:[#allocation149_spill] sm:$0xff]  ;;  %v10368_v23 = vld [vmem:[#allocation143_spill] sm:$0xff] }
 0x7a9   :  { %3861 = vmatmul.mubr.bf16.vlgmr.msra.gmra.mrb[8].mxu0 %v10307_v1  ;;  %3947 = vmatmul.mubr.bf16.vlgmr.msra.gmra.mrb[8].mxu1 %v10307_v1 }
 0x7aa   :  { %3958 = vmatpush1.bf16.msra.mxu0 %v10308_v39  ;;  %4044 = vmatpush1.bf16.msra.mxu1 %v10309_v36  ;;  %v10369_v39 = vld [vmem:[#allocation142_spill] sm:$0xff]  ;;  %v10370_v36 = vld [vmem:[#allocation156_spill] sm:$0xff] }
 0x7ab   :  { %3959 = vmatprep.subr.bf16.mxu0 %v10310_v2  ;;  %4045 = vmatprep.subr.bf16.mxu1 %v10311_v10  ;;  %v10371_v2 = vld [vmem:[#allocation165_spill] sm:$0xff]  ;;  %v10372_v10 = vld [vmem:[#allocation159_spill] sm:$0xff] }
 0x7ac   :  { %3989 = vmatprep.mubr.bf16.mxu0 %v8065_v0  ;;  %4075 = vmatprep.mubr.bf16.mxu1 %v8065_v0  ;;  %v10322_v0 = vld [vmem:[#allocation59_spill] sm:$0xff] }
 0x7ae   :  { %3960 = vmatpush1.bf16.msra.mxu0 %v10312_v3  ;;  %4046 = vmatpush1.bf16.msra.mxu1 %v10313_v57  ;;  %v10373_v3 = vld [vmem:[#allocation158_spill] sm:$0xff]  ;;  %v10374_v57 = vld [vmem:[#allocation172_spill] sm:$0xff] }
 0x7af   :  { %3961 = vmatprep.subr.bf16.mxu0 %v10314_v51  ;;  %4047 = vmatprep.subr.bf16.mxu1 %v10315_v54  ;;  %v10375_v51 = vld [vmem:[#allocation181_spill] sm:$0xff]  ;;  %v10376_v54 = vld [vmem:[#allocation175_spill] sm:$0xff] }
 0x7b2   :  { %3962 = vmatpush1.bf16.msra.mxu0 %v10316_v58  ;;  %4048 = vmatpush1.bf16.msra.mxu1 %v10317_v59  ;;  %v10377_v58 = vld [vmem:[#allocation174_spill] sm:$0xff]  ;;  %v10378_v59 = vld [vmem:[#allocation188_spill] sm:$0xff] }
 0x7b3   :  { %3963 = vmatprep.subr.bf16.mxu0 %v10318_v60  ;;  %4049 = vmatprep.subr.bf16.mxu1 %v10319_v50  ;;  %v10379_v60 = vld [vmem:[#allocation197_spill] sm:$0xff]  ;;  %v10381_v50 = vld [vmem:[#allocation190_spill] sm:$0xff] }
 0x7b6   :  { %3964 = vmatpush1.bf16.msra.mxu0 %v10320_v11  ;;  %4050 = vmatpush1.bf16.msra.mxu1 %v10321_v62  ;;  %v10382_v11 = vld [vmem:[#allocation204_spill] sm:$0xff]  ;;  %v10383_v62 = vld [vmem:[#allocation213_spill] sm:$0xff] }
 0x7b7   :  { %3965 = vmatprep.subr.bf16.mxu0 %v10322_v0  ;;  %4051 = vmatprep.subr.bf16.mxu1 %v10323_v20  ;;  %v10384_v0 = vld [vmem:[#allocation207_spill] sm:$0xff]  ;;  %v10385_v20 = vld [vmem:[#allocation206_spill] sm:$0xff] }
 0x7ba   :  { %3966 = vmatpush1.bf16.msra.mxu0 %v10324_v46  ;;  %4052 = vmatpush1.bf16.msra.mxu1 %v10325_v31  ;;  %v10387_v46 = vld [vmem:[#allocation229_spill] sm:$0xff]  ;;  %v10388_v31 = vld [vmem:[#allocation223_spill] sm:$0xff] }
 0x7bb   :  { %3967 = vmatprep.subr.bf16.mxu0 %v10326_v12  ;;  %4053 = vmatprep.subr.bf16.mxu1 %v10327_v22  ;;  %v10389_v12 = vld [vmem:[#allocation222_spill] sm:$0xff]  ;;  %v10390_v22 = vld [vmem:[#allocation236_spill] sm:$0xff] }
 0x7be   :  { %3968 = vmatpush1.bf16.msra.mxu0 %v10328_v55  ;;  %4054 = vmatpush1.bf16.msra.mxu1 %v10329_v13  ;;  %v10391_v55 = vld [vmem:[#allocation245_spill] sm:$0xff]  ;;  %v10392_v13 = vld [vmem:[#allocation239_spill] sm:$0xff] }
 0x7bf   :  { %3969 = vmatprep.subr.bf16.mxu0 %v10330_v14  ;;  %4055 = vmatprep.subr.bf16.mxu1 %v10331_v5  ;;  %v10393_v14 = vld [vmem:[#allocation238_spill] sm:$0xff]  ;;  %v10394_v5 = vld [vmem:[#allocation252_spill] sm:$0xff] }
 0x7c2   :  { %3970 = vmatpush1.bf16.msra.mxu0 %v10332_v8  ;;  %4056 = vmatpush1.bf16.msra.mxu1 %v10333_v53  ;;  %v10395_v8 = vld [vmem:[#allocation261_spill] sm:$0xff]  ;;  %v10396_v53 = vld [vmem:[#allocation255_spill] sm:$0xff] }
 0x7c3   :  { %3971 = vmatprep.subr.bf16.mxu0 %v10334_v16  ;;  %4057 = vmatprep.subr.bf16.mxu1 %v10335_v24  ;;  %v10397_v16 = vld [vmem:[#allocation254_spill] sm:$0xff]  ;;  %v10398_v24 = vld [vmem:[#allocation49_spill] sm:$0xff] }
 0x7c6   :  { %3972 = vmatpush1.bf16.msra.mxu0 %v10336_v25  ;;  %4058 = vmatpush1.bf16.msra.mxu1 %v10337_v43  ;;  %v10399_v25 = vld [vmem:[#allocation96_spill] sm:$0xff]  ;;  %v10400_v43 = vld [vmem:[#allocation43_spill] sm:$0xff] }
 0x7c7   :  { %3973 = vmatprep.subr.bf16.mxu0 %v10338_v45  ;;  %4059 = vmatprep.subr.bf16.mxu1 %v10339_v61  ;;  %v10401_v45 = vld [vmem:[#allocation44_spill] sm:$0xff]  ;;  %v10402_v61 = vld [vmem:[#allocation113_spill] sm:$0xff] }
 0x7ca   :  { %3974 = vmatpush1.bf16.msra.mxu0 %v10340_v40  ;;  %4060 = vmatpush1.bf16.msra.mxu1 %v10341_v15  ;;  %v10403_v40 = vld [vmem:[#allocation112_spill] sm:$0xff]  ;;  %v10404_v15 = vld [vmem:[#allocation106_spill] sm:$0xff] }
 0x7cb   :  { %3975 = vmatprep.subr.bf16.mxu0 %v10342_v27  ;;  %4061 = vmatprep.subr.bf16.mxu1 %v10343_v26  ;;  %v10405_v27 = vld [vmem:[#allocation115_spill] sm:$0xff]  ;;  %v10406_v26 = vld [vmem:[#allocation122_spill] sm:$0xff] }
 0x7ce   :  { %3976 = vmatpush1.bf16.msra.mxu0 %v10344_v52  ;;  %4062 = vmatpush1.bf16.msra.mxu1 %v10345_v42  ;;  %v10407_v52 = vld [vmem:[#allocation131_spill] sm:$0xff]  ;;  %v10408_v42 = vld [vmem:[#allocation97_spill] sm:$0xff] }
 0x7cf   :  { %3977 = vmatprep.subr.bf16.mxu0 %v10346_v17  ;;  %4063 = vmatprep.subr.bf16.mxu1 %v10347_v38  ;;  %v10409_v17 = vld [vmem:[#allocation129_spill] sm:$0xff]  ;;  %v10410_v38 = vld [vmem:[#allocation47_spill] sm:$0xff] }
 0x7d2   :  { %3978 = vmatpush1.bf16.msra.mxu0 %v10348_v4  ;;  %4064 = vmatpush1.bf16.msra.mxu1 %v10349_v6  ;;  %v10411_v4 = vld [vmem:[#allocation136_spill] sm:$0xff]  ;;  %v10412_v6 = vld [vmem:[#allocation139_spill] sm:$0xff] }
 0x7d3   :  { %3979 = vmatprep.subr.bf16.mxu0 %v10350_v21  ;;  %4065 = vmatprep.subr.bf16.mxu1 %v10351_v7  ;;  %v10413_v21 = vld [vmem:[#allocation42_spill] sm:$0xff]  ;;  %v10414_v7 = vld [vmem:[#allocation153_spill] sm:$0xff] }
 0x7d6   :  { %3980 = vmatpush1.bf16.msra.mxu0 %v10352_v44  ;;  %4066 = vmatpush1.bf16.msra.mxu1 %v10353_v63  ;;  %v10415_v44 = vld [vmem:[#allocation152_spill] sm:$0xff]  ;;  %v10416_v63 = vld [vmem:[#allocation146_spill] sm:$0xff] }
 0x7d7   :  { %3981 = vmatprep.subr.bf16.mxu0 %v10354_v30  ;;  %4067 = vmatprep.subr.bf16.mxu1 %v10355_v28  ;;  %v10417_v30 = vld [vmem:[#allocation155_spill] sm:$0xff]  ;;  %v10418_v28 = vld [vmem:[#allocation169_spill] sm:$0xff] }
 0x7da   :  { %3982 = vmatpush1.bf16.msra.mxu0 %v10356_v34  ;;  %4068 = vmatpush1.bf16.msra.mxu1 %v10357_v56  ;;  %v10419_v34 = vld [vmem:[#allocation168_spill] sm:$0xff]  ;;  %v10420_v56 = vld [vmem:[#allocation162_spill] sm:$0xff] }
 0x7db   :  { %3983 = vmatprep.subr.bf16.mxu0 %v10358_v18  ;;  %4069 = vmatprep.subr.bf16.mxu1 %v10359_v29  ;;  %v10421_v18 = vld [vmem:[#allocation171_spill] sm:$0xff]  ;;  %v10422_v29 = vld [vmem:[#allocation185_spill] sm:$0xff] }
 0x7de   :  { %3984 = vmatpush1.bf16.msra.mxu0 %v10360_v19  ;;  %4070 = vmatpush1.bf16.msra.mxu1 %v10361_v32  ;;  %v10423_v19 = vld [vmem:[#allocation184_spill] sm:$0xff]  ;;  %v10424_v32 = vld [vmem:[#allocation178_spill] sm:$0xff] }
 0x7df   :  { %3985 = vmatprep.subr.bf16.mxu0 %v10362_v33  ;;  %4071 = vmatprep.subr.bf16.mxu1 %v10363_v35  ;;  %v10425_v33 = vld [vmem:[#allocation187_spill] sm:$0xff]  ;;  %v10426_v35 = vld [vmem:[#allocation201_spill] sm:$0xff] }
 0x7e2   :  { %3986 = vmatpush1.bf16.msra.mxu0 %v10364_v37  ;;  %4072 = vmatpush1.bf16.msra.mxu1 %v10365_v41  ;;  %v10427_v37 = vld [vmem:[#allocation200_spill] sm:$0xff]  ;;  %v10428_v41 = vld [vmem:[#allocation194_spill] sm:$0xff] }
 0x7e3   :  { %3987 = vmatprep.subr.bf16.mxu0 %v10366_v48  ;;  %4073 = vmatprep.subr.bf16.mxu1 %v10367_v49  ;;  %v10429_v48 = vld [vmem:[#allocation203_spill] sm:$0xff]  ;;  %v10430_v49 = vld [vmem:[#allocation217_spill] sm:$0xff] }
 0x7e6   :  { %3988 = vmatpush1.bf16.msra.mxu0 %v10368_v23  ;;  %4074 = vmatpush1.bf16.msra.mxu1 %v10369_v39  ;;  %v10431_v23 = vld [vmem:[#allocation216_spill] sm:$0xff]  ;;  %v10432_v39 = vld [vmem:[#allocation210_spill] sm:$0xff] }
 0x7e7   :  { %4000 = vmatprep.subr.bf16.mxu0 %v10370_v36  ;;  %4086 = vmatprep.subr.bf16.mxu1 %v10371_v2  ;;  %v10433_v36 = vld [vmem:[#allocation219_spill] sm:$0xff]  ;;  %v4129_v2 = vld [vmem:[#allocation13 + $0x8] sm:$0xff] }
 0x7e9   :  { %3990 = vmatmul.mubr.bf16.vlgmr.msra.gmra.mrb[12].mxu0 %v10241_v47  ;;  %4076 = vmatmul.mubr.bf16.vlgmr.msra.gmra.mrb[12].mxu1 %v10241_v47  ;;  %v10380_v47 = vld [vmem:[#allocation191_spill] sm:$0xff] }
 0x7ea   :  { %4001 = vmatpush1.bf16.msra.mxu0 %v10372_v10  ;;  %4087 = vmatpush1.bf16.msra.mxu1 %v10373_v3  ;;  %v10434_v10 = vld [vmem:[#allocation227_spill] sm:$0xff] }
 0x7eb   :  { %4002 = vmatprep.subr.bf16.mxu0 %v10374_v57  ;;  %4088 = vmatprep.subr.bf16.mxu1 %v10375_v51  ;;  %v4134_v3 = vrot.slane %v4129_v2, %v10434_v10  ;;  %v10435_v57 = vld [vmem:[#allocation224_spill] sm:$0xff] }
 0x7ec   :  { %4032 = vmatprep.mubr.bf16.mxu0 %v10246_v9  ;;  %4118 = vmatprep.mubr.bf16.mxu1 %v10246_v9  ;;  %v10386_v9 = vld [vmem:[#allocation220_spill] sm:$0xff]  ;;  %v4142_v51 = vrot.slane %v4129_v2, %v10435_v57 }
 0x7ee   :  { %4003 = vmatpush1.bf16.msra.mxu0 %v10376_v54  ;;  %4089 = vmatpush1.bf16.msra.mxu1 %v10377_v58  ;;  %v10436_v54 = vld [vmem:[#allocation226_spill] sm:$0xff] }
 0x7ef   :  { %4004 = vmatprep.subr.bf16.mxu0 %v10378_v59  ;;  %4090 = vmatprep.subr.bf16.mxu1 %v10379_v60  ;;  %v4138_v58 = vrot.slane %v4129_v2, %v10436_v54  ;;  %v10437_v59 = vld [vmem:[#allocation233_spill] sm:$0xff] }
 0x7f0   :  { %v4146_v60 = vrot.slane %v4129_v2, %v10437_v59 }
 0x7f2   :  { %4005 = vmatpush1.bf16.msra.mxu0 %v10380_v47  ;;  %4091 = vmatpush1.bf16.msra.mxu1 %v10381_v50 }
 0x7f3   :  { %4006 = vmatprep.subr.bf16.mxu0 %v10382_v11  ;;  %4092 = vmatprep.subr.bf16.mxu1 %v10383_v62 }
 0x7f6   :  { %4007 = vmatpush1.bf16.msra.mxu0 %v10384_v0  ;;  %4093 = vmatpush1.bf16.msra.mxu1 %v10385_v20 }
 0x7f7   :  { %4008 = vmatprep.subr.bf16.mxu0 %v10386_v9  ;;  %4094 = vmatprep.subr.bf16.mxu1 %v10387_v46 }
 0x7fa   :  { %4009 = vmatpush1.bf16.msra.mxu0 %v10388_v31  ;;  %4095 = vmatpush1.bf16.msra.mxu1 %v10389_v12 }
 0x7fb   :  { %4010 = vmatprep.subr.bf16.mxu0 %v10390_v22  ;;  %4096 = vmatprep.subr.bf16.mxu1 %v10391_v55 }
 0x7fe   :  { %4011 = vmatpush1.bf16.msra.mxu0 %v10392_v13  ;;  %4097 = vmatpush1.bf16.msra.mxu1 %v10393_v14 }
 0x7ff   :  { %4012 = vmatprep.subr.bf16.mxu0 %v10394_v5  ;;  %4098 = vmatprep.subr.bf16.mxu1 %v10395_v8 }
 0x802   :  { %4013 = vmatpush1.bf16.msra.mxu0 %v10396_v53  ;;  %4099 = vmatpush1.bf16.msra.mxu1 %v10397_v16 }
 0x803   :  { %4014 = vmatprep.subr.bf16.mxu0 %v10398_v24  ;;  %4100 = vmatprep.subr.bf16.mxu1 %v10399_v25 }
 0x806   :  { %4015 = vmatpush1.bf16.msra.mxu0 %v10400_v43  ;;  %4101 = vmatpush1.bf16.msra.mxu1 %v10401_v45 }
 0x807   :  { %4016 = vmatprep.subr.bf16.mxu0 %v10402_v61  ;;  %4102 = vmatprep.subr.bf16.mxu1 %v10403_v40 }
 0x80a   :  { %4017 = vmatpush1.bf16.msra.mxu0 %v10404_v15  ;;  %4103 = vmatpush1.bf16.msra.mxu1 %v10405_v27 }
 0x80b   :  { %4018 = vmatprep.subr.bf16.mxu0 %v10406_v26  ;;  %4104 = vmatprep.subr.bf16.mxu1 %v10407_v52 }
 0x80e   :  { %4019 = vmatpush1.bf16.msra.mxu0 %v10408_v42  ;;  %4105 = vmatpush1.bf16.msra.mxu1 %v10409_v17 }
 0x80f   :  { %4020 = vmatprep.subr.bf16.mxu0 %v10410_v38  ;;  %4106 = vmatprep.subr.bf16.mxu1 %v10411_v4 }
 0x812   :  { %4021 = vmatpush1.bf16.msra.mxu0 %v10412_v6  ;;  %4107 = vmatpush1.bf16.msra.mxu1 %v10413_v21 }
 0x813   :  { %4022 = vmatprep.subr.bf16.mxu0 %v10414_v7  ;;  %4108 = vmatprep.subr.bf16.mxu1 %v10415_v44 }
 0x816   :  { %4023 = vmatpush1.bf16.msra.mxu0 %v10416_v63  ;;  %4109 = vmatpush1.bf16.msra.mxu1 %v10417_v30 }
 0x817   :  { %4024 = vmatprep.subr.bf16.mxu0 %v10418_v28  ;;  %4110 = vmatprep.subr.bf16.mxu1 %v10419_v34 }
 0x81a   :  { %4025 = vmatpush1.bf16.msra.mxu0 %v10420_v56  ;;  %4111 = vmatpush1.bf16.msra.mxu1 %v10421_v18 }
 0x81b   :  { %4026 = vmatprep.subr.bf16.mxu0 %v10422_v29  ;;  %4112 = vmatprep.subr.bf16.mxu1 %v10423_v19 }
 0x81e   :  { %4027 = vmatpush1.bf16.msra.mxu0 %v10424_v32  ;;  %4113 = vmatpush1.bf16.msra.mxu1 %v10425_v33 }
 0x81f   :  { %4028 = vmatprep.subr.bf16.mxu0 %v10426_v35  ;;  %4114 = vmatprep.subr.bf16.mxu1 %v10427_v37 }
 0x822   :  { %4029 = vmatpush1.bf16.msra.mxu0 %v10428_v41  ;;  %4115 = vmatpush1.bf16.msra.mxu1 %v10429_v48 }
 0x823   :  { %4030 = vmatprep.subr.bf16.mxu0 %v10430_v49  ;;  %4116 = vmatprep.subr.bf16.mxu1 %v10431_v23 }
 0x826   :  { %4031 = vmatpush1.bf16.msra.mxu0 %v10432_v39  ;;  %4117 = vmatpush1.bf16.msra.mxu1 %v10433_v36 }
 0x829   :  { %4033 = vmatmul.mubr.bf16.vlgmr.msra.gmra.mrb[12].mxu0 %v10307_v1  ;;  %4119 = vmatmul.mubr.bf16.vlgmr.msra.gmra.mrb[12].mxu1 %v10307_v1 }
 0x87c   :  { %v3862_v47 = vpop.f32.mrb[8].mxu0  ;;  %v3948_v50 = vpop.f32.mrb[8].mxu1 }
 0x87d   :  { %v4171_v11 = vadd.f32 %v4134_v3, %v3862_v47  ;;  %v4173_v62 = vadd.f32 %v4142_v51, %v3948_v50  ;;  %v3864_v0 = vpop.f32.mrb[9].mxu0  ;;  %v3950_v20 = vpop.f32.mrb[9].mxu1 }
 0x87e   :  { %v4172_v9 = vadd.f32 %v4138_v58, %v3864_v0  ;;  %v4174_v46 = vadd.f32 %v4146_v60, %v3950_v20  ;;  %v3866_v31 = vpop.f32.mrb[10].mxu0  ;;  %v3952_v12 = vpop.f32.mrb[10].mxu1 }
 0x87f   :  { %v4179_v1 = vadd.f32 %v4134_v3, %v3866_v31  ;;  %v4181_v22 = vadd.f32 %v4142_v51, %v3952_v12  ;;  %v3868_v55 = vpop.f32.mrb[11].mxu0  ;;  %v3954_v13 = vpop.f32.mrb[11].mxu1  ;;  %v4187_v8 = vmax.f32 %v4171_v11, 0.0  ;;  %v4189_v53 = vmax.f32 %v4173_v62, 0.0 }
 0x880   :  { %v4180_v14 = vadd.f32 %v4138_v58, %v3868_v55  ;;  %v4182_v5 = vadd.f32 %v4146_v60, %v3954_v13  ;;  %v4188_v25 = vmax.f32 %v4172_v9, 0.0  ;;  %v4190_v43 = vmax.f32 %v4174_v46, 0.0 }
 0x881   :  { %v4195_v16 = vmax.f32 %v4179_v1, 0.0  ;;  %v4197_v24 = vmax.f32 %v4181_v22, 0.0 }
 0x882   :  { %v4196_v45 = vmax.f32 %v4180_v14, 0.0  ;;  %v4198_v61 = vmax.f32 %v4182_v5, 0.0 }
 0x883   :  { %v8916_v40 = vpack.c.bf16 %v4195_v16, %v4187_v8  ;;  %v8918_v15 = vpack.c.bf16 %v4197_v24, %v4189_v53 }
 0x884   :  { %v8923_v27 = vpack.c.bf16 %v4196_v45, %v4188_v25  ;;  %v8925_v26 = vpack.c.bf16 %v4198_v61, %v4190_v43 }
 0x885   :  { %10438 = vst [vmem:[#allocation218_spill] sm:$0xff] %v8916_v40  ;;  %10439 = vst [vmem:[#allocation50_spill] sm:$0xff] %v8918_v15 }
 0x886   :  { %10440 = vst [vmem:[#allocation45_spill] sm:$0xff] %v8925_v26 }
 0x887   :  { %4247 = dma.general %s4211_s16, 16384, %s4226_s5, %s6558_s17, %s6559_s1, [#allocation30], %s6650_s19, 0  }
 0x888   :  { %v10441_v52 = vld [vmem:[#allocation225_spill] sm:$0xff] }
 0x889   :  { %v10442_v42 = vsub.s32 4, %v10441_v52  ;;  %v10443_v38 = vsub.s32 6, %v10441_v52  ;;  %v10444_v6 = vsub.s32 5, %v10441_v52  ;;  %v10445_v7 = vsub.s32 7, %v10441_v52 }
 0x88b   :  { %v4150_v17 = vrot.slane %v4129_v2, %v10442_v42  ;;  %v4158_v4 = vrot.slane %v4129_v2, %v10443_v38  ;;  %v4154_v21 = vrot.slane %v4129_v2, %v10444_v6  ;;  %v4162_v44 = vrot.slane %v4129_v2, %v10445_v7 }
 0x8fc   :  { %v4034_v63 = vpop.f32.mrb[12].mxu0  ;;  %v4120_v30 = vpop.f32.mrb[12].mxu1 }
 0x8fd   :  { %v4175_v28 = vadd.f32 %v4150_v17, %v4034_v63  ;;  %v4177_v34 = vadd.f32 %v4158_v4, %v4120_v30  ;;  %v4036_v56 = vpop.f32.mrb[13].mxu0  ;;  %v4122_v18 = vpop.f32.mrb[13].mxu1 }
 0x8fe   :  { %v4176_v29 = vadd.f32 %v4154_v21, %v4036_v56  ;;  %v4178_v19 = vadd.f32 %v4162_v44, %v4122_v18  ;;  %v4038_v32 = vpop.f32.mrb[14].mxu0  ;;  %v4124_v33 = vpop.f32.mrb[14].mxu1 }
 0x8ff   :  { %v4183_v35 = vadd.f32 %v4150_v17, %v4038_v32  ;;  %v4185_v37 = vadd.f32 %v4158_v4, %v4124_v33  ;;  %v4040_v41 = vpop.f32.mrb[15].mxu0  ;;  %v4126_v48 = vpop.f32.mrb[15].mxu1  ;;  %v4191_v39 = vmax.f32 %v4175_v28, 0.0  ;;  %v4193_v36 = vmax.f32 %v4177_v34, 0.0 }
 0x900   :  { %v4184_v49 = vadd.f32 %v4154_v21, %v4040_v41  ;;  %v4186_v23 = vadd.f32 %v4162_v44, %v4126_v48  ;;  %v4192_v51 = vmax.f32 %v4176_v29, 0.0  ;;  %v4194_v58 = vmax.f32 %v4178_v19, 0.0 }
 0x901   :  { %v4199_v3 = vmax.f32 %v4183_v35, 0.0  ;;  %v4201_v2 = vmax.f32 %v4185_v37, 0.0 }
 0x902   :  { %v4200_v60 = vmax.f32 %v4184_v49, 0.0  ;;  %v4202_v47 = vmax.f32 %v4186_v23, 0.0 }
 0x903   :  { %v8936_v50 = vpack.c.bf16 %v4199_v3, %v4191_v39  ;;  %v8938_v11 = vpack.c.bf16 %v4201_v2, %v4193_v36 }
 0x904   :  { %v8940_v62 = vpack.c.bf16 %v4200_v60, %v4192_v51  ;;  %v8942_v0 = vpack.c.bf16 %v4202_v47, %v4194_v58 }
 0x905   :  { %6523 = dma.done.wait [#allocation7], 16384 }
 0x906   :  { %6524 = vsyncadd [#allocation7], 4294950912  ;;  %v8944_v20 = vld [vmem:[#allocation4] sm:$0xff]  ;;  %v8946_v9 = vld [vmem:[#allocation4 + $0x8] sm:$0xff] }
 0x907   :  { %v8948_v46 = vld [vmem:[#allocation4 + $0x10] sm:$0xff]  ;;  %v8950_v31 = vld [vmem:[#allocation4 + $0x18] sm:$0xff]  ;;  %v8952_v12 = vld [vmem:[#allocation4 + $0x20] sm:$0xff] }
 0x908   :  { %v8954_v1 = vld [vmem:[#allocation4 + $0x28] sm:$0xff]  ;;  %v8956_v22 = vld [vmem:[#allocation4 + $0x30] sm:$0xff]  ;;  %v8958_v55 = vld [vmem:[#allocation4 + $0x38] sm:$0xff] }
 0x909   :  { %v8960_v13 = vld [vmem:[#allocation4 + $0x40] sm:$0xff]  ;;  %v8962_v14 = vld [vmem:[#allocation4 + $0x48] sm:$0xff]  ;;  %v8964_v5 = vld [vmem:[#allocation4 + $0x50] sm:$0xff] }
 0x90a   :  { %v8966_v8 = vld [vmem:[#allocation4 + $0x58] sm:$0xff]  ;;  %v8968_v53 = vld [vmem:[#allocation4 + $0x60] sm:$0xff]  ;;  %v8970_v16 = vld [vmem:[#allocation4 + $0x68] sm:$0xff] }
 0x90b   :  { %v8972_v24 = vld [vmem:[#allocation4 + $0x70] sm:$0xff]  ;;  %v8974_v25 = vld [vmem:[#allocation4 + $0x78] sm:$0xff]  ;;  %v8976_v43 = vld [vmem:[#allocation4 + $0x80] sm:$0xff] }
 0x90c   :  { %v8978_v45 = vld [vmem:[#allocation4 + $0x88] sm:$0xff]  ;;  %v8980_v61 = vld [vmem:[#allocation4 + $0x90] sm:$0xff]  ;;  %v8982_v52 = vld [vmem:[#allocation4 + $0x98] sm:$0xff] }
 0x90d   :  { %v8984_v42 = vld [vmem:[#allocation4 + $0xa0] sm:$0xff]  ;;  %v8986_v17 = vld [vmem:[#allocation4 + $0xa8] sm:$0xff]  ;;  %v8988_v38 = vld [vmem:[#allocation4 + $0xb0] sm:$0xff] }
 0x90e   :  { %v8990_v4 = vld [vmem:[#allocation4 + $0xb8] sm:$0xff]  ;;  %v8992_v6 = vld [vmem:[#allocation4 + $0xc0] sm:$0xff]  ;;  %v8994_v21 = vld [vmem:[#allocation4 + $0xc8] sm:$0xff] }
 0x90f   :  { %v8996_v7 = vld [vmem:[#allocation4 + $0xd0] sm:$0xff]  ;;  %v8998_v44 = vld [vmem:[#allocation4 + $0xd8] sm:$0xff]  ;;  %v9000_v63 = vld [vmem:[#allocation4 + $0xe0] sm:$0xff] }
 0x910   :  { %v9002_v30 = vld [vmem:[#allocation4 + $0xe8] sm:$0xff]  ;;  %v9004_v28 = vld [vmem:[#allocation4 + $0xf0] sm:$0xff]  ;;  %v9006_v34 = vld [vmem:[#allocation4 + $0xf8] sm:$0xff] }
 0x911   :  { %v9008_v56 = vld [vmem:[#allocation4 + $0x100] sm:$0xff]  ;;  %v9010_v18 = vld [vmem:[#allocation4 + $0x108] sm:$0xff]  ;;  %v9012_v29 = vld [vmem:[#allocation4 + $0x110] sm:$0xff] }
 0x912   :  { %v9014_v19 = vld [vmem:[#allocation4 + $0x118] sm:$0xff]  ;;  %v9016_v32 = vld [vmem:[#allocation4 + $0x120] sm:$0xff]  ;;  %v9018_v33 = vld [vmem:[#allocation4 + $0x128] sm:$0xff] }
 0x913   :  { %v9020_v35 = vld [vmem:[#allocation4 + $0x130] sm:$0xff]  ;;  %v9022_v37 = vld [vmem:[#allocation4 + $0x138] sm:$0xff]  ;;  %v9024_v41 = vld [vmem:[#allocation4 + $0x140] sm:$0xff] }
 0x914   :  { %v9026_v48 = vld [vmem:[#allocation4 + $0x148] sm:$0xff]  ;;  %v9028_v49 = vld [vmem:[#allocation4 + $0x150] sm:$0xff]  ;;  %v9030_v23 = vld [vmem:[#allocation4 + $0x158] sm:$0xff] }
 0x915   :  { %v9032_v39 = vld [vmem:[#allocation4 + $0x160] sm:$0xff]  ;;  %v9034_v36 = vld [vmem:[#allocation4 + $0x168] sm:$0xff]  ;;  %v9036_v3 = vld [vmem:[#allocation4 + $0x170] sm:$0xff] }
 0x916   :  { %10446 = vst [vmem:[#allocation51_spill] sm:$0xff] %v9032_v39  ;;  %10447 = vst [vmem:[#allocation46_spill] sm:$0xff] %v9034_v36  ;;  %v9038_v2 = vld [vmem:[#allocation4 + $0x178] sm:$0xff]  ;;  %v9040_v51 = vld [vmem:[#allocation4 + $0x180] sm:$0xff] }
 0x917   :  { %10448 = vst [vmem:[#allocation85_spill] sm:$0xff] %v9036_v3  ;;  %10449 = vst [vmem:[#allocation88_spill] sm:$0xff] %v9038_v2  ;;  %v9042_v58 = vld [vmem:[#allocation4 + $0x188] sm:$0xff]  ;;  %v9044_v60 = vld [vmem:[#allocation4 + $0x190] sm:$0xff] }
 0x918   :  { %10450 = vst [vmem:[#allocation93_spill] sm:$0xff] %v9040_v51  ;;  %10451 = vst [vmem:[#allocation91_spill] sm:$0xff] %v9042_v58  ;;  %v9046_v47 = vld [vmem:[#allocation4 + $0x198] sm:$0xff]  ;;  %v9048_v59 = vld [vmem:[#allocation4 + $0x1a0] sm:$0xff] }
 0x919   :  { %10452 = vst [vmem:[#allocation90_spill] sm:$0xff] %v9044_v60  ;;  %10453 = vst [vmem:[#allocation100_spill] sm:$0xff] %v9046_v47  ;;  %v9050_v54 = vld [vmem:[#allocation4 + $0x1a8] sm:$0xff]  ;;  %v9052_v57 = vld [vmem:[#allocation4 + $0x1b0] sm:$0xff] }
 0x91a   :  { %10454 = vst [vmem:[#allocation109_spill] sm:$0xff] %v9048_v59  ;;  %10455 = vst [vmem:[#allocation103_spill] sm:$0xff] %v9050_v54  ;;  %v9054_v10 = vld [vmem:[#allocation4 + $0x1b8] sm:$0xff]  ;;  %v9056_v15 = vld [vmem:[#allocation4 + $0x1c0] sm:$0xff] }
 0x91b   :  { %10456 = vst [vmem:[#allocation102_spill] sm:$0xff] %v9052_v57  ;;  %10457 = vst [vmem:[#allocation116_spill] sm:$0xff] %v9054_v10  ;;  %v9058_v26 = vld [vmem:[#allocation4 + $0x1c8] sm:$0xff]  ;;  %v9060_v40 = vld [vmem:[#allocation4 + $0x1d0] sm:$0xff] }
 0x91c   :  { %10458 = vst [vmem:[#allocation125_spill] sm:$0xff] %v9056_v15  ;;  %10459 = vst [vmem:[#allocation119_spill] sm:$0xff] %v9058_v26  ;;  %v9062_v51 = vld [vmem:[#allocation4 + $0x1d8] sm:$0xff]  ;;  %v9064_v58 = vld [vmem:[#allocation4 + $0x1e0] sm:$0xff] }
 0x91d   :  { %10460 = vst [vmem:[#allocation118_spill] sm:$0xff] %v9060_v40  ;;  %10461 = vst [vmem:[#allocation132_spill] sm:$0xff] %v9062_v51  ;;  %v9066_v60 = vld [vmem:[#allocation4 + $0x1e8] sm:$0xff]  ;;  %v9068_v47 = vld [vmem:[#allocation4 + $0x1f0] sm:$0xff] }
 0x91e   :  { %10462 = vst [vmem:[#allocation141_spill] sm:$0xff] %v9064_v58  ;;  %10463 = vst [vmem:[#allocation135_spill] sm:$0xff] %v9066_v60  ;;  %v9070_v59 = vld [vmem:[#allocation4 + $0x1f8] sm:$0xff]  ;;  %v9072_v54 = vld [vmem:[#allocation4 + $0x200] sm:$0xff] }
 0x91f   :  { %10464 = vst [vmem:[#allocation134_spill] sm:$0xff] %v9068_v47  ;;  %10465 = vst [vmem:[#allocation148_spill] sm:$0xff] %v9070_v59  ;;  %v9074_v57 = vld [vmem:[#allocation4 + $0x208] sm:$0xff]  ;;  %v9076_v10 = vld [vmem:[#allocation4 + $0x210] sm:$0xff] }
 0x920   :  { %10466 = vst [vmem:[#allocation157_spill] sm:$0xff] %v9072_v54  ;;  %10467 = vst [vmem:[#allocation235_spill] sm:$0xff] %v9074_v57  ;;  %v9078_v15 = vld [vmem:[#allocation4 + $0x218] sm:$0xff]  ;;  %v9080_v26 = vld [vmem:[#allocation4 + $0x220] sm:$0xff] }
 0x921   :  { %10468 = vst [vmem:[#allocation151_spill] sm:$0xff] %v9076_v10  ;;  %10469 = vst [vmem:[#allocation150_spill] sm:$0xff] %v9078_v15  ;;  %v9082_v40 = vld [vmem:[#allocation4 + $0x228] sm:$0xff]  ;;  %v9084_v51 = vld [vmem:[#allocation4 + $0x230] sm:$0xff] }
 0x922   :  { %10470 = vst [vmem:[#allocation164_spill] sm:$0xff] %v9080_v26  ;;  %10471 = vst [vmem:[#allocation173_spill] sm:$0xff] %v9082_v40  ;;  %v9086_v58 = vld [vmem:[#allocation4 + $0x238] sm:$0xff]  ;;  %v9088_v60 = vld [vmem:[#allocation4 + $0x240] sm:$0xff] }
 0x923   :  { %10472 = vst [vmem:[#allocation234_spill] sm:$0xff] %v9084_v51  ;;  %10473 = vst [vmem:[#allocation167_spill] sm:$0xff] %v9086_v58  ;;  %v9090_v47 = vld [vmem:[#allocation4 + $0x248] sm:$0xff]  ;;  %v9092_v59 = vld [vmem:[#allocation4 + $0x250] sm:$0xff] }
 0x924   :  { %10474 = vst [vmem:[#allocation166_spill] sm:$0xff] %v9088_v60  ;;  %10475 = vst [vmem:[#allocation180_spill] sm:$0xff] %v9090_v47  ;;  %v9094_v54 = vld [vmem:[#allocation4 + $0x258] sm:$0xff]  ;;  %v9096_v57 = vld [vmem:[#allocation4 + $0x260] sm:$0xff] }
 0x925   :  { %10476 = vst [vmem:[#allocation189_spill] sm:$0xff] %v9092_v59  ;;  %10477 = vst [vmem:[#allocation183_spill] sm:$0xff] %v9094_v54  ;;  %v9098_v10 = vld [vmem:[#allocation4 + $0x268] sm:$0xff]  ;;  %v9100_v15 = vld [vmem:[#allocation4 + $0x270] sm:$0xff] }
 0x926   :  { %10478 = vst [vmem:[#allocation182_spill] sm:$0xff] %v9096_v57  ;;  %10479 = vst [vmem:[#allocation196_spill] sm:$0xff] %v9098_v10  ;;  %v9102_v26 = vld [vmem:[#allocation4 + $0x278] sm:$0xff]  ;;  %v9104_v40 = vld [vmem:[#allocation4 + $0x280] sm:$0xff] }
 0x927   :  { %10480 = vst [vmem:[#allocation205_spill] sm:$0xff] %v9100_v15  ;;  %10481 = vst [vmem:[#allocation199_spill] sm:$0xff] %v9102_v26  ;;  %v9106_v51 = vld [vmem:[#allocation4 + $0x288] sm:$0xff]  ;;  %v9108_v58 = vld [vmem:[#allocation4 + $0x290] sm:$0xff] }
 0x928   :  { %10482 = vst [vmem:[#allocation198_spill] sm:$0xff] %v9104_v40  ;;  %10483 = vst [vmem:[#allocation212_spill] sm:$0xff] %v9106_v51  ;;  %v9110_v60 = vld [vmem:[#allocation4 + $0x298] sm:$0xff]  ;;  %v9112_v47 = vld [vmem:[#allocation4 + $0x2a0] sm:$0xff] }
 0x929   :  { %10484 = vst [vmem:[#allocation221_spill] sm:$0xff] %v9108_v58  ;;  %10485 = vst [vmem:[#allocation215_spill] sm:$0xff] %v9110_v60  ;;  %v9114_v59 = vld [vmem:[#allocation4 + $0x2a8] sm:$0xff]  ;;  %v9116_v54 = vld [vmem:[#allocation4 + $0x2b0] sm:$0xff] }
 0x92a   :  { %10486 = vst [vmem:[#allocation214_spill] sm:$0xff] %v9112_v47  ;;  %10487 = vst [vmem:[#allocation228_spill] sm:$0xff] %v9114_v59  ;;  %v9118_v57 = vld [vmem:[#allocation4 + $0x2b8] sm:$0xff]  ;;  %v9120_v10 = vld [vmem:[#allocation4 + $0x2c0] sm:$0xff] }
 0x92b   :  { %10488 = vst [vmem:[#allocation237_spill] sm:$0xff] %v9116_v54  ;;  %10489 = vst [vmem:[#allocation231_spill] sm:$0xff] %v9118_v57  ;;  %v9122_v15 = vld [vmem:[#allocation4 + $0x2c8] sm:$0xff]  ;;  %v9124_v26 = vld [vmem:[#allocation4 + $0x2d0] sm:$0xff] }
 0x92c   :  { %10490 = vst [vmem:[#allocation230_spill] sm:$0xff] %v9120_v10  ;;  %10491 = vst [vmem:[#allocation244_spill] sm:$0xff] %v9122_v15  ;;  %v9126_v40 = vld [vmem:[#allocation4 + $0x2d8] sm:$0xff]  ;;  %v9128_v51 = vld [vmem:[#allocation4 + $0x2e0] sm:$0xff] }
 0x92d   :  { %10492 = vst [vmem:[#allocation253_spill] sm:$0xff] %v9124_v26  ;;  %10493 = vst [vmem:[#allocation247_spill] sm:$0xff] %v9126_v40  ;;  %v9130_v58 = vld [vmem:[#allocation4 + $0x2e8] sm:$0xff]  ;;  %v9132_v60 = vld [vmem:[#allocation4 + $0x2f0] sm:$0xff] }
 0x92e   :  { %10494 = vst [vmem:[#allocation246_spill] sm:$0xff] %v9128_v51  ;;  %10495 = vst [vmem:[#allocation260_spill] sm:$0xff] %v9130_v58  ;;  %v9134_v47 = vld [vmem:[#allocation4 + $0x2f8] sm:$0xff]  ;;  %v9136_v59 = vld [vmem:[#allocation4 + $0x300] sm:$0xff] }
 0x92f   :  { %10496 = vst [vmem:[#allocation48_spill] sm:$0xff] %v9132_v60  ;;  %10497 = vst [vmem:[#allocation263_spill] sm:$0xff] %v9134_v47  ;;  %v9138_v54 = vld [vmem:[#allocation4 + $0x308] sm:$0xff]  ;;  %v9140_v57 = vld [vmem:[#allocation4 + $0x310] sm:$0xff] }
 0x930   :  { %10498 = vst [vmem:[#allocation262_spill] sm:$0xff] %v9136_v59  ;;  %10499 = vst [vmem:[#allocation105_spill] sm:$0xff] %v9138_v54  ;;  %v9142_v10 = vld [vmem:[#allocation4 + $0x318] sm:$0xff]  ;;  %v9144_v15 = vld [vmem:[#allocation4 + $0x320] sm:$0xff] }
 0x931   :  { %10500 = vst [vmem:[#allocation104_spill] sm:$0xff] %v9140_v57  ;;  %10501 = vst [vmem:[#allocation98_spill] sm:$0xff] %v9142_v10  ;;  %v9146_v26 = vld [vmem:[#allocation4 + $0x328] sm:$0xff]  ;;  %v9148_v40 = vld [vmem:[#allocation4 + $0x330] sm:$0xff] }
 0x932   :  { %10502 = vst [vmem:[#allocation107_spill] sm:$0xff] %v9144_v15  ;;  %10503 = vst [vmem:[#allocation121_spill] sm:$0xff] %v9146_v26  ;;  %v9150_v51 = vld [vmem:[#allocation4 + $0x338] sm:$0xff]  ;;  %v9152_v58 = vld [vmem:[#allocation4 + $0x340] sm:$0xff] }
 0x933   :  { %10504 = vst [vmem:[#allocation120_spill] sm:$0xff] %v9148_v40  ;;  %10505 = vst [vmem:[#allocation114_spill] sm:$0xff] %v9150_v51  ;;  %v9154_v60 = vld [vmem:[#allocation4 + $0x348] sm:$0xff]  ;;  %v9156_v47 = vld [vmem:[#allocation4 + $0x350] sm:$0xff] }
 0x934   :  { %10506 = vst [vmem:[#allocation123_spill] sm:$0xff] %v9152_v58  ;;  %10507 = vst [vmem:[#allocation99_spill] sm:$0xff] %v9154_v60  ;;  %v9158_v59 = vld [vmem:[#allocation4 + $0x358] sm:$0xff]  ;;  %v9160_v54 = vld [vmem:[#allocation4 + $0x360] sm:$0xff] }
 0x935   :  { %10508 = vst [vmem:[#allocation137_spill] sm:$0xff] %v9156_v47  ;;  %10509 = vst [vmem:[#allocation128_spill] sm:$0xff] %v9158_v59  ;;  %v9162_v57 = vld [vmem:[#allocation4 + $0x368] sm:$0xff]  ;;  %v9164_v10 = vld [vmem:[#allocation4 + $0x370] sm:$0xff] }
 0x936   :  { %10510 = vst [vmem:[#allocation130_spill] sm:$0xff] %v9160_v54  ;;  %10511 = vst [vmem:[#allocation145_spill] sm:$0xff] %v9162_v57  ;;  %v9166_v15 = vld [vmem:[#allocation4 + $0x378] sm:$0xff]  ;;  %v9168_v26 = vld [vmem:[#allocation4 + $0x380] sm:$0xff] }
 0x937   :  { %10512 = vst [vmem:[#allocation144_spill] sm:$0xff] %v9164_v10  ;;  %10513 = vst [vmem:[#allocation138_spill] sm:$0xff] %v9166_v15  ;;  %v9170_v40 = vld [vmem:[#allocation4 + $0x388] sm:$0xff]  ;;  %v9172_v51 = vld [vmem:[#allocation4 + $0x390] sm:$0xff] }
 0x938   :  { %10514 = vst [vmem:[#allocation147_spill] sm:$0xff] %v9168_v26  ;;  %10515 = vst [vmem:[#allocation161_spill] sm:$0xff] %v9170_v40  ;;  %v9174_v58 = vld [vmem:[#allocation4 + $0x398] sm:$0xff]  ;;  %v9176_v60 = vld [vmem:[#allocation4 + $0x3a0] sm:$0xff] }
 0x939   :  { %10516 = vst [vmem:[#allocation160_spill] sm:$0xff] %v9172_v51  ;;  %10517 = vst [vmem:[#allocation154_spill] sm:$0xff] %v9174_v58  ;;  %v9178_v47 = vld [vmem:[#allocation4 + $0x3a8] sm:$0xff]  ;;  %v9180_v59 = vld [vmem:[#allocation4 + $0x3b0] sm:$0xff] }
 0x93a   :  { %10518 = vst [vmem:[#allocation163_spill] sm:$0xff] %v9176_v60  ;;  %10519 = vst [vmem:[#allocation177_spill] sm:$0xff] %v9178_v47  ;;  %v9182_v54 = vld [vmem:[#allocation4 + $0x3b8] sm:$0xff]  ;;  %v9184_v57 = vld [vmem:[#allocation4 + $0x3c0] sm:$0xff] }
 0x93b   :  { %10520 = vst [vmem:[#allocation176_spill] sm:$0xff] %v9180_v59  ;;  %10521 = vst [vmem:[#allocation170_spill] sm:$0xff] %v9182_v54  ;;  %v9186_v10 = vld [vmem:[#allocation4 + $0x3c8] sm:$0xff]  ;;  %v9188_v15 = vld [vmem:[#allocation4 + $0x3d0] sm:$0xff] }
 0x93c   :  { %10522 = vst [vmem:[#allocation179_spill] sm:$0xff] %v9184_v57  ;;  %10523 = vst [vmem:[#allocation193_spill] sm:$0xff] %v9186_v10  ;;  %v9190_v26 = vld [vmem:[#allocation4 + $0x3d8] sm:$0xff]  ;;  %v9192_v40 = vld [vmem:[#allocation4 + $0x3e0] sm:$0xff] }
 0x93d   :  { %10524 = vst [vmem:[#allocation192_spill] sm:$0xff] %v9188_v15  ;;  %10525 = vst [vmem:[#allocation186_spill] sm:$0xff] %v9190_v26  ;;  %v9194_v51 = vld [vmem:[#allocation4 + $0x3e8] sm:$0xff]  ;;  %v9196_v58 = vld [vmem:[#allocation4 + $0x3f0] sm:$0xff] }
 0x93e   :  { %10526 = vst [vmem:[#allocation195_spill] sm:$0xff] %v9192_v40  ;;  %10527 = vst [vmem:[#allocation209_spill] sm:$0xff] %v9194_v51  ;;  %v9198_v60 = vld [vmem:[#allocation4 + $0x3f8] sm:$0xff] }
 0x93f   :  { %10528 = vst [vmem:[#allocation208_spill] sm:$0xff] %v9196_v58  ;;  %10529 = vst [vmem:[#allocation202_spill] sm:$0xff] %v9198_v60 }
 0x940   :  { %6525 = dma.done.wait [#allocation7 + $0x1], 16384 }
 0x941   :  { %6526 = vsyncadd [#allocation7 + $0x1], 4294950912  ;;  %4541 = vmatprep.mubr.bf16.mxu0 %v8940_v62  ;;  %4627 = vmatprep.mubr.bf16.mxu1 %v8940_v62  ;;  %v4382_v57 = vld [vmem:[#allocation4 + $0x408] sm:$0xff]  ;;  %v4384_v10 = vld [vmem:[#allocation4 + $0x418] sm:$0xff]  ;;  %vm6561_vm0 = vmmov 0   ;;  %s6562_s3 = smov [#allocation14]  }
 0x942   :  { %v4381_v59 = vld [vmem:[#allocation4 + $0x400] sm:$0xff]  ;;  %4509 = vmatprep.subr.bf16.mxu0 %v4382_v57  ;;  %4595 = vmatprep.subr.bf16.mxu1 %v4384_v10  ;;  %v4383_v15 = vld [vmem:[#allocation4 + $0x410] sm:$0xff]  ;;  %v4386_v26 = vld [vmem:[#allocation4 + $0x428] sm:$0xff]  ;;  %s5796_s19 = sshll.u32 %s6562_s3, 4  ;;  %s5797_s19 = int_to_ptr.vmem [resolvable:$true] %s5796_s19 }
 0x943   :  { %v4388_v40 = vld [vmem:[#allocation4 + $0x438] sm:$0xff]  ;;  %4510 = vmatpush1.bf16.msra.mxu0 %v4381_v59  ;;  %4596 = vmatpush1.bf16.msra.mxu1 %v4383_v15  ;;  %v4385_v58 = vld [vmem:[#allocation4 + $0x420] sm:$0xff]  ;;  %v4387_v60 = vld [vmem:[#allocation4 + $0x430] sm:$0xff]  ;;  %s6485_s22 = scalar_lea.vmem %s5797_s19, 256  ;;  %p6490_p11 = scmp.lt.s32.totalorder %s5797_s19, %s5797_s19 }
 0x944   :  { %4511 = vmatprep.subr.bf16.mxu0 %v4386_v26  ;;  %4597 = vmatprep.subr.bf16.mxu1 %v4388_v40  ;;  %v4390_v51 = vld [vmem:[#allocation4 + $0x448] sm:$0xff]  ;;  %v4392_v54 = vld [vmem:[#allocation4 + $0x458] sm:$0xff]  ;;  %v4389_v62 = vld [vmem:[#allocation4 + $0x440] sm:$0xff]  ;;  %p6486_p10 = scmp.ne.s32.totalorder %s5797_s19, %s6485_s22  ;;  %p6491_p12 = scmp.lt.s32.totalorder %s6485_s22, %s6485_s22 }
 0x945   :  { %v4391_v47 = vld [vmem:[#allocation4 + $0x450] sm:$0xff]  ;;  %v4394_v3 = vld [vmem:[#allocation4 + $0x468] sm:$0xff]  ;;  %v4396_v57 = vld [vmem:[#allocation4 + $0x478] sm:$0xff] }
 0x946   :  { %v4393_v10 = vld [vmem:[#allocation4 + $0x460] sm:$0xff]  ;;  %v4395_v59 = vld [vmem:[#allocation4 + $0x470] sm:$0xff]  ;;  %v4398_v15 = vld [vmem:[#allocation4 + $0x488] sm:$0xff]  ;;  %p6492_p13 = por %p6491_p12, %p6490_p11 }
 0x947   :  { %4512 = vmatpush1.bf16.msra.mxu0 %v4385_v58  ;;  %4598 = vmatpush1.bf16.msra.mxu1 %v4387_v60  ;;  %v4400_v40 = vld [vmem:[#allocation4 + $0x498] sm:$0xff]  ;;  %v4397_v26 = vld [vmem:[#allocation4 + $0x480] sm:$0xff]  ;;  %v4399_v58 = vld [vmem:[#allocation4 + $0x490] sm:$0xff] }
 0x948   :  { %4513 = vmatprep.subr.bf16.mxu0 %v4390_v51  ;;  %4599 = vmatprep.subr.bf16.mxu1 %v4392_v54  ;;  %v4402_v51 = vld [vmem:[#allocation4 + $0x4a8] sm:$0xff]  ;;  %v4404_v54 = vld [vmem:[#allocation4 + $0x4b8] sm:$0xff]  ;;  %v4401_v60 = vld [vmem:[#allocation4 + $0x4a0] sm:$0xff]  ;;  %p6493_p0 = pnand %p6492_p13, %p6486_p10 }
 0x949   :  { %v4427_v39 = vld [vmem:[#allocation4 + $0x570] sm:$0xff]  ;;  %v4438_v2 = vld [vmem:[#allocation4 + $0x5c8] sm:$0xff]  ;;  %v4440_v36 = vld [vmem:[#allocation4 + $0x5d8] sm:$0xff] }
 0x94b   :  { %4514 = vmatpush1.bf16.msra.mxu0 %v4389_v62  ;;  %4600 = vmatpush1.bf16.msra.mxu1 %v4391_v47  ;;  %v4403_v47 = vld [vmem:[#allocation4 + $0x4b0] sm:$0xff]  ;;  %v4408_v62 = vld [vmem:[#allocation4 + $0x4d8] sm:$0xff] }
 0x94c   :  { %4515 = vmatprep.subr.bf16.mxu0 %v4394_v3  ;;  %4601 = vmatprep.subr.bf16.mxu1 %v4396_v57  ;;  %v4406_v3 = vld [vmem:[#allocation4 + $0x4c8] sm:$0xff]  ;;  %v4405_v57 = vld [vmem:[#allocation4 + $0x4c0] sm:$0xff] }
 0x94f   :  { %4516 = vmatpush1.bf16.msra.mxu0 %v4393_v10  ;;  %4602 = vmatpush1.bf16.msra.mxu1 %v4395_v59  ;;  %v4407_v10 = vld [vmem:[#allocation4 + $0x4d0] sm:$0xff]  ;;  %v4410_v59 = vld [vmem:[#allocation4 + $0x4e8] sm:$0xff] }
 0x950   :  { %4517 = vmatprep.subr.bf16.mxu0 %v4398_v15  ;;  %4603 = vmatprep.subr.bf16.mxu1 %v4400_v40  ;;  %v4412_v15 = vld [vmem:[#allocation4 + $0x4f8] sm:$0xff]  ;;  %v4409_v40 = vld [vmem:[#allocation4 + $0x4e0] sm:$0xff] }
 0x953   :  { %4518 = vmatpush1.bf16.msra.mxu0 %v4397_v26  ;;  %4604 = vmatpush1.bf16.msra.mxu1 %v4399_v58  ;;  %v4411_v26 = vld [vmem:[#allocation4 + $0x4f0] sm:$0xff]  ;;  %v4414_v58 = vld [vmem:[#allocation4 + $0x508] sm:$0xff] }
 0x954   :  { %4519 = vmatprep.subr.bf16.mxu0 %v4402_v51  ;;  %4605 = vmatprep.subr.bf16.mxu1 %v4404_v54  ;;  %v4416_v51 = vld [vmem:[#allocation4 + $0x518] sm:$0xff]  ;;  %v4413_v54 = vld [vmem:[#allocation4 + $0x500] sm:$0xff] }
 0x957   :  { %4520 = vmatpush1.bf16.msra.mxu0 %v4401_v60  ;;  %4606 = vmatpush1.bf16.msra.mxu1 %v4403_v47  ;;  %v4415_v60 = vld [vmem:[#allocation4 + $0x510] sm:$0xff]  ;;  %v4418_v47 = vld [vmem:[#allocation4 + $0x528] sm:$0xff] }
 0x958   :  { %4521 = vmatprep.subr.bf16.mxu0 %v4406_v3  ;;  %4607 = vmatprep.subr.bf16.mxu1 %v4408_v62  ;;  %v4420_v3 = vld [vmem:[#allocation4 + $0x538] sm:$0xff]  ;;  %v4417_v62 = vld [vmem:[#allocation4 + $0x520] sm:$0xff] }
 0x95b   :  { %4522 = vmatpush1.bf16.msra.mxu0 %v4405_v57  ;;  %4608 = vmatpush1.bf16.msra.mxu1 %v4407_v10  ;;  %v4419_v57 = vld [vmem:[#allocation4 + $0x530] sm:$0xff]  ;;  %v4422_v10 = vld [vmem:[#allocation4 + $0x548] sm:$0xff] }
 0x95c   :  { %4523 = vmatprep.subr.bf16.mxu0 %v4410_v59  ;;  %4609 = vmatprep.subr.bf16.mxu1 %v4412_v15  ;;  %v4424_v59 = vld [vmem:[#allocation4 + $0x558] sm:$0xff]  ;;  %v4421_v15 = vld [vmem:[#allocation4 + $0x540] sm:$0xff] }
 0x95f   :  { %4524 = vmatpush1.bf16.msra.mxu0 %v4409_v40  ;;  %4610 = vmatpush1.bf16.msra.mxu1 %v4411_v26  ;;  %v4423_v40 = vld [vmem:[#allocation4 + $0x550] sm:$0xff]  ;;  %v4426_v26 = vld [vmem:[#allocation4 + $0x568] sm:$0xff] }
 0x960   :  { %4525 = vmatprep.subr.bf16.mxu0 %v4414_v58  ;;  %4611 = vmatprep.subr.bf16.mxu1 %v4416_v51  ;;  %v4428_v58 = vld [vmem:[#allocation4 + $0x578] sm:$0xff]  ;;  %v4425_v51 = vld [vmem:[#allocation4 + $0x560] sm:$0xff] }
 0x963   :  { %4526 = vmatpush1.bf16.msra.mxu0 %v4413_v54  ;;  %4612 = vmatpush1.bf16.msra.mxu1 %v4415_v60  ;;  %v4430_v54 = vld [vmem:[#allocation4 + $0x588] sm:$0xff]  ;;  %v4432_v60 = vld [vmem:[#allocation4 + $0x598] sm:$0xff] }
 0x964   :  { %4527 = vmatprep.subr.bf16.mxu0 %v4418_v47  ;;  %4613 = vmatprep.subr.bf16.mxu1 %v4420_v3  ;;  %v4429_v47 = vld [vmem:[#allocation4 + $0x580] sm:$0xff]  ;;  %v4431_v3 = vld [vmem:[#allocation4 + $0x590] sm:$0xff] }
 0x967   :  { %4528 = vmatpush1.bf16.msra.mxu0 %v4417_v62  ;;  %4614 = vmatpush1.bf16.msra.mxu1 %v4419_v57  ;;  %v4434_v62 = vld [vmem:[#allocation4 + $0x5a8] sm:$0xff]  ;;  %v4436_v57 = vld [vmem:[#allocation4 + $0x5b8] sm:$0xff] }
 0x968   :  { %4529 = vmatprep.subr.bf16.mxu0 %v4422_v10  ;;  %4615 = vmatprep.subr.bf16.mxu1 %v4424_v59  ;;  %v4433_v10 = vld [vmem:[#allocation4 + $0x5a0] sm:$0xff]  ;;  %v4435_v59 = vld [vmem:[#allocation4 + $0x5b0] sm:$0xff] }
 0x96b   :  { %4530 = vmatpush1.bf16.msra.mxu0 %v4421_v15  ;;  %4616 = vmatpush1.bf16.msra.mxu1 %v4423_v40  ;;  %v4437_v15 = vld [vmem:[#allocation4 + $0x5c0] sm:$0xff]  ;;  %v4439_v40 = vld [vmem:[#allocation4 + $0x5d0] sm:$0xff] }
 0x96c   :  { %4531 = vmatprep.subr.bf16.mxu0 %v4426_v26  ;;  %4617 = vmatprep.subr.bf16.mxu1 %v4428_v58  ;;  %v4442_v26 = vld [vmem:[#allocation4 + $0x5e8] sm:$0xff]  ;;  %v4444_v58 = vld [vmem:[#allocation4 + $0x5f8] sm:$0xff] }
 0x96f   :  { %4532 = vmatpush1.bf16.msra.mxu0 %v4425_v51  ;;  %4618 = vmatpush1.bf16.msra.mxu1 %v4427_v39  ;;  %v4441_v39 = vld [vmem:[#allocation4 + $0x5e0] sm:$0xff]  ;;  %v4443_v51 = vld [vmem:[#allocation4 + $0x5f0] sm:$0xff] }
 0x970   :  { %4533 = vmatprep.subr.bf16.mxu0 %v4430_v54  ;;  %4619 = vmatprep.subr.bf16.mxu1 %v4432_v60  ;;  %v4446_v54 = vld [vmem:[#allocation4 + $0x608] sm:$0xff]  ;;  %v4448_v60 = vld [vmem:[#allocation4 + $0x618] sm:$0xff] }
 0x973   :  { %4534 = vmatpush1.bf16.msra.mxu0 %v4429_v47  ;;  %4620 = vmatpush1.bf16.msra.mxu1 %v4431_v3  ;;  %v4445_v47 = vld [vmem:[#allocation4 + $0x600] sm:$0xff]  ;;  %v4447_v3 = vld [vmem:[#allocation4 + $0x610] sm:$0xff] }
 0x974   :  { %4535 = vmatprep.subr.bf16.mxu0 %v4434_v62  ;;  %4621 = vmatprep.subr.bf16.mxu1 %v4436_v57  ;;  %v4450_v62 = vld [vmem:[#allocation4 + $0x628] sm:$0xff]  ;;  %v4452_v57 = vld [vmem:[#allocation4 + $0x638] sm:$0xff] }
 0x977   :  { %4536 = vmatpush1.bf16.msra.mxu0 %v4433_v10  ;;  %4622 = vmatpush1.bf16.msra.mxu1 %v4435_v59  ;;  %v4454_v10 = vld [vmem:[#allocation4 + $0x648] sm:$0xff]  ;;  %v4456_v59 = vld [vmem:[#allocation4 + $0x658] sm:$0xff] }
 0x978   :  { %4537 = vmatprep.subr.bf16.mxu0 %v4438_v2  ;;  %4623 = vmatprep.subr.bf16.mxu1 %v4440_v36  ;;  %v4449_v36 = vld [vmem:[#allocation4 + $0x620] sm:$0xff]  ;;  %v4451_v2 = vld [vmem:[#allocation4 + $0x630] sm:$0xff] }
 0x97b   :  { %4538 = vmatpush1.bf16.msra.mxu0 %v4437_v15  ;;  %4624 = vmatpush1.bf16.msra.mxu1 %v4439_v40  ;;  %v4453_v15 = vld [vmem:[#allocation4 + $0x640] sm:$0xff]  ;;  %v4455_v40 = vld [vmem:[#allocation4 + $0x650] sm:$0xff] }
 0x97c   :  { %4539 = vmatprep.subr.bf16.mxu0 %v4442_v26  ;;  %4625 = vmatprep.subr.bf16.mxu1 %v4444_v58  ;;  %v4458_v26 = vld [vmem:[#allocation4 + $0x668] sm:$0xff]  ;;  %v4460_v58 = vld [vmem:[#allocation4 + $0x678] sm:$0xff] }
 0x97f   :  { %4540 = vmatpush1.bf16.msra.mxu0 %v4441_v39  ;;  %4626 = vmatpush1.bf16.msra.mxu1 %v4443_v51  ;;  %v4459_v39 = vld [vmem:[#allocation4 + $0x670] sm:$0xff]  ;;  %v4462_v51 = vld [vmem:[#allocation4 + $0x688] sm:$0xff] }
 0x980   :  { %4552 = vmatprep.subr.bf16.mxu0 %v4446_v54  ;;  %4638 = vmatprep.subr.bf16.mxu1 %v4448_v60  ;;  %v4464_v54 = vld [vmem:[#allocation4 + $0x698] sm:$0xff]  ;;  %v4461_v60 = vld [vmem:[#allocation4 + $0x680] sm:$0xff] }
 0x982   :  { %4542 = vmatmul.mubr.bf16.vlgmr.msra.gmra.mrb[16].mxu0 %v8936_v50  ;;  %4628 = vmatmul.mubr.bf16.vlgmr.msra.gmra.mrb[16].mxu1 %v8936_v50  ;;  %v4457_v50 = vld [vmem:[#allocation4 + $0x660] sm:$0xff] }
 0x983   :  { %4553 = vmatpush1.bf16.msra.mxu0 %v4445_v47  ;;  %4639 = vmatpush1.bf16.msra.mxu1 %v4447_v3  ;;  %v4463_v47 = vld [vmem:[#allocation4 + $0x690] sm:$0xff]  ;;  %v4468_v3 = vld [vmem:[#allocation4 + $0x6b8] sm:$0xff] }
 0x984   :  { %4554 = vmatprep.subr.bf16.mxu0 %v4450_v62  ;;  %4640 = vmatprep.subr.bf16.mxu1 %v4452_v57  ;;  %v4465_v62 = vld [vmem:[#allocation4 + $0x6a0] sm:$0xff]  ;;  %v4467_v57 = vld [vmem:[#allocation4 + $0x6b0] sm:$0xff] }
 0x985   :  { %4584 = vmatprep.mubr.bf16.mxu0 %v8942_v0  ;;  %4670 = vmatprep.mubr.bf16.mxu1 %v8942_v0  ;;  %v4466_v0 = vld [vmem:[#allocation4 + $0x6a8] sm:$0xff] }
 0x987   :  { %4555 = vmatpush1.bf16.msra.mxu0 %v4449_v36  ;;  %4641 = vmatpush1.bf16.msra.mxu1 %v4451_v2  ;;  %v4470_v36 = vld [vmem:[#allocation4 + $0x6c8] sm:$0xff]  ;;  %v4472_v2 = vld [vmem:[#allocation4 + $0x6d8] sm:$0xff] }
 0x988   :  { %4556 = vmatprep.subr.bf16.mxu0 %v4454_v10  ;;  %4642 = vmatprep.subr.bf16.mxu1 %v4456_v59  ;;  %v4469_v10 = vld [vmem:[#allocation4 + $0x6c0] sm:$0xff]  ;;  %v4471_v59 = vld [vmem:[#allocation4 + $0x6d0] sm:$0xff] }
 0x98b   :  { %4557 = vmatpush1.bf16.msra.mxu0 %v4453_v15  ;;  %4643 = vmatpush1.bf16.msra.mxu1 %v4455_v40  ;;  %v4474_v15 = vld [vmem:[#allocation4 + $0x6e8] sm:$0xff]  ;;  %v4476_v40 = vld [vmem:[#allocation4 + $0x6f8] sm:$0xff] }
 0x98c   :  { %4558 = vmatprep.subr.bf16.mxu0 %v4458_v26  ;;  %4644 = vmatprep.subr.bf16.mxu1 %v4460_v58  ;;  %v4473_v26 = vld [vmem:[#allocation4 + $0x6e0] sm:$0xff]  ;;  %v4475_v58 = vld [vmem:[#allocation4 + $0x6f0] sm:$0xff] }
 0x98f   :  { %4559 = vmatpush1.bf16.msra.mxu0 %v4457_v50  ;;  %4645 = vmatpush1.bf16.msra.mxu1 %v4459_v39  ;;  %v4478_v50 = vld [vmem:[#allocation4 + $0x708] sm:$0xff]  ;;  %v4480_v39 = vld [vmem:[#allocation4 + $0x718] sm:$0xff] }
 0x990   :  { %4560 = vmatprep.subr.bf16.mxu0 %v4462_v51  ;;  %4646 = vmatprep.subr.bf16.mxu1 %v4464_v54  ;;  %v4477_v51 = vld [vmem:[#allocation4 + $0x700] sm:$0xff]  ;;  %v4479_v54 = vld [vmem:[#allocation4 + $0x710] sm:$0xff] }
 0x993   :  { %4561 = vmatpush1.bf16.msra.mxu0 %v4461_v60  ;;  %4647 = vmatpush1.bf16.msra.mxu1 %v4463_v47  ;;  %v4482_v60 = vld [vmem:[#allocation4 + $0x728] sm:$0xff]  ;;  %v4484_v47 = vld [vmem:[#allocation4 + $0x738] sm:$0xff] }
 0x994   :  { %4562 = vmatprep.subr.bf16.mxu0 %v4466_v0  ;;  %4648 = vmatprep.subr.bf16.mxu1 %v4468_v3  ;;  %v4481_v0 = vld [vmem:[#allocation4 + $0x720] sm:$0xff]  ;;  %v4483_v3 = vld [vmem:[#allocation4 + $0x730] sm:$0xff] }
 0x997   :  { %4563 = vmatpush1.bf16.msra.mxu0 %v4465_v62  ;;  %4649 = vmatpush1.bf16.msra.mxu1 %v4467_v57  ;;  %v4486_v62 = vld [vmem:[#allocation4 + $0x748] sm:$0xff]  ;;  %v4488_v57 = vld [vmem:[#allocation4 + $0x758] sm:$0xff] }
 0x998   :  { %4564 = vmatprep.subr.bf16.mxu0 %v4470_v36  ;;  %4650 = vmatprep.subr.bf16.mxu1 %v4472_v2  ;;  %v4485_v36 = vld [vmem:[#allocation4 + $0x740] sm:$0xff]  ;;  %v4487_v2 = vld [vmem:[#allocation4 + $0x750] sm:$0xff] }
 0x99b   :  { %4565 = vmatpush1.bf16.msra.mxu0 %v4469_v10  ;;  %4651 = vmatpush1.bf16.msra.mxu1 %v4471_v59  ;;  %v4490_v10 = vld [vmem:[#allocation4 + $0x768] sm:$0xff]  ;;  %v4492_v59 = vld [vmem:[#allocation4 + $0x778] sm:$0xff] }
 0x99c   :  { %4566 = vmatprep.subr.bf16.mxu0 %v4474_v15  ;;  %4652 = vmatprep.subr.bf16.mxu1 %v4476_v40  ;;  %v4489_v15 = vld [vmem:[#allocation4 + $0x760] sm:$0xff]  ;;  %v4491_v40 = vld [vmem:[#allocation4 + $0x770] sm:$0xff] }
 0x99f   :  { %4567 = vmatpush1.bf16.msra.mxu0 %v4473_v26  ;;  %4653 = vmatpush1.bf16.msra.mxu1 %v4475_v58  ;;  %v4494_v26 = vld [vmem:[#allocation4 + $0x788] sm:$0xff]  ;;  %v4496_v58 = vld [vmem:[#allocation4 + $0x798] sm:$0xff] }
 0x9a0   :  { %4568 = vmatprep.subr.bf16.mxu0 %v4478_v50  ;;  %4654 = vmatprep.subr.bf16.mxu1 %v4480_v39  ;;  %v4493_v50 = vld [vmem:[#allocation4 + $0x780] sm:$0xff]  ;;  %v4495_v39 = vld [vmem:[#allocation4 + $0x790] sm:$0xff] }
 0x9a3   :  { %4569 = vmatpush1.bf16.msra.mxu0 %v4477_v51  ;;  %4655 = vmatpush1.bf16.msra.mxu1 %v4479_v54  ;;  %v4498_v51 = vld [vmem:[#allocation4 + $0x7a8] sm:$0xff]  ;;  %v4500_v54 = vld [vmem:[#allocation4 + $0x7b8] sm:$0xff] }
 0x9a4   :  { %4570 = vmatprep.subr.bf16.mxu0 %v4482_v60  ;;  %4656 = vmatprep.subr.bf16.mxu1 %v4484_v47  ;;  %v4497_v60 = vld [vmem:[#allocation4 + $0x7a0] sm:$0xff]  ;;  %v4499_v47 = vld [vmem:[#allocation4 + $0x7b0] sm:$0xff] }
 0x9a7   :  { %4571 = vmatpush1.bf16.msra.mxu0 %v4481_v0  ;;  %4657 = vmatpush1.bf16.msra.mxu1 %v4483_v3  ;;  %v4502_v0 = vld [vmem:[#allocation4 + $0x7c8] sm:$0xff]  ;;  %v4504_v3 = vld [vmem:[#allocation4 + $0x7d8] sm:$0xff] }
 0x9a8   :  { %4572 = vmatprep.subr.bf16.mxu0 %v4486_v62  ;;  %4658 = vmatprep.subr.bf16.mxu1 %v4488_v57  ;;  %v4501_v62 = vld [vmem:[#allocation4 + $0x7c0] sm:$0xff]  ;;  %v4503_v57 = vld [vmem:[#allocation4 + $0x7d0] sm:$0xff] }
 0x9ab   :  { %4573 = vmatpush1.bf16.msra.mxu0 %v4485_v36  ;;  %4659 = vmatpush1.bf16.msra.mxu1 %v4487_v2  ;;  %v4506_v36 = vld [vmem:[#allocation4 + $0x7e8] sm:$0xff]  ;;  %v4508_v2 = vld [vmem:[#allocation4 + $0x7f8] sm:$0xff] }
 0x9ac   :  { %4574 = vmatprep.subr.bf16.mxu0 %v4490_v10  ;;  %4660 = vmatprep.subr.bf16.mxu1 %v4492_v59  ;;  %v4505_v10 = vld [vmem:[#allocation4 + $0x7e0] sm:$0xff]  ;;  %v4507_v59 = vld [vmem:[#allocation4 + $0x7f0] sm:$0xff] }
 0x9af   :  { %4575 = vmatpush1.bf16.msra.mxu0 %v4489_v15  ;;  %4661 = vmatpush1.bf16.msra.mxu1 %v4491_v40  ;;  %v10576_v15 = vld [vmem:[#allocation244_spill] sm:$0xff]  ;;  %v10577_v40 = vld [vmem:[#allocation247_spill] sm:$0xff] }
 0x9b0   :  { %4576 = vmatprep.subr.bf16.mxu0 %v4494_v26  ;;  %4662 = vmatprep.subr.bf16.mxu1 %v4496_v58  ;;  %v10578_v26 = vld [vmem:[#allocation230_spill] sm:$0xff]  ;;  %v10579_v58 = vld [vmem:[#allocation253_spill] sm:$0xff] }
 0x9b3   :  { %4577 = vmatpush1.bf16.msra.mxu0 %v4493_v50  ;;  %4663 = vmatpush1.bf16.msra.mxu1 %v4495_v39  ;;  %v10580_v50 = vld [vmem:[#allocation260_spill] sm:$0xff]  ;;  %v10581_v39 = vld [vmem:[#allocation263_spill] sm:$0xff] }
 0x9b4   :  { %4578 = vmatprep.subr.bf16.mxu0 %v4498_v51  ;;  %4664 = vmatprep.subr.bf16.mxu1 %v4500_v54  ;;  %v10582_v51 = vld [vmem:[#allocation246_spill] sm:$0xff]  ;;  %v10583_v54 = vld [vmem:[#allocation48_spill] sm:$0xff] }
 0x9b7   :  { %4579 = vmatpush1.bf16.msra.mxu0 %v4497_v60  ;;  %4665 = vmatpush1.bf16.msra.mxu1 %v4499_v47  ;;  %v10584_v60 = vld [vmem:[#allocation105_spill] sm:$0xff]  ;;  %v10585_v47 = vld [vmem:[#allocation98_spill] sm:$0xff] }
 0x9b8   :  { %4580 = vmatprep.subr.bf16.mxu0 %v4502_v0  ;;  %4666 = vmatprep.subr.bf16.mxu1 %v4504_v3  ;;  %v10586_v0 = vld [vmem:[#allocation262_spill] sm:$0xff]  ;;  %v10587_v3 = vld [vmem:[#allocation104_spill] sm:$0xff] }
 0x9bb   :  { %4581 = vmatpush1.bf16.msra.mxu0 %v4501_v62  ;;  %4667 = vmatpush1.bf16.msra.mxu1 %v4503_v57  ;;  %v10588_v62 = vld [vmem:[#allocation121_spill] sm:$0xff]  ;;  %v10589_v57 = vld [vmem:[#allocation114_spill] sm:$0xff] }
 0x9bc   :  { %4582 = vmatprep.subr.bf16.mxu0 %v4506_v36  ;;  %4668 = vmatprep.subr.bf16.mxu1 %v4508_v2  ;;  %v10590_v36 = vld [vmem:[#allocation107_spill] sm:$0xff]  ;;  %v10591_v2 = vld [vmem:[#allocation120_spill] sm:$0xff] }
 0x9bf   :  { %4583 = vmatpush1.bf16.msra.mxu0 %v4505_v10  ;;  %4669 = vmatpush1.bf16.msra.mxu1 %v4507_v59  ;;  %v10592_v10 = vld [vmem:[#allocation99_spill] sm:$0xff]  ;;  %v10593_v59 = vld [vmem:[#allocation128_spill] sm:$0xff] }
 0x9c0   :  { %4681 = vmatprep.subr.bf16.mxu0 %v8946_v9  ;;  %4767 = vmatprep.subr.bf16.mxu1 %v8950_v31  ;;  %v10533_v9 = vld [vmem:[#allocation85_spill] sm:$0xff]  ;;  %v10535_v31 = vld [vmem:[#allocation100_spill] sm:$0xff] }
 0x9c2   :  { %4585 = vmatmul.mubr.bf16.vlgmr.msra.gmra.mrb[16].mxu0 %v8938_v11  ;;  %4671 = vmatmul.mubr.bf16.vlgmr.msra.gmra.mrb[16].mxu1 %v8938_v11  ;;  %v10531_v11 = vld [vmem:[#allocation88_spill] sm:$0xff] }
 0x9c3   :  { %4682 = vmatpush1.bf16.msra.mxu0 %v8944_v20  ;;  %4768 = vmatpush1.bf16.msra.mxu1 %v8948_v46  ;;  %v10532_v20 = vld [vmem:[#allocation51_spill] sm:$0xff] }
 0x9c4   :  { %4683 = vmatprep.subr.bf16.mxu0 %v8954_v1  ;;  %4769 = vmatprep.subr.bf16.mxu1 %v8958_v55  ;;  %v10534_v46 = vld [vmem:[#allocation91_spill] sm:$0xff]  ;;  %v10537_v1 = vld [vmem:[#allocation90_spill] sm:$0xff]  ;;  %v10539_v55 = vld [vmem:[#allocation116_spill] sm:$0xff] }
 0x9c5   :  { %4713 = vmatprep.mubr.bf16.mxu0 %v8923_v27  ;;  %4799 = vmatprep.mubr.bf16.mxu1 %v8923_v27  ;;  %v10530_v27 = vld [vmem:[#allocation46_spill] sm:$0xff] }
 0x9c7   :  { %4684 = vmatpush1.bf16.msra.mxu0 %v8952_v12  ;;  %4770 = vmatpush1.bf16.msra.mxu1 %v8956_v22  ;;  %v10536_v12 = vld [vmem:[#allocation93_spill] sm:$0xff]  ;;  %v10538_v22 = vld [vmem:[#allocation103_spill] sm:$0xff] }
 0x9c8   :  { %4685 = vmatprep.subr.bf16.mxu0 %v8962_v14  ;;  %4771 = vmatprep.subr.bf16.mxu1 %v8966_v8  ;;  %v10541_v14 = vld [vmem:[#allocation102_spill] sm:$0xff]  ;;  %v10543_v8 = vld [vmem:[#allocation132_spill] sm:$0xff] }
 0x9cb   :  { %4686 = vmatpush1.bf16.msra.mxu0 %v8960_v13  ;;  %4772 = vmatpush1.bf16.msra.mxu1 %v8964_v5  ;;  %v10540_v13 = vld [vmem:[#allocation109_spill] sm:$0xff]  ;;  %v10542_v5 = vld [vmem:[#allocation119_spill] sm:$0xff] }
 0x9cc   :  { %4687 = vmatprep.subr.bf16.mxu0 %v8970_v16  ;;  %4773 = vmatprep.subr.bf16.mxu1 %v8974_v25  ;;  %v10545_v16 = vld [vmem:[#allocation118_spill] sm:$0xff]  ;;  %v10547_v25 = vld [vmem:[#allocation148_spill] sm:$0xff] }
 0x9cf   :  { %4688 = vmatpush1.bf16.msra.mxu0 %v8968_v53  ;;  %4774 = vmatpush1.bf16.msra.mxu1 %v8972_v24  ;;  %v10544_v53 = vld [vmem:[#allocation125_spill] sm:$0xff]  ;;  %v10546_v24 = vld [vmem:[#allocation135_spill] sm:$0xff] }
 0x9d0   :  { %4689 = vmatprep.subr.bf16.mxu0 %v8978_v45  ;;  %4775 = vmatprep.subr.bf16.mxu1 %v8982_v52  ;;  %v10549_v45 = vld [vmem:[#allocation134_spill] sm:$0xff] }
 0x9d1   :  { %v10551_v52 = vld [vmem:[#allocation150_spill] sm:$0xff] }
 0x9d3   :  { %4690 = vmatpush1.bf16.msra.mxu0 %v8976_v43  ;;  %4776 = vmatpush1.bf16.msra.mxu1 %v8980_v61  ;;  %v10548_v43 = vld [vmem:[#allocation141_spill] sm:$0xff]  ;;  %v10550_v61 = vld [vmem:[#allocation235_spill] sm:$0xff] }
 0x9d4   :  { %4691 = vmatprep.subr.bf16.mxu0 %v8986_v17  ;;  %4777 = vmatprep.subr.bf16.mxu1 %v8990_v4  ;;  %v10553_v17 = vld [vmem:[#allocation157_spill] sm:$0xff] }
 0x9d5   :  { %v10555_v4 = vld [vmem:[#allocation173_spill] sm:$0xff] }
 0x9d7   :  { %4692 = vmatpush1.bf16.msra.mxu0 %v8984_v42  ;;  %4778 = vmatpush1.bf16.msra.mxu1 %v8988_v38  ;;  %v10552_v42 = vld [vmem:[#allocation218_spill] sm:$0xff]  ;;  %v10554_v38 = vld [vmem:[#allocation151_spill] sm:$0xff] }
 0x9d8   :  { %4693 = vmatprep.subr.bf16.mxu0 %v8994_v21  ;;  %4779 = vmatprep.subr.bf16.mxu1 %v8998_v44  ;;  %v10557_v21 = vld [vmem:[#allocation45_spill] sm:$0xff]  ;;  %v10559_v44 = vld [vmem:[#allocation234_spill] sm:$0xff] }
 0x9db   :  { %4694 = vmatpush1.bf16.msra.mxu0 %v8992_v6  ;;  %4780 = vmatpush1.bf16.msra.mxu1 %v8996_v7  ;;  %v10556_v6 = vld [vmem:[#allocation167_spill] sm:$0xff]  ;;  %v10558_v7 = vld [vmem:[#allocation164_spill] sm:$0xff] }
 0x9dc   :  { %4695 = vmatprep.subr.bf16.mxu0 %v9002_v30  ;;  %4781 = vmatprep.subr.bf16.mxu1 %v9006_v34  ;;  %v10561_v30 = vld [vmem:[#allocation183_spill] sm:$0xff]  ;;  %v10563_v34 = vld [vmem:[#allocation189_spill] sm:$0xff] }
 0x9df   :  { %4696 = vmatpush1.bf16.msra.mxu0 %v9000_v63  ;;  %4782 = vmatpush1.bf16.msra.mxu1 %v9004_v28  ;;  %v10560_v63 = vld [vmem:[#allocation180_spill] sm:$0xff]  ;;  %v10562_v28 = vld [vmem:[#allocation166_spill] sm:$0xff] }
 0x9e0   :  { %4697 = vmatprep.subr.bf16.mxu0 %v9010_v18  ;;  %4783 = vmatprep.subr.bf16.mxu1 %v9014_v19  ;;  %v10565_v18 = vld [vmem:[#allocation199_spill] sm:$0xff]  ;;  %v10567_v19 = vld [vmem:[#allocation205_spill] sm:$0xff] }
 0x9e3   :  { %4698 = vmatpush1.bf16.msra.mxu0 %v9008_v56  ;;  %4784 = vmatpush1.bf16.msra.mxu1 %v9012_v29  ;;  %v10564_v56 = vld [vmem:[#allocation196_spill] sm:$0xff]  ;;  %v10566_v29 = vld [vmem:[#allocation182_spill] sm:$0xff] }
 0x9e4   :  { %4699 = vmatprep.subr.bf16.mxu0 %v9018_v33  ;;  %4785 = vmatprep.subr.bf16.mxu1 %v9022_v37  ;;  %v10569_v33 = vld [vmem:[#allocation215_spill] sm:$0xff]  ;;  %v10571_v37 = vld [vmem:[#allocation221_spill] sm:$0xff] }
 0x9e7   :  { %4700 = vmatpush1.bf16.msra.mxu0 %v9016_v32  ;;  %4786 = vmatpush1.bf16.msra.mxu1 %v9020_v35  ;;  %v10568_v32 = vld [vmem:[#allocation212_spill] sm:$0xff]  ;;  %v10570_v35 = vld [vmem:[#allocation198_spill] sm:$0xff] }
 0x9e8   :  { %4701 = vmatprep.subr.bf16.mxu0 %v9026_v48  ;;  %4787 = vmatprep.subr.bf16.mxu1 %v9030_v23  ;;  %v10573_v48 = vld [vmem:[#allocation231_spill] sm:$0xff]  ;;  %v10575_v23 = vld [vmem:[#allocation237_spill] sm:$0xff] }
 0x9eb   :  { %4702 = vmatpush1.bf16.msra.mxu0 %v9024_v41  ;;  %4788 = vmatpush1.bf16.msra.mxu1 %v9028_v49  ;;  %v10572_v41 = vld [vmem:[#allocation228_spill] sm:$0xff]  ;;  %v10574_v49 = vld [vmem:[#allocation214_spill] sm:$0xff] }
 0x9ec   :  { %4703 = vmatprep.subr.bf16.mxu0 %v10530_v27  ;;  %4789 = vmatprep.subr.bf16.mxu1 %v10531_v11  ;;  %v10594_v27 = vld [vmem:[#allocation123_spill] sm:$0xff]  ;;  %v10595_v11 = vld [vmem:[#allocation137_spill] sm:$0xff] }
 0x9ef   :  { %4704 = vmatpush1.bf16.msra.mxu0 %v10532_v20  ;;  %4790 = vmatpush1.bf16.msra.mxu1 %v10533_v9  ;;  %v10596_v20 = vld [vmem:[#allocation145_spill] sm:$0xff]  ;;  %v10597_v9 = vld [vmem:[#allocation138_spill] sm:$0xff] }
 0x9f0   :  { %4705 = vmatprep.subr.bf16.mxu0 %v10534_v46  ;;  %4791 = vmatprep.subr.bf16.mxu1 %v10535_v31  ;;  %v10598_v46 = vld [vmem:[#allocation130_spill] sm:$0xff]  ;;  %v10599_v31 = vld [vmem:[#allocation144_spill] sm:$0xff] }
 0x9f3   :  { %4706 = vmatpush1.bf16.msra.mxu0 %v10536_v12  ;;  %4792 = vmatpush1.bf16.msra.mxu1 %v10537_v1  ;;  %v10600_v12 = vld [vmem:[#allocation161_spill] sm:$0xff]  ;;  %v10601_v1 = vld [vmem:[#allocation154_spill] sm:$0xff] }
 0x9f4   :  { %4707 = vmatprep.subr.bf16.mxu0 %v10538_v22  ;;  %4793 = vmatprep.subr.bf16.mxu1 %v10539_v55  ;;  %v10602_v22 = vld [vmem:[#allocation147_spill] sm:$0xff]  ;;  %v10603_v55 = vld [vmem:[#allocation160_spill] sm:$0xff] }
 0x9f7   :  { %4708 = vmatpush1.bf16.msra.mxu0 %v10540_v13  ;;  %4794 = vmatpush1.bf16.msra.mxu1 %v10541_v14  ;;  %v10604_v13 = vld [vmem:[#allocation177_spill] sm:$0xff]  ;;  %v10605_v14 = vld [vmem:[#allocation170_spill] sm:$0xff] }
 0x9f8   :  { %4709 = vmatprep.subr.bf16.mxu0 %v10542_v5  ;;  %4795 = vmatprep.subr.bf16.mxu1 %v10543_v8  ;;  %v10606_v5 = vld [vmem:[#allocation163_spill] sm:$0xff]  ;;  %v10607_v8 = vld [vmem:[#allocation176_spill] sm:$0xff] }
 0x9fb   :  { %4710 = vmatpush1.bf16.msra.mxu0 %v10544_v53  ;;  %4796 = vmatpush1.bf16.msra.mxu1 %v10545_v16  ;;  %v10608_v53 = vld [vmem:[#allocation193_spill] sm:$0xff]  ;;  %v10609_v16 = vld [vmem:[#allocation186_spill] sm:$0xff] }
 0x9fc   :  { %4711 = vmatprep.subr.bf16.mxu0 %v10546_v24  ;;  %4797 = vmatprep.subr.bf16.mxu1 %v10547_v25  ;;  %v10610_v24 = vld [vmem:[#allocation179_spill] sm:$0xff]  ;;  %v10611_v25 = vld [vmem:[#allocation192_spill] sm:$0xff] }
 0x9ff   :  { %4712 = vmatpush1.bf16.msra.mxu0 %v10548_v43  ;;  %4798 = vmatpush1.bf16.msra.mxu1 %v10549_v45  ;;  %v10612_v43 = vld [vmem:[#allocation209_spill] sm:$0xff]  ;;  %v10613_v45 = vld [vmem:[#allocation202_spill] sm:$0xff] }
 0xa00   :  { %4724 = vmatprep.subr.bf16.mxu0 %v10550_v61  ;;  %4810 = vmatprep.subr.bf16.mxu1 %v10551_v52  ;;  %v6293_v61 = vld [vmem:[#allocation11 + $0x4] ss:$8 sps:$4 sm:$0xff]   ;;  %v10614_v52 = vld [vmem:[#allocation195_spill] sm:$0xff] }
 0xa02   :  { %4714 = vmatmul.mubr.bf16.vlgmr.msra.gmra.mrb[16].mxu0 %v10552_v42  ;;  %4800 = vmatmul.mubr.bf16.vlgmr.msra.gmra.mrb[16].mxu1 %v10552_v42  ;;  %v10615_v42 = vld [vmem:[#allocation208_spill] sm:$0xff] }
 0xa03   :  { %4725 = vmatpush1.bf16.msra.mxu0 %v10553_v17  ;;  %4811 = vmatpush1.bf16.msra.mxu1 %v10554_v38  ;;  %v6291_v17 = vld [vmem:[#allocation11] ss:$8 sps:$4 sm:$0xff]   ;;  %v6296_v38 = vld [vmem:[#allocation11 + $0x14] ss:$8 sps:$4 sm:$0xff]  }
 0xa04   :  { %4726 = vmatprep.subr.bf16.mxu0 %v10555_v4  ;;  %4812 = vmatprep.subr.bf16.mxu1 %v10556_v6  ;;  %v10616_v4 = vld [vmem:[#allocation50_spill] sm:$0xff] }
 0xa05   :  { %4756 = vmatprep.mubr.bf16.mxu0 %v10557_v21  ;;  %4842 = vmatprep.mubr.bf16.mxu1 %v10557_v21  ;;  %v6294_v6 = vld [vmem:[#allocation11 + $0x10] ss:$8 sps:$4 sm:$0xff]   ;;  %v6299_v21 = vld [vmem:[#allocation11 + $0x24] ss:$8 sps:$4 sm:$0xff]  }
 0xa07   :  { %4727 = vmatpush1.bf16.msra.mxu0 %v10558_v7  ;;  %4813 = vmatpush1.bf16.msra.mxu1 %v10559_v44  ;;  %v6297_v7 = vld [vmem:[#allocation11 + $0x20] ss:$8 sps:$4 sm:$0xff]   ;;  %v6302_v44 = vld [vmem:[#allocation11 + $0x34] ss:$8 sps:$4 sm:$0xff]  }
 0xa08   :  { %4728 = vmatprep.subr.bf16.mxu0 %v10560_v63  ;;  %4814 = vmatprep.subr.bf16.mxu1 %v10561_v30  ;;  %v6300_v63 = vld [vmem:[#allocation11 + $0x30] ss:$8 sps:$4 sm:$0xff]   ;;  %v6305_v30 = vld [vmem:[#allocation11 + $0x44] ss:$8 sps:$4 sm:$0xff]  }
 0xa0b   :  { %4729 = vmatpush1.bf16.msra.mxu0 %v10562_v28  ;;  %4815 = vmatpush1.bf16.msra.mxu1 %v10563_v34  ;;  %v6303_v28 = vld [vmem:[#allocation11 + $0x40] ss:$8 sps:$4 sm:$0xff]   ;;  %v6308_v34 = vld [vmem:[#allocation11 + $0x54] ss:$8 sps:$4 sm:$0xff]  }
 0xa0c   :  { %4730 = vmatprep.subr.bf16.mxu0 %v10564_v56  ;;  %4816 = vmatprep.subr.bf16.mxu1 %v10565_v18  ;;  %v6306_v56 = vld [vmem:[#allocation11 + $0x50] ss:$8 sps:$4 sm:$0xff]   ;;  %v6311_v18 = vld [vmem:[#allocation11 + $0x64] ss:$8 sps:$4 sm:$0xff]  }
 0xa0f   :  { %4731 = vmatpush1.bf16.msra.mxu0 %v10566_v29  ;;  %4817 = vmatpush1.bf16.msra.mxu1 %v10567_v19  ;;  %v6309_v29 = vld [vmem:[#allocation11 + $0x60] ss:$8 sps:$4 sm:$0xff]   ;;  %v6314_v19 = vld [vmem:[#allocation11 + $0x74] ss:$8 sps:$4 sm:$0xff]  }
 0xa10   :  { %4732 = vmatprep.subr.bf16.mxu0 %v10568_v32  ;;  %4818 = vmatprep.subr.bf16.mxu1 %v10569_v33  ;;  %v6312_v32 = vld [vmem:[#allocation11 + $0x70] ss:$8 sps:$4 sm:$0xff]   ;;  %v6317_v33 = vld [vmem:[#allocation11 + $0x84] ss:$8 sps:$4 sm:$0xff]  }
 0xa13   :  { %4733 = vmatpush1.bf16.msra.mxu0 %v10570_v35  ;;  %4819 = vmatpush1.bf16.msra.mxu1 %v10571_v37  ;;  %v6315_v35 = vld [vmem:[#allocation11 + $0x80] ss:$8 sps:$4 sm:$0xff]   ;;  %v6320_v37 = vld [vmem:[#allocation11 + $0x94] ss:$8 sps:$4 sm:$0xff]  }
 0xa14   :  { %4734 = vmatprep.subr.bf16.mxu0 %v10572_v41  ;;  %4820 = vmatprep.subr.bf16.mxu1 %v10573_v48  ;;  %v6318_v41 = vld [vmem:[#allocation11 + $0x90] ss:$8 sps:$4 sm:$0xff]   ;;  %v6323_v48 = vld [vmem:[#allocation11 + $0xa4] ss:$8 sps:$4 sm:$0xff]  }
 0xa17   :  { %4735 = vmatpush1.bf16.msra.mxu0 %v10574_v49  ;;  %4821 = vmatpush1.bf16.msra.mxu1 %v10575_v23  ;;  %v6321_v49 = vld [vmem:[#allocation11 + $0xa0] ss:$8 sps:$4 sm:$0xff]   ;;  %v6326_v23 = vld [vmem:[#allocation11 + $0xb4] ss:$8 sps:$4 sm:$0xff]  }
 0xa18   :  { %4736 = vmatprep.subr.bf16.mxu0 %v10576_v15  ;;  %4822 = vmatprep.subr.bf16.mxu1 %v10577_v40  ;;  %v6324_v15 = vld [vmem:[#allocation11 + $0xb0] ss:$8 sps:$4 sm:$0xff]   ;;  %v6329_v40 = vld [vmem:[#allocation11 + $0xc4] ss:$8 sps:$4 sm:$0xff]  }
 0xa1b   :  { %4737 = vmatpush1.bf16.msra.mxu0 %v10578_v26  ;;  %4823 = vmatpush1.bf16.msra.mxu1 %v10579_v58  ;;  %v6327_v26 = vld [vmem:[#allocation11 + $0xc0] ss:$8 sps:$4 sm:$0xff]   ;;  %v6332_v58 = vld [vmem:[#allocation11 + $0xd4] ss:$8 sps:$4 sm:$0xff]  }
 0xa1c   :  { %4738 = vmatprep.subr.bf16.mxu0 %v10580_v50  ;;  %4824 = vmatprep.subr.bf16.mxu1 %v10581_v39  ;;  %v6330_v50 = vld [vmem:[#allocation11 + $0xd0] ss:$8 sps:$4 sm:$0xff]   ;;  %v6335_v39 = vld [vmem:[#allocation11 + $0xe4] ss:$8 sps:$4 sm:$0xff]  }
 0xa1f   :  { %4739 = vmatpush1.bf16.msra.mxu0 %v10582_v51  ;;  %4825 = vmatpush1.bf16.msra.mxu1 %v10583_v54  ;;  %v6333_v51 = vld [vmem:[#allocation11 + $0xe0] ss:$8 sps:$4 sm:$0xff]   ;;  %v6338_v54 = vld [vmem:[#allocation11 + $0xf4] ss:$8 sps:$4 sm:$0xff]  }
 0xa20   :  { %4740 = vmatprep.subr.bf16.mxu0 %v10584_v60  ;;  %4826 = vmatprep.subr.bf16.mxu1 %v10585_v47  ;;  %v6336_v60 = vld [vmem:[#allocation11 + $0xf0] ss:$8 sps:$4 sm:$0xff]   ;;  %v6341_v47 = vld [vmem:[#allocation11 + $0x104] ss:$8 sps:$4 sm:$0xff]  }
 0xa23   :  { %4741 = vmatpush1.bf16.msra.mxu0 %v10586_v0  ;;  %4827 = vmatpush1.bf16.msra.mxu1 %v10587_v3  ;;  %v6387_v0 = vld [vmem:[#allocation11 + $0x280] ss:$8 sps:$4 sm:$0xff]  }
 0xa24   :  { %4742 = vmatprep.subr.bf16.mxu0 %v10588_v62  ;;  %4828 = vmatprep.subr.bf16.mxu1 %v10589_v57  ;;  %v6388_v3 = vld [vmem:[#allocation11 + $0x200] ss:$8 sps:$4 sm:$0xff]   ;;  %v6389_v62 = vld [vmem:[#allocation11 + $0x290] ss:$8 sps:$4 sm:$0xff]  }
 0xa25   :  { %v6390_v57 = vld [vmem:[#allocation11 + $0x210] ss:$8 sps:$4 sm:$0xff]  }
 0xa27   :  { %4743 = vmatpush1.bf16.msra.mxu0 %v10590_v36  ;;  %4829 = vmatpush1.bf16.msra.mxu1 %v10591_v2  ;;  %v6391_v36 = vld [vmem:[#allocation11 + $0x2a0] ss:$8 sps:$4 sm:$0xff]  }
 0xa28   :  { %4744 = vmatprep.subr.bf16.mxu0 %v10592_v10  ;;  %4830 = vmatprep.subr.bf16.mxu1 %v10593_v59  ;;  %v6392_v2 = vld [vmem:[#allocation11 + $0x220] ss:$8 sps:$4 sm:$0xff]   ;;  %v6393_v10 = vld [vmem:[#allocation11 + $0x2b0] ss:$8 sps:$4 sm:$0xff]  }
 0xa29   :  { %v6394_v59 = vld [vmem:[#allocation11 + $0x230] ss:$8 sps:$4 sm:$0xff]  }
 0xa2b   :  { %4745 = vmatpush1.bf16.msra.mxu0 %v10594_v27  ;;  %4831 = vmatpush1.bf16.msra.mxu1 %v10595_v11  ;;  %v6395_v27 = vld [vmem:[#allocation11 + $0x2c0] ss:$8 sps:$4 sm:$0xff]  }
 0xa2c   :  { %4746 = vmatprep.subr.bf16.mxu0 %v10596_v20  ;;  %4832 = vmatprep.subr.bf16.mxu1 %v10597_v9  ;;  %v6396_v11 = vld [vmem:[#allocation11 + $0x240] ss:$8 sps:$4 sm:$0xff]   ;;  %v6397_v20 = vld [vmem:[#allocation11 + $0x2d0] ss:$8 sps:$4 sm:$0xff]  }
 0xa2d   :  { %v4853_v9 = vld [vmem:[#allocation13 + $0x10] sm:$0xf] }
 0xa2f   :  { %4747 = vmatpush1.bf16.msra.mxu0 %v10598_v46  ;;  %4833 = vmatpush1.bf16.msra.mxu1 %v10599_v31  ;;  %v10617_v46 = vld [vmem:[#allocation227_spill] sm:$0xff] }
 0xa30   :  { %4748 = vmatprep.subr.bf16.mxu0 %v10600_v12  ;;  %4834 = vmatprep.subr.bf16.mxu1 %v10601_v1  ;;  %v4858_v31 = vrot.slane %v4853_v9, %v10617_v46  ;;  %v10618_v12 = vld [vmem:[#allocation224_spill] sm:$0xff] }
 0xa31   :  { %v4866_v1 = vrot.slane %v4853_v9, %v10618_v12  ;;  %v6386_v12 = vld [vmem:[#allocation11 + $0x1f4] ss:$8 sps:$4 sm:$0xff]  }
 0xa33   :  { %4749 = vmatpush1.bf16.msra.mxu0 %v10602_v22  ;;  %4835 = vmatpush1.bf16.msra.mxu1 %v10603_v55  ;;  %v10619_v22 = vld [vmem:[#allocation226_spill] sm:$0xff] }
 0xa34   :  { %4750 = vmatprep.subr.bf16.mxu0 %v10604_v13  ;;  %4836 = vmatprep.subr.bf16.mxu1 %v10605_v14  ;;  %v4862_v55 = vrot.slane %v4853_v9, %v10619_v22  ;;  %v10620_v13 = vld [vmem:[#allocation233_spill] sm:$0xff] }
 0xa35   :  { %v4870_v14 = vrot.slane %v4853_v9, %v10620_v13  ;;  %v6383_v9 = vld [vmem:[#allocation11 + $0x1e4] ss:$8 sps:$4 sm:$0xff]   ;;  %v6399_v13 = vld [vmem:[#allocation11 + $0x2e0] ss:$8 sps:$4 sm:$0xff]  }
 0xa37   :  { %4751 = vmatpush1.bf16.msra.mxu0 %v10606_v5  ;;  %4837 = vmatpush1.bf16.msra.mxu1 %v10607_v8 }
 0xa38   :  { %4752 = vmatprep.subr.bf16.mxu0 %v10608_v53  ;;  %4838 = vmatprep.subr.bf16.mxu1 %v10609_v16 }
 0xa3b   :  { %4753 = vmatpush1.bf16.msra.mxu0 %v10610_v24  ;;  %4839 = vmatpush1.bf16.msra.mxu1 %v10611_v25 }
 0xa3c   :  { %4754 = vmatprep.subr.bf16.mxu0 %v10612_v43  ;;  %4840 = vmatprep.subr.bf16.mxu1 %v10613_v45 }
 0xa3f   :  { %4755 = vmatpush1.bf16.msra.mxu0 %v10614_v52  ;;  %4841 = vmatpush1.bf16.msra.mxu1 %v10615_v42 }
 0xa40   :  { %5291 = vmatprep.subr.bf16.mxu0 %v6293_v61  ;;  %5985 = vmatprep.subr.bf16.mxu1 %v6387_v0  ;;  %v6363_v0 = vld [vmem:[#allocation11 + $0x180] ss:$8 sps:$4 sm:$0xff]  }
 0xa42   :  { %4757 = vmatmul.mubr.bf16.vlgmr.msra.gmra.mrb[16].mxu0 %v10616_v4  ;;  %4843 = vmatmul.mubr.bf16.vlgmr.msra.gmra.mrb[16].mxu1 %v10616_v4 }
 0xa43   :  { %5292 = vmatpush1.bf16.msra.mxu0 %v6291_v17  ;;  %5986 = vmatpush3.bf16.msra.mxu1 %v6388_v3  ;;  %v6368_v3 = vld [vmem:[#allocation11 + $0x194] ss:$8 sps:$4 sm:$0xff]  }
 0xa44   :  { %5293 = vmatprep.subr.bf16.mxu0 %v6296_v38  ;;  %5987 = vmatprep.subr.bf16.mxu1 %v6389_v62  ;;  %v6366_v62 = vld [vmem:[#allocation11 + $0x190] ss:$8 sps:$4 sm:$0xff]  }
 0xa47   :  { %5294 = vmatpush1.bf16.msra.mxu0 %v6294_v6  ;;  %5988 = vmatpush3.bf16.msra.mxu1 %v6390_v57  ;;  %v6371_v57 = vld [vmem:[#allocation11 + $0x1a4] ss:$8 sps:$4 sm:$0xff]  }
 0xa48   :  { %5295 = vmatprep.subr.bf16.mxu0 %v6299_v21  ;;  %5989 = vmatprep.subr.bf16.mxu1 %v6391_v36  ;;  %v6369_v36 = vld [vmem:[#allocation11 + $0x1a0] ss:$8 sps:$4 sm:$0xff]  }
 0xa4b   :  { %5296 = vmatpush1.bf16.msra.mxu0 %v6297_v7  ;;  %5990 = vmatpush3.bf16.msra.mxu1 %v6392_v2  ;;  %v6374_v2 = vld [vmem:[#allocation11 + $0x1b4] ss:$8 sps:$4 sm:$0xff]  }
 0xa4c   :  { %5297 = vmatprep.subr.bf16.mxu0 %v6302_v44  ;;  %5991 = vmatprep.subr.bf16.mxu1 %v6393_v10  ;;  %v6372_v10 = vld [vmem:[#allocation11 + $0x1b0] ss:$8 sps:$4 sm:$0xff]  }
 0xa4f   :  { %5298 = vmatpush1.bf16.msra.mxu0 %v6300_v63  ;;  %5992 = vmatpush3.bf16.msra.mxu1 %v6394_v59  ;;  %v6377_v59 = vld [vmem:[#allocation11 + $0x1c4] ss:$8 sps:$4 sm:$0xff]  }
 0xa50   :  { %5299 = vmatprep.subr.bf16.mxu0 %v6305_v30  ;;  %5993 = vmatprep.subr.bf16.mxu1 %v6395_v27  ;;  %v6375_v27 = vld [vmem:[#allocation11 + $0x1c0] ss:$8 sps:$4 sm:$0xff]  }
 0xa53   :  { %5300 = vmatpush1.bf16.msra.mxu0 %v6303_v28  ;;  %5994 = vmatpush3.bf16.msra.mxu1 %v6396_v11  ;;  %v6380_v11 = vld [vmem:[#allocation11 + $0x1d4] ss:$8 sps:$4 sm:$0xff]  }
 0xa54   :  { %5301 = vmatprep.subr.bf16.mxu0 %v6308_v34  ;;  %5995 = vmatprep.subr.bf16.mxu1 %v6397_v20  ;;  %v6378_v20 = vld [vmem:[#allocation11 + $0x1d0] ss:$8 sps:$4 sm:$0xff]  }
 0xa57   :  { %5302 = vmatpush1.bf16.msra.mxu0 %v6306_v56 }
 0xa58   :  { %5303 = vmatprep.subr.bf16.mxu0 %v6311_v18 }
 0xa5b   :  { %5304 = vmatpush1.bf16.msra.mxu0 %v6309_v29 }
 0xa5c   :  { %5305 = vmatprep.subr.bf16.mxu0 %v6314_v19 }
 0xa5f   :  { %5306 = vmatpush1.bf16.msra.mxu0 %v6312_v32 }
 0xa60   :  { %5307 = vmatprep.subr.bf16.mxu0 %v6317_v33 }
 0xa63   :  { %5308 = vmatpush1.bf16.msra.mxu0 %v6315_v35  ;;  %v6339_v35 = vld [vmem:[#allocation11 + $0x100] ss:$8 sps:$4 sm:$0xff]  }
 0xa64   :  { %5309 = vmatprep.subr.bf16.mxu0 %v6320_v37  ;;  %v6344_v37 = vld [vmem:[#allocation11 + $0x114] ss:$8 sps:$4 sm:$0xff]  }
 0xa67   :  { %5310 = vmatpush1.bf16.msra.mxu0 %v6318_v41  ;;  %v6342_v41 = vld [vmem:[#allocation11 + $0x110] ss:$8 sps:$4 sm:$0xff]  }
 0xa68   :  { %5311 = vmatprep.subr.bf16.mxu0 %v6323_v48  ;;  %v6347_v48 = vld [vmem:[#allocation11 + $0x124] ss:$8 sps:$4 sm:$0xff]  }
 0xa6b   :  { %5312 = vmatpush1.bf16.msra.mxu0 %v6321_v49  ;;  %v6345_v49 = vld [vmem:[#allocation11 + $0x120] ss:$8 sps:$4 sm:$0xff]  }
 0xa6c   :  { %5313 = vmatprep.subr.bf16.mxu0 %v6326_v23  ;;  %v6350_v23 = vld [vmem:[#allocation11 + $0x134] ss:$8 sps:$4 sm:$0xff]  }
 0xa6f   :  { %5314 = vmatpush1.bf16.msra.mxu0 %v6324_v15  ;;  %v6348_v15 = vld [vmem:[#allocation11 + $0x130] ss:$8 sps:$4 sm:$0xff]  }
 0xa70   :  { %5315 = vmatprep.subr.bf16.mxu0 %v6329_v40  ;;  %v6353_v40 = vld [vmem:[#allocation11 + $0x144] ss:$8 sps:$4 sm:$0xff]  }
 0xa73   :  { %5316 = vmatpush1.bf16.msra.mxu0 %v6327_v26  ;;  %v6351_v26 = vld [vmem:[#allocation11 + $0x140] ss:$8 sps:$4 sm:$0xff]  }
 0xa74   :  { %5317 = vmatprep.subr.bf16.mxu0 %v6332_v58  ;;  %v6356_v58 = vld [vmem:[#allocation11 + $0x154] ss:$8 sps:$4 sm:$0xff]  }
 0xa77   :  { %5318 = vmatpush1.bf16.msra.mxu0 %v6330_v50  ;;  %v6354_v50 = vld [vmem:[#allocation11 + $0x150] ss:$8 sps:$4 sm:$0xff]  }
 0xa78   :  { %5319 = vmatprep.subr.bf16.mxu0 %v6335_v39  ;;  %v6359_v39 = vld [vmem:[#allocation11 + $0x164] ss:$8 sps:$4 sm:$0xff]  }
 0xa7b   :  { %5320 = vmatpush1.bf16.msra.mxu0 %v6333_v51  ;;  %v6357_v51 = vld [vmem:[#allocation11 + $0x160] ss:$8 sps:$4 sm:$0xff]  }
 0xa7c   :  { %5321 = vmatprep.subr.bf16.mxu0 %v6338_v54  ;;  %v6362_v54 = vld [vmem:[#allocation11 + $0x174] ss:$8 sps:$4 sm:$0xff]  }
 0xa7f   :  { %5322 = vmatpush1.bf16.msra.mxu0 %v6336_v60  ;;  %v6360_v60 = vld [vmem:[#allocation11 + $0x170] ss:$8 sps:$4 sm:$0xff]  }
 0xa80   :  { %5334 = vmatprep.subr.bf16.mxu0 %v6341_v47  ;;  %v6365_v47 = vld [vmem:[#allocation11 + $0x184] ss:$8 sps:$4 sm:$0xff]  }
 0xb15   :  { %v4758_v5 = vpop.f32.mrb[16].mxu0  ;;  %v4844_v8 = vpop.f32.mrb[16].mxu1 }
 0xb16   :  { %v4875_v53 = vadd.f32 %v4858_v31, %v4758_v5  ;;  %v4877_v16 = vadd.f32 %v4866_v1, %v4844_v8  ;;  %v4760_v24 = vpop.f32.mrb[17].mxu0  ;;  %v4846_v25 = vpop.f32.mrb[17].mxu1  ;;  %v6401_v5 = vld [vmem:[#allocation11 + $0x2f0] ss:$8 sps:$4 sm:$0xff]  }
 0xb17   :  { %v4876_v43 = vadd.f32 %v4862_v55, %v4760_v24  ;;  %v4878_v45 = vadd.f32 %v4870_v14, %v4846_v25  ;;  %v4762_v61 = vpop.f32.mrb[18].mxu0  ;;  %v4848_v52 = vpop.f32.mrb[18].mxu1  ;;  %v6402_v8 = vld [vmem:[#allocation11 + $0x270] ss:$8 sps:$4 sm:$0xff]  }
 0xb18   :  { %v4879_v42 = vadd.f32 %v4858_v31, %v4762_v61  ;;  %v4881_v17 = vadd.f32 %v4866_v1, %v4848_v52  ;;  %v4764_v38 = vpop.f32.mrb[19].mxu0  ;;  %v4850_v4 = vpop.f32.mrb[19].mxu1  ;;  %v4883_v7 = vmax.f32 %v4875_v53, 0.0  ;;  %v4885_v44 = vmax.f32 %v4877_v16, 0.0  ;;  %v6381_v31 = vld [vmem:[#allocation11 + $0x1e0] ss:$8 sps:$4 sm:$0xff]  }
 0xb19   :  { %v4880_v6 = vadd.f32 %v4862_v55, %v4764_v38  ;;  %v4882_v21 = vadd.f32 %v4870_v14, %v4850_v4  ;;  %v4884_v28 = vmax.f32 %v4876_v43, 0.0  ;;  %v4886_v34 = vmax.f32 %v4878_v45, 0.0  ;;  %v6384_v1 = vld [vmem:[#allocation11 + $0x1f0] ss:$8 sps:$4 sm:$0xff]   ;;  %v6400_v14 = vld [vmem:[#allocation11 + $0x260] ss:$8 sps:$4 sm:$0xff]  }
 0xb1a   :  { %v4887_v63 = vmax.f32 %v4879_v42, 0.0  ;;  %v4889_v30 = vmax.f32 %v4881_v17, 0.0  ;;  %v6398_v55 = vld [vmem:[#allocation11 + $0x250] ss:$8 sps:$4 sm:$0xff]   ;;  %v6560_v53 = vmov 0.0  }
 0xb1b   :  { %v4888_v56 = vmax.f32 %v4880_v6, 0.0  ;;  %v4890_v18 = vmax.f32 %v4882_v21, 0.0  ;;  %5996 = vmatpush3.bf16.msra.mxu1 %v6398_v55  ;;  %v4959_v16 = vld [vmem:[#allocation13 + $0x14] sm:$0x3] }
 0xb1c   :  { %v4891_v29 = vpack.c.bf16 %v4887_v63, %v4883_v7  ;;  %v9348_v19 = vpack.c.bf16 %v4889_v30, %v4885_v44  ;;  %5997 = vmatprep.subr.bf16.mxu1 %v6399_v13  ;;  %v4964_v24 = vrot.slane %v4959_v16, %v10617_v46  ;;  %v4968_v25 = vrot.slane %v4959_v16, %v10619_v22  ;;  %v6404_v46 = vld [vmem:[#allocation11 + $0x310] ss:$8 sps:$4 sm:$0xff]   ;;  %v6405_v22 = vld [vmem:[#allocation11 + $0x320] ss:$8 sps:$4 sm:$0xff]  }
 0xb1d   :  { %v4892_v32 = vpack.c.bf16 %v4888_v56, %v4884_v28  ;;  %v4894_v33 = vpack.c.bf16 %v4890_v18, %v4886_v34  ;;  %v6403_v28 = vld [vmem:[#allocation11 + $0x300] ss:$8 sps:$4 sm:$0xff]   ;;  %v6406_v34 = vld [vmem:[#allocation11 + $0x330] ss:$8 sps:$4 sm:$0xff]  }
 0xb1e   :  { %v6407_v56 = vld [vmem:[#allocation11 + $0x340] ss:$8 sps:$4 sm:$0xff]   ;;  %v6408_v18 = vld [vmem:[#allocation11 + $0x350] ss:$8 sps:$4 sm:$0xff]  }
 0xb1f   :  { %5323 = vmatprep.mubr.bf16.mxu0 %v4892_v32  ;;  %5998 = vmatpush3.bf16.msra.mxu1 %v6400_v14 }
 0xb20   :  { %5324 = vmatmul.mubr.bf16.vlgmr.msra.gmra.mrb[20].mxu0 %v4891_v29  ;;  %5999 = vmatprep.subr.bf16.mxu1 %v6401_v5  ;;  %v6409_v29 = vld [vmem:[#allocation11 + $0x360] ss:$8 sps:$4 sm:$0xff]  }
 0xb21   :  { %5335 = vmatpush1.bf16.msra.mxu0 %v6339_v35  ;;  %5366 = vmatprep.mubr.bf16.mxu0 %v4894_v33  ;;  %v5944_v33 = vld [vmem:[#allocation13 + $0x16] ss:$0 sm:$0xff] }
 0xb22   :  { %5336 = vmatprep.subr.bf16.mxu0 %v6344_v37 }
 0xb23   :  { %6000 = vmatpush3.bf16.msra.mxu1 %v6402_v8 }
 0xb24   :  { %6025 = vmatprep.subr.bf16.mxu1 %v6560_v53 }
 0xb25   :  { %5337 = vmatpush1.bf16.msra.mxu0 %v6342_v41 }
 0xb26   :  { %5338 = vmatprep.subr.bf16.mxu0 %v6347_v48 }
 0xb29   :  { %5339 = vmatpush1.bf16.msra.mxu0 %v6345_v49 }
 0xb2a   :  { %5340 = vmatprep.subr.bf16.mxu0 %v6350_v23 }
 0xb2d   :  { %5341 = vmatpush1.bf16.msra.mxu0 %v6348_v15 }
 0xb2e   :  { %5342 = vmatprep.subr.bf16.mxu0 %v6353_v40 }
 0xb31   :  { %5343 = vmatpush1.bf16.msra.mxu0 %v6351_v26 }
 0xb32   :  { %5344 = vmatprep.subr.bf16.mxu0 %v6356_v58  ;;  %v6411_v58 = vld [vmem:[#allocation11 + $0x380] ss:$8 sps:$4 sm:$0xff]  }
 0xb35   :  { %5345 = vmatpush1.bf16.msra.mxu0 %v6354_v50 }
 0xb36   :  { %5346 = vmatprep.subr.bf16.mxu0 %v6359_v39  ;;  %v6412_v39 = vld [vmem:[#allocation11 + $0x390] ss:$8 sps:$4 sm:$0xff]  }
 0xb39   :  { %5347 = vmatpush1.bf16.msra.mxu0 %v6357_v51  ;;  %v6413_v51 = vld [vmem:[#allocation11 + $0x3a0] ss:$8 sps:$4 sm:$0xff]  }
 0xb3a   :  { %5348 = vmatprep.subr.bf16.mxu0 %v6362_v54  ;;  %v6414_v54 = vld [vmem:[#allocation11 + $0x3b0] ss:$8 sps:$4 sm:$0xff]  }
 0xb3d   :  { %5349 = vmatpush1.bf16.msra.mxu0 %v6360_v60  ;;  %v6415_v60 = vld [vmem:[#allocation11 + $0x3c0] ss:$8 sps:$4 sm:$0xff]  }
 0xb3e   :  { %5350 = vmatprep.subr.bf16.mxu0 %v6365_v47  ;;  %v6416_v47 = vld [vmem:[#allocation11 + $0x3d0] ss:$8 sps:$4 sm:$0xff]  }
 0xb41   :  { %5351 = vmatpush1.bf16.msra.mxu0 %v6363_v0  ;;  %v6417_v0 = vld [vmem:[#allocation11 + $0x3e0] ss:$8 sps:$4 sm:$0xff]  }
 0xb42   :  { %5352 = vmatprep.subr.bf16.mxu0 %v6368_v3  ;;  %v6418_v3 = vld [vmem:[#allocation11 + $0x3f0] ss:$8 sps:$4 sm:$0xff]  }
 0xb45   :  { %5353 = vmatpush1.bf16.msra.mxu0 %v6366_v62  ;;  %v5961_v62 = vld [vmem:[#allocation13 + $0x17] ss:$0 sm:$0xff] }
 0xb46   :  { %5354 = vmatprep.subr.bf16.mxu0 %v6371_v57 }
 0xb49   :  { %5355 = vmatpush1.bf16.msra.mxu0 %v6369_v36 }
 0xb4a   :  { %5356 = vmatprep.subr.bf16.mxu0 %v6374_v2 }
 0xb4d   :  { %5357 = vmatpush1.bf16.msra.mxu0 %v6372_v10 }
 0xb4e   :  { %5358 = vmatprep.subr.bf16.mxu0 %v6377_v59 }
 0xb51   :  { %5359 = vmatpush1.bf16.msra.mxu0 %v6375_v27 }
 0xb52   :  { %5360 = vmatprep.subr.bf16.mxu0 %v6380_v11 }
 0xb55   :  { %5361 = vmatpush1.bf16.msra.mxu0 %v6378_v20 }
 0xb56   :  { %5362 = vmatprep.subr.bf16.mxu0 %v6383_v9 }
 0xb59   :  { %5363 = vmatpush1.bf16.msra.mxu0 %v6381_v31  ;;  %v5970_v31 = vld [vmem:[#allocation13 + $0x18] ss:$0 sm:$0xff] }
 0xb5a   :  { %5364 = vmatprep.subr.bf16.mxu0 %v6386_v12 }
 0xb5d   :  { %5365 = vmatpush1.bf16.msra.mxu0 %v6384_v1 }
 0xb60   :  { %5367 = vmatmul.mubr.bf16.vlgmr.msra.gmra.mrb[20].mxu0 %v9348_v19  ;;  %v6410_v19 = vld [vmem:[#allocation11 + $0x370] ss:$8 sps:$4 sm:$0xff]  }
 0xc33   :  { %v5368_v43 = vpop.f32.mrb[20].mxu0 }
 0xc34   :  { %v6065_v45 = vadd.f32 %v5368_v43, %v4964_v24  ;;  %v5370_v61 = vpop.f32.mrb[21].mxu0 }
 0xc35   :  { %v6066_v52 = vadd.f32 %v5370_v61, %v4968_v25  ;;  %v5372_v42 = vpop.f32.mrb[22].mxu0 }
 0xc36   :  { %v6067_v17 = vadd.f32 %v5372_v42, %v4964_v24  ;;  %v5374_v38 = vpop.f32.mrb[23].mxu0  ;;  %v5377_v6 = vmax.f32 %v6065_v45, 0.0 }
 0xc37   :  { %v6068_v4 = vadd.f32 %v5374_v38, %v4968_v25  ;;  %v5378_v7 = vmax.f32 %v6066_v52, 0.0 }
 0xc38   :  { %v5379_v21 = vmax.f32 %v6067_v17, 0.0 }
 0xc39   :  { %v5380_v44 = vmax.f32 %v6068_v4, 0.0 }
 0xc3a   :  { %v5381_v63 = vpack.c.bf16 %v5379_v21, %v5377_v6 }
 0xc3b   :  { %v5382_v30 = vpack.c.bf16 %v5380_v44, %v5378_v7 }
 0xc3d   :  { %5550 = vmatprep.mubr.bf16.mxu1 %v5382_v30 }
 0xc3e   :  { %5551 = vmatmul.mubr.bf16.vlgmr.msra.gmra.mrb[20].mxu1 %v5381_v63 }
 0xc3f   :  { %6026 = vmatpush3.bf16.msra.mxu1 %v6403_v28  ;;  %6041 = vmatprep.mubr.msk.bf16.mxu1 %vm6561_vm0, %v6560_v53 }
 0xc40   :  { %6027 = vmatprep.subr.bf16.mxu1 %v6560_v53 }
 0xc43   :  { %6028 = vmatpush3.bf16.msra.mxu1 %v6404_v46 }
 0xc44   :  { %6029 = vmatprep.subr.bf16.mxu1 %v6560_v53 }
 0xc47   :  { %6030 = vmatpush3.bf16.msra.mxu1 %v6405_v22 }
 0xc48   :  { %6031 = vmatprep.subr.bf16.mxu1 %v6560_v53 }
 0xc4b   :  { %6032 = vmatpush3.bf16.msra.mxu1 %v6406_v34 }
 0xc4c   :  { %6033 = vmatprep.subr.bf16.mxu1 %v6560_v53 }
 0xc4f   :  { %6034 = vmatpush3.bf16.msra.mxu1 %v6407_v56 }
 0xc50   :  { %6035 = vmatprep.subr.bf16.mxu1 %v6560_v53 }
 0xc53   :  { %6036 = vmatpush3.bf16.msra.mxu1 %v6408_v18 }
 0xc54   :  { %6037 = vmatprep.subr.bf16.mxu1 %v6560_v53 }
 0xc57   :  { %6038 = vmatpush3.bf16.msra.mxu1 %v6409_v29 }
 0xc58   :  { %6039 = vmatprep.subr.bf16.mxu1 %v6560_v53 }
 0xc5b   :  { %6040 = vmatpush3.bf16.msra.mxu1 %v6410_v19 }
 0xc5c   :  { %6045 = vmatprep.subr.bf16.mxu1 %v6560_v53 }
 0xd11   :  { %v6001_v32 = vpop.f32.mrb[20].mxu1 }
 0xd12   :  { %v6002_v35 = vpop.f32.mrb[21].mxu1 }
 0xd13   :  { %v6003_v37 = vadd.f32 %v6002_v35, %v6001_v32  ;;  %v6004_v41 = vpop.f32.mrb[22].mxu1 }
 0xd14   :  { %v6005_v48 = vpop.f32.mrb[23].mxu1 }
 0xd15   :  { %v5553_v49 = vadd.f32 %v6003_v37, %v5944_v33  ;;  %v6006_v23 = vadd.f32 %v6005_v48, %v6004_v41 }
 0xd17   :  { %v5556_v15 = vadd.f32 %v6006_v23, %v5944_v33  ;;  %v5559_v40 = vmax.f32 %v5553_v49, 0.0 }
 0xd19   :  { %v5560_v26 = vmax.f32 %v5556_v15, 0.0 }
 0xd1b   :  { %v5561_v50 = vpack.c.bf16 %v5560_v26, %v5559_v40 }
 0xd1d   :  { %6042 = vmatmul.mubr.bf16.vlgmr.msra.gmra.mrb[24].mxu1 %v5561_v50 }
 0xd1e   :  { %6046 = vmatpush3.bf16.msra.mxu1 %v6411_v58  ;;  %6061 = vmatprep.mubr.msk.bf16.mxu1 %vm6561_vm0, %v6560_v53 }
 0xd1f   :  { %6047 = vmatprep.subr.bf16.mxu1 %v6560_v53 }
 0xd22   :  { %6048 = vmatpush3.bf16.msra.mxu1 %v6412_v39 }
 0xd23   :  { %6049 = vmatprep.subr.bf16.mxu1 %v6560_v53 }
 0xd26   :  { %6050 = vmatpush3.bf16.msra.mxu1 %v6413_v51 }
 0xd27   :  { %6051 = vmatprep.subr.bf16.mxu1 %v6560_v53 }
 0xd2a   :  { %6052 = vmatpush3.bf16.msra.mxu1 %v6414_v54 }
 0xd2b   :  { %6053 = vmatprep.subr.bf16.mxu1 %v6560_v53 }
 0xd2e   :  { %6054 = vmatpush3.bf16.msra.mxu1 %v6415_v60 }
 0xd2f   :  { %6055 = vmatprep.subr.bf16.mxu1 %v6560_v53 }
 0xd32   :  { %6056 = vmatpush3.bf16.msra.mxu1 %v6416_v47 }
 0xd33   :  { %6057 = vmatprep.subr.bf16.mxu1 %v6560_v53 }
 0xd36   :  { %6058 = vmatpush3.bf16.msra.mxu1 %v6417_v0 }
 0xd37   :  { %6059 = vmatprep.subr.bf16.mxu1 %v6560_v53 }
 0xd3a   :  { %6060 = vmatpush3.bf16.msra.mxu1 %v6418_v3 }
 0xdf0   :  { %v5667_v57 = vpop.f32.mrb[24].mxu1 }
 0xdf1   :  { %v5668_v36 = vadd.f32 %v5961_v62, %v5667_v57  ;;  %v6043_v2 = vpop.f32.mrb[25].mxu1 }
 0xdf2   :  { %v5670_v10 = vpop.f32.mrb[26].mxu1 }
 0xdf3   :  { %v5671_v59 = vadd.f32 %v5961_v62, %v5670_v10  ;;  %v6044_v27 = vpop.f32.mrb[27].mxu1  ;;  %v5674_v11 = vmax.f32 %v5668_v36, 0.0 }
 0xdf5   :  { %v5675_v20 = vmax.f32 %v5671_v59, 0.0 }
 0xdf7   :  { %v5676_v9 = vpack.c.bf16 %v5675_v20, %v5674_v11 }
 0xdf9   :  { %6062 = vmatmul.mubr.bf16.vlgmr.msra.gmra.mrb[28].mxu1 %v5676_v9 }
 0xecc   :  { %v5782_v12 = vpop.f32.mrb[28].mxu1 }
 0xecd   :  { %v5783_v1 = vadd.f32 %v5970_v31, %v5782_v12  ;;  %v6063_v55 = vpop.f32.mrb[29].mxu1 }
 0xece   :  { %v5785_v13 = vpop.f32.mrb[30].mxu1 }
 0xecf   :  { %5789 = vst [vmem:[#allocation14] sm:$0xff] %v5783_v1  ;;  %v5786_v14 = vadd.f32 %v5970_v31, %v5785_v13  ;;  %v6064_v5 = vpop.f32.mrb[31].mxu1 }
 0xed1   :  { %5790 = vst [vmem:[#allocation14 + $0x8] sm:$0xff] %v5786_v14 }
 0xed2   :  { %6496 = shalt.err (!%p6493_p0)
}
 0xed3   :  { %s6497_s25 = scalar_lea.hbm %s9394_s6, 256 }
 0xed4   :  { %p6498_p1 = scmp.ne.s32.totalorder %s9394_s6, %s6497_s25  ;;  %p6501_p2 = scmp.lt.u32.totalorder %s6497_s25, %s9394_s6 }
 0xed6   :  { %p6503_p3 = pnand %p6501_p2, %p6498_p1 }
 0xed8   :  { %6506 = shalt.err (!%p6503_p3)
}
 0xed9   :  { %5802 = dma.vmem_to_hbm [thread:$0]  %s5797_s19, 256, %s9394_s6, [#allocation10], %s6530_s7, %s6530_s7, %s6531_s8  }
 0xeda   :  { %6527 = dma.done.wait [#allocation10], 256  }
 0xedb   :  { %6528 = vsyncadd [#allocation10], 4294967040 }
 0xedc   :  { %5806 = vsyncpa [#allocation9], 1 }
 0xedd   :  { %5807 = vsyncpa [#allocation12], 1 }
 0xede   :  { %5808 = vsyncpa [#allocation10], 1 }
 0xedf   :  { %5809 = vsyncmov [#allocation5] }
 0xee2   :  { %s5810_s9 = vpop.sfrf %5809 }
 0xee3   :  { %p5979_p4 = scmp.ne.s32.totalorder %s5810_s9, 0 }
 0xee5   :  { %5814 = shalt.err (%p5979_p4)  }
 0xee6   :  { %5816 = vsyncmov [#allocation5 + $0x1] }
 0xee9   :  { %s5817_s10 = vpop.sfrf %5816 }
 0xeea   :  { %p5980_p5 = scmp.ne.s32.totalorder %s5817_s10, 0 }
 0xeec   :  { %5821 = shalt.err (%p5980_p5)  }
 0xeed   :  { %5822 = vsyncmov [#allocation6] }
 0xef0   :  { %s5823_s2 = vpop.sfrf %5822 }
 0xef1   :  { %p5981_p6 = scmp.ne.s32.totalorder %s5823_s2, 0 }
 0xef3   :  { %5827 = shalt.err (%p5981_p6)  }
 0xef4   :  { %5829 = vsyncmov [#allocation6 + $0x1] }
 0xef7   :  { %s5830_s11 = vpop.sfrf %5829 }
 0xef8   :  { %p5982_p7 = scmp.ne.s32.totalorder %s5830_s11, 0 }
 0xefa   :  { %5834 = shalt.err (%p5982_p7)  }
 0xefb   :  { %5835 = vsyncmov [#allocation7] }
 0xefe   :  { %s5836_s6 = vpop.sfrf %5835 }
 0xeff   :  { %p5983_p8 = scmp.ne.s32.totalorder %s5836_s6, 0 }
 0xf01   :  { %5840 = shalt.err (%p5983_p8)  }
 0xf02   :  { %5842 = vsyncmov [#allocation7 + $0x1] }
 0xf05   :  { %s5843_s7 = vpop.sfrf %5842 }
 0xf06   :  { %p5984_p9 = scmp.ne.s32.totalorder %s5843_s7, 0 }
 0xf08   :  { %5847 = shalt.err (%p5984_p9)  }

</bundles_post_ra>
